<compile_context>
chip_gen: v5e
topology: v5e:2x2
jax: 0.10.0
libtpu: 0.0.40
codegen_flags: <defaults>
</compile_context>

<pallas_src>
import functools

import numpy as np
import jax
import jax.numpy as jnp
from jax.experimental import pallas as pl
from jax.experimental.pallas import tpu as pltpu

# --- token / config constants (gen_opts equivalents) -------------------------
PAD, UNK, SOS, EOS = 0, 1, 2, 3
MAX_DECODING_STEPS = 8          # gen_opts.max_decoding_steps
MAX_VOCAB_SIZE = 32             # gen_opts.max_vocab_size  (V)
EMB_DIM = 16
HIDDEN = 32

_vmem = functools.partial(pl.BlockSpec, memory_space=pltpu.MemorySpace.VMEM)


# =============================== fused kernel ================================
def _generator_kernel(gx_ref, mask_ref, id_oh_ref, enc_wh_ref, ct0_ref,
                      wg_ref, wlog_ref, wdec_ref, wenc_bd_ref, vblock_ref,
                      expand_ref, summat_ref,
                      dist_ref, tok_ref,
                      enc_ref, encfeat_ref, cat_ref):
    """Encoder LSTM + T-step greedy pointer-generator decode, single launch."""
    S, Bp, G4 = gx_ref.shape
    H = G4 // 4
    V = wg_ref.shape[0] - 2 * H
    T, _, VP = dist_ref.shape
    f32 = jnp.float32

    def lstm_step(gates, c_prev):
        # gate columns pre-permuted to [i | f | o | g] -> 2 activation pushes
        sig = jax.nn.sigmoid(gates[:, :3 * H])
        g = jnp.tanh(gates[:, 3 * H:])
        i, f, o = sig[:, :H], sig[:, H:2 * H], sig[:, 2 * H:3 * H]
        c_new = f * c_prev + i * g
        return o * jnp.tanh(c_new), c_new

    def pack_cat(oneh_v, ct_v, h_v):
        # fused-matmul input [onehot | ct | h] built with static lane stores
        cat_ref[:, :V] = oneh_v
        cat_ref[:, V:V + H] = ct_v
        cat_ref[:, V + H:] = h_v
        return cat_ref[...]

    # ------------------------------ encoder ----------------------------------
    # Input projection (x @ Wx + b) is precomputed in the wrapper (gx_ref);
    # each step is one MXU push on the serial recurrence.
    h = jnp.zeros((Bp, H), f32)
    c = jnp.zeros((Bp, H), f32)
    for t in range(S):                                   # fully unrolled
        gates = gx_ref[t] + jnp.dot(h, enc_wh_ref[...],
                                    preferred_element_type=f32)
        h, c = lstm_step(gates, c)
        enc_ref[:, t * H:(t + 1) * H] = h                # lane-dense (Bp, S*H)

    # loop-invariant attention features: block-diag(att_wenc) in one push
    encfeat_ref[...] = jnp.dot(enc_ref[...], wenc_bd_ref[...],
                               preferred_element_type=f32)

    # ----------------------- decoder state init ------------------------------
    ct = ct0_ref[...]                                    # (Bp, H)
    vocab_iota = jax.lax.broadcasted_iota(jnp.int32, (Bp, V), 1)
    lane_iota_i = jax.lax.broadcasted_iota(jnp.int32, (1, VP), 1)
    lane_iota_f = lane_iota_i.astype(f32)
    pgen_neg = jnp.where(lane_iota_i == VP - 1, -2e9, 0.0).astype(f32)
    oneh = (vocab_iota == SOS).astype(f32)               # (Bp, V)
    st = None                                            # sum_temporal_srcs

    # --------------------------- greedy decode -------------------------------
    for t in range(T):                                   # fully unrolled
        # decoder LSTM: ONE fused gate matmul (onehot folds x_emb@Wx + bias)
        gates = jnp.dot(pack_cat(oneh, ct, h), wg_ref[...],
                        preferred_element_type=f32)      # (Bp, 4H)
        h, c = lstm_step(gates, c)

        # intra-temporal encoder attention (Paulus et al. 2017), lane-dense.
        # TODO(synk): exp() is unstabilized (matches reference).
        df = jnp.dot(h, wdec_ref[...], preferred_element_type=f32)   # (Bp,S*H)
        e = jnp.dot(jnp.tanh(encfeat_ref[...] + df), vblock_ref[...],
                    preferred_element_type=f32)          # (Bp, S)
        exp_e = jnp.exp(e)
        if t == 0:
            e_temp = exp_e
            st = exp_e
        else:
            e_temp = exp_e / st
            st = st + exp_e
        masked = e_temp * mask_ref[...]                  # (Bp, S)
        attn = masked / (jnp.sum(masked, axis=1, keepdims=True) + 1e-12)

        # context vector via two MXU pushes on the lane-dense encoder states
        attn_exp = jnp.dot(attn, expand_ref[...],
                           preferred_element_type=f32)   # (Bp, S*H)
        ct = jnp.dot(attn_exp * enc_ref[...], summat_ref[...],
                     preferred_element_type=f32)         # (Bp, H)

        # fused vocab logits + p_gen: p_gen rides in dead pad lane VP-1,
        # bias (incl. -1e9 on pad columns) folded into the one-hot rows.
        raw = jnp.dot(pack_cat(oneh, ct, h), wlog_ref[...],
                      preferred_element_type=f32)        # (Bp, VP)
        p_gen = jax.nn.sigmoid(raw[:, VP - 1:VP])        # (Bp, 1)
        logits = raw + pgen_neg                          # kill p_gen lane
        logits = logits - jnp.max(logits, axis=1, keepdims=True)
        ex = jnp.exp(logits)
        vocab_dist = ex / jnp.sum(ex, axis=1, keepdims=True)

        # pointer/copy scatter into the lane-padded extended vocab
        copy_dist = attn[:, 0:1] * id_oh_ref[0]
        for s in range(1, S):
            copy_dist = copy_dist + attn[:, s:s + 1] * id_oh_ref[s]

        dist = p_gen * vocab_dist + (1.0 - p_gen) * copy_dist
        dist_ref[t] = dist

        # greedy argmax (lowest index on ties), fed back as next input token
        maxv = jnp.max(dist, axis=1, keepdims=True)
        tok = jnp.min(jnp.where(dist == maxv, lane_iota_f, float(VP)),
                      axis=1, keepdims=True).astype(jnp.int32)   # (Bp, 1)
        tok_ref[t] = tok
        x_next = jnp.where(tok >= V, UNK, tok)           # OOV -> UNK
        oneh = (x_next == vocab_iota).astype(f32)        # (Bp, V)


# ============================ device-side wrapper =============================
@functools.partial(jax.jit, static_argnums=(5,))
def _generator_device(params, src_seqs, enc_padding_mask, ct_e,
                      enc_batch_extend_vocab, extend_vocab_size):
    S, B = src_seqs.shape
    E, H, V, T = EMB_DIM, HIDDEN, MAX_VOCAB_SIZE, MAX_DECODING_STEPS
    Bp = max(8, ((B + 7) // 8) * 8)                       # sublane-pad batch
    # lane-pad vocab to a multiple of 128 with >= 1 dead column (p_gen lane)
    VP = ((extend_vocab_size + 128) // 128) * 128
    SH = S * H
    f32 = jnp.float32

    def pad_axis(x, axis, value):
        if Bp == B:
            return x
        pads = [(0, 0)] * x.ndim
        pads[axis] = (0, Bp - B)
        return jnp.pad(x, pads, constant_values=value)

    emb = params['embedding'].astype(f32)                 # (V, E)

    # gate-column permutation  i,f,g,o -> i,f,o,g  (sigmoid block contiguous)
    perm = np.concatenate([np.arange(0, 2 * H),
                           np.arange(3 * H, 4 * H),
                           np.arange(2 * H, 3 * H)])
    enc_wx = params['enc_wx'][:, perm]
    enc_wh = params['enc_wh'][:, perm].astype(f32)
    enc_b = params['enc_b'][:, perm]
    dec_wxc = params['dec_wx'][:, perm]
    dec_wx, dec_wc = dec_wxc[:E], dec_wxc[E:]
    dec_wh = params['dec_wh'][:, perm]
    dec_b = params['dec_b'][:, perm]

    # hoisted encoder input projection (one big matmul, off the recurrence)
    src_emb = jnp.take(emb, src_seqs.astype(jnp.int32), axis=0)      # (S,B,E)
    gx = jnp.einsum('sbe,eg->sbg', src_emb, enc_wx) + enc_b          # (S,B,4H)
    gx = pad_axis(gx, 1, 0.0).astype(f32)                            # (S,Bp,4H)

    mask = pad_axis(enc_padding_mask.astype(f32), 0, 1.0)            # (Bp,S)
    ids = pad_axis(enc_batch_extend_vocab.astype(jnp.int32), 0, 0).T  # (S,Bp)
    id_onehot = jax.nn.one_hot(ids, VP, dtype=f32)                   # (S,Bp,VP)
    ct0 = pad_axis(ct_e.astype(f32), 0, 0.0)                         # (Bp,H)

    # fused decoder-gate weight: rows [token-onehot | ct | h]
    Wg = jnp.concatenate([emb @ dec_wx + dec_b, dec_wc, dec_wh],
                         axis=0).astype(f32)                          # (V+2H,4H)

    # attention block matrices (loop-invariant, MXU-friendly)
    eyeS = jnp.eye(S, dtype=f32)
    eyeH = jnp.eye(H, dtype=f32)
    wenc_bd = jnp.kron(eyeS, params['att_wenc'].astype(f32))          # (SH,SH)
    wdec_tile = jnp.tile(params['att_wdec'].astype(f32), (1, S))      # (H,SH)
    vblock = jnp.kron(eyeS, params['att_v'].astype(f32).reshape(H, 1))  # (SH,S)
    expand = jnp.kron(eyeS, jnp.ones((1, H), f32))                    # (S,SH)
    summat = jnp.kron(jnp.ones((S, 1), f32), eyeH)                    # (SH,H)

    # fused logits + p_gen weight; columns: [0:V vocab | V:VP-1 pad(-1e9) | VP-1 p_gen]
    NPAD = VP - 1 - V
    wvh, wvc, bv = params['out_wvh'], params['out_wvc'], params['out_bv']
    h_block = jnp.concatenate(
        [wvh, jnp.zeros((H, NPAD), f32), params['pg_wh'].T], axis=1)
    c_block = jnp.concatenate(
        [wvc, jnp.zeros((H, NPAD), f32), params['pg_wc'].T], axis=1)
    x_block = jnp.concatenate(
        [jnp.broadcast_to(bv, (V, V)),
         jnp.full((V, NPAD), -1e9, f32),
         emb @ params['pg_wx'].T + params['pg_b']], axis=1)
    Wlog = jnp.concatenate([x_block, c_block, h_block], axis=0).astype(f32)

    dists, toks = pl.pallas_call(
        _generator_kernel,
        out_shape=(jax.ShapeDtypeStruct((T, Bp, VP), f32),
                   jax.ShapeDtypeStruct((T, Bp, 1), jnp.int32)),
        in_specs=[_vmem()] * 12,
        out_specs=(_vmem(), _vmem()),
        scratch_shapes=[
            pltpu.VMEM((Bp, SH), f32),        # lane-dense encoder states
            pltpu.VMEM((Bp, SH), f32),        # encoder attention features
            pltpu.VMEM((Bp, V + 2 * H), f32),  # [onehot|ct|h] staging buffer
        ],
    )(gx, mask, id_onehot, enc_wh, ct0, Wg, Wlog,
      wdec_tile, wenc_bd, vblock, expand, summat)

    dists = dists[:, :B, :extend_vocab_size]                          # (T,B,Vext)
    toks = toks[:, :B, 0]                                             # (T,B)

    # EOS bookkeeping on device (first EOS step + 1, else T)
    is_eos = toks == EOS
    first_eos = jnp.argmax(is_eos, axis=0)
    out_lens = jnp.where(jnp.any(is_eos, axis=0), first_eos + 1, T).astype(jnp.int32)
    return dists, toks, out_lens


# ============================ Generator.forward ==============================
def generator_forward(params, src_seqs, src_lens, enc_padding_mask, ct_e,
                      extra_zeros, enc_batch_extend_vocab, extend_vocab_size,
                      enable_dropout=True, state=None):
    # TODO(synk): Monte-Carlo `state` path, dropout, prev_s intra-decoder
    #             attention, packed variable-length encoding not modeled.
    del src_lens, extra_zeros, enable_dropout, state
    dists, toks, out_lens = _generator_device(
        params, src_seqs, enc_padding_mask, ct_e, enc_batch_extend_vocab,
        int(extend_vocab_size))

    # Single host sync: the module's return shapes depend on max_out_len.
    # (The reference's early `break` only skips steps that truncation removes
    # anyway, so the fixed-T on-device loop is equivalent after truncation.)
    max_out_len = int(out_lens.max())
    dec_outs = jnp.transpose(dists[:max_out_len], (1, 0, 2))          # (B,L,Vext)
    out_seqs = jnp.transpose(toks[:max_out_len], (1, 0))              # (B,L)
    seq_mask = jnp.arange(max_out_len)[None, :] < out_lens[:, None]
    out_seqs = jnp.where(seq_mask, out_seqs, PAD)
    # (batch, max_out_len), (batch,), (batch, max_out_len, extend_vocab_size)
    return out_seqs, out_lens, dec_outs


# ================================== main =====================================
if __name__ == "__main__":
    B, S = 2, 8
    V, E, H = MAX_VOCAB_SIZE, EMB_DIM, HIDDEN
    n_extra = 4
    Vext = V + n_extra

    key = jax.random.PRNGKey(0)
    keys = jax.random.split(key, 20)

    def init(k, shape, scale=0.1):
        return jax.random.normal(k, shape, jnp.float32) * scale

    params = {
        'embedding': init(keys[0], (V, E)),
        # encoder LSTM
        'enc_wx': init(keys[1], (E, 4 * H)),
        'enc_wh': init(keys[2], (H, 4 * H)),
        'enc_b':  jnp.zeros((1, 4 * H), jnp.float32),
        # decoder LSTM (input = [x_emb ; ct_e])
        'dec_wx': init(keys[3], (E + H, 4 * H)),
        'dec_wh': init(keys[4], (H, 4 * H)),
        'dec_b':  jnp.zeros((1, 4 * H), jnp.float32),
        # intra-temporal encoder attention
        'att_wenc': init(keys[5], (H, H)),
        'att_wdec': init(keys[6], (H, H)),
        'att_v':    init(keys[7], (1, H)),
        # vocab projection + pointer gate
        'out_wvh': init(keys[8], (H, V)),
        'out_wvc': init(keys[9], (H, V)),
        'out_bv':  jnp.zeros((1, V), jnp.float32),
        'pg_wh':   init(keys[10], (1, H)),
        'pg_wc':   init(keys[11], (1, H)),
        'pg_wx':   init(keys[12], (1, E)),
        'pg_b':    jnp.zeros((1, 1), jnp.float32),
    }

    src_seqs = jax.random.randint(keys[13], (S, B), 4, V).astype(jnp.int32)
    src_lens = [S] * B
    enc_padding_mask = jnp.ones((B, S), jnp.float32)
    ct_e = jnp.zeros((B, H), jnp.float32)
    extra_zeros = jnp.zeros((B, n_extra), jnp.float32)
    enc_batch_extend_vocab = jax.random.randint(
        keys[14], (B, S), 4, Vext).astype(jnp.int32)

    out_seqs, out_lens, dec_outs = generator_forward(
        params, src_seqs, src_lens, enc_padding_mask, ct_e,
        extra_zeros, enc_batch_extend_vocab, Vext)

    jax.block_until_ready((out_seqs, out_lens, dec_outs))
    assert out_seqs.shape[0] == B
    assert dec_outs.shape[0] == B and dec_outs.shape[2] == Vext
    assert out_lens.shape == (B,)
    print("KERNEL_OK")
</pallas_src>

<mosaic_0001>
module attributes {stable_mosaic.version = 11 : i64} {
  func.func @_generator_kernel(%arg0: memref<8x8x128xf32, #tpu.memory_space<vmem>>, %arg1: memref<8x8xf32, #tpu.memory_space<vmem>>, %arg2: memref<8x8x128xf32, #tpu.memory_space<vmem>>, %arg3: memref<32x128xf32, #tpu.memory_space<vmem>>, %arg4: memref<8x32xf32, #tpu.memory_space<vmem>>, %arg5: memref<96x128xf32, #tpu.memory_space<vmem>>, %arg6: memref<96x128xf32, #tpu.memory_space<vmem>>, %arg7: memref<32x256xf32, #tpu.memory_space<vmem>>, %arg8: memref<256x256xf32, #tpu.memory_space<vmem>>, %arg9: memref<256x8xf32, #tpu.memory_space<vmem>>, %arg10: memref<8x256xf32, #tpu.memory_space<vmem>>, %arg11: memref<256x32xf32, #tpu.memory_space<vmem>>, %arg12: memref<8x8x128xf32, #tpu.memory_space<vmem>>, %arg13: memref<8x8x1xi32, #tpu.memory_space<vmem>>, %arg14: memref<8x256xf32, #tpu.memory_space<vmem>>, %arg15: memref<8x256xf32, #tpu.memory_space<vmem>>, %arg16: memref<8x96xf32, #tpu.memory_space<vmem>>) attributes {dimension_semantics = [], scalar_prefetch = 0 : i64, scratch_operands = 3 : i64, tpu.core_type = #tpu.core_type<tc>} {
    %cst = arith.constant 0.000000e+00 : f32
    %0 = vector.broadcast %cst : f32 to vector<8x32xf32>
    %cst_0 = arith.constant 0.000000e+00 : f32
    %1 = vector.broadcast %cst_0 : f32 to vector<8x32xf32>
    %c0 = arith.constant 0 : index
    %c0_1 = arith.constant 0 : index
    %c0_2 = arith.constant 0 : index
    %2 = vector.load %arg0[%c0, %c0_1, %c0_2] : memref<8x8x128xf32, #tpu.memory_space<vmem>>, vector<1x8x128xf32>
    %3 = vector.shape_cast %2 : vector<1x8x128xf32> to vector<8x128xf32>
    %c0_3 = arith.constant 0 : index
    %c0_4 = arith.constant 0 : index
    %4 = vector.load %arg3[%c0_3, %c0_4] : memref<32x128xf32, #tpu.memory_space<vmem>>, vector<32x128xf32>
    %cst_5 = arith.constant dense<0.000000e+00> : vector<8x128xf32>
    %5 = tpu.matmul %0, %4, %cst_5 {dimension_numbers = #tpu.dot_dimension_numbers<[1], [0], [0], [1], [0, 0, 1, 1], [], []>} : vector<8x32xf32>, vector<32x128xf32>, vector<8x128xf32> -> vector<8x128xf32>
    %6 = arith.addf %3, %5 : vector<8x128xf32>
    %7 = vector.extract_strided_slice %6 {offsets = [0, 0], sizes = [8, 96], strides = [1, 1]} : vector<8x128xf32> to vector<8x96xf32>
    %8 = arith.negf %7 : vector<8x96xf32>
    %9 = math.exp %8 : vector<8x96xf32>
    %cst_6 = arith.constant 1.000000e+00 : f32
    %10 = vector.broadcast %cst_6 : f32 to vector<8x96xf32>
    %11 = arith.addf %10, %9 : vector<8x96xf32>
    %12 = arith.divf %10, %11 : vector<8x96xf32>
    %13 = vector.extract_strided_slice %6 {offsets = [0, 96], sizes = [8, 32], strides = [1, 1]} : vector<8x128xf32> to vector<8x32xf32>
    %14 = math.tanh %13 : vector<8x32xf32>
    %15 = vector.extract_strided_slice %12 {offsets = [0, 0], sizes = [8, 32], strides = [1, 1]} : vector<8x96xf32> to vector<8x32xf32>
    %16 = vector.extract_strided_slice %12 {offsets = [0, 32], sizes = [8, 32], strides = [1, 1]} : vector<8x96xf32> to vector<8x32xf32>
    %17 = vector.extract_strided_slice %12 {offsets = [0, 64], sizes = [8, 32], strides = [1, 1]} : vector<8x96xf32> to vector<8x32xf32>
    %18 = arith.mulf %16, %1 : vector<8x32xf32>
    %19 = arith.mulf %15, %14 : vector<8x32xf32>
    %20 = arith.addf %18, %19 : vector<8x32xf32>
    %21 = math.tanh %20 : vector<8x32xf32>
    %22 = arith.mulf %17, %21 : vector<8x32xf32>
    %c0_7 = arith.constant 0 : index
    %c0_8 = arith.constant 0 : index
    %23 = vector.load %arg14[%c0_7, %c0_8] : memref<8x256xf32, #tpu.memory_space<vmem>>, vector<8x32xf32>
    tpu.vector_store %arg14[%c0_7, %c0_8], %22 {strides = array<i32>} : memref<8x256xf32, #tpu.memory_space<vmem>>, vector<8x32xf32>,
    %c1 = arith.constant 1 : index
    %c0_9 = arith.constant 0 : index
    %c0_10 = arith.constant 0 : index
    %24 = vector.load %arg0[%c1, %c0_9, %c0_10] : memref<8x8x128xf32, #tpu.memory_space<vmem>>, vector<1x8x128xf32>
    %25 = vector.shape_cast %24 : vector<1x8x128xf32> to vector<8x128xf32>
    %c0_11 = arith.constant 0 : index
    %c0_12 = arith.constant 0 : index
    %26 = vector.load %arg3[%c0_11, %c0_12] : memref<32x128xf32, #tpu.memory_space<vmem>>, vector<32x128xf32>
    %cst_13 = arith.constant dense<0.000000e+00> : vector<8x128xf32>
    %27 = tpu.matmul %22, %26, %cst_13 {dimension_numbers = #tpu.dot_dimension_numbers<[1], [0], [0], [1], [0, 0, 1, 1], [], []>} : vector<8x32xf32>, vector<32x128xf32>, vector<8x128xf32> -> vector<8x128xf32>
    %28 = arith.addf %25, %27 : vector<8x128xf32>
    %29 = vector.extract_strided_slice %28 {offsets = [0, 0], sizes = [8, 96], strides = [1, 1]} : vector<8x128xf32> to vector<8x96xf32>
    %30 = arith.negf %29 : vector<8x96xf32>
    %31 = math.exp %30 : vector<8x96xf32>
    %cst_14 = arith.constant 1.000000e+00 : f32
    %32 = vector.broadcast %cst_14 : f32 to vector<8x96xf32>
    %33 = arith.addf %32, %31 : vector<8x96xf32>
    %34 = arith.divf %32, %33 : vector<8x96xf32>
    %35 = vector.extract_strided_slice %28 {offsets = [0, 96], sizes = [8, 32], strides = [1, 1]} : vector<8x128xf32> to vector<8x32xf32>
    %36 = math.tanh %35 : vector<8x32xf32>
    %37 = vector.extract_strided_slice %34 {offsets = [0, 0], sizes = [8, 32], strides = [1, 1]} : vector<8x96xf32> to vector<8x32xf32>
    %38 = vector.extract_strided_slice %34 {offsets = [0, 32], sizes = [8, 32], strides = [1, 1]} : vector<8x96xf32> to vector<8x32xf32>
    %39 = vector.extract_strided_slice %34 {offsets = [0, 64], sizes = [8, 32], strides = [1, 1]} : vector<8x96xf32> to vector<8x32xf32>
    %40 = arith.mulf %38, %20 : vector<8x32xf32>
    %41 = arith.mulf %37, %36 : vector<8x32xf32>
    %42 = arith.addf %40, %41 : vector<8x32xf32>
    %43 = math.tanh %42 : vector<8x32xf32>
    %44 = arith.mulf %39, %43 : vector<8x32xf32>
    %c0_15 = arith.constant 0 : index
    %c32 = arith.constant 32 : index
    %45 = vector.load %arg14[%c0_15, %c32] : memref<8x256xf32, #tpu.memory_space<vmem>>, vector<8x32xf32>
    tpu.vector_store %arg14[%c0_15, %c32], %44 {strides = array<i32>} : memref<8x256xf32, #tpu.memory_space<vmem>>, vector<8x32xf32>,
    %c2 = arith.constant 2 : index
    %c0_16 = arith.constant 0 : index
    %c0_17 = arith.constant 0 : index
    %46 = vector.load %arg0[%c2, %c0_16, %c0_17] : memref<8x8x128xf32, #tpu.memory_space<vmem>>, vector<1x8x128xf32>
    %47 = vector.shape_cast %46 : vector<1x8x128xf32> to vector<8x128xf32>
    %c0_18 = arith.constant 0 : index
    %c0_19 = arith.constant 0 : index
    %48 = vector.load %arg3[%c0_18, %c0_19] : memref<32x128xf32, #tpu.memory_space<vmem>>, vector<32x128xf32>
    %cst_20 = arith.constant dense<0.000000e+00> : vector<8x128xf32>
    %49 = tpu.matmul %44, %48, %cst_20 {dimension_numbers = #tpu.dot_dimension_numbers<[1], [0], [0], [1], [0, 0, 1, 1], [], []>} : vector<8x32xf32>, vector<32x128xf32>, vector<8x128xf32> -> vector<8x128xf32>
    %50 = arith.addf %47, %49 : vector<8x128xf32>
    %51 = vector.extract_strided_slice %50 {offsets = [0, 0], sizes = [8, 96], strides = [1, 1]} : vector<8x128xf32> to vector<8x96xf32>
    %52 = arith.negf %51 : vector<8x96xf32>
    %53 = math.exp %52 : vector<8x96xf32>
    %cst_21 = arith.constant 1.000000e+00 : f32
    %54 = vector.broadcast %cst_21 : f32 to vector<8x96xf32>
    %55 = arith.addf %54, %53 : vector<8x96xf32>
    %56 = arith.divf %54, %55 : vector<8x96xf32>
    %57 = vector.extract_strided_slice %50 {offsets = [0, 96], sizes = [8, 32], strides = [1, 1]} : vector<8x128xf32> to vector<8x32xf32>
    %58 = math.tanh %57 : vector<8x32xf32>
    %59 = vector.extract_strided_slice %56 {offsets = [0, 0], sizes = [8, 32], strides = [1, 1]} : vector<8x96xf32> to vector<8x32xf32>
    %60 = vector.extract_strided_slice %56 {offsets = [0, 32], sizes = [8, 32], strides = [1, 1]} : vector<8x96xf32> to vector<8x32xf32>
    %61 = vector.extract_strided_slice %56 {offsets = [0, 64], sizes = [8, 32], strides = [1, 1]} : vector<8x96xf32> to vector<8x32xf32>
    %62 = arith.mulf %60, %42 : vector<8x32xf32>
    %63 = arith.mulf %59, %58 : vector<8x32xf32>
    %64 = arith.addf %62, %63 : vector<8x32xf32>
    %65 = math.tanh %64 : vector<8x32xf32>
    %66 = arith.mulf %61, %65 : vector<8x32xf32>
    %c0_22 = arith.constant 0 : index
    %c64 = arith.constant 64 : index
    %67 = vector.load %arg14[%c0_22, %c64] : memref<8x256xf32, #tpu.memory_space<vmem>>, vector<8x32xf32>
    tpu.vector_store %arg14[%c0_22, %c64], %66 {strides = array<i32>} : memref<8x256xf32, #tpu.memory_space<vmem>>, vector<8x32xf32>,
    %c3 = arith.constant 3 : index
    %c0_23 = arith.constant 0 : index
    %c0_24 = arith.constant 0 : index
    %68 = vector.load %arg0[%c3, %c0_23, %c0_24] : memref<8x8x128xf32, #tpu.memory_space<vmem>>, vector<1x8x128xf32>
    %69 = vector.shape_cast %68 : vector<1x8x128xf32> to vector<8x128xf32>
    %c0_25 = arith.constant 0 : index
    %c0_26 = arith.constant 0 : index
    %70 = vector.load %arg3[%c0_25, %c0_26] : memref<32x128xf32, #tpu.memory_space<vmem>>, vector<32x128xf32>
    %cst_27 = arith.constant dense<0.000000e+00> : vector<8x128xf32>
    %71 = tpu.matmul %66, %70, %cst_27 {dimension_numbers = #tpu.dot_dimension_numbers<[1], [0], [0], [1], [0, 0, 1, 1], [], []>} : vector<8x32xf32>, vector<32x128xf32>, vector<8x128xf32> -> vector<8x128xf32>
    %72 = arith.addf %69, %71 : vector<8x128xf32>
    %73 = vector.extract_strided_slice %72 {offsets = [0, 0], sizes = [8, 96], strides = [1, 1]} : vector<8x128xf32> to vector<8x96xf32>
    %74 = arith.negf %73 : vector<8x96xf32>
    %75 = math.exp %74 : vector<8x96xf32>
    %cst_28 = arith.constant 1.000000e+00 : f32
    %76 = vector.broadcast %cst_28 : f32 to vector<8x96xf32>
    %77 = arith.addf %76, %75 : vector<8x96xf32>
    %78 = arith.divf %76, %77 : vector<8x96xf32>
    %79 = vector.extract_strided_slice %72 {offsets = [0, 96], sizes = [8, 32], strides = [1, 1]} : vector<8x128xf32> to vector<8x32xf32>
    %80 = math.tanh %79 : vector<8x32xf32>
    %81 = vector.extract_strided_slice %78 {offsets = [0, 0], sizes = [8, 32], strides = [1, 1]} : vector<8x96xf32> to vector<8x32xf32>
    %82 = vector.extract_strided_slice %78 {offsets = [0, 32], sizes = [8, 32], strides = [1, 1]} : vector<8x96xf32> to vector<8x32xf32>
    %83 = vector.extract_strided_slice %78 {offsets = [0, 64], sizes = [8, 32], strides = [1, 1]} : vector<8x96xf32> to vector<8x32xf32>
    %84 = arith.mulf %82, %64 : vector<8x32xf32>
    %85 = arith.mulf %81, %80 : vector<8x32xf32>
    %86 = arith.addf %84, %85 : vector<8x32xf32>
    %87 = math.tanh %86 : vector<8x32xf32>
    %88 = arith.mulf %83, %87 : vector<8x32xf32>
    %c0_29 = arith.constant 0 : index
    %c96 = arith.constant 96 : index
    %89 = vector.load %arg14[%c0_29, %c96] : memref<8x256xf32, #tpu.memory_space<vmem>>, vector<8x32xf32>
    tpu.vector_store %arg14[%c0_29, %c96], %88 {strides = array<i32>} : memref<8x256xf32, #tpu.memory_space<vmem>>, vector<8x32xf32>,
    %c4 = arith.constant 4 : index
    %c0_30 = arith.constant 0 : index
    %c0_31 = arith.constant 0 : index
    %90 = vector.load %arg0[%c4, %c0_30, %c0_31] : memref<8x8x128xf32, #tpu.memory_space<vmem>>, vector<1x8x128xf32>
    %91 = vector.shape_cast %90 : vector<1x8x128xf32> to vector<8x128xf32>
    %c0_32 = arith.constant 0 : index
    %c0_33 = arith.constant 0 : index
    %92 = vector.load %arg3[%c0_32, %c0_33] : memref<32x128xf32, #tpu.memory_space<vmem>>, vector<32x128xf32>
    %cst_34 = arith.constant dense<0.000000e+00> : vector<8x128xf32>
    %93 = tpu.matmul %88, %92, %cst_34 {dimension_numbers = #tpu.dot_dimension_numbers<[1], [0], [0], [1], [0, 0, 1, 1], [], []>} : vector<8x32xf32>, vector<32x128xf32>, vector<8x128xf32> -> vector<8x128xf32>
    %94 = arith.addf %91, %93 : vector<8x128xf32>
    %95 = vector.extract_strided_slice %94 {offsets = [0, 0], sizes = [8, 96], strides = [1, 1]} : vector<8x128xf32> to vector<8x96xf32>
    %96 = arith.negf %95 : vector<8x96xf32>
    %97 = math.exp %96 : vector<8x96xf32>
    %cst_35 = arith.constant 1.000000e+00 : f32
    %98 = vector.broadcast %cst_35 : f32 to vector<8x96xf32>
    %99 = arith.addf %98, %97 : vector<8x96xf32>
    %100 = arith.divf %98, %99 : vector<8x96xf32>
    %101 = vector.extract_strided_slice %94 {offsets = [0, 96], sizes = [8, 32], strides = [1, 1]} : vector<8x128xf32> to vector<8x32xf32>
    %102 = math.tanh %101 : vector<8x32xf32>
    %103 = vector.extract_strided_slice %100 {offsets = [0, 0], sizes = [8, 32], strides = [1, 1]} : vector<8x96xf32> to vector<8x32xf32>
    %104 = vector.extract_strided_slice %100 {offsets = [0, 32], sizes = [8, 32], strides = [1, 1]} : vector<8x96xf32> to vector<8x32xf32>
    %105 = vector.extract_strided_slice %100 {offsets = [0, 64], sizes = [8, 32], strides = [1, 1]} : vector<8x96xf32> to vector<8x32xf32>
    %106 = arith.mulf %104, %86 : vector<8x32xf32>
    %107 = arith.mulf %103, %102 : vector<8x32xf32>
    %108 = arith.addf %106, %107 : vector<8x32xf32>
    %109 = math.tanh %108 : vector<8x32xf32>
    %110 = arith.mulf %105, %109 : vector<8x32xf32>
    %c0_36 = arith.constant 0 : index
    %c128 = arith.constant 128 : index
    %111 = vector.load %arg14[%c0_36, %c128] : memref<8x256xf32, #tpu.memory_space<vmem>>, vector<8x32xf32>
    tpu.vector_store %arg14[%c0_36, %c128], %110 {strides = array<i32>} : memref<8x256xf32, #tpu.memory_space<vmem>>, vector<8x32xf32>,
    %c5 = arith.constant 5 : index
    %c0_37 = arith.constant 0 : index
    %c0_38 = arith.constant 0 : index
    %112 = vector.load %arg0[%c5, %c0_37, %c0_38] : memref<8x8x128xf32, #tpu.memory_space<vmem>>, vector<1x8x128xf32>
    %113 = vector.shape_cast %112 : vector<1x8x128xf32> to vector<8x128xf32>
    %c0_39 = arith.constant 0 : index
    %c0_40 = arith.constant 0 : index
    %114 = vector.load %arg3[%c0_39, %c0_40] : memref<32x128xf32, #tpu.memory_space<vmem>>, vector<32x128xf32>
    %cst_41 = arith.constant dense<0.000000e+00> : vector<8x128xf32>
    %115 = tpu.matmul %110, %114, %cst_41 {dimension_numbers = #tpu.dot_dimension_numbers<[1], [0], [0], [1], [0, 0, 1, 1], [], []>} : vector<8x32xf32>, vector<32x128xf32>, vector<8x128xf32> -> vector<8x128xf32>
    %116 = arith.addf %113, %115 : vector<8x128xf32>
    %117 = vector.extract_strided_slice %116 {offsets = [0, 0], sizes = [8, 96], strides = [1, 1]} : vector<8x128xf32> to vector<8x96xf32>
    %118 = arith.negf %117 : vector<8x96xf32>
    %119 = math.exp %118 : vector<8x96xf32>
    %cst_42 = arith.constant 1.000000e+00 : f32
    %120 = vector.broadcast %cst_42 : f32 to vector<8x96xf32>
    %121 = arith.addf %120, %119 : vector<8x96xf32>
    %122 = arith.divf %120, %121 : vector<8x96xf32>
    %123 = vector.extract_strided_slice %116 {offsets = [0, 96], sizes = [8, 32], strides = [1, 1]} : vector<8x128xf32> to vector<8x32xf32>
    %124 = math.tanh %123 : vector<8x32xf32>
    %125 = vector.extract_strided_slice %122 {offsets = [0, 0], sizes = [8, 32], strides = [1, 1]} : vector<8x96xf32> to vector<8x32xf32>
    %126 = vector.extract_strided_slice %122 {offsets = [0, 32], sizes = [8, 32], strides = [1, 1]} : vector<8x96xf32> to vector<8x32xf32>
    %127 = vector.extract_strided_slice %122 {offsets = [0, 64], sizes = [8, 32], strides = [1, 1]} : vector<8x96xf32> to vector<8x32xf32>
    %128 = arith.mulf %126, %108 : vector<8x32xf32>
    %129 = arith.mulf %125, %124 : vector<8x32xf32>
    %130 = arith.addf %128, %129 : vector<8x32xf32>
    %131 = math.tanh %130 : vector<8x32xf32>
    %132 = arith.mulf %127, %131 : vector<8x32xf32>
    %c0_43 = arith.constant 0 : index
    %c160 = arith.constant 160 : index
    %133 = vector.load %arg14[%c0_43, %c160] : memref<8x256xf32, #tpu.memory_space<vmem>>, vector<8x32xf32>
    tpu.vector_store %arg14[%c0_43, %c160], %132 {strides = array<i32>} : memref<8x256xf32, #tpu.memory_space<vmem>>, vector<8x32xf32>,
    %c6 = arith.constant 6 : index
    %c0_44 = arith.constant 0 : index
    %c0_45 = arith.constant 0 : index
    %134 = vector.load %arg0[%c6, %c0_44, %c0_45] : memref<8x8x128xf32, #tpu.memory_space<vmem>>, vector<1x8x128xf32>
    %135 = vector.shape_cast %134 : vector<1x8x128xf32> to vector<8x128xf32>
    %c0_46 = arith.constant 0 : index
    %c0_47 = arith.constant 0 : index
    %136 = vector.load %arg3[%c0_46, %c0_47] : memref<32x128xf32, #tpu.memory_space<vmem>>, vector<32x128xf32>
    %cst_48 = arith.constant dense<0.000000e+00> : vector<8x128xf32>
    %137 = tpu.matmul %132, %136, %cst_48 {dimension_numbers = #tpu.dot_dimension_numbers<[1], [0], [0], [1], [0, 0, 1, 1], [], []>} : vector<8x32xf32>, vector<32x128xf32>, vector<8x128xf32> -> vector<8x128xf32>
    %138 = arith.addf %135, %137 : vector<8x128xf32>
    %139 = vector.extract_strided_slice %138 {offsets = [0, 0], sizes = [8, 96], strides = [1, 1]} : vector<8x128xf32> to vector<8x96xf32>
    %140 = arith.negf %139 : vector<8x96xf32>
    %141 = math.exp %140 : vector<8x96xf32>
    %cst_49 = arith.constant 1.000000e+00 : f32
    %142 = vector.broadcast %cst_49 : f32 to vector<8x96xf32>
    %143 = arith.addf %142, %141 : vector<8x96xf32>
    %144 = arith.divf %142, %143 : vector<8x96xf32>
    %145 = vector.extract_strided_slice %138 {offsets = [0, 96], sizes = [8, 32], strides = [1, 1]} : vector<8x128xf32> to vector<8x32xf32>
    %146 = math.tanh %145 : vector<8x32xf32>
    %147 = vector.extract_strided_slice %144 {offsets = [0, 0], sizes = [8, 32], strides = [1, 1]} : vector<8x96xf32> to vector<8x32xf32>
    %148 = vector.extract_strided_slice %144 {offsets = [0, 32], sizes = [8, 32], strides = [1, 1]} : vector<8x96xf32> to vector<8x32xf32>
    %149 = vector.extract_strided_slice %144 {offsets = [0, 64], sizes = [8, 32], strides = [1, 1]} : vector<8x96xf32> to vector<8x32xf32>
    %150 = arith.mulf %148, %130 : vector<8x32xf32>
    %151 = arith.mulf %147, %146 : vector<8x32xf32>
    %152 = arith.addf %150, %151 : vector<8x32xf32>
    %153 = math.tanh %152 : vector<8x32xf32>
    %154 = arith.mulf %149, %153 : vector<8x32xf32>
    %c0_50 = arith.constant 0 : index
    %c192 = arith.constant 192 : index
    %155 = vector.load %arg14[%c0_50, %c192] : memref<8x256xf32, #tpu.memory_space<vmem>>, vector<8x32xf32>
    tpu.vector_store %arg14[%c0_50, %c192], %154 {strides = array<i32>} : memref<8x256xf32, #tpu.memory_space<vmem>>, vector<8x32xf32>,
    %c7 = arith.constant 7 : index
    %c0_51 = arith.constant 0 : index
    %c0_52 = arith.constant 0 : index
    %156 = vector.load %arg0[%c7, %c0_51, %c0_52] : memref<8x8x128xf32, #tpu.memory_space<vmem>>, vector<1x8x128xf32>
    %157 = vector.shape_cast %156 : vector<1x8x128xf32> to vector<8x128xf32>
    %c0_53 = arith.constant 0 : index
    %c0_54 = arith.constant 0 : index
    %158 = vector.load %arg3[%c0_53, %c0_54] : memref<32x128xf32, #tpu.memory_space<vmem>>, vector<32x128xf32>
    %cst_55 = arith.constant dense<0.000000e+00> : vector<8x128xf32>
    %159 = tpu.matmul %154, %158, %cst_55 {dimension_numbers = #tpu.dot_dimension_numbers<[1], [0], [0], [1], [0, 0, 1, 1], [], []>} : vector<8x32xf32>, vector<32x128xf32>, vector<8x128xf32> -> vector<8x128xf32>
    %160 = arith.addf %157, %159 : vector<8x128xf32>
    %161 = vector.extract_strided_slice %160 {offsets = [0, 0], sizes = [8, 96], strides = [1, 1]} : vector<8x128xf32> to vector<8x96xf32>
    %162 = arith.negf %161 : vector<8x96xf32>
    %163 = math.exp %162 : vector<8x96xf32>
    %cst_56 = arith.constant 1.000000e+00 : f32
    %164 = vector.broadcast %cst_56 : f32 to vector<8x96xf32>
    %165 = arith.addf %164, %163 : vector<8x96xf32>
    %166 = arith.divf %164, %165 : vector<8x96xf32>
    %167 = vector.extract_strided_slice %160 {offsets = [0, 96], sizes = [8, 32], strides = [1, 1]} : vector<8x128xf32> to vector<8x32xf32>
    %168 = math.tanh %167 : vector<8x32xf32>
    %169 = vector.extract_strided_slice %166 {offsets = [0, 0], sizes = [8, 32], strides = [1, 1]} : vector<8x96xf32> to vector<8x32xf32>
    %170 = vector.extract_strided_slice %166 {offsets = [0, 32], sizes = [8, 32], strides = [1, 1]} : vector<8x96xf32> to vector<8x32xf32>
    %171 = vector.extract_strided_slice %166 {offsets = [0, 64], sizes = [8, 32], strides = [1, 1]} : vector<8x96xf32> to vector<8x32xf32>
    %172 = arith.mulf %170, %152 : vector<8x32xf32>
    %173 = arith.mulf %169, %168 : vector<8x32xf32>
    %174 = arith.addf %172, %173 : vector<8x32xf32>
    %175 = math.tanh %174 : vector<8x32xf32>
    %176 = arith.mulf %171, %175 : vector<8x32xf32>
    %c0_57 = arith.constant 0 : index
    %c224 = arith.constant 224 : index
    %177 = vector.load %arg14[%c0_57, %c224] : memref<8x256xf32, #tpu.memory_space<vmem>>, vector<8x32xf32>
    tpu.vector_store %arg14[%c0_57, %c224], %176 {strides = array<i32>} : memref<8x256xf32, #tpu.memory_space<vmem>>, vector<8x32xf32>,
    %c0_58 = arith.constant 0 : index
    %c0_59 = arith.constant 0 : index
    %178 = vector.load %arg14[%c0_58, %c0_59] : memref<8x256xf32, #tpu.memory_space<vmem>>, vector<8x256xf32>
    %c0_60 = arith.constant 0 : index
    %c0_61 = arith.constant 0 : index
    %179 = vector.load %arg8[%c0_60, %c0_61] : memref<256x256xf32, #tpu.memory_space<vmem>>, vector<256x256xf32>
    %cst_62 = arith.constant dense<0.000000e+00> : vector<8x256xf32>
    %180 = tpu.matmul %178, %179, %cst_62 {dimension_numbers = #tpu.dot_dimension_numbers<[1], [0], [0], [1], [0, 0, 1, 1], [], []>} : vector<8x256xf32>, vector<256x256xf32>, vector<8x256xf32> -> vector<8x256xf32>
    %c0_63 = arith.constant 0 : index
    %c0_64 = arith.constant 0 : index
    %181 = vector.load %arg15[%c0_63, %c0_64] : memref<8x256xf32, #tpu.memory_space<vmem>>, vector<8x256xf32>
    tpu.vector_store %arg15[%c0_63, %c0_64], %180 {strides = array<i32>} : memref<8x256xf32, #tpu.memory_space<vmem>>, vector<8x256xf32>,
    %c0_65 = arith.constant 0 : index
    %c0_66 = arith.constant 0 : index
    %182 = vector.load %arg4[%c0_65, %c0_66] : memref<8x32xf32, #tpu.memory_space<vmem>>, vector<8x32xf32>
    %183 = tpu.iota {dimensions = array<i32: 1>} : vector<8x32xi32>
    %184 = tpu.iota {dimensions = array<i32: 1>} : vector<1x128xi32>
    %185 = arith.sitofp %184 : vector<1x128xi32> to vector<1x128xf32>
    %c127_i32 = arith.constant 127 : i32
    %186 = vector.broadcast %c127_i32 : i32 to vector<1x128xi32>
    %187 = arith.cmpi eq, %184, %186 : vector<1x128xi32>
    %cst_67 = arith.constant -2.000000e+09 : f32
    %cst_68 = arith.constant 0.000000e+00 : f32
    %188 = vector.broadcast %cst_67 : f32 to vector<1x128xf32>
    %189 = vector.broadcast %cst_68 : f32 to vector<1x128xf32>
    %190 = arith.select %187, %188, %189 : vector<1x128xi1>, vector<1x128xf32>
    %c2_i32 = arith.constant 2 : i32
    %191 = vector.broadcast %c2_i32 : i32 to vector<8x32xi32>
    %192 = arith.cmpi eq, %183, %191 : vector<8x32xi32>
    %193 = arith.extui %192 : vector<8x32xi1> to vector<8x32xi32>
    %194 = arith.sitofp %193 : vector<8x32xi32> to vector<8x32xf32>
    %c0_69 = arith.constant 0 : index
    %c0_70 = arith.constant 0 : index
    %195 = vector.load %arg16[%c0_69, %c0_70] : memref<8x96xf32, #tpu.memory_space<vmem>>, vector<8x32xf32>
    tpu.vector_store %arg16[%c0_69, %c0_70], %194 {strides = array<i32>} : memref<8x96xf32, #tpu.memory_space<vmem>>, vector<8x32xf32>,
    %c0_71 = arith.constant 0 : index
    %c32_72 = arith.constant 32 : index
    %196 = vector.load %arg16[%c0_71, %c32_72] : memref<8x96xf32, #tpu.memory_space<vmem>>, vector<8x32xf32>
    tpu.vector_store %arg16[%c0_71, %c32_72], %182 {strides = array<i32>} : memref<8x96xf32, #tpu.memory_space<vmem>>, vector<8x32xf32>,
    %c0_73 = arith.constant 0 : index
    %c64_74 = arith.constant 64 : index
    %197 = vector.load %arg16[%c0_73, %c64_74] : memref<8x96xf32, #tpu.memory_space<vmem>>, vector<8x32xf32>
    tpu.vector_store %arg16[%c0_73, %c64_74], %176 {strides = array<i32>} : memref<8x96xf32, #tpu.memory_space<vmem>>, vector<8x32xf32>,
    %c0_75 = arith.constant 0 : index
    %c0_76 = arith.constant 0 : index
    %198 = vector.load %arg16[%c0_75, %c0_76] : memref<8x96xf32, #tpu.memory_space<vmem>>, vector<8x96xf32>
    %c0_77 = arith.constant 0 : index
    %c0_78 = arith.constant 0 : index
    %199 = vector.load %arg5[%c0_77, %c0_78] : memref<96x128xf32, #tpu.memory_space<vmem>>, vector<96x128xf32>
    %cst_79 = arith.constant dense<0.000000e+00> : vector<8x128xf32>
    %200 = tpu.matmul %198, %199, %cst_79 {dimension_numbers = #tpu.dot_dimension_numbers<[1], [0], [0], [1], [0, 0, 1, 1], [], []>} : vector<8x96xf32>, vector<96x128xf32>, vector<8x128xf32> -> vector<8x128xf32>
    %201 = vector.extract_strided_slice %200 {offsets = [0, 0], sizes = [8, 96], strides = [1, 1]} : vector<8x128xf32> to vector<8x96xf32>
    %202 = arith.negf %201 : vector<8x96xf32>
    %203 = math.exp %202 : vector<8x96xf32>
    %cst_80 = arith.constant 1.000000e+00 : f32
    %204 = vector.broadcast %cst_80 : f32 to vector<8x96xf32>
    %205 = arith.addf %204, %203 : vector<8x96xf32>
    %206 = arith.divf %204, %205 : vector<8x96xf32>
    %207 = vector.extract_strided_slice %200 {offsets = [0, 96], sizes = [8, 32], strides = [1, 1]} : vector<8x128xf32> to vector<8x32xf32>
    %208 = math.tanh %207 : vector<8x32xf32>
    %209 = vector.extract_strided_slice %206 {offsets = [0, 0], sizes = [8, 32], strides = [1, 1]} : vector<8x96xf32> to vector<8x32xf32>
    %210 = vector.extract_strided_slice %206 {offsets = [0, 32], sizes = [8, 32], strides = [1, 1]} : vector<8x96xf32> to vector<8x32xf32>
    %211 = vector.extract_strided_slice %206 {offsets = [0, 64], sizes = [8, 32], strides = [1, 1]} : vector<8x96xf32> to vector<8x32xf32>
    %212 = arith.mulf %210, %174 : vector<8x32xf32>
    %213 = arith.mulf %209, %208 : vector<8x32xf32>
    %214 = arith.addf %212, %213 : vector<8x32xf32>
    %215 = math.tanh %214 : vector<8x32xf32>
    %216 = arith.mulf %211, %215 : vector<8x32xf32>
    %c0_81 = arith.constant 0 : index
    %c0_82 = arith.constant 0 : index
    %217 = vector.load %arg7[%c0_81, %c0_82] : memref<32x256xf32, #tpu.memory_space<vmem>>, vector<32x256xf32>
    %cst_83 = arith.constant dense<0.000000e+00> : vector<8x256xf32>
    %218 = tpu.matmul %216, %217, %cst_83 {dimension_numbers = #tpu.dot_dimension_numbers<[1], [0], [0], [1], [0, 0, 1, 1], [], []>} : vector<8x32xf32>, vector<32x256xf32>, vector<8x256xf32> -> vector<8x256xf32>
    %c0_84 = arith.constant 0 : index
    %c0_85 = arith.constant 0 : index
    %219 = vector.load %arg15[%c0_84, %c0_85] : memref<8x256xf32, #tpu.memory_space<vmem>>, vector<8x256xf32>
    %220 = arith.addf %219, %218 : vector<8x256xf32>
    %221 = math.tanh %220 : vector<8x256xf32>
    %c0_86 = arith.constant 0 : index
    %c0_87 = arith.constant 0 : index
    %222 = vector.load %arg9[%c0_86, %c0_87] : memref<256x8xf32, #tpu.memory_space<vmem>>, vector<256x8xf32>
    %cst_88 = arith.constant dense<0.000000e+00> : vector<8x8xf32>
    %223 = tpu.matmul %221, %222, %cst_88 {dimension_numbers = #tpu.dot_dimension_numbers<[1], [0], [0], [1], [0, 0, 1, 1], [], []>} : vector<8x256xf32>, vector<256x8xf32>, vector<8x8xf32> -> vector<8x8xf32>
    %224 = math.exp %223 : vector<8x8xf32>
    %c0_89 = arith.constant 0 : index
    %c0_90 = arith.constant 0 : index
    %225 = vector.load %arg1[%c0_89, %c0_90] : memref<8x8xf32, #tpu.memory_space<vmem>>, vector<8x8xf32>
    %226 = arith.mulf %224, %225 : vector<8x8xf32>
    %cst_91 = arith.constant dense<0.000000e+00> : vector<8xf32>
    %227 = vector.multi_reduction <add>, %226, %cst_91 [1] : vector<8x8xf32> to vector<8xf32>
    %228 = vector.shape_cast %227 : vector<8xf32> to vector<8x1xf32>
    %cst_92 = arith.constant 9.99999996E-13 : f32
    %229 = vector.broadcast %cst_92 : f32 to vector<8x1xf32>
    %230 = arith.addf %228, %229 : vector<8x1xf32>
    %231 = vector.broadcast %230 : vector<8x1xf32> to vector<8x8xf32>
    %232 = arith.divf %226, %231 : vector<8x8xf32>
    %c0_93 = arith.constant 0 : index
    %c0_94 = arith.constant 0 : index
    %233 = vector.load %arg10[%c0_93, %c0_94] : memref<8x256xf32, #tpu.memory_space<vmem>>, vector<8x256xf32>
    %cst_95 = arith.constant dense<0.000000e+00> : vector<8x256xf32>
    %234 = tpu.matmul %232, %233, %cst_95 {dimension_numbers = #tpu.dot_dimension_numbers<[1], [0], [0], [1], [0, 0, 1, 1], [], []>} : vector<8x8xf32>, vector<8x256xf32>, vector<8x256xf32> -> vector<8x256xf32>
    %c0_96 = arith.constant 0 : index
    %c0_97 = arith.constant 0 : index
    %235 = vector.load %arg14[%c0_96, %c0_97] : memref<8x256xf32, #tpu.memory_space<vmem>>, vector<8x256xf32>
    %236 = arith.mulf %234, %235 : vector<8x256xf32>
    %c0_98 = arith.constant 0 : index
    %c0_99 = arith.constant 0 : index
    %237 = vector.load %arg11[%c0_98, %c0_99] : memref<256x32xf32, #tpu.memory_space<vmem>>, vector<256x32xf32>
    %cst_100 = arith.constant dense<0.000000e+00> : vector<8x32xf32>
    %238 = tpu.matmul %236, %237, %cst_100 {dimension_numbers = #tpu.dot_dimension_numbers<[1], [0], [0], [1], [0, 0, 1, 1], [], []>} : vector<8x256xf32>, vector<256x32xf32>, vector<8x32xf32> -> vector<8x32xf32>
    %c0_101 = arith.constant 0 : index
    %c0_102 = arith.constant 0 : index
    %239 = vector.load %arg16[%c0_101, %c0_102] : memref<8x96xf32, #tpu.memory_space<vmem>>, vector<8x32xf32>
    tpu.vector_store %arg16[%c0_101, %c0_102], %194 {strides = array<i32>} : memref<8x96xf32, #tpu.memory_space<vmem>>, vector<8x32xf32>,
    %c0_103 = arith.constant 0 : index
    %c32_104 = arith.constant 32 : index
    %240 = vector.load %arg16[%c0_103, %c32_104] : memref<8x96xf32, #tpu.memory_space<vmem>>, vector<8x32xf32>
    tpu.vector_store %arg16[%c0_103, %c32_104], %238 {strides = array<i32>} : memref<8x96xf32, #tpu.memory_space<vmem>>, vector<8x32xf32>,
    %c0_105 = arith.constant 0 : index
    %c64_106 = arith.constant 64 : index
    %241 = vector.load %arg16[%c0_105, %c64_106] : memref<8x96xf32, #tpu.memory_space<vmem>>, vector<8x32xf32>
    tpu.vector_store %arg16[%c0_105, %c64_106], %216 {strides = array<i32>} : memref<8x96xf32, #tpu.memory_space<vmem>>, vector<8x32xf32>,
    %c0_107 = arith.constant 0 : index
    %c0_108 = arith.constant 0 : index
    %242 = vector.load %arg16[%c0_107, %c0_108] : memref<8x96xf32, #tpu.memory_space<vmem>>, vector<8x96xf32>
    %c0_109 = arith.constant 0 : index
    %c0_110 = arith.constant 0 : index
    %243 = vector.load %arg6[%c0_109, %c0_110] : memref<96x128xf32, #tpu.memory_space<vmem>>, vector<96x128xf32>
    %cst_111 = arith.constant dense<0.000000e+00> : vector<8x128xf32>
    %244 = tpu.matmul %242, %243, %cst_111 {dimension_numbers = #tpu.dot_dimension_numbers<[1], [0], [0], [1], [0, 0, 1, 1], [], []>} : vector<8x96xf32>, vector<96x128xf32>, vector<8x128xf32> -> vector<8x128xf32>
    %245 = vector.extract_strided_slice %244 {offsets = [0, 127], sizes = [8, 1], strides = [1, 1]} : vector<8x128xf32> to vector<8x1xf32>
    %246 = arith.negf %245 : vector<8x1xf32>
    %247 = math.exp %246 : vector<8x1xf32>
    %cst_112 = arith.constant 1.000000e+00 : f32
    %248 = vector.broadcast %cst_112 : f32 to vector<8x1xf32>
    %249 = arith.addf %248, %247 : vector<8x1xf32>
    %250 = arith.divf %248, %249 : vector<8x1xf32>
    %251 = vector.broadcast %190 : vector<1x128xf32> to vector<8x128xf32>
    %252 = arith.addf %244, %251 : vector<8x128xf32>
    %cst_113 = arith.constant dense<0xFF800000> : vector<8xf32>
    %253 = vector.multi_reduction <maximumf>, %252, %cst_113 [1] : vector<8x128xf32> to vector<8xf32>
    %254 = vector.shape_cast %253 : vector<8xf32> to vector<8x1xf32>
    %255 = vector.broadcast %254 : vector<8x1xf32> to vector<8x128xf32>
    %256 = arith.subf %252, %255 : vector<8x128xf32>
    %257 = math.exp %256 : vector<8x128xf32>
    %cst_114 = arith.constant dense<0.000000e+00> : vector<8xf32>
    %258 = vector.multi_reduction <add>, %257, %cst_114 [1] : vector<8x128xf32> to vector<8xf32>
    %259 = vector.shape_cast %258 : vector<8xf32> to vector<8x1xf32>
    %260 = vector.broadcast %259 : vector<8x1xf32> to vector<8x128xf32>
    %261 = arith.divf %257, %260 : vector<8x128xf32>
    %262 = vector.extract_strided_slice %232 {offsets = [0, 0], sizes = [8, 1], strides = [1, 1]} : vector<8x8xf32> to vector<8x1xf32>
    %c0_115 = arith.constant 0 : index
    %c0_116 = arith.constant 0 : index
    %c0_117 = arith.constant 0 : index
    %263 = vector.load %arg2[%c0_115, %c0_116, %c0_117] : memref<8x8x128xf32, #tpu.memory_space<vmem>>, vector<1x8x128xf32>
    %264 = vector.shape_cast %263 : vector<1x8x128xf32> to vector<8x128xf32>
    %265 = vector.broadcast %262 : vector<8x1xf32> to vector<8x128xf32>
    %266 = arith.mulf %265, %264 : vector<8x128xf32>
    %267 = vector.extract_strided_slice %232 {offsets = [0, 1], sizes = [8, 1], strides = [1, 1]} : vector<8x8xf32> to vector<8x1xf32>
    %c1_118 = arith.constant 1 : index
    %c0_119 = arith.constant 0 : index
    %c0_120 = arith.constant 0 : index
    %268 = vector.load %arg2[%c1_118, %c0_119, %c0_120] : memref<8x8x128xf32, #tpu.memory_space<vmem>>, vector<1x8x128xf32>
    %269 = vector.shape_cast %268 : vector<1x8x128xf32> to vector<8x128xf32>
    %270 = vector.broadcast %267 : vector<8x1xf32> to vector<8x128xf32>
    %271 = arith.mulf %270, %269 : vector<8x128xf32>
    %272 = arith.addf %266, %271 : vector<8x128xf32>
    %273 = vector.extract_strided_slice %232 {offsets = [0, 2], sizes = [8, 1], strides = [1, 1]} : vector<8x8xf32> to vector<8x1xf32>
    %c2_121 = arith.constant 2 : index
    %c0_122 = arith.constant 0 : index
    %c0_123 = arith.constant 0 : index
    %274 = vector.load %arg2[%c2_121, %c0_122, %c0_123] : memref<8x8x128xf32, #tpu.memory_space<vmem>>, vector<1x8x128xf32>
    %275 = vector.shape_cast %274 : vector<1x8x128xf32> to vector<8x128xf32>
    %276 = vector.broadcast %273 : vector<8x1xf32> to vector<8x128xf32>
    %277 = arith.mulf %276, %275 : vector<8x128xf32>
    %278 = arith.addf %272, %277 : vector<8x128xf32>
    %279 = vector.extract_strided_slice %232 {offsets = [0, 3], sizes = [8, 1], strides = [1, 1]} : vector<8x8xf32> to vector<8x1xf32>
    %c3_124 = arith.constant 3 : index
    %c0_125 = arith.constant 0 : index
    %c0_126 = arith.constant 0 : index
    %280 = vector.load %arg2[%c3_124, %c0_125, %c0_126] : memref<8x8x128xf32, #tpu.memory_space<vmem>>, vector<1x8x128xf32>
    %281 = vector.shape_cast %280 : vector<1x8x128xf32> to vector<8x128xf32>
    %282 = vector.broadcast %279 : vector<8x1xf32> to vector<8x128xf32>
    %283 = arith.mulf %282, %281 : vector<8x128xf32>
    %284 = arith.addf %278, %283 : vector<8x128xf32>
    %285 = vector.extract_strided_slice %232 {offsets = [0, 4], sizes = [8, 1], strides = [1, 1]} : vector<8x8xf32> to vector<8x1xf32>
    %c4_127 = arith.constant 4 : index
    %c0_128 = arith.constant 0 : index
    %c0_129 = arith.constant 0 : index
    %286 = vector.load %arg2[%c4_127, %c0_128, %c0_129] : memref<8x8x128xf32, #tpu.memory_space<vmem>>, vector<1x8x128xf32>
    %287 = vector.shape_cast %286 : vector<1x8x128xf32> to vector<8x128xf32>
    %288 = vector.broadcast %285 : vector<8x1xf32> to vector<8x128xf32>
    %289 = arith.mulf %288, %287 : vector<8x128xf32>
    %290 = arith.addf %284, %289 : vector<8x128xf32>
    %291 = vector.extract_strided_slice %232 {offsets = [0, 5], sizes = [8, 1], strides = [1, 1]} : vector<8x8xf32> to vector<8x1xf32>
    %c5_130 = arith.constant 5 : index
    %c0_131 = arith.constant 0 : index
    %c0_132 = arith.constant 0 : index
    %292 = vector.load %arg2[%c5_130, %c0_131, %c0_132] : memref<8x8x128xf32, #tpu.memory_space<vmem>>, vector<1x8x128xf32>
    %293 = vector.shape_cast %292 : vector<1x8x128xf32> to vector<8x128xf32>
    %294 = vector.broadcast %291 : vector<8x1xf32> to vector<8x128xf32>
    %295 = arith.mulf %294, %293 : vector<8x128xf32>
    %296 = arith.addf %290, %295 : vector<8x128xf32>
    %297 = vector.extract_strided_slice %232 {offsets = [0, 6], sizes = [8, 1], strides = [1, 1]} : vector<8x8xf32> to vector<8x1xf32>
    %c6_133 = arith.constant 6 : index
    %c0_134 = arith.constant 0 : index
    %c0_135 = arith.constant 0 : index
    %298 = vector.load %arg2[%c6_133, %c0_134, %c0_135] : memref<8x8x128xf32, #tpu.memory_space<vmem>>, vector<1x8x128xf32>
    %299 = vector.shape_cast %298 : vector<1x8x128xf32> to vector<8x128xf32>
    %300 = vector.broadcast %297 : vector<8x1xf32> to vector<8x128xf32>
    %301 = arith.mulf %300, %299 : vector<8x128xf32>
    %302 = arith.addf %296, %301 : vector<8x128xf32>
    %303 = vector.extract_strided_slice %232 {offsets = [0, 7], sizes = [8, 1], strides = [1, 1]} : vector<8x8xf32> to vector<8x1xf32>
    %c7_136 = arith.constant 7 : index
    %c0_137 = arith.constant 0 : index
    %c0_138 = arith.constant 0 : index
    %304 = vector.load %arg2[%c7_136, %c0_137, %c0_138] : memref<8x8x128xf32, #tpu.memory_space<vmem>>, vector<1x8x128xf32>
    %305 = vector.shape_cast %304 : vector<1x8x128xf32> to vector<8x128xf32>
    %306 = vector.broadcast %303 : vector<8x1xf32> to vector<8x128xf32>
    %307 = arith.mulf %306, %305 : vector<8x128xf32>
    %308 = arith.addf %302, %307 : vector<8x128xf32>
    %309 = vector.broadcast %250 : vector<8x1xf32> to vector<8x128xf32>
    %310 = arith.mulf %309, %261 : vector<8x128xf32>
    %cst_139 = arith.constant 1.000000e+00 : f32
    %311 = vector.broadcast %cst_139 : f32 to vector<8x1xf32>
    %312 = arith.subf %311, %250 : vector<8x1xf32>
    %313 = vector.broadcast %312 : vector<8x1xf32> to vector<8x128xf32>
    %314 = arith.mulf %313, %308 : vector<8x128xf32>
    %315 = arith.addf %310, %314 : vector<8x128xf32>
    %c0_140 = arith.constant 0 : index
    %c0_141 = arith.constant 0 : index
    %c0_142 = arith.constant 0 : index
    %316 = vector.load %arg12[%c0_140, %c0_141, %c0_142] : memref<8x8x128xf32, #tpu.memory_space<vmem>>, vector<1x8x128xf32>
    %317 = vector.shape_cast %316 : vector<1x8x128xf32> to vector<8x128xf32>
    %318 = vector.shape_cast %315 : vector<8x128xf32> to vector<1x8x128xf32>
    tpu.vector_store %arg12[%c0_140, %c0_141, %c0_142], %318 {strides = array<i32>} : memref<8x8x128xf32, #tpu.memory_space<vmem>>, vector<1x8x128xf32>,
    %cst_143 = arith.constant dense<0xFF800000> : vector<8xf32>
    %319 = vector.multi_reduction <maximumf>, %315, %cst_143 [1] : vector<8x128xf32> to vector<8xf32>
    %320 = vector.shape_cast %319 : vector<8xf32> to vector<8x1xf32>
    %321 = vector.broadcast %320 : vector<8x1xf32> to vector<8x128xf32>
    %322 = arith.cmpf oeq, %315, %321 : vector<8x128xf32>
    %cst_144 = arith.constant 1.280000e+02 : f32
    %323 = vector.shape_cast %185 : vector<1x128xf32> to vector<1x128xf32>
    %324 = vector.broadcast %323 : vector<1x128xf32> to vector<8x128xf32>
    %325 = vector.broadcast %cst_144 : f32 to vector<8x128xf32>
    %326 = arith.select %322, %324, %325 : vector<8x128xi1>, vector<8x128xf32>
    %cst_145 = arith.constant dense<0x7F800000> : vector<8xf32>
    %327 = vector.multi_reduction <minimumf>, %326, %cst_145 [1] : vector<8x128xf32> to vector<8xf32>
    %328 = vector.shape_cast %327 : vector<8xf32> to vector<8x1xf32>
    %329 = arith.fptosi %328 : vector<8x1xf32> to vector<8x1xi32>
    %c0_146 = arith.constant 0 : index
    %c0_147 = arith.constant 0 : index
    %c0_148 = arith.constant 0 : index
    %330 = vector.load %arg13[%c0_146, %c0_147, %c0_148] : memref<8x8x1xi32, #tpu.memory_space<vmem>>, vector<1x8x1xi32>
    %331 = vector.shape_cast %330 : vector<1x8x1xi32> to vector<8x1xi32>
    %332 = vector.shape_cast %329 : vector<8x1xi32> to vector<1x8x1xi32>
    tpu.vector_store %arg13[%c0_146, %c0_147, %c0_148], %332 {strides = array<i32>} : memref<8x8x1xi32, #tpu.memory_space<vmem>>, vector<1x8x1xi32>,
    %c32_i32 = arith.constant 32 : i32
    %333 = vector.broadcast %c32_i32 : i32 to vector<8x1xi32>
    %334 = arith.cmpi sge, %329, %333 : vector<8x1xi32>
    %c1_i32 = arith.constant 1 : i32
    %335 = vector.broadcast %c1_i32 : i32 to vector<8x1xi32>
    %336 = arith.select %334, %335, %329 : vector<8x1xi1>, vector<8x1xi32>
    %337 = vector.broadcast %336 : vector<8x1xi32> to vector<8x32xi32>
    %338 = arith.cmpi eq, %337, %183 : vector<8x32xi32>
    %339 = arith.extui %338 : vector<8x32xi1> to vector<8x32xi32>
    %340 = arith.sitofp %339 : vector<8x32xi32> to vector<8x32xf32>
    %c0_149 = arith.constant 0 : index
    %c0_150 = arith.constant 0 : index
    %341 = vector.load %arg16[%c0_149, %c0_150] : memref<8x96xf32, #tpu.memory_space<vmem>>, vector<8x32xf32>
    tpu.vector_store %arg16[%c0_149, %c0_150], %340 {strides = array<i32>} : memref<8x96xf32, #tpu.memory_space<vmem>>, vector<8x32xf32>,
    %c0_151 = arith.constant 0 : index
    %c32_152 = arith.constant 32 : index
    %342 = vector.load %arg16[%c0_151, %c32_152] : memref<8x96xf32, #tpu.memory_space<vmem>>, vector<8x32xf32>
    tpu.vector_store %arg16[%c0_151, %c32_152], %238 {strides = array<i32>} : memref<8x96xf32, #tpu.memory_space<vmem>>, vector<8x32xf32>,
    %c0_153 = arith.constant 0 : index
    %c64_154 = arith.constant 64 : index
    %343 = vector.load %arg16[%c0_153, %c64_154] : memref<8x96xf32, #tpu.memory_space<vmem>>, vector<8x32xf32>
    tpu.vector_store %arg16[%c0_153, %c64_154], %216 {strides = array<i32>} : memref<8x96xf32, #tpu.memory_space<vmem>>, vector<8x32xf32>,
    %c0_155 = arith.constant 0 : index
    %c0_156 = arith.constant 0 : index
    %344 = vector.load %arg16[%c0_155, %c0_156] : memref<8x96xf32, #tpu.memory_space<vmem>>, vector<8x96xf32>
    %c0_157 = arith.constant 0 : index
    %c0_158 = arith.constant 0 : index
    %345 = vector.load %arg5[%c0_157, %c0_158] : memref<96x128xf32, #tpu.memory_space<vmem>>, vector<96x128xf32>
    %cst_159 = arith.constant dense<0.000000e+00> : vector<8x128xf32>
    %346 = tpu.matmul %344, %345, %cst_159 {dimension_numbers = #tpu.dot_dimension_numbers<[1], [0], [0], [1], [0, 0, 1, 1], [], []>} : vector<8x96xf32>, vector<96x128xf32>, vector<8x128xf32> -> vector<8x128xf32>
    %347 = vector.extract_strided_slice %346 {offsets = [0, 0], sizes = [8, 96], strides = [1, 1]} : vector<8x128xf32> to vector<8x96xf32>
    %348 = arith.negf %347 : vector<8x96xf32>
    %349 = math.exp %348 : vector<8x96xf32>
    %cst_160 = arith.constant 1.000000e+00 : f32
    %350 = vector.broadcast %cst_160 : f32 to vector<8x96xf32>
    %351 = arith.addf %350, %349 : vector<8x96xf32>
    %352 = arith.divf %350, %351 : vector<8x96xf32>
    %353 = vector.extract_strided_slice %346 {offsets = [0, 96], sizes = [8, 32], strides = [1, 1]} : vector<8x128xf32> to vector<8x32xf32>
    %354 = math.tanh %353 : vector<8x32xf32>
    %355 = vector.extract_strided_slice %352 {offsets = [0, 0], sizes = [8, 32], strides = [1, 1]} : vector<8x96xf32> to vector<8x32xf32>
    %356 = vector.extract_strided_slice %352 {offsets = [0, 32], sizes = [8, 32], strides = [1, 1]} : vector<8x96xf32> to vector<8x32xf32>
    %357 = vector.extract_strided_slice %352 {offsets = [0, 64], sizes = [8, 32], strides = [1, 1]} : vector<8x96xf32> to vector<8x32xf32>
    %358 = arith.mulf %356, %214 : vector<8x32xf32>
    %359 = arith.mulf %355, %354 : vector<8x32xf32>
    %360 = arith.addf %358, %359 : vector<8x32xf32>
    %361 = math.tanh %360 : vector<8x32xf32>
    %362 = arith.mulf %357, %361 : vector<8x32xf32>
    %c0_161 = arith.constant 0 : index
    %c0_162 = arith.constant 0 : index
    %363 = vector.load %arg7[%c0_161, %c0_162] : memref<32x256xf32, #tpu.memory_space<vmem>>, vector<32x256xf32>
    %cst_163 = arith.constant dense<0.000000e+00> : vector<8x256xf32>
    %364 = tpu.matmul %362, %363, %cst_163 {dimension_numbers = #tpu.dot_dimension_numbers<[1], [0], [0], [1], [0, 0, 1, 1], [], []>} : vector<8x32xf32>, vector<32x256xf32>, vector<8x256xf32> -> vector<8x256xf32>
    %c0_164 = arith.constant 0 : index
    %c0_165 = arith.constant 0 : index
    %365 = vector.load %arg15[%c0_164, %c0_165] : memref<8x256xf32, #tpu.memory_space<vmem>>, vector<8x256xf32>
    %366 = arith.addf %365, %364 : vector<8x256xf32>
    %367 = math.tanh %366 : vector<8x256xf32>
    %c0_166 = arith.constant 0 : index
    %c0_167 = arith.constant 0 : index
    %368 = vector.load %arg9[%c0_166, %c0_167] : memref<256x8xf32, #tpu.memory_space<vmem>>, vector<256x8xf32>
    %cst_168 = arith.constant dense<0.000000e+00> : vector<8x8xf32>
    %369 = tpu.matmul %367, %368, %cst_168 {dimension_numbers = #tpu.dot_dimension_numbers<[1], [0], [0], [1], [0, 0, 1, 1], [], []>} : vector<8x256xf32>, vector<256x8xf32>, vector<8x8xf32> -> vector<8x8xf32>
    %370 = math.exp %369 : vector<8x8xf32>
    %371 = arith.divf %370, %224 : vector<8x8xf32>
    %372 = arith.addf %224, %370 : vector<8x8xf32>
    %c0_169 = arith.constant 0 : index
    %c0_170 = arith.constant 0 : index
    %373 = vector.load %arg1[%c0_169, %c0_170] : memref<8x8xf32, #tpu.memory_space<vmem>>, vector<8x8xf32>
    %374 = arith.mulf %371, %373 : vector<8x8xf32>
    %cst_171 = arith.constant dense<0.000000e+00> : vector<8xf32>
    %375 = vector.multi_reduction <add>, %374, %cst_171 [1] : vector<8x8xf32> to vector<8xf32>
    %376 = vector.shape_cast %375 : vector<8xf32> to vector<8x1xf32>
    %cst_172 = arith.constant 9.99999996E-13 : f32
    %377 = vector.broadcast %cst_172 : f32 to vector<8x1xf32>
    %378 = arith.addf %376, %377 : vector<8x1xf32>
    %379 = vector.broadcast %378 : vector<8x1xf32> to vector<8x8xf32>
    %380 = arith.divf %374, %379 : vector<8x8xf32>
    %c0_173 = arith.constant 0 : index
    %c0_174 = arith.constant 0 : index
    %381 = vector.load %arg10[%c0_173, %c0_174] : memref<8x256xf32, #tpu.memory_space<vmem>>, vector<8x256xf32>
    %cst_175 = arith.constant dense<0.000000e+00> : vector<8x256xf32>
    %382 = tpu.matmul %380, %381, %cst_175 {dimension_numbers = #tpu.dot_dimension_numbers<[1], [0], [0], [1], [0, 0, 1, 1], [], []>} : vector<8x8xf32>, vector<8x256xf32>, vector<8x256xf32> -> vector<8x256xf32>
    %c0_176 = arith.constant 0 : index
    %c0_177 = arith.constant 0 : index
    %383 = vector.load %arg14[%c0_176, %c0_177] : memref<8x256xf32, #tpu.memory_space<vmem>>, vector<8x256xf32>
    %384 = arith.mulf %382, %383 : vector<8x256xf32>
    %c0_178 = arith.constant 0 : index
    %c0_179 = arith.constant 0 : index
    %385 = vector.load %arg11[%c0_178, %c0_179] : memref<256x32xf32, #tpu.memory_space<vmem>>, vector<256x32xf32>
    %cst_180 = arith.constant dense<0.000000e+00> : vector<8x32xf32>
    %386 = tpu.matmul %384, %385, %cst_180 {dimension_numbers = #tpu.dot_dimension_numbers<[1], [0], [0], [1], [0, 0, 1, 1], [], []>} : vector<8x256xf32>, vector<256x32xf32>, vector<8x32xf32> -> vector<8x32xf32>
    %c0_181 = arith.constant 0 : index
    %c0_182 = arith.constant 0 : index
    %387 = vector.load %arg16[%c0_181, %c0_182] : memref<8x96xf32, #tpu.memory_space<vmem>>, vector<8x32xf32>
    tpu.vector_store %arg16[%c0_181, %c0_182], %340 {strides = array<i32>} : memref<8x96xf32, #tpu.memory_space<vmem>>, vector<8x32xf32>,
    %c0_183 = arith.constant 0 : index
    %c32_184 = arith.constant 32 : index
    %388 = vector.load %arg16[%c0_183, %c32_184] : memref<8x96xf32, #tpu.memory_space<vmem>>, vector<8x32xf32>
    tpu.vector_store %arg16[%c0_183, %c32_184], %386 {strides = array<i32>} : memref<8x96xf32, #tpu.memory_space<vmem>>, vector<8x32xf32>,
    %c0_185 = arith.constant 0 : index
    %c64_186 = arith.constant 64 : index
    %389 = vector.load %arg16[%c0_185, %c64_186] : memref<8x96xf32, #tpu.memory_space<vmem>>, vector<8x32xf32>
    tpu.vector_store %arg16[%c0_185, %c64_186], %362 {strides = array<i32>} : memref<8x96xf32, #tpu.memory_space<vmem>>, vector<8x32xf32>,
    %c0_187 = arith.constant 0 : index
    %c0_188 = arith.constant 0 : index
    %390 = vector.load %arg16[%c0_187, %c0_188] : memref<8x96xf32, #tpu.memory_space<vmem>>, vector<8x96xf32>
    %c0_189 = arith.constant 0 : index
    %c0_190 = arith.constant 0 : index
    %391 = vector.load %arg6[%c0_189, %c0_190] : memref<96x128xf32, #tpu.memory_space<vmem>>, vector<96x128xf32>
    %cst_191 = arith.constant dense<0.000000e+00> : vector<8x128xf32>
    %392 = tpu.matmul %390, %391, %cst_191 {dimension_numbers = #tpu.dot_dimension_numbers<[1], [0], [0], [1], [0, 0, 1, 1], [], []>} : vector<8x96xf32>, vector<96x128xf32>, vector<8x128xf32> -> vector<8x128xf32>
    %393 = vector.extract_strided_slice %392 {offsets = [0, 127], sizes = [8, 1], strides = [1, 1]} : vector<8x128xf32> to vector<8x1xf32>
    %394 = arith.negf %393 : vector<8x1xf32>
    %395 = math.exp %394 : vector<8x1xf32>
    %cst_192 = arith.constant 1.000000e+00 : f32
    %396 = vector.broadcast %cst_192 : f32 to vector<8x1xf32>
    %397 = arith.addf %396, %395 : vector<8x1xf32>
    %398 = arith.divf %396, %397 : vector<8x1xf32>
    %399 = vector.broadcast %190 : vector<1x128xf32> to vector<8x128xf32>
    %400 = arith.addf %392, %399 : vector<8x128xf32>
    %cst_193 = arith.constant dense<0xFF800000> : vector<8xf32>
    %401 = vector.multi_reduction <maximumf>, %400, %cst_193 [1] : vector<8x128xf32> to vector<8xf32>
    %402 = vector.shape_cast %401 : vector<8xf32> to vector<8x1xf32>
    %403 = vector.broadcast %402 : vector<8x1xf32> to vector<8x128xf32>
    %404 = arith.subf %400, %403 : vector<8x128xf32>
    %405 = math.exp %404 : vector<8x128xf32>
    %cst_194 = arith.constant dense<0.000000e+00> : vector<8xf32>
    %406 = vector.multi_reduction <add>, %405, %cst_194 [1] : vector<8x128xf32> to vector<8xf32>
    %407 = vector.shape_cast %406 : vector<8xf32> to vector<8x1xf32>
    %408 = vector.broadcast %407 : vector<8x1xf32> to vector<8x128xf32>
    %409 = arith.divf %405, %408 : vector<8x128xf32>
    %410 = vector.extract_strided_slice %380 {offsets = [0, 0], sizes = [8, 1], strides = [1, 1]} : vector<8x8xf32> to vector<8x1xf32>
    %c0_195 = arith.constant 0 : index
    %c0_196 = arith.constant 0 : index
    %c0_197 = arith.constant 0 : index
    %411 = vector.load %arg2[%c0_195, %c0_196, %c0_197] : memref<8x8x128xf32, #tpu.memory_space<vmem>>, vector<1x8x128xf32>
    %412 = vector.shape_cast %411 : vector<1x8x128xf32> to vector<8x128xf32>
    %413 = vector.broadcast %410 : vector<8x1xf32> to vector<8x128xf32>
    %414 = arith.mulf %413, %412 : vector<8x128xf32>
    %415 = vector.extract_strided_slice %380 {offsets = [0, 1], sizes = [8, 1], strides = [1, 1]} : vector<8x8xf32> to vector<8x1xf32>
    %c1_198 = arith.constant 1 : index
    %c0_199 = arith.constant 0 : index
    %c0_200 = arith.constant 0 : index
    %416 = vector.load %arg2[%c1_198, %c0_199, %c0_200] : memref<8x8x128xf32, #tpu.memory_space<vmem>>, vector<1x8x128xf32>
    %417 = vector.shape_cast %416 : vector<1x8x128xf32> to vector<8x128xf32>
    %418 = vector.broadcast %415 : vector<8x1xf32> to vector<8x128xf32>
    %419 = arith.mulf %418, %417 : vector<8x128xf32>
    %420 = arith.addf %414, %419 : vector<8x128xf32>
    %421 = vector.extract_strided_slice %380 {offsets = [0, 2], sizes = [8, 1], strides = [1, 1]} : vector<8x8xf32> to vector<8x1xf32>
    %c2_201 = arith.constant 2 : index
    %c0_202 = arith.constant 0 : index
    %c0_203 = arith.constant 0 : index
    %422 = vector.load %arg2[%c2_201, %c0_202, %c0_203] : memref<8x8x128xf32, #tpu.memory_space<vmem>>, vector<1x8x128xf32>
    %423 = vector.shape_cast %422 : vector<1x8x128xf32> to vector<8x128xf32>
    %424 = vector.broadcast %421 : vector<8x1xf32> to vector<8x128xf32>
    %425 = arith.mulf %424, %423 : vector<8x128xf32>
    %426 = arith.addf %420, %425 : vector<8x128xf32>
    %427 = vector.extract_strided_slice %380 {offsets = [0, 3], sizes = [8, 1], strides = [1, 1]} : vector<8x8xf32> to vector<8x1xf32>
    %c3_204 = arith.constant 3 : index
    %c0_205 = arith.constant 0 : index
    %c0_206 = arith.constant 0 : index
    %428 = vector.load %arg2[%c3_204, %c0_205, %c0_206] : memref<8x8x128xf32, #tpu.memory_space<vmem>>, vector<1x8x128xf32>
    %429 = vector.shape_cast %428 : vector<1x8x128xf32> to vector<8x128xf32>
    %430 = vector.broadcast %427 : vector<8x1xf32> to vector<8x128xf32>
    %431 = arith.mulf %430, %429 : vector<8x128xf32>
    %432 = arith.addf %426, %431 : vector<8x128xf32>
    %433 = vector.extract_strided_slice %380 {offsets = [0, 4], sizes = [8, 1], strides = [1, 1]} : vector<8x8xf32> to vector<8x1xf32>
    %c4_207 = arith.constant 4 : index
    %c0_208 = arith.constant 0 : index
    %c0_209 = arith.constant 0 : index
    %434 = vector.load %arg2[%c4_207, %c0_208, %c0_209] : memref<8x8x128xf32, #tpu.memory_space<vmem>>, vector<1x8x128xf32>
    %435 = vector.shape_cast %434 : vector<1x8x128xf32> to vector<8x128xf32>
    %436 = vector.broadcast %433 : vector<8x1xf32> to vector<8x128xf32>
    %437 = arith.mulf %436, %435 : vector<8x128xf32>
    %438 = arith.addf %432, %437 : vector<8x128xf32>
    %439 = vector.extract_strided_slice %380 {offsets = [0, 5], sizes = [8, 1], strides = [1, 1]} : vector<8x8xf32> to vector<8x1xf32>
    %c5_210 = arith.constant 5 : index
    %c0_211 = arith.constant 0 : index
    %c0_212 = arith.constant 0 : index
    %440 = vector.load %arg2[%c5_210, %c0_211, %c0_212] : memref<8x8x128xf32, #tpu.memory_space<vmem>>, vector<1x8x128xf32>
    %441 = vector.shape_cast %440 : vector<1x8x128xf32> to vector<8x128xf32>
    %442 = vector.broadcast %439 : vector<8x1xf32> to vector<8x128xf32>
    %443 = arith.mulf %442, %441 : vector<8x128xf32>
    %444 = arith.addf %438, %443 : vector<8x128xf32>
    %445 = vector.extract_strided_slice %380 {offsets = [0, 6], sizes = [8, 1], strides = [1, 1]} : vector<8x8xf32> to vector<8x1xf32>
    %c6_213 = arith.constant 6 : index
    %c0_214 = arith.constant 0 : index
    %c0_215 = arith.constant 0 : index
    %446 = vector.load %arg2[%c6_213, %c0_214, %c0_215] : memref<8x8x128xf32, #tpu.memory_space<vmem>>, vector<1x8x128xf32>
    %447 = vector.shape_cast %446 : vector<1x8x128xf32> to vector<8x128xf32>
    %448 = vector.broadcast %445 : vector<8x1xf32> to vector<8x128xf32>
    %449 = arith.mulf %448, %447 : vector<8x128xf32>
    %450 = arith.addf %444, %449 : vector<8x128xf32>
    %451 = vector.extract_strided_slice %380 {offsets = [0, 7], sizes = [8, 1], strides = [1, 1]} : vector<8x8xf32> to vector<8x1xf32>
    %c7_216 = arith.constant 7 : index
    %c0_217 = arith.constant 0 : index
    %c0_218 = arith.constant 0 : index
    %452 = vector.load %arg2[%c7_216, %c0_217, %c0_218] : memref<8x8x128xf32, #tpu.memory_space<vmem>>, vector<1x8x128xf32>
    %453 = vector.shape_cast %452 : vector<1x8x128xf32> to vector<8x128xf32>
    %454 = vector.broadcast %451 : vector<8x1xf32> to vector<8x128xf32>
    %455 = arith.mulf %454, %453 : vector<8x128xf32>
    %456 = arith.addf %450, %455 : vector<8x128xf32>
    %457 = vector.broadcast %398 : vector<8x1xf32> to vector<8x128xf32>
    %458 = arith.mulf %457, %409 : vector<8x128xf32>
    %cst_219 = arith.constant 1.000000e+00 : f32
    %459 = vector.broadcast %cst_219 : f32 to vector<8x1xf32>
    %460 = arith.subf %459, %398 : vector<8x1xf32>
    %461 = vector.broadcast %460 : vector<8x1xf32> to vector<8x128xf32>
    %462 = arith.mulf %461, %456 : vector<8x128xf32>
    %463 = arith.addf %458, %462 : vector<8x128xf32>
    %c1_220 = arith.constant 1 : index
    %c0_221 = arith.constant 0 : index
    %c0_222 = arith.constant 0 : index
    %464 = vector.load %arg12[%c1_220, %c0_221, %c0_222] : memref<8x8x128xf32, #tpu.memory_space<vmem>>, vector<1x8x128xf32>
    %465 = vector.shape_cast %464 : vector<1x8x128xf32> to vector<8x128xf32>
    %466 = vector.shape_cast %463 : vector<8x128xf32> to vector<1x8x128xf32>
    tpu.vector_store %arg12[%c1_220, %c0_221, %c0_222], %466 {strides = array<i32>} : memref<8x8x128xf32, #tpu.memory_space<vmem>>, vector<1x8x128xf32>,
    %cst_223 = arith.constant dense<0xFF800000> : vector<8xf32>
    %467 = vector.multi_reduction <maximumf>, %463, %cst_223 [1] : vector<8x128xf32> to vector<8xf32>
    %468 = vector.shape_cast %467 : vector<8xf32> to vector<8x1xf32>
    %469 = vector.broadcast %468 : vector<8x1xf32> to vector<8x128xf32>
    %470 = arith.cmpf oeq, %463, %469 : vector<8x128xf32>
    %cst_224 = arith.constant 1.280000e+02 : f32
    %471 = vector.shape_cast %185 : vector<1x128xf32> to vector<1x128xf32>
    %472 = vector.broadcast %471 : vector<1x128xf32> to vector<8x128xf32>
    %473 = vector.broadcast %cst_224 : f32 to vector<8x128xf32>
    %474 = arith.select %470, %472, %473 : vector<8x128xi1>, vector<8x128xf32>
    %cst_225 = arith.constant dense<0x7F800000> : vector<8xf32>
    %475 = vector.multi_reduction <minimumf>, %474, %cst_225 [1] : vector<8x128xf32> to vector<8xf32>
    %476 = vector.shape_cast %475 : vector<8xf32> to vector<8x1xf32>
    %477 = arith.fptosi %476 : vector<8x1xf32> to vector<8x1xi32>
    %c1_226 = arith.constant 1 : index
    %c0_227 = arith.constant 0 : index
    %c0_228 = arith.constant 0 : index
    %478 = vector.load %arg13[%c1_226, %c0_227, %c0_228] : memref<8x8x1xi32, #tpu.memory_space<vmem>>, vector<1x8x1xi32>
    %479 = vector.shape_cast %478 : vector<1x8x1xi32> to vector<8x1xi32>
    %480 = vector.shape_cast %477 : vector<8x1xi32> to vector<1x8x1xi32>
    tpu.vector_store %arg13[%c1_226, %c0_227, %c0_228], %480 {strides = array<i32>} : memref<8x8x1xi32, #tpu.memory_space<vmem>>, vector<1x8x1xi32>,
    %c32_i32_229 = arith.constant 32 : i32
    %481 = vector.broadcast %c32_i32_229 : i32 to vector<8x1xi32>
    %482 = arith.cmpi sge, %477, %481 : vector<8x1xi32>
    %c1_i32_230 = arith.constant 1 : i32
    %483 = vector.broadcast %c1_i32_230 : i32 to vector<8x1xi32>
    %484 = arith.select %482, %483, %477 : vector<8x1xi1>, vector<8x1xi32>
    %485 = vector.broadcast %484 : vector<8x1xi32> to vector<8x32xi32>
    %486 = arith.cmpi eq, %485, %183 : vector<8x32xi32>
    %487 = arith.extui %486 : vector<8x32xi1> to vector<8x32xi32>
    %488 = arith.sitofp %487 : vector<8x32xi32> to vector<8x32xf32>
    %c0_231 = arith.constant 0 : index
    %c0_232 = arith.constant 0 : index
    %489 = vector.load %arg16[%c0_231, %c0_232] : memref<8x96xf32, #tpu.memory_space<vmem>>, vector<8x32xf32>
    tpu.vector_store %arg16[%c0_231, %c0_232], %488 {strides = array<i32>} : memref<8x96xf32, #tpu.memory_space<vmem>>, vector<8x32xf32>,
    %c0_233 = arith.constant 0 : index
    %c32_234 = arith.constant 32 : index
    %490 = vector.load %arg16[%c0_233, %c32_234] : memref<8x96xf32, #tpu.memory_space<vmem>>, vector<8x32xf32>
    tpu.vector_store %arg16[%c0_233, %c32_234], %386 {strides = array<i32>} : memref<8x96xf32, #tpu.memory_space<vmem>>, vector<8x32xf32>,
    %c0_235 = arith.constant 0 : index
    %c64_236 = arith.constant 64 : index
    %491 = vector.load %arg16[%c0_235, %c64_236] : memref<8x96xf32, #tpu.memory_space<vmem>>, vector<8x32xf32>
    tpu.vector_store %arg16[%c0_235, %c64_236], %362 {strides = array<i32>} : memref<8x96xf32, #tpu.memory_space<vmem>>, vector<8x32xf32>,
    %c0_237 = arith.constant 0 : index
    %c0_238 = arith.constant 0 : index
    %492 = vector.load %arg16[%c0_237, %c0_238] : memref<8x96xf32, #tpu.memory_space<vmem>>, vector<8x96xf32>
    %c0_239 = arith.constant 0 : index
    %c0_240 = arith.constant 0 : index
    %493 = vector.load %arg5[%c0_239, %c0_240] : memref<96x128xf32, #tpu.memory_space<vmem>>, vector<96x128xf32>
    %cst_241 = arith.constant dense<0.000000e+00> : vector<8x128xf32>
    %494 = tpu.matmul %492, %493, %cst_241 {dimension_numbers = #tpu.dot_dimension_numbers<[1], [0], [0], [1], [0, 0, 1, 1], [], []>} : vector<8x96xf32>, vector<96x128xf32>, vector<8x128xf32> -> vector<8x128xf32>
    %495 = vector.extract_strided_slice %494 {offsets = [0, 0], sizes = [8, 96], strides = [1, 1]} : vector<8x128xf32> to vector<8x96xf32>
    %496 = arith.negf %495 : vector<8x96xf32>
    %497 = math.exp %496 : vector<8x96xf32>
    %cst_242 = arith.constant 1.000000e+00 : f32
    %498 = vector.broadcast %cst_242 : f32 to vector<8x96xf32>
    %499 = arith.addf %498, %497 : vector<8x96xf32>
    %500 = arith.divf %498, %499 : vector<8x96xf32>
    %501 = vector.extract_strided_slice %494 {offsets = [0, 96], sizes = [8, 32], strides = [1, 1]} : vector<8x128xf32> to vector<8x32xf32>
    %502 = math.tanh %501 : vector<8x32xf32>
    %503 = vector.extract_strided_slice %500 {offsets = [0, 0], sizes = [8, 32], strides = [1, 1]} : vector<8x96xf32> to vector<8x32xf32>
    %504 = vector.extract_strided_slice %500 {offsets = [0, 32], sizes = [8, 32], strides = [1, 1]} : vector<8x96xf32> to vector<8x32xf32>
    %505 = vector.extract_strided_slice %500 {offsets = [0, 64], sizes = [8, 32], strides = [1, 1]} : vector<8x96xf32> to vector<8x32xf32>
    %506 = arith.mulf %504, %360 : vector<8x32xf32>
    %507 = arith.mulf %503, %502 : vector<8x32xf32>
    %508 = arith.addf %506, %507 : vector<8x32xf32>
    %509 = math.tanh %508 : vector<8x32xf32>
    %510 = arith.mulf %505, %509 : vector<8x32xf32>
    %c0_243 = arith.constant 0 : index
    %c0_244 = arith.constant 0 : index
    %511 = vector.load %arg7[%c0_243, %c0_244] : memref<32x256xf32, #tpu.memory_space<vmem>>, vector<32x256xf32>
    %cst_245 = arith.constant dense<0.000000e+00> : vector<8x256xf32>
    %512 = tpu.matmul %510, %511, %cst_245 {dimension_numbers = #tpu.dot_dimension_numbers<[1], [0], [0], [1], [0, 0, 1, 1], [], []>} : vector<8x32xf32>, vector<32x256xf32>, vector<8x256xf32> -> vector<8x256xf32>
    %c0_246 = arith.constant 0 : index
    %c0_247 = arith.constant 0 : index
    %513 = vector.load %arg15[%c0_246, %c0_247] : memref<8x256xf32, #tpu.memory_space<vmem>>, vector<8x256xf32>
    %514 = arith.addf %513, %512 : vector<8x256xf32>
    %515 = math.tanh %514 : vector<8x256xf32>
    %c0_248 = arith.constant 0 : index
    %c0_249 = arith.constant 0 : index
    %516 = vector.load %arg9[%c0_248, %c0_249] : memref<256x8xf32, #tpu.memory_space<vmem>>, vector<256x8xf32>
    %cst_250 = arith.constant dense<0.000000e+00> : vector<8x8xf32>
    %517 = tpu.matmul %515, %516, %cst_250 {dimension_numbers = #tpu.dot_dimension_numbers<[1], [0], [0], [1], [0, 0, 1, 1], [], []>} : vector<8x256xf32>, vector<256x8xf32>, vector<8x8xf32> -> vector<8x8xf32>
    %518 = math.exp %517 : vector<8x8xf32>
    %519 = arith.divf %518, %372 : vector<8x8xf32>
    %520 = arith.addf %372, %518 : vector<8x8xf32>
    %c0_251 = arith.constant 0 : index
    %c0_252 = arith.constant 0 : index
    %521 = vector.load %arg1[%c0_251, %c0_252] : memref<8x8xf32, #tpu.memory_space<vmem>>, vector<8x8xf32>
    %522 = arith.mulf %519, %521 : vector<8x8xf32>
    %cst_253 = arith.constant dense<0.000000e+00> : vector<8xf32>
    %523 = vector.multi_reduction <add>, %522, %cst_253 [1] : vector<8x8xf32> to vector<8xf32>
    %524 = vector.shape_cast %523 : vector<8xf32> to vector<8x1xf32>
    %cst_254 = arith.constant 9.99999996E-13 : f32
    %525 = vector.broadcast %cst_254 : f32 to vector<8x1xf32>
    %526 = arith.addf %524, %525 : vector<8x1xf32>
    %527 = vector.broadcast %526 : vector<8x1xf32> to vector<8x8xf32>
    %528 = arith.divf %522, %527 : vector<8x8xf32>
    %c0_255 = arith.constant 0 : index
    %c0_256 = arith.constant 0 : index
    %529 = vector.load %arg10[%c0_255, %c0_256] : memref<8x256xf32, #tpu.memory_space<vmem>>, vector<8x256xf32>
    %cst_257 = arith.constant dense<0.000000e+00> : vector<8x256xf32>
    %530 = tpu.matmul %528, %529, %cst_257 {dimension_numbers = #tpu.dot_dimension_numbers<[1], [0], [0], [1], [0, 0, 1, 1], [], []>} : vector<8x8xf32>, vector<8x256xf32>, vector<8x256xf32> -> vector<8x256xf32>
    %c0_258 = arith.constant 0 : index
    %c0_259 = arith.constant 0 : index
    %531 = vector.load %arg14[%c0_258, %c0_259] : memref<8x256xf32, #tpu.memory_space<vmem>>, vector<8x256xf32>
    %532 = arith.mulf %530, %531 : vector<8x256xf32>
    %c0_260 = arith.constant 0 : index
    %c0_261 = arith.constant 0 : index
    %533 = vector.load %arg11[%c0_260, %c0_261] : memref<256x32xf32, #tpu.memory_space<vmem>>, vector<256x32xf32>
    %cst_262 = arith.constant dense<0.000000e+00> : vector<8x32xf32>
    %534 = tpu.matmul %532, %533, %cst_262 {dimension_numbers = #tpu.dot_dimension_numbers<[1], [0], [0], [1], [0, 0, 1, 1], [], []>} : vector<8x256xf32>, vector<256x32xf32>, vector<8x32xf32> -> vector<8x32xf32>
    %c0_263 = arith.constant 0 : index
    %c0_264 = arith.constant 0 : index
    %535 = vector.load %arg16[%c0_263, %c0_264] : memref<8x96xf32, #tpu.memory_space<vmem>>, vector<8x32xf32>
    tpu.vector_store %arg16[%c0_263, %c0_264], %488 {strides = array<i32>} : memref<8x96xf32, #tpu.memory_space<vmem>>, vector<8x32xf32>,
    %c0_265 = arith.constant 0 : index
    %c32_266 = arith.constant 32 : index
    %536 = vector.load %arg16[%c0_265, %c32_266] : memref<8x96xf32, #tpu.memory_space<vmem>>, vector<8x32xf32>
    tpu.vector_store %arg16[%c0_265, %c32_266], %534 {strides = array<i32>} : memref<8x96xf32, #tpu.memory_space<vmem>>, vector<8x32xf32>,
    %c0_267 = arith.constant 0 : index
    %c64_268 = arith.constant 64 : index
    %537 = vector.load %arg16[%c0_267, %c64_268] : memref<8x96xf32, #tpu.memory_space<vmem>>, vector<8x32xf32>
    tpu.vector_store %arg16[%c0_267, %c64_268], %510 {strides = array<i32>} : memref<8x96xf32, #tpu.memory_space<vmem>>, vector<8x32xf32>,
    %c0_269 = arith.constant 0 : index
    %c0_270 = arith.constant 0 : index
    %538 = vector.load %arg16[%c0_269, %c0_270] : memref<8x96xf32, #tpu.memory_space<vmem>>, vector<8x96xf32>
    %c0_271 = arith.constant 0 : index
    %c0_272 = arith.constant 0 : index
    %539 = vector.load %arg6[%c0_271, %c0_272] : memref<96x128xf32, #tpu.memory_space<vmem>>, vector<96x128xf32>
    %cst_273 = arith.constant dense<0.000000e+00> : vector<8x128xf32>
    %540 = tpu.matmul %538, %539, %cst_273 {dimension_numbers = #tpu.dot_dimension_numbers<[1], [0], [0], [1], [0, 0, 1, 1], [], []>} : vector<8x96xf32>, vector<96x128xf32>, vector<8x128xf32> -> vector<8x128xf32>
    %541 = vector.extract_strided_slice %540 {offsets = [0, 127], sizes = [8, 1], strides = [1, 1]} : vector<8x128xf32> to vector<8x1xf32>
    %542 = arith.negf %541 : vector<8x1xf32>
    %543 = math.exp %542 : vector<8x1xf32>
    %cst_274 = arith.constant 1.000000e+00 : f32
    %544 = vector.broadcast %cst_274 : f32 to vector<8x1xf32>
    %545 = arith.addf %544, %543 : vector<8x1xf32>
    %546 = arith.divf %544, %545 : vector<8x1xf32>
    %547 = vector.broadcast %190 : vector<1x128xf32> to vector<8x128xf32>
    %548 = arith.addf %540, %547 : vector<8x128xf32>
    %cst_275 = arith.constant dense<0xFF800000> : vector<8xf32>
    %549 = vector.multi_reduction <maximumf>, %548, %cst_275 [1] : vector<8x128xf32> to vector<8xf32>
    %550 = vector.shape_cast %549 : vector<8xf32> to vector<8x1xf32>
    %551 = vector.broadcast %550 : vector<8x1xf32> to vector<8x128xf32>
    %552 = arith.subf %548, %551 : vector<8x128xf32>
    %553 = math.exp %552 : vector<8x128xf32>
    %cst_276 = arith.constant dense<0.000000e+00> : vector<8xf32>
    %554 = vector.multi_reduction <add>, %553, %cst_276 [1] : vector<8x128xf32> to vector<8xf32>
    %555 = vector.shape_cast %554 : vector<8xf32> to vector<8x1xf32>
    %556 = vector.broadcast %555 : vector<8x1xf32> to vector<8x128xf32>
    %557 = arith.divf %553, %556 : vector<8x128xf32>
    %558 = vector.extract_strided_slice %528 {offsets = [0, 0], sizes = [8, 1], strides = [1, 1]} : vector<8x8xf32> to vector<8x1xf32>
    %c0_277 = arith.constant 0 : index
    %c0_278 = arith.constant 0 : index
    %c0_279 = arith.constant 0 : index
    %559 = vector.load %arg2[%c0_277, %c0_278, %c0_279] : memref<8x8x128xf32, #tpu.memory_space<vmem>>, vector<1x8x128xf32>
    %560 = vector.shape_cast %559 : vector<1x8x128xf32> to vector<8x128xf32>
    %561 = vector.broadcast %558 : vector<8x1xf32> to vector<8x128xf32>
    %562 = arith.mulf %561, %560 : vector<8x128xf32>
    %563 = vector.extract_strided_slice %528 {offsets = [0, 1], sizes = [8, 1], strides = [1, 1]} : vector<8x8xf32> to vector<8x1xf32>
    %c1_280 = arith.constant 1 : index
    %c0_281 = arith.constant 0 : index
    %c0_282 = arith.constant 0 : index
    %564 = vector.load %arg2[%c1_280, %c0_281, %c0_282] : memref<8x8x128xf32, #tpu.memory_space<vmem>>, vector<1x8x128xf32>
    %565 = vector.shape_cast %564 : vector<1x8x128xf32> to vector<8x128xf32>
    %566 = vector.broadcast %563 : vector<8x1xf32> to vector<8x128xf32>
    %567 = arith.mulf %566, %565 : vector<8x128xf32>
    %568 = arith.addf %562, %567 : vector<8x128xf32>
    %569 = vector.extract_strided_slice %528 {offsets = [0, 2], sizes = [8, 1], strides = [1, 1]} : vector<8x8xf32> to vector<8x1xf32>
    %c2_283 = arith.constant 2 : index
    %c0_284 = arith.constant 0 : index
    %c0_285 = arith.constant 0 : index
    %570 = vector.load %arg2[%c2_283, %c0_284, %c0_285] : memref<8x8x128xf32, #tpu.memory_space<vmem>>, vector<1x8x128xf32>
    %571 = vector.shape_cast %570 : vector<1x8x128xf32> to vector<8x128xf32>
    %572 = vector.broadcast %569 : vector<8x1xf32> to vector<8x128xf32>
    %573 = arith.mulf %572, %571 : vector<8x128xf32>
    %574 = arith.addf %568, %573 : vector<8x128xf32>
    %575 = vector.extract_strided_slice %528 {offsets = [0, 3], sizes = [8, 1], strides = [1, 1]} : vector<8x8xf32> to vector<8x1xf32>
    %c3_286 = arith.constant 3 : index
    %c0_287 = arith.constant 0 : index
    %c0_288 = arith.constant 0 : index
    %576 = vector.load %arg2[%c3_286, %c0_287, %c0_288] : memref<8x8x128xf32, #tpu.memory_space<vmem>>, vector<1x8x128xf32>
    %577 = vector.shape_cast %576 : vector<1x8x128xf32> to vector<8x128xf32>
    %578 = vector.broadcast %575 : vector<8x1xf32> to vector<8x128xf32>
    %579 = arith.mulf %578, %577 : vector<8x128xf32>
    %580 = arith.addf %574, %579 : vector<8x128xf32>
    %581 = vector.extract_strided_slice %528 {offsets = [0, 4], sizes = [8, 1], strides = [1, 1]} : vector<8x8xf32> to vector<8x1xf32>
    %c4_289 = arith.constant 4 : index
    %c0_290 = arith.constant 0 : index
    %c0_291 = arith.constant 0 : index
    %582 = vector.load %arg2[%c4_289, %c0_290, %c0_291] : memref<8x8x128xf32, #tpu.memory_space<vmem>>, vector<1x8x128xf32>
    %583 = vector.shape_cast %582 : vector<1x8x128xf32> to vector<8x128xf32>
    %584 = vector.broadcast %581 : vector<8x1xf32> to vector<8x128xf32>
    %585 = arith.mulf %584, %583 : vector<8x128xf32>
    %586 = arith.addf %580, %585 : vector<8x128xf32>
    %587 = vector.extract_strided_slice %528 {offsets = [0, 5], sizes = [8, 1], strides = [1, 1]} : vector<8x8xf32> to vector<8x1xf32>
    %c5_292 = arith.constant 5 : index
    %c0_293 = arith.constant 0 : index
    %c0_294 = arith.constant 0 : index
    %588 = vector.load %arg2[%c5_292, %c0_293, %c0_294] : memref<8x8x128xf32, #tpu.memory_space<vmem>>, vector<1x8x128xf32>
    %589 = vector.shape_cast %588 : vector<1x8x128xf32> to vector<8x128xf32>
    %590 = vector.broadcast %587 : vector<8x1xf32> to vector<8x128xf32>
    %591 = arith.mulf %590, %589 : vector<8x128xf32>
    %592 = arith.addf %586, %591 : vector<8x128xf32>
    %593 = vector.extract_strided_slice %528 {offsets = [0, 6], sizes = [8, 1], strides = [1, 1]} : vector<8x8xf32> to vector<8x1xf32>
    %c6_295 = arith.constant 6 : index
    %c0_296 = arith.constant 0 : index
    %c0_297 = arith.constant 0 : index
    %594 = vector.load %arg2[%c6_295, %c0_296, %c0_297] : memref<8x8x128xf32, #tpu.memory_space<vmem>>, vector<1x8x128xf32>
    %595 = vector.shape_cast %594 : vector<1x8x128xf32> to vector<8x128xf32>
    %596 = vector.broadcast %593 : vector<8x1xf32> to vector<8x128xf32>
    %597 = arith.mulf %596, %595 : vector<8x128xf32>
    %598 = arith.addf %592, %597 : vector<8x128xf32>
    %599 = vector.extract_strided_slice %528 {offsets = [0, 7], sizes = [8, 1], strides = [1, 1]} : vector<8x8xf32> to vector<8x1xf32>
    %c7_298 = arith.constant 7 : index
    %c0_299 = arith.constant 0 : index
    %c0_300 = arith.constant 0 : index
    %600 = vector.load %arg2[%c7_298, %c0_299, %c0_300] : memref<8x8x128xf32, #tpu.memory_space<vmem>>, vector<1x8x128xf32>
    %601 = vector.shape_cast %600 : vector<1x8x128xf32> to vector<8x128xf32>
    %602 = vector.broadcast %599 : vector<8x1xf32> to vector<8x128xf32>
    %603 = arith.mulf %602, %601 : vector<8x128xf32>
    %604 = arith.addf %598, %603 : vector<8x128xf32>
    %605 = vector.broadcast %546 : vector<8x1xf32> to vector<8x128xf32>
    %606 = arith.mulf %605, %557 : vector<8x128xf32>
    %cst_301 = arith.constant 1.000000e+00 : f32
    %607 = vector.broadcast %cst_301 : f32 to vector<8x1xf32>
    %608 = arith.subf %607, %546 : vector<8x1xf32>
    %609 = vector.broadcast %608 : vector<8x1xf32> to vector<8x128xf32>
    %610 = arith.mulf %609, %604 : vector<8x128xf32>
    %611 = arith.addf %606, %610 : vector<8x128xf32>
    %c2_302 = arith.constant 2 : index
    %c0_303 = arith.constant 0 : index
    %c0_304 = arith.constant 0 : index
    %612 = vector.load %arg12[%c2_302, %c0_303, %c0_304] : memref<8x8x128xf32, #tpu.memory_space<vmem>>, vector<1x8x128xf32>
    %613 = vector.shape_cast %612 : vector<1x8x128xf32> to vector<8x128xf32>
    %614 = vector.shape_cast %611 : vector<8x128xf32> to vector<1x8x128xf32>
    tpu.vector_store %arg12[%c2_302, %c0_303, %c0_304], %614 {strides = array<i32>} : memref<8x8x128xf32, #tpu.memory_space<vmem>>, vector<1x8x128xf32>,
    %cst_305 = arith.constant dense<0xFF800000> : vector<8xf32>
    %615 = vector.multi_reduction <maximumf>, %611, %cst_305 [1] : vector<8x128xf32> to vector<8xf32>
    %616 = vector.shape_cast %615 : vector<8xf32> to vector<8x1xf32>
    %617 = vector.broadcast %616 : vector<8x1xf32> to vector<8x128xf32>
    %618 = arith.cmpf oeq, %611, %617 : vector<8x128xf32>
    %cst_306 = arith.constant 1.280000e+02 : f32
    %619 = vector.shape_cast %185 : vector<1x128xf32> to vector<1x128xf32>
    %620 = vector.broadcast %619 : vector<1x128xf32> to vector<8x128xf32>
    %621 = vector.broadcast %cst_306 : f32 to vector<8x128xf32>
    %622 = arith.select %618, %620, %621 : vector<8x128xi1>, vector<8x128xf32>
    %cst_307 = arith.constant dense<0x7F800000> : vector<8xf32>
    %623 = vector.multi_reduction <minimumf>, %622, %cst_307 [1] : vector<8x128xf32> to vector<8xf32>
    %624 = vector.shape_cast %623 : vector<8xf32> to vector<8x1xf32>
    %625 = arith.fptosi %624 : vector<8x1xf32> to vector<8x1xi32>
    %c2_308 = arith.constant 2 : index
    %c0_309 = arith.constant 0 : index
    %c0_310 = arith.constant 0 : index
    %626 = vector.load %arg13[%c2_308, %c0_309, %c0_310] : memref<8x8x1xi32, #tpu.memory_space<vmem>>, vector<1x8x1xi32>
    %627 = vector.shape_cast %626 : vector<1x8x1xi32> to vector<8x1xi32>
    %628 = vector.shape_cast %625 : vector<8x1xi32> to vector<1x8x1xi32>
    tpu.vector_store %arg13[%c2_308, %c0_309, %c0_310], %628 {strides = array<i32>} : memref<8x8x1xi32, #tpu.memory_space<vmem>>, vector<1x8x1xi32>,
    %c32_i32_311 = arith.constant 32 : i32
    %629 = vector.broadcast %c32_i32_311 : i32 to vector<8x1xi32>
    %630 = arith.cmpi sge, %625, %629 : vector<8x1xi32>
    %c1_i32_312 = arith.constant 1 : i32
    %631 = vector.broadcast %c1_i32_312 : i32 to vector<8x1xi32>
    %632 = arith.select %630, %631, %625 : vector<8x1xi1>, vector<8x1xi32>
    %633 = vector.broadcast %632 : vector<8x1xi32> to vector<8x32xi32>
    %634 = arith.cmpi eq, %633, %183 : vector<8x32xi32>
    %635 = arith.extui %634 : vector<8x32xi1> to vector<8x32xi32>
    %636 = arith.sitofp %635 : vector<8x32xi32> to vector<8x32xf32>
    %c0_313 = arith.constant 0 : index
    %c0_314 = arith.constant 0 : index
    %637 = vector.load %arg16[%c0_313, %c0_314] : memref<8x96xf32, #tpu.memory_space<vmem>>, vector<8x32xf32>
    tpu.vector_store %arg16[%c0_313, %c0_314], %636 {strides = array<i32>} : memref<8x96xf32, #tpu.memory_space<vmem>>, vector<8x32xf32>,
    %c0_315 = arith.constant 0 : index
    %c32_316 = arith.constant 32 : index
    %638 = vector.load %arg16[%c0_315, %c32_316] : memref<8x96xf32, #tpu.memory_space<vmem>>, vector<8x32xf32>
    tpu.vector_store %arg16[%c0_315, %c32_316], %534 {strides = array<i32>} : memref<8x96xf32, #tpu.memory_space<vmem>>, vector<8x32xf32>,
    %c0_317 = arith.constant 0 : index
    %c64_318 = arith.constant 64 : index
    %639 = vector.load %arg16[%c0_317, %c64_318] : memref<8x96xf32, #tpu.memory_space<vmem>>, vector<8x32xf32>
    tpu.vector_store %arg16[%c0_317, %c64_318], %510 {strides = array<i32>} : memref<8x96xf32, #tpu.memory_space<vmem>>, vector<8x32xf32>,
    %c0_319 = arith.constant 0 : index
    %c0_320 = arith.constant 0 : index
    %640 = vector.load %arg16[%c0_319, %c0_320] : memref<8x96xf32, #tpu.memory_space<vmem>>, vector<8x96xf32>
    %c0_321 = arith.constant 0 : index
    %c0_322 = arith.constant 0 : index
    %641 = vector.load %arg5[%c0_321, %c0_322] : memref<96x128xf32, #tpu.memory_space<vmem>>, vector<96x128xf32>
    %cst_323 = arith.constant dense<0.000000e+00> : vector<8x128xf32>
    %642 = tpu.matmul %640, %641, %cst_323 {dimension_numbers = #tpu.dot_dimension_numbers<[1], [0], [0], [1], [0, 0, 1, 1], [], []>} : vector<8x96xf32>, vector<96x128xf32>, vector<8x128xf32> -> vector<8x128xf32>
    %643 = vector.extract_strided_slice %642 {offsets = [0, 0], sizes = [8, 96], strides = [1, 1]} : vector<8x128xf32> to vector<8x96xf32>
    %644 = arith.negf %643 : vector<8x96xf32>
    %645 = math.exp %644 : vector<8x96xf32>
    %cst_324 = arith.constant 1.000000e+00 : f32
    %646 = vector.broadcast %cst_324 : f32 to vector<8x96xf32>
    %647 = arith.addf %646, %645 : vector<8x96xf32>
    %648 = arith.divf %646, %647 : vector<8x96xf32>
    %649 = vector.extract_strided_slice %642 {offsets = [0, 96], sizes = [8, 32], strides = [1, 1]} : vector<8x128xf32> to vector<8x32xf32>
    %650 = math.tanh %649 : vector<8x32xf32>
    %651 = vector.extract_strided_slice %648 {offsets = [0, 0], sizes = [8, 32], strides = [1, 1]} : vector<8x96xf32> to vector<8x32xf32>
    %652 = vector.extract_strided_slice %648 {offsets = [0, 32], sizes = [8, 32], strides = [1, 1]} : vector<8x96xf32> to vector<8x32xf32>
    %653 = vector.extract_strided_slice %648 {offsets = [0, 64], sizes = [8, 32], strides = [1, 1]} : vector<8x96xf32> to vector<8x32xf32>
    %654 = arith.mulf %652, %508 : vector<8x32xf32>
    %655 = arith.mulf %651, %650 : vector<8x32xf32>
    %656 = arith.addf %654, %655 : vector<8x32xf32>
    %657 = math.tanh %656 : vector<8x32xf32>
    %658 = arith.mulf %653, %657 : vector<8x32xf32>
    %c0_325 = arith.constant 0 : index
    %c0_326 = arith.constant 0 : index
    %659 = vector.load %arg7[%c0_325, %c0_326] : memref<32x256xf32, #tpu.memory_space<vmem>>, vector<32x256xf32>
    %cst_327 = arith.constant dense<0.000000e+00> : vector<8x256xf32>
    %660 = tpu.matmul %658, %659, %cst_327 {dimension_numbers = #tpu.dot_dimension_numbers<[1], [0], [0], [1], [0, 0, 1, 1], [], []>} : vector<8x32xf32>, vector<32x256xf32>, vector<8x256xf32> -> vector<8x256xf32>
    %c0_328 = arith.constant 0 : index
    %c0_329 = arith.constant 0 : index
    %661 = vector.load %arg15[%c0_328, %c0_329] : memref<8x256xf32, #tpu.memory_space<vmem>>, vector<8x256xf32>
    %662 = arith.addf %661, %660 : vector<8x256xf32>
    %663 = math.tanh %662 : vector<8x256xf32>
    %c0_330 = arith.constant 0 : index
    %c0_331 = arith.constant 0 : index
    %664 = vector.load %arg9[%c0_330, %c0_331] : memref<256x8xf32, #tpu.memory_space<vmem>>, vector<256x8xf32>
    %cst_332 = arith.constant dense<0.000000e+00> : vector<8x8xf32>
    %665 = tpu.matmul %663, %664, %cst_332 {dimension_numbers = #tpu.dot_dimension_numbers<[1], [0], [0], [1], [0, 0, 1, 1], [], []>} : vector<8x256xf32>, vector<256x8xf32>, vector<8x8xf32> -> vector<8x8xf32>
    %666 = math.exp %665 : vector<8x8xf32>
    %667 = arith.divf %666, %520 : vector<8x8xf32>
    %668 = arith.addf %520, %666 : vector<8x8xf32>
    %c0_333 = arith.constant 0 : index
    %c0_334 = arith.constant 0 : index
    %669 = vector.load %arg1[%c0_333, %c0_334] : memref<8x8xf32, #tpu.memory_space<vmem>>, vector<8x8xf32>
    %670 = arith.mulf %667, %669 : vector<8x8xf32>
    %cst_335 = arith.constant dense<0.000000e+00> : vector<8xf32>
    %671 = vector.multi_reduction <add>, %670, %cst_335 [1] : vector<8x8xf32> to vector<8xf32>
    %672 = vector.shape_cast %671 : vector<8xf32> to vector<8x1xf32>
    %cst_336 = arith.constant 9.99999996E-13 : f32
    %673 = vector.broadcast %cst_336 : f32 to vector<8x1xf32>
    %674 = arith.addf %672, %673 : vector<8x1xf32>
    %675 = vector.broadcast %674 : vector<8x1xf32> to vector<8x8xf32>
    %676 = arith.divf %670, %675 : vector<8x8xf32>
    %c0_337 = arith.constant 0 : index
    %c0_338 = arith.constant 0 : index
    %677 = vector.load %arg10[%c0_337, %c0_338] : memref<8x256xf32, #tpu.memory_space<vmem>>, vector<8x256xf32>
    %cst_339 = arith.constant dense<0.000000e+00> : vector<8x256xf32>
    %678 = tpu.matmul %676, %677, %cst_339 {dimension_numbers = #tpu.dot_dimension_numbers<[1], [0], [0], [1], [0, 0, 1, 1], [], []>} : vector<8x8xf32>, vector<8x256xf32>, vector<8x256xf32> -> vector<8x256xf32>
    %c0_340 = arith.constant 0 : index
    %c0_341 = arith.constant 0 : index
    %679 = vector.load %arg14[%c0_340, %c0_341] : memref<8x256xf32, #tpu.memory_space<vmem>>, vector<8x256xf32>
    %680 = arith.mulf %678, %679 : vector<8x256xf32>
    %c0_342 = arith.constant 0 : index
    %c0_343 = arith.constant 0 : index
    %681 = vector.load %arg11[%c0_342, %c0_343] : memref<256x32xf32, #tpu.memory_space<vmem>>, vector<256x32xf32>
    %cst_344 = arith.constant dense<0.000000e+00> : vector<8x32xf32>
    %682 = tpu.matmul %680, %681, %cst_344 {dimension_numbers = #tpu.dot_dimension_numbers<[1], [0], [0], [1], [0, 0, 1, 1], [], []>} : vector<8x256xf32>, vector<256x32xf32>, vector<8x32xf32> -> vector<8x32xf32>
    %c0_345 = arith.constant 0 : index
    %c0_346 = arith.constant 0 : index
    %683 = vector.load %arg16[%c0_345, %c0_346] : memref<8x96xf32, #tpu.memory_space<vmem>>, vector<8x32xf32>
    tpu.vector_store %arg16[%c0_345, %c0_346], %636 {strides = array<i32>} : memref<8x96xf32, #tpu.memory_space<vmem>>, vector<8x32xf32>,
    %c0_347 = arith.constant 0 : index
    %c32_348 = arith.constant 32 : index
    %684 = vector.load %arg16[%c0_347, %c32_348] : memref<8x96xf32, #tpu.memory_space<vmem>>, vector<8x32xf32>
    tpu.vector_store %arg16[%c0_347, %c32_348], %682 {strides = array<i32>} : memref<8x96xf32, #tpu.memory_space<vmem>>, vector<8x32xf32>,
    %c0_349 = arith.constant 0 : index
    %c64_350 = arith.constant 64 : index
    %685 = vector.load %arg16[%c0_349, %c64_350] : memref<8x96xf32, #tpu.memory_space<vmem>>, vector<8x32xf32>
    tpu.vector_store %arg16[%c0_349, %c64_350], %658 {strides = array<i32>} : memref<8x96xf32, #tpu.memory_space<vmem>>, vector<8x32xf32>,
    %c0_351 = arith.constant 0 : index
    %c0_352 = arith.constant 0 : index
    %686 = vector.load %arg16[%c0_351, %c0_352] : memref<8x96xf32, #tpu.memory_space<vmem>>, vector<8x96xf32>
    %c0_353 = arith.constant 0 : index
    %c0_354 = arith.constant 0 : index
    %687 = vector.load %arg6[%c0_353, %c0_354] : memref<96x128xf32, #tpu.memory_space<vmem>>, vector<96x128xf32>
    %cst_355 = arith.constant dense<0.000000e+00> : vector<8x128xf32>
    %688 = tpu.matmul %686, %687, %cst_355 {dimension_numbers = #tpu.dot_dimension_numbers<[1], [0], [0], [1], [0, 0, 1, 1], [], []>} : vector<8x96xf32>, vector<96x128xf32>, vector<8x128xf32> -> vector<8x128xf32>
    %689 = vector.extract_strided_slice %688 {offsets = [0, 127], sizes = [8, 1], strides = [1, 1]} : vector<8x128xf32> to vector<8x1xf32>
    %690 = arith.negf %689 : vector<8x1xf32>
    %691 = math.exp %690 : vector<8x1xf32>
    %cst_356 = arith.constant 1.000000e+00 : f32
    %692 = vector.broadcast %cst_356 : f32 to vector<8x1xf32>
    %693 = arith.addf %692, %691 : vector<8x1xf32>
    %694 = arith.divf %692, %693 : vector<8x1xf32>
    %695 = vector.broadcast %190 : vector<1x128xf32> to vector<8x128xf32>
    %696 = arith.addf %688, %695 : vector<8x128xf32>
    %cst_357 = arith.constant dense<0xFF800000> : vector<8xf32>
    %697 = vector.multi_reduction <maximumf>, %696, %cst_357 [1] : vector<8x128xf32> to vector<8xf32>
    %698 = vector.shape_cast %697 : vector<8xf32> to vector<8x1xf32>
    %699 = vector.broadcast %698 : vector<8x1xf32> to vector<8x128xf32>
    %700 = arith.subf %696, %699 : vector<8x128xf32>
    %701 = math.exp %700 : vector<8x128xf32>
    %cst_358 = arith.constant dense<0.000000e+00> : vector<8xf32>
    %702 = vector.multi_reduction <add>, %701, %cst_358 [1] : vector<8x128xf32> to vector<8xf32>
    %703 = vector.shape_cast %702 : vector<8xf32> to vector<8x1xf32>
    %704 = vector.broadcast %703 : vector<8x1xf32> to vector<8x128xf32>
    %705 = arith.divf %701, %704 : vector<8x128xf32>
    %706 = vector.extract_strided_slice %676 {offsets = [0, 0], sizes = [8, 1], strides = [1, 1]} : vector<8x8xf32> to vector<8x1xf32>
    %c0_359 = arith.constant 0 : index
    %c0_360 = arith.constant 0 : index
    %c0_361 = arith.constant 0 : index
    %707 = vector.load %arg2[%c0_359, %c0_360, %c0_361] : memref<8x8x128xf32, #tpu.memory_space<vmem>>, vector<1x8x128xf32>
    %708 = vector.shape_cast %707 : vector<1x8x128xf32> to vector<8x128xf32>
    %709 = vector.broadcast %706 : vector<8x1xf32> to vector<8x128xf32>
    %710 = arith.mulf %709, %708 : vector<8x128xf32>
    %711 = vector.extract_strided_slice %676 {offsets = [0, 1], sizes = [8, 1], strides = [1, 1]} : vector<8x8xf32> to vector<8x1xf32>
    %c1_362 = arith.constant 1 : index
    %c0_363 = arith.constant 0 : index
    %c0_364 = arith.constant 0 : index
    %712 = vector.load %arg2[%c1_362, %c0_363, %c0_364] : memref<8x8x128xf32, #tpu.memory_space<vmem>>, vector<1x8x128xf32>
    %713 = vector.shape_cast %712 : vector<1x8x128xf32> to vector<8x128xf32>
    %714 = vector.broadcast %711 : vector<8x1xf32> to vector<8x128xf32>
    %715 = arith.mulf %714, %713 : vector<8x128xf32>
    %716 = arith.addf %710, %715 : vector<8x128xf32>
    %717 = vector.extract_strided_slice %676 {offsets = [0, 2], sizes = [8, 1], strides = [1, 1]} : vector<8x8xf32> to vector<8x1xf32>
    %c2_365 = arith.constant 2 : index
    %c0_366 = arith.constant 0 : index
    %c0_367 = arith.constant 0 : index
    %718 = vector.load %arg2[%c2_365, %c0_366, %c0_367] : memref<8x8x128xf32, #tpu.memory_space<vmem>>, vector<1x8x128xf32>
    %719 = vector.shape_cast %718 : vector<1x8x128xf32> to vector<8x128xf32>
    %720 = vector.broadcast %717 : vector<8x1xf32> to vector<8x128xf32>
    %721 = arith.mulf %720, %719 : vector<8x128xf32>
    %722 = arith.addf %716, %721 : vector<8x128xf32>
    %723 = vector.extract_strided_slice %676 {offsets = [0, 3], sizes = [8, 1], strides = [1, 1]} : vector<8x8xf32> to vector<8x1xf32>
    %c3_368 = arith.constant 3 : index
    %c0_369 = arith.constant 0 : index
    %c0_370 = arith.constant 0 : index
    %724 = vector.load %arg2[%c3_368, %c0_369, %c0_370] : memref<8x8x128xf32, #tpu.memory_space<vmem>>, vector<1x8x128xf32>
    %725 = vector.shape_cast %724 : vector<1x8x128xf32> to vector<8x128xf32>
    %726 = vector.broadcast %723 : vector<8x1xf32> to vector<8x128xf32>
    %727 = arith.mulf %726, %725 : vector<8x128xf32>
    %728 = arith.addf %722, %727 : vector<8x128xf32>
    %729 = vector.extract_strided_slice %676 {offsets = [0, 4], sizes = [8, 1], strides = [1, 1]} : vector<8x8xf32> to vector<8x1xf32>
    %c4_371 = arith.constant 4 : index
    %c0_372 = arith.constant 0 : index
    %c0_373 = arith.constant 0 : index
    %730 = vector.load %arg2[%c4_371, %c0_372, %c0_373] : memref<8x8x128xf32, #tpu.memory_space<vmem>>, vector<1x8x128xf32>
    %731 = vector.shape_cast %730 : vector<1x8x128xf32> to vector<8x128xf32>
    %732 = vector.broadcast %729 : vector<8x1xf32> to vector<8x128xf32>
    %733 = arith.mulf %732, %731 : vector<8x128xf32>
    %734 = arith.addf %728, %733 : vector<8x128xf32>
    %735 = vector.extract_strided_slice %676 {offsets = [0, 5], sizes = [8, 1], strides = [1, 1]} : vector<8x8xf32> to vector<8x1xf32>
    %c5_374 = arith.constant 5 : index
    %c0_375 = arith.constant 0 : index
    %c0_376 = arith.constant 0 : index
    %736 = vector.load %arg2[%c5_374, %c0_375, %c0_376] : memref<8x8x128xf32, #tpu.memory_space<vmem>>, vector<1x8x128xf32>
    %737 = vector.shape_cast %736 : vector<1x8x128xf32> to vector<8x128xf32>
    %738 = vector.broadcast %735 : vector<8x1xf32> to vector<8x128xf32>
    %739 = arith.mulf %738, %737 : vector<8x128xf32>
    %740 = arith.addf %734, %739 : vector<8x128xf32>
    %741 = vector.extract_strided_slice %676 {offsets = [0, 6], sizes = [8, 1], strides = [1, 1]} : vector<8x8xf32> to vector<8x1xf32>
    %c6_377 = arith.constant 6 : index
    %c0_378 = arith.constant 0 : index
    %c0_379 = arith.constant 0 : index
    %742 = vector.load %arg2[%c6_377, %c0_378, %c0_379] : memref<8x8x128xf32, #tpu.memory_space<vmem>>, vector<1x8x128xf32>
    %743 = vector.shape_cast %742 : vector<1x8x128xf32> to vector<8x128xf32>
    %744 = vector.broadcast %741 : vector<8x1xf32> to vector<8x128xf32>
    %745 = arith.mulf %744, %743 : vector<8x128xf32>
    %746 = arith.addf %740, %745 : vector<8x128xf32>
    %747 = vector.extract_strided_slice %676 {offsets = [0, 7], sizes = [8, 1], strides = [1, 1]} : vector<8x8xf32> to vector<8x1xf32>
    %c7_380 = arith.constant 7 : index
    %c0_381 = arith.constant 0 : index
    %c0_382 = arith.constant 0 : index
    %748 = vector.load %arg2[%c7_380, %c0_381, %c0_382] : memref<8x8x128xf32, #tpu.memory_space<vmem>>, vector<1x8x128xf32>
    %749 = vector.shape_cast %748 : vector<1x8x128xf32> to vector<8x128xf32>
    %750 = vector.broadcast %747 : vector<8x1xf32> to vector<8x128xf32>
    %751 = arith.mulf %750, %749 : vector<8x128xf32>
    %752 = arith.addf %746, %751 : vector<8x128xf32>
    %753 = vector.broadcast %694 : vector<8x1xf32> to vector<8x128xf32>
    %754 = arith.mulf %753, %705 : vector<8x128xf32>
    %cst_383 = arith.constant 1.000000e+00 : f32
    %755 = vector.broadcast %cst_383 : f32 to vector<8x1xf32>
    %756 = arith.subf %755, %694 : vector<8x1xf32>
    %757 = vector.broadcast %756 : vector<8x1xf32> to vector<8x128xf32>
    %758 = arith.mulf %757, %752 : vector<8x128xf32>
    %759 = arith.addf %754, %758 : vector<8x128xf32>
    %c3_384 = arith.constant 3 : index
    %c0_385 = arith.constant 0 : index
    %c0_386 = arith.constant 0 : index
    %760 = vector.load %arg12[%c3_384, %c0_385, %c0_386] : memref<8x8x128xf32, #tpu.memory_space<vmem>>, vector<1x8x128xf32>
    %761 = vector.shape_cast %760 : vector<1x8x128xf32> to vector<8x128xf32>
    %762 = vector.shape_cast %759 : vector<8x128xf32> to vector<1x8x128xf32>
    tpu.vector_store %arg12[%c3_384, %c0_385, %c0_386], %762 {strides = array<i32>} : memref<8x8x128xf32, #tpu.memory_space<vmem>>, vector<1x8x128xf32>,
    %cst_387 = arith.constant dense<0xFF800000> : vector<8xf32>
    %763 = vector.multi_reduction <maximumf>, %759, %cst_387 [1] : vector<8x128xf32> to vector<8xf32>
    %764 = vector.shape_cast %763 : vector<8xf32> to vector<8x1xf32>
    %765 = vector.broadcast %764 : vector<8x1xf32> to vector<8x128xf32>
    %766 = arith.cmpf oeq, %759, %765 : vector<8x128xf32>
    %cst_388 = arith.constant 1.280000e+02 : f32
    %767 = vector.shape_cast %185 : vector<1x128xf32> to vector<1x128xf32>
    %768 = vector.broadcast %767 : vector<1x128xf32> to vector<8x128xf32>
    %769 = vector.broadcast %cst_388 : f32 to vector<8x128xf32>
    %770 = arith.select %766, %768, %769 : vector<8x128xi1>, vector<8x128xf32>
    %cst_389 = arith.constant dense<0x7F800000> : vector<8xf32>
    %771 = vector.multi_reduction <minimumf>, %770, %cst_389 [1] : vector<8x128xf32> to vector<8xf32>
    %772 = vector.shape_cast %771 : vector<8xf32> to vector<8x1xf32>
    %773 = arith.fptosi %772 : vector<8x1xf32> to vector<8x1xi32>
    %c3_390 = arith.constant 3 : index
    %c0_391 = arith.constant 0 : index
    %c0_392 = arith.constant 0 : index
    %774 = vector.load %arg13[%c3_390, %c0_391, %c0_392] : memref<8x8x1xi32, #tpu.memory_space<vmem>>, vector<1x8x1xi32>
    %775 = vector.shape_cast %774 : vector<1x8x1xi32> to vector<8x1xi32>
    %776 = vector.shape_cast %773 : vector<8x1xi32> to vector<1x8x1xi32>
    tpu.vector_store %arg13[%c3_390, %c0_391, %c0_392], %776 {strides = array<i32>} : memref<8x8x1xi32, #tpu.memory_space<vmem>>, vector<1x8x1xi32>,
    %c32_i32_393 = arith.constant 32 : i32
    %777 = vector.broadcast %c32_i32_393 : i32 to vector<8x1xi32>
    %778 = arith.cmpi sge, %773, %777 : vector<8x1xi32>
    %c1_i32_394 = arith.constant 1 : i32
    %779 = vector.broadcast %c1_i32_394 : i32 to vector<8x1xi32>
    %780 = arith.select %778, %779, %773 : vector<8x1xi1>, vector<8x1xi32>
    %781 = vector.broadcast %780 : vector<8x1xi32> to vector<8x32xi32>
    %782 = arith.cmpi eq, %781, %183 : vector<8x32xi32>
    %783 = arith.extui %782 : vector<8x32xi1> to vector<8x32xi32>
    %784 = arith.sitofp %783 : vector<8x32xi32> to vector<8x32xf32>
    %c0_395 = arith.constant 0 : index
    %c0_396 = arith.constant 0 : index
    %785 = vector.load %arg16[%c0_395, %c0_396] : memref<8x96xf32, #tpu.memory_space<vmem>>, vector<8x32xf32>
    tpu.vector_store %arg16[%c0_395, %c0_396], %784 {strides = array<i32>} : memref<8x96xf32, #tpu.memory_space<vmem>>, vector<8x32xf32>,
    %c0_397 = arith.constant 0 : index
    %c32_398 = arith.constant 32 : index
    %786 = vector.load %arg16[%c0_397, %c32_398] : memref<8x96xf32, #tpu.memory_space<vmem>>, vector<8x32xf32>
    tpu.vector_store %arg16[%c0_397, %c32_398], %682 {strides = array<i32>} : memref<8x96xf32, #tpu.memory_space<vmem>>, vector<8x32xf32>,
    %c0_399 = arith.constant 0 : index
    %c64_400 = arith.constant 64 : index
    %787 = vector.load %arg16[%c0_399, %c64_400] : memref<8x96xf32, #tpu.memory_space<vmem>>, vector<8x32xf32>
    tpu.vector_store %arg16[%c0_399, %c64_400], %658 {strides = array<i32>} : memref<8x96xf32, #tpu.memory_space<vmem>>, vector<8x32xf32>,
    %c0_401 = arith.constant 0 : index
    %c0_402 = arith.constant 0 : index
    %788 = vector.load %arg16[%c0_401, %c0_402] : memref<8x96xf32, #tpu.memory_space<vmem>>, vector<8x96xf32>
    %c0_403 = arith.constant 0 : index
    %c0_404 = arith.constant 0 : index
    %789 = vector.load %arg5[%c0_403, %c0_404] : memref<96x128xf32, #tpu.memory_space<vmem>>, vector<96x128xf32>
    %cst_405 = arith.constant dense<0.000000e+00> : vector<8x128xf32>
    %790 = tpu.matmul %788, %789, %cst_405 {dimension_numbers = #tpu.dot_dimension_numbers<[1], [0], [0], [1], [0, 0, 1, 1], [], []>} : vector<8x96xf32>, vector<96x128xf32>, vector<8x128xf32> -> vector<8x128xf32>
    %791 = vector.extract_strided_slice %790 {offsets = [0, 0], sizes = [8, 96], strides = [1, 1]} : vector<8x128xf32> to vector<8x96xf32>
    %792 = arith.negf %791 : vector<8x96xf32>
    %793 = math.exp %792 : vector<8x96xf32>
    %cst_406 = arith.constant 1.000000e+00 : f32
    %794 = vector.broadcast %cst_406 : f32 to vector<8x96xf32>
    %795 = arith.addf %794, %793 : vector<8x96xf32>
    %796 = arith.divf %794, %795 : vector<8x96xf32>
    %797 = vector.extract_strided_slice %790 {offsets = [0, 96], sizes = [8, 32], strides = [1, 1]} : vector<8x128xf32> to vector<8x32xf32>
    %798 = math.tanh %797 : vector<8x32xf32>
    %799 = vector.extract_strided_slice %796 {offsets = [0, 0], sizes = [8, 32], strides = [1, 1]} : vector<8x96xf32> to vector<8x32xf32>
    %800 = vector.extract_strided_slice %796 {offsets = [0, 32], sizes = [8, 32], strides = [1, 1]} : vector<8x96xf32> to vector<8x32xf32>
    %801 = vector.extract_strided_slice %796 {offsets = [0, 64], sizes = [8, 32], strides = [1, 1]} : vector<8x96xf32> to vector<8x32xf32>
    %802 = arith.mulf %800, %656 : vector<8x32xf32>
    %803 = arith.mulf %799, %798 : vector<8x32xf32>
    %804 = arith.addf %802, %803 : vector<8x32xf32>
    %805 = math.tanh %804 : vector<8x32xf32>
    %806 = arith.mulf %801, %805 : vector<8x32xf32>
    %c0_407 = arith.constant 0 : index
    %c0_408 = arith.constant 0 : index
    %807 = vector.load %arg7[%c0_407, %c0_408] : memref<32x256xf32, #tpu.memory_space<vmem>>, vector<32x256xf32>
    %cst_409 = arith.constant dense<0.000000e+00> : vector<8x256xf32>
    %808 = tpu.matmul %806, %807, %cst_409 {dimension_numbers = #tpu.dot_dimension_numbers<[1], [0], [0], [1], [0, 0, 1, 1], [], []>} : vector<8x32xf32>, vector<32x256xf32>, vector<8x256xf32> -> vector<8x256xf32>
    %c0_410 = arith.constant 0 : index
    %c0_411 = arith.constant 0 : index
    %809 = vector.load %arg15[%c0_410, %c0_411] : memref<8x256xf32, #tpu.memory_space<vmem>>, vector<8x256xf32>
    %810 = arith.addf %809, %808 : vector<8x256xf32>
    %811 = math.tanh %810 : vector<8x256xf32>
    %c0_412 = arith.constant 0 : index
    %c0_413 = arith.constant 0 : index
    %812 = vector.load %arg9[%c0_412, %c0_413] : memref<256x8xf32, #tpu.memory_space<vmem>>, vector<256x8xf32>
    %cst_414 = arith.constant dense<0.000000e+00> : vector<8x8xf32>
    %813 = tpu.matmul %811, %812, %cst_414 {dimension_numbers = #tpu.dot_dimension_numbers<[1], [0], [0], [1], [0, 0, 1, 1], [], []>} : vector<8x256xf32>, vector<256x8xf32>, vector<8x8xf32> -> vector<8x8xf32>
    %814 = math.exp %813 : vector<8x8xf32>
    %815 = arith.divf %814, %668 : vector<8x8xf32>
    %816 = arith.addf %668, %814 : vector<8x8xf32>
    %c0_415 = arith.constant 0 : index
    %c0_416 = arith.constant 0 : index
    %817 = vector.load %arg1[%c0_415, %c0_416] : memref<8x8xf32, #tpu.memory_space<vmem>>, vector<8x8xf32>
    %818 = arith.mulf %815, %817 : vector<8x8xf32>
    %cst_417 = arith.constant dense<0.000000e+00> : vector<8xf32>
    %819 = vector.multi_reduction <add>, %818, %cst_417 [1] : vector<8x8xf32> to vector<8xf32>
    %820 = vector.shape_cast %819 : vector<8xf32> to vector<8x1xf32>
    %cst_418 = arith.constant 9.99999996E-13 : f32
    %821 = vector.broadcast %cst_418 : f32 to vector<8x1xf32>
    %822 = arith.addf %820, %821 : vector<8x1xf32>
    %823 = vector.broadcast %822 : vector<8x1xf32> to vector<8x8xf32>
    %824 = arith.divf %818, %823 : vector<8x8xf32>
    %c0_419 = arith.constant 0 : index
    %c0_420 = arith.constant 0 : index
    %825 = vector.load %arg10[%c0_419, %c0_420] : memref<8x256xf32, #tpu.memory_space<vmem>>, vector<8x256xf32>
    %cst_421 = arith.constant dense<0.000000e+00> : vector<8x256xf32>
    %826 = tpu.matmul %824, %825, %cst_421 {dimension_numbers = #tpu.dot_dimension_numbers<[1], [0], [0], [1], [0, 0, 1, 1], [], []>} : vector<8x8xf32>, vector<8x256xf32>, vector<8x256xf32> -> vector<8x256xf32>
    %c0_422 = arith.constant 0 : index
    %c0_423 = arith.constant 0 : index
    %827 = vector.load %arg14[%c0_422, %c0_423] : memref<8x256xf32, #tpu.memory_space<vmem>>, vector<8x256xf32>
    %828 = arith.mulf %826, %827 : vector<8x256xf32>
    %c0_424 = arith.constant 0 : index
    %c0_425 = arith.constant 0 : index
    %829 = vector.load %arg11[%c0_424, %c0_425] : memref<256x32xf32, #tpu.memory_space<vmem>>, vector<256x32xf32>
    %cst_426 = arith.constant dense<0.000000e+00> : vector<8x32xf32>
    %830 = tpu.matmul %828, %829, %cst_426 {dimension_numbers = #tpu.dot_dimension_numbers<[1], [0], [0], [1], [0, 0, 1, 1], [], []>} : vector<8x256xf32>, vector<256x32xf32>, vector<8x32xf32> -> vector<8x32xf32>
    %c0_427 = arith.constant 0 : index
    %c0_428 = arith.constant 0 : index
    %831 = vector.load %arg16[%c0_427, %c0_428] : memref<8x96xf32, #tpu.memory_space<vmem>>, vector<8x32xf32>
    tpu.vector_store %arg16[%c0_427, %c0_428], %784 {strides = array<i32>} : memref<8x96xf32, #tpu.memory_space<vmem>>, vector<8x32xf32>,
    %c0_429 = arith.constant 0 : index
    %c32_430 = arith.constant 32 : index
    %832 = vector.load %arg16[%c0_429, %c32_430] : memref<8x96xf32, #tpu.memory_space<vmem>>, vector<8x32xf32>
    tpu.vector_store %arg16[%c0_429, %c32_430], %830 {strides = array<i32>} : memref<8x96xf32, #tpu.memory_space<vmem>>, vector<8x32xf32>,
    %c0_431 = arith.constant 0 : index
    %c64_432 = arith.constant 64 : index
    %833 = vector.load %arg16[%c0_431, %c64_432] : memref<8x96xf32, #tpu.memory_space<vmem>>, vector<8x32xf32>
    tpu.vector_store %arg16[%c0_431, %c64_432], %806 {strides = array<i32>} : memref<8x96xf32, #tpu.memory_space<vmem>>, vector<8x32xf32>,
    %c0_433 = arith.constant 0 : index
    %c0_434 = arith.constant 0 : index
    %834 = vector.load %arg16[%c0_433, %c0_434] : memref<8x96xf32, #tpu.memory_space<vmem>>, vector<8x96xf32>
    %c0_435 = arith.constant 0 : index
    %c0_436 = arith.constant 0 : index
    %835 = vector.load %arg6[%c0_435, %c0_436] : memref<96x128xf32, #tpu.memory_space<vmem>>, vector<96x128xf32>
    %cst_437 = arith.constant dense<0.000000e+00> : vector<8x128xf32>
    %836 = tpu.matmul %834, %835, %cst_437 {dimension_numbers = #tpu.dot_dimension_numbers<[1], [0], [0], [1], [0, 0, 1, 1], [], []>} : vector<8x96xf32>, vector<96x128xf32>, vector<8x128xf32> -> vector<8x128xf32>
    %837 = vector.extract_strided_slice %836 {offsets = [0, 127], sizes = [8, 1], strides = [1, 1]} : vector<8x128xf32> to vector<8x1xf32>
    %838 = arith.negf %837 : vector<8x1xf32>
    %839 = math.exp %838 : vector<8x1xf32>
    %cst_438 = arith.constant 1.000000e+00 : f32
    %840 = vector.broadcast %cst_438 : f32 to vector<8x1xf32>
    %841 = arith.addf %840, %839 : vector<8x1xf32>
    %842 = arith.divf %840, %841 : vector<8x1xf32>
    %843 = vector.broadcast %190 : vector<1x128xf32> to vector<8x128xf32>
    %844 = arith.addf %836, %843 : vector<8x128xf32>
    %cst_439 = arith.constant dense<0xFF800000> : vector<8xf32>
    %845 = vector.multi_reduction <maximumf>, %844, %cst_439 [1] : vector<8x128xf32> to vector<8xf32>
    %846 = vector.shape_cast %845 : vector<8xf32> to vector<8x1xf32>
    %847 = vector.broadcast %846 : vector<8x1xf32> to vector<8x128xf32>
    %848 = arith.subf %844, %847 : vector<8x128xf32>
    %849 = math.exp %848 : vector<8x128xf32>
    %cst_440 = arith.constant dense<0.000000e+00> : vector<8xf32>
    %850 = vector.multi_reduction <add>, %849, %cst_440 [1] : vector<8x128xf32> to vector<8xf32>
    %851 = vector.shape_cast %850 : vector<8xf32> to vector<8x1xf32>
    %852 = vector.broadcast %851 : vector<8x1xf32> to vector<8x128xf32>
    %853 = arith.divf %849, %852 : vector<8x128xf32>
    %854 = vector.extract_strided_slice %824 {offsets = [0, 0], sizes = [8, 1], strides = [1, 1]} : vector<8x8xf32> to vector<8x1xf32>
    %c0_441 = arith.constant 0 : index
    %c0_442 = arith.constant 0 : index
    %c0_443 = arith.constant 0 : index
    %855 = vector.load %arg2[%c0_441, %c0_442, %c0_443] : memref<8x8x128xf32, #tpu.memory_space<vmem>>, vector<1x8x128xf32>
    %856 = vector.shape_cast %855 : vector<1x8x128xf32> to vector<8x128xf32>
    %857 = vector.broadcast %854 : vector<8x1xf32> to vector<8x128xf32>
    %858 = arith.mulf %857, %856 : vector<8x128xf32>
    %859 = vector.extract_strided_slice %824 {offsets = [0, 1], sizes = [8, 1], strides = [1, 1]} : vector<8x8xf32> to vector<8x1xf32>
    %c1_444 = arith.constant 1 : index
    %c0_445 = arith.constant 0 : index
    %c0_446 = arith.constant 0 : index
    %860 = vector.load %arg2[%c1_444, %c0_445, %c0_446] : memref<8x8x128xf32, #tpu.memory_space<vmem>>, vector<1x8x128xf32>
    %861 = vector.shape_cast %860 : vector<1x8x128xf32> to vector<8x128xf32>
    %862 = vector.broadcast %859 : vector<8x1xf32> to vector<8x128xf32>
    %863 = arith.mulf %862, %861 : vector<8x128xf32>
    %864 = arith.addf %858, %863 : vector<8x128xf32>
    %865 = vector.extract_strided_slice %824 {offsets = [0, 2], sizes = [8, 1], strides = [1, 1]} : vector<8x8xf32> to vector<8x1xf32>
    %c2_447 = arith.constant 2 : index
    %c0_448 = arith.constant 0 : index
    %c0_449 = arith.constant 0 : index
    %866 = vector.load %arg2[%c2_447, %c0_448, %c0_449] : memref<8x8x128xf32, #tpu.memory_space<vmem>>, vector<1x8x128xf32>
    %867 = vector.shape_cast %866 : vector<1x8x128xf32> to vector<8x128xf32>
    %868 = vector.broadcast %865 : vector<8x1xf32> to vector<8x128xf32>
    %869 = arith.mulf %868, %867 : vector<8x128xf32>
    %870 = arith.addf %864, %869 : vector<8x128xf32>
    %871 = vector.extract_strided_slice %824 {offsets = [0, 3], sizes = [8, 1], strides = [1, 1]} : vector<8x8xf32> to vector<8x1xf32>
    %c3_450 = arith.constant 3 : index
    %c0_451 = arith.constant 0 : index
    %c0_452 = arith.constant 0 : index
    %872 = vector.load %arg2[%c3_450, %c0_451, %c0_452] : memref<8x8x128xf32, #tpu.memory_space<vmem>>, vector<1x8x128xf32>
    %873 = vector.shape_cast %872 : vector<1x8x128xf32> to vector<8x128xf32>
    %874 = vector.broadcast %871 : vector<8x1xf32> to vector<8x128xf32>
    %875 = arith.mulf %874, %873 : vector<8x128xf32>
    %876 = arith.addf %870, %875 : vector<8x128xf32>
    %877 = vector.extract_strided_slice %824 {offsets = [0, 4], sizes = [8, 1], strides = [1, 1]} : vector<8x8xf32> to vector<8x1xf32>
    %c4_453 = arith.constant 4 : index
    %c0_454 = arith.constant 0 : index
    %c0_455 = arith.constant 0 : index
    %878 = vector.load %arg2[%c4_453, %c0_454, %c0_455] : memref<8x8x128xf32, #tpu.memory_space<vmem>>, vector<1x8x128xf32>
    %879 = vector.shape_cast %878 : vector<1x8x128xf32> to vector<8x128xf32>
    %880 = vector.broadcast %877 : vector<8x1xf32> to vector<8x128xf32>
    %881 = arith.mulf %880, %879 : vector<8x128xf32>
    %882 = arith.addf %876, %881 : vector<8x128xf32>
    %883 = vector.extract_strided_slice %824 {offsets = [0, 5], sizes = [8, 1], strides = [1, 1]} : vector<8x8xf32> to vector<8x1xf32>
    %c5_456 = arith.constant 5 : index
    %c0_457 = arith.constant 0 : index
    %c0_458 = arith.constant 0 : index
    %884 = vector.load %arg2[%c5_456, %c0_457, %c0_458] : memref<8x8x128xf32, #tpu.memory_space<vmem>>, vector<1x8x128xf32>
    %885 = vector.shape_cast %884 : vector<1x8x128xf32> to vector<8x128xf32>
    %886 = vector.broadcast %883 : vector<8x1xf32> to vector<8x128xf32>
    %887 = arith.mulf %886, %885 : vector<8x128xf32>
    %888 = arith.addf %882, %887 : vector<8x128xf32>
    %889 = vector.extract_strided_slice %824 {offsets = [0, 6], sizes = [8, 1], strides = [1, 1]} : vector<8x8xf32> to vector<8x1xf32>
    %c6_459 = arith.constant 6 : index
    %c0_460 = arith.constant 0 : index
    %c0_461 = arith.constant 0 : index
    %890 = vector.load %arg2[%c6_459, %c0_460, %c0_461] : memref<8x8x128xf32, #tpu.memory_space<vmem>>, vector<1x8x128xf32>
    %891 = vector.shape_cast %890 : vector<1x8x128xf32> to vector<8x128xf32>
    %892 = vector.broadcast %889 : vector<8x1xf32> to vector<8x128xf32>
    %893 = arith.mulf %892, %891 : vector<8x128xf32>
    %894 = arith.addf %888, %893 : vector<8x128xf32>
    %895 = vector.extract_strided_slice %824 {offsets = [0, 7], sizes = [8, 1], strides = [1, 1]} : vector<8x8xf32> to vector<8x1xf32>
    %c7_462 = arith.constant 7 : index
    %c0_463 = arith.constant 0 : index
    %c0_464 = arith.constant 0 : index
    %896 = vector.load %arg2[%c7_462, %c0_463, %c0_464] : memref<8x8x128xf32, #tpu.memory_space<vmem>>, vector<1x8x128xf32>
    %897 = vector.shape_cast %896 : vector<1x8x128xf32> to vector<8x128xf32>
    %898 = vector.broadcast %895 : vector<8x1xf32> to vector<8x128xf32>
    %899 = arith.mulf %898, %897 : vector<8x128xf32>
    %900 = arith.addf %894, %899 : vector<8x128xf32>
    %901 = vector.broadcast %842 : vector<8x1xf32> to vector<8x128xf32>
    %902 = arith.mulf %901, %853 : vector<8x128xf32>
    %cst_465 = arith.constant 1.000000e+00 : f32
    %903 = vector.broadcast %cst_465 : f32 to vector<8x1xf32>
    %904 = arith.subf %903, %842 : vector<8x1xf32>
    %905 = vector.broadcast %904 : vector<8x1xf32> to vector<8x128xf32>
    %906 = arith.mulf %905, %900 : vector<8x128xf32>
    %907 = arith.addf %902, %906 : vector<8x128xf32>
    %c4_466 = arith.constant 4 : index
    %c0_467 = arith.constant 0 : index
    %c0_468 = arith.constant 0 : index
    %908 = vector.load %arg12[%c4_466, %c0_467, %c0_468] : memref<8x8x128xf32, #tpu.memory_space<vmem>>, vector<1x8x128xf32>
    %909 = vector.shape_cast %908 : vector<1x8x128xf32> to vector<8x128xf32>
    %910 = vector.shape_cast %907 : vector<8x128xf32> to vector<1x8x128xf32>
    tpu.vector_store %arg12[%c4_466, %c0_467, %c0_468], %910 {strides = array<i32>} : memref<8x8x128xf32, #tpu.memory_space<vmem>>, vector<1x8x128xf32>,
    %cst_469 = arith.constant dense<0xFF800000> : vector<8xf32>
    %911 = vector.multi_reduction <maximumf>, %907, %cst_469 [1] : vector<8x128xf32> to vector<8xf32>
    %912 = vector.shape_cast %911 : vector<8xf32> to vector<8x1xf32>
    %913 = vector.broadcast %912 : vector<8x1xf32> to vector<8x128xf32>
    %914 = arith.cmpf oeq, %907, %913 : vector<8x128xf32>
    %cst_470 = arith.constant 1.280000e+02 : f32
    %915 = vector.shape_cast %185 : vector<1x128xf32> to vector<1x128xf32>
    %916 = vector.broadcast %915 : vector<1x128xf32> to vector<8x128xf32>
    %917 = vector.broadcast %cst_470 : f32 to vector<8x128xf32>
    %918 = arith.select %914, %916, %917 : vector<8x128xi1>, vector<8x128xf32>
    %cst_471 = arith.constant dense<0x7F800000> : vector<8xf32>
    %919 = vector.multi_reduction <minimumf>, %918, %cst_471 [1] : vector<8x128xf32> to vector<8xf32>
    %920 = vector.shape_cast %919 : vector<8xf32> to vector<8x1xf32>
    %921 = arith.fptosi %920 : vector<8x1xf32> to vector<8x1xi32>
    %c4_472 = arith.constant 4 : index
    %c0_473 = arith.constant 0 : index
    %c0_474 = arith.constant 0 : index
    %922 = vector.load %arg13[%c4_472, %c0_473, %c0_474] : memref<8x8x1xi32, #tpu.memory_space<vmem>>, vector<1x8x1xi32>
    %923 = vector.shape_cast %922 : vector<1x8x1xi32> to vector<8x1xi32>
    %924 = vector.shape_cast %921 : vector<8x1xi32> to vector<1x8x1xi32>
    tpu.vector_store %arg13[%c4_472, %c0_473, %c0_474], %924 {strides = array<i32>} : memref<8x8x1xi32, #tpu.memory_space<vmem>>, vector<1x8x1xi32>,
    %c32_i32_475 = arith.constant 32 : i32
    %925 = vector.broadcast %c32_i32_475 : i32 to vector<8x1xi32>
    %926 = arith.cmpi sge, %921, %925 : vector<8x1xi32>
    %c1_i32_476 = arith.constant 1 : i32
    %927 = vector.broadcast %c1_i32_476 : i32 to vector<8x1xi32>
    %928 = arith.select %926, %927, %921 : vector<8x1xi1>, vector<8x1xi32>
    %929 = vector.broadcast %928 : vector<8x1xi32> to vector<8x32xi32>
    %930 = arith.cmpi eq, %929, %183 : vector<8x32xi32>
    %931 = arith.extui %930 : vector<8x32xi1> to vector<8x32xi32>
    %932 = arith.sitofp %931 : vector<8x32xi32> to vector<8x32xf32>
    %c0_477 = arith.constant 0 : index
    %c0_478 = arith.constant 0 : index
    %933 = vector.load %arg16[%c0_477, %c0_478] : memref<8x96xf32, #tpu.memory_space<vmem>>, vector<8x32xf32>
    tpu.vector_store %arg16[%c0_477, %c0_478], %932 {strides = array<i32>} : memref<8x96xf32, #tpu.memory_space<vmem>>, vector<8x32xf32>,
    %c0_479 = arith.constant 0 : index
    %c32_480 = arith.constant 32 : index
    %934 = vector.load %arg16[%c0_479, %c32_480] : memref<8x96xf32, #tpu.memory_space<vmem>>, vector<8x32xf32>
    tpu.vector_store %arg16[%c0_479, %c32_480], %830 {strides = array<i32>} : memref<8x96xf32, #tpu.memory_space<vmem>>, vector<8x32xf32>,
    %c0_481 = arith.constant 0 : index
    %c64_482 = arith.constant 64 : index
    %935 = vector.load %arg16[%c0_481, %c64_482] : memref<8x96xf32, #tpu.memory_space<vmem>>, vector<8x32xf32>
    tpu.vector_store %arg16[%c0_481, %c64_482], %806 {strides = array<i32>} : memref<8x96xf32, #tpu.memory_space<vmem>>, vector<8x32xf32>,
    %c0_483 = arith.constant 0 : index
    %c0_484 = arith.constant 0 : index
    %936 = vector.load %arg16[%c0_483, %c0_484] : memref<8x96xf32, #tpu.memory_space<vmem>>, vector<8x96xf32>
    %c0_485 = arith.constant 0 : index
    %c0_486 = arith.constant 0 : index
    %937 = vector.load %arg5[%c0_485, %c0_486] : memref<96x128xf32, #tpu.memory_space<vmem>>, vector<96x128xf32>
    %cst_487 = arith.constant dense<0.000000e+00> : vector<8x128xf32>
    %938 = tpu.matmul %936, %937, %cst_487 {dimension_numbers = #tpu.dot_dimension_numbers<[1], [0], [0], [1], [0, 0, 1, 1], [], []>} : vector<8x96xf32>, vector<96x128xf32>, vector<8x128xf32> -> vector<8x128xf32>
    %939 = vector.extract_strided_slice %938 {offsets = [0, 0], sizes = [8, 96], strides = [1, 1]} : vector<8x128xf32> to vector<8x96xf32>
    %940 = arith.negf %939 : vector<8x96xf32>
    %941 = math.exp %940 : vector<8x96xf32>
    %cst_488 = arith.constant 1.000000e+00 : f32
    %942 = vector.broadcast %cst_488 : f32 to vector<8x96xf32>
    %943 = arith.addf %942, %941 : vector<8x96xf32>
    %944 = arith.divf %942, %943 : vector<8x96xf32>
    %945 = vector.extract_strided_slice %938 {offsets = [0, 96], sizes = [8, 32], strides = [1, 1]} : vector<8x128xf32> to vector<8x32xf32>
    %946 = math.tanh %945 : vector<8x32xf32>
    %947 = vector.extract_strided_slice %944 {offsets = [0, 0], sizes = [8, 32], strides = [1, 1]} : vector<8x96xf32> to vector<8x32xf32>
    %948 = vector.extract_strided_slice %944 {offsets = [0, 32], sizes = [8, 32], strides = [1, 1]} : vector<8x96xf32> to vector<8x32xf32>
    %949 = vector.extract_strided_slice %944 {offsets = [0, 64], sizes = [8, 32], strides = [1, 1]} : vector<8x96xf32> to vector<8x32xf32>
    %950 = arith.mulf %948, %804 : vector<8x32xf32>
    %951 = arith.mulf %947, %946 : vector<8x32xf32>
    %952 = arith.addf %950, %951 : vector<8x32xf32>
    %953 = math.tanh %952 : vector<8x32xf32>
    %954 = arith.mulf %949, %953 : vector<8x32xf32>
    %c0_489 = arith.constant 0 : index
    %c0_490 = arith.constant 0 : index
    %955 = vector.load %arg7[%c0_489, %c0_490] : memref<32x256xf32, #tpu.memory_space<vmem>>, vector<32x256xf32>
    %cst_491 = arith.constant dense<0.000000e+00> : vector<8x256xf32>
    %956 = tpu.matmul %954, %955, %cst_491 {dimension_numbers = #tpu.dot_dimension_numbers<[1], [0], [0], [1], [0, 0, 1, 1], [], []>} : vector<8x32xf32>, vector<32x256xf32>, vector<8x256xf32> -> vector<8x256xf32>
    %c0_492 = arith.constant 0 : index
    %c0_493 = arith.constant 0 : index
    %957 = vector.load %arg15[%c0_492, %c0_493] : memref<8x256xf32, #tpu.memory_space<vmem>>, vector<8x256xf32>
    %958 = arith.addf %957, %956 : vector<8x256xf32>
    %959 = math.tanh %958 : vector<8x256xf32>
    %c0_494 = arith.constant 0 : index
    %c0_495 = arith.constant 0 : index
    %960 = vector.load %arg9[%c0_494, %c0_495] : memref<256x8xf32, #tpu.memory_space<vmem>>, vector<256x8xf32>
    %cst_496 = arith.constant dense<0.000000e+00> : vector<8x8xf32>
    %961 = tpu.matmul %959, %960, %cst_496 {dimension_numbers = #tpu.dot_dimension_numbers<[1], [0], [0], [1], [0, 0, 1, 1], [], []>} : vector<8x256xf32>, vector<256x8xf32>, vector<8x8xf32> -> vector<8x8xf32>
    %962 = math.exp %961 : vector<8x8xf32>
    %963 = arith.divf %962, %816 : vector<8x8xf32>
    %964 = arith.addf %816, %962 : vector<8x8xf32>
    %c0_497 = arith.constant 0 : index
    %c0_498 = arith.constant 0 : index
    %965 = vector.load %arg1[%c0_497, %c0_498] : memref<8x8xf32, #tpu.memory_space<vmem>>, vector<8x8xf32>
    %966 = arith.mulf %963, %965 : vector<8x8xf32>
    %cst_499 = arith.constant dense<0.000000e+00> : vector<8xf32>
    %967 = vector.multi_reduction <add>, %966, %cst_499 [1] : vector<8x8xf32> to vector<8xf32>
    %968 = vector.shape_cast %967 : vector<8xf32> to vector<8x1xf32>
    %cst_500 = arith.constant 9.99999996E-13 : f32
    %969 = vector.broadcast %cst_500 : f32 to vector<8x1xf32>
    %970 = arith.addf %968, %969 : vector<8x1xf32>
    %971 = vector.broadcast %970 : vector<8x1xf32> to vector<8x8xf32>
    %972 = arith.divf %966, %971 : vector<8x8xf32>
    %c0_501 = arith.constant 0 : index
    %c0_502 = arith.constant 0 : index
    %973 = vector.load %arg10[%c0_501, %c0_502] : memref<8x256xf32, #tpu.memory_space<vmem>>, vector<8x256xf32>
    %cst_503 = arith.constant dense<0.000000e+00> : vector<8x256xf32>
    %974 = tpu.matmul %972, %973, %cst_503 {dimension_numbers = #tpu.dot_dimension_numbers<[1], [0], [0], [1], [0, 0, 1, 1], [], []>} : vector<8x8xf32>, vector<8x256xf32>, vector<8x256xf32> -> vector<8x256xf32>
    %c0_504 = arith.constant 0 : index
    %c0_505 = arith.constant 0 : index
    %975 = vector.load %arg14[%c0_504, %c0_505] : memref<8x256xf32, #tpu.memory_space<vmem>>, vector<8x256xf32>
    %976 = arith.mulf %974, %975 : vector<8x256xf32>
    %c0_506 = arith.constant 0 : index
    %c0_507 = arith.constant 0 : index
    %977 = vector.load %arg11[%c0_506, %c0_507] : memref<256x32xf32, #tpu.memory_space<vmem>>, vector<256x32xf32>
    %cst_508 = arith.constant dense<0.000000e+00> : vector<8x32xf32>
    %978 = tpu.matmul %976, %977, %cst_508 {dimension_numbers = #tpu.dot_dimension_numbers<[1], [0], [0], [1], [0, 0, 1, 1], [], []>} : vector<8x256xf32>, vector<256x32xf32>, vector<8x32xf32> -> vector<8x32xf32>
    %c0_509 = arith.constant 0 : index
    %c0_510 = arith.constant 0 : index
    %979 = vector.load %arg16[%c0_509, %c0_510] : memref<8x96xf32, #tpu.memory_space<vmem>>, vector<8x32xf32>
    tpu.vector_store %arg16[%c0_509, %c0_510], %932 {strides = array<i32>} : memref<8x96xf32, #tpu.memory_space<vmem>>, vector<8x32xf32>,
    %c0_511 = arith.constant 0 : index
    %c32_512 = arith.constant 32 : index
    %980 = vector.load %arg16[%c0_511, %c32_512] : memref<8x96xf32, #tpu.memory_space<vmem>>, vector<8x32xf32>
    tpu.vector_store %arg16[%c0_511, %c32_512], %978 {strides = array<i32>} : memref<8x96xf32, #tpu.memory_space<vmem>>, vector<8x32xf32>,
    %c0_513 = arith.constant 0 : index
    %c64_514 = arith.constant 64 : index
    %981 = vector.load %arg16[%c0_513, %c64_514] : memref<8x96xf32, #tpu.memory_space<vmem>>, vector<8x32xf32>
    tpu.vector_store %arg16[%c0_513, %c64_514], %954 {strides = array<i32>} : memref<8x96xf32, #tpu.memory_space<vmem>>, vector<8x32xf32>,
    %c0_515 = arith.constant 0 : index
    %c0_516 = arith.constant 0 : index
    %982 = vector.load %arg16[%c0_515, %c0_516] : memref<8x96xf32, #tpu.memory_space<vmem>>, vector<8x96xf32>
    %c0_517 = arith.constant 0 : index
    %c0_518 = arith.constant 0 : index
    %983 = vector.load %arg6[%c0_517, %c0_518] : memref<96x128xf32, #tpu.memory_space<vmem>>, vector<96x128xf32>
    %cst_519 = arith.constant dense<0.000000e+00> : vector<8x128xf32>
    %984 = tpu.matmul %982, %983, %cst_519 {dimension_numbers = #tpu.dot_dimension_numbers<[1], [0], [0], [1], [0, 0, 1, 1], [], []>} : vector<8x96xf32>, vector<96x128xf32>, vector<8x128xf32> -> vector<8x128xf32>
    %985 = vector.extract_strided_slice %984 {offsets = [0, 127], sizes = [8, 1], strides = [1, 1]} : vector<8x128xf32> to vector<8x1xf32>
    %986 = arith.negf %985 : vector<8x1xf32>
    %987 = math.exp %986 : vector<8x1xf32>
    %cst_520 = arith.constant 1.000000e+00 : f32
    %988 = vector.broadcast %cst_520 : f32 to vector<8x1xf32>
    %989 = arith.addf %988, %987 : vector<8x1xf32>
    %990 = arith.divf %988, %989 : vector<8x1xf32>
    %991 = vector.broadcast %190 : vector<1x128xf32> to vector<8x128xf32>
    %992 = arith.addf %984, %991 : vector<8x128xf32>
    %cst_521 = arith.constant dense<0xFF800000> : vector<8xf32>
    %993 = vector.multi_reduction <maximumf>, %992, %cst_521 [1] : vector<8x128xf32> to vector<8xf32>
    %994 = vector.shape_cast %993 : vector<8xf32> to vector<8x1xf32>
    %995 = vector.broadcast %994 : vector<8x1xf32> to vector<8x128xf32>
    %996 = arith.subf %992, %995 : vector<8x128xf32>
    %997 = math.exp %996 : vector<8x128xf32>
    %cst_522 = arith.constant dense<0.000000e+00> : vector<8xf32>
    %998 = vector.multi_reduction <add>, %997, %cst_522 [1] : vector<8x128xf32> to vector<8xf32>
    %999 = vector.shape_cast %998 : vector<8xf32> to vector<8x1xf32>
    %1000 = vector.broadcast %999 : vector<8x1xf32> to vector<8x128xf32>
    %1001 = arith.divf %997, %1000 : vector<8x128xf32>
    %1002 = vector.extract_strided_slice %972 {offsets = [0, 0], sizes = [8, 1], strides = [1, 1]} : vector<8x8xf32> to vector<8x1xf32>
    %c0_523 = arith.constant 0 : index
    %c0_524 = arith.constant 0 : index
    %c0_525 = arith.constant 0 : index
    %1003 = vector.load %arg2[%c0_523, %c0_524, %c0_525] : memref<8x8x128xf32, #tpu.memory_space<vmem>>, vector<1x8x128xf32>
    %1004 = vector.shape_cast %1003 : vector<1x8x128xf32> to vector<8x128xf32>
    %1005 = vector.broadcast %1002 : vector<8x1xf32> to vector<8x128xf32>
    %1006 = arith.mulf %1005, %1004 : vector<8x128xf32>
    %1007 = vector.extract_strided_slice %972 {offsets = [0, 1], sizes = [8, 1], strides = [1, 1]} : vector<8x8xf32> to vector<8x1xf32>
    %c1_526 = arith.constant 1 : index
    %c0_527 = arith.constant 0 : index
    %c0_528 = arith.constant 0 : index
    %1008 = vector.load %arg2[%c1_526, %c0_527, %c0_528] : memref<8x8x128xf32, #tpu.memory_space<vmem>>, vector<1x8x128xf32>
    %1009 = vector.shape_cast %1008 : vector<1x8x128xf32> to vector<8x128xf32>
    %1010 = vector.broadcast %1007 : vector<8x1xf32> to vector<8x128xf32>
    %1011 = arith.mulf %1010, %1009 : vector<8x128xf32>
    %1012 = arith.addf %1006, %1011 : vector<8x128xf32>
    %1013 = vector.extract_strided_slice %972 {offsets = [0, 2], sizes = [8, 1], strides = [1, 1]} : vector<8x8xf32> to vector<8x1xf32>
    %c2_529 = arith.constant 2 : index
    %c0_530 = arith.constant 0 : index
    %c0_531 = arith.constant 0 : index
    %1014 = vector.load %arg2[%c2_529, %c0_530, %c0_531] : memref<8x8x128xf32, #tpu.memory_space<vmem>>, vector<1x8x128xf32>
    %1015 = vector.shape_cast %1014 : vector<1x8x128xf32> to vector<8x128xf32>
    %1016 = vector.broadcast %1013 : vector<8x1xf32> to vector<8x128xf32>
    %1017 = arith.mulf %1016, %1015 : vector<8x128xf32>
    %1018 = arith.addf %1012, %1017 : vector<8x128xf32>
    %1019 = vector.extract_strided_slice %972 {offsets = [0, 3], sizes = [8, 1], strides = [1, 1]} : vector<8x8xf32> to vector<8x1xf32>
    %c3_532 = arith.constant 3 : index
    %c0_533 = arith.constant 0 : index
    %c0_534 = arith.constant 0 : index
    %1020 = vector.load %arg2[%c3_532, %c0_533, %c0_534] : memref<8x8x128xf32, #tpu.memory_space<vmem>>, vector<1x8x128xf32>
    %1021 = vector.shape_cast %1020 : vector<1x8x128xf32> to vector<8x128xf32>
    %1022 = vector.broadcast %1019 : vector<8x1xf32> to vector<8x128xf32>
    %1023 = arith.mulf %1022, %1021 : vector<8x128xf32>
    %1024 = arith.addf %1018, %1023 : vector<8x128xf32>
    %1025 = vector.extract_strided_slice %972 {offsets = [0, 4], sizes = [8, 1], strides = [1, 1]} : vector<8x8xf32> to vector<8x1xf32>
    %c4_535 = arith.constant 4 : index
    %c0_536 = arith.constant 0 : index
    %c0_537 = arith.constant 0 : index
    %1026 = vector.load %arg2[%c4_535, %c0_536, %c0_537] : memref<8x8x128xf32, #tpu.memory_space<vmem>>, vector<1x8x128xf32>
    %1027 = vector.shape_cast %1026 : vector<1x8x128xf32> to vector<8x128xf32>
    %1028 = vector.broadcast %1025 : vector<8x1xf32> to vector<8x128xf32>
    %1029 = arith.mulf %1028, %1027 : vector<8x128xf32>
    %1030 = arith.addf %1024, %1029 : vector<8x128xf32>
    %1031 = vector.extract_strided_slice %972 {offsets = [0, 5], sizes = [8, 1], strides = [1, 1]} : vector<8x8xf32> to vector<8x1xf32>
    %c5_538 = arith.constant 5 : index
    %c0_539 = arith.constant 0 : index
    %c0_540 = arith.constant 0 : index
    %1032 = vector.load %arg2[%c5_538, %c0_539, %c0_540] : memref<8x8x128xf32, #tpu.memory_space<vmem>>, vector<1x8x128xf32>
    %1033 = vector.shape_cast %1032 : vector<1x8x128xf32> to vector<8x128xf32>
    %1034 = vector.broadcast %1031 : vector<8x1xf32> to vector<8x128xf32>
    %1035 = arith.mulf %1034, %1033 : vector<8x128xf32>
    %1036 = arith.addf %1030, %1035 : vector<8x128xf32>
    %1037 = vector.extract_strided_slice %972 {offsets = [0, 6], sizes = [8, 1], strides = [1, 1]} : vector<8x8xf32> to vector<8x1xf32>
    %c6_541 = arith.constant 6 : index
    %c0_542 = arith.constant 0 : index
    %c0_543 = arith.constant 0 : index
    %1038 = vector.load %arg2[%c6_541, %c0_542, %c0_543] : memref<8x8x128xf32, #tpu.memory_space<vmem>>, vector<1x8x128xf32>
    %1039 = vector.shape_cast %1038 : vector<1x8x128xf32> to vector<8x128xf32>
    %1040 = vector.broadcast %1037 : vector<8x1xf32> to vector<8x128xf32>
    %1041 = arith.mulf %1040, %1039 : vector<8x128xf32>
    %1042 = arith.addf %1036, %1041 : vector<8x128xf32>
    %1043 = vector.extract_strided_slice %972 {offsets = [0, 7], sizes = [8, 1], strides = [1, 1]} : vector<8x8xf32> to vector<8x1xf32>
    %c7_544 = arith.constant 7 : index
    %c0_545 = arith.constant 0 : index
    %c0_546 = arith.constant 0 : index
    %1044 = vector.load %arg2[%c7_544, %c0_545, %c0_546] : memref<8x8x128xf32, #tpu.memory_space<vmem>>, vector<1x8x128xf32>
    %1045 = vector.shape_cast %1044 : vector<1x8x128xf32> to vector<8x128xf32>
    %1046 = vector.broadcast %1043 : vector<8x1xf32> to vector<8x128xf32>
    %1047 = arith.mulf %1046, %1045 : vector<8x128xf32>
    %1048 = arith.addf %1042, %1047 : vector<8x128xf32>
    %1049 = vector.broadcast %990 : vector<8x1xf32> to vector<8x128xf32>
    %1050 = arith.mulf %1049, %1001 : vector<8x128xf32>
    %cst_547 = arith.constant 1.000000e+00 : f32
    %1051 = vector.broadcast %cst_547 : f32 to vector<8x1xf32>
    %1052 = arith.subf %1051, %990 : vector<8x1xf32>
    %1053 = vector.broadcast %1052 : vector<8x1xf32> to vector<8x128xf32>
    %1054 = arith.mulf %1053, %1048 : vector<8x128xf32>
    %1055 = arith.addf %1050, %1054 : vector<8x128xf32>
    %c5_548 = arith.constant 5 : index
    %c0_549 = arith.constant 0 : index
    %c0_550 = arith.constant 0 : index
    %1056 = vector.load %arg12[%c5_548, %c0_549, %c0_550] : memref<8x8x128xf32, #tpu.memory_space<vmem>>, vector<1x8x128xf32>
    %1057 = vector.shape_cast %1056 : vector<1x8x128xf32> to vector<8x128xf32>
    %1058 = vector.shape_cast %1055 : vector<8x128xf32> to vector<1x8x128xf32>
    tpu.vector_store %arg12[%c5_548, %c0_549, %c0_550], %1058 {strides = array<i32>} : memref<8x8x128xf32, #tpu.memory_space<vmem>>, vector<1x8x128xf32>,
    %cst_551 = arith.constant dense<0xFF800000> : vector<8xf32>
    %1059 = vector.multi_reduction <maximumf>, %1055, %cst_551 [1] : vector<8x128xf32> to vector<8xf32>
    %1060 = vector.shape_cast %1059 : vector<8xf32> to vector<8x1xf32>
    %1061 = vector.broadcast %1060 : vector<8x1xf32> to vector<8x128xf32>
    %1062 = arith.cmpf oeq, %1055, %1061 : vector<8x128xf32>
    %cst_552 = arith.constant 1.280000e+02 : f32
    %1063 = vector.shape_cast %185 : vector<1x128xf32> to vector<1x128xf32>
    %1064 = vector.broadcast %1063 : vector<1x128xf32> to vector<8x128xf32>
    %1065 = vector.broadcast %cst_552 : f32 to vector<8x128xf32>
    %1066 = arith.select %1062, %1064, %1065 : vector<8x128xi1>, vector<8x128xf32>
    %cst_553 = arith.constant dense<0x7F800000> : vector<8xf32>
    %1067 = vector.multi_reduction <minimumf>, %1066, %cst_553 [1] : vector<8x128xf32> to vector<8xf32>
    %1068 = vector.shape_cast %1067 : vector<8xf32> to vector<8x1xf32>
    %1069 = arith.fptosi %1068 : vector<8x1xf32> to vector<8x1xi32>
    %c5_554 = arith.constant 5 : index
    %c0_555 = arith.constant 0 : index
    %c0_556 = arith.constant 0 : index
    %1070 = vector.load %arg13[%c5_554, %c0_555, %c0_556] : memref<8x8x1xi32, #tpu.memory_space<vmem>>, vector<1x8x1xi32>
    %1071 = vector.shape_cast %1070 : vector<1x8x1xi32> to vector<8x1xi32>
    %1072 = vector.shape_cast %1069 : vector<8x1xi32> to vector<1x8x1xi32>
    tpu.vector_store %arg13[%c5_554, %c0_555, %c0_556], %1072 {strides = array<i32>} : memref<8x8x1xi32, #tpu.memory_space<vmem>>, vector<1x8x1xi32>,
    %c32_i32_557 = arith.constant 32 : i32
    %1073 = vector.broadcast %c32_i32_557 : i32 to vector<8x1xi32>
    %1074 = arith.cmpi sge, %1069, %1073 : vector<8x1xi32>
    %c1_i32_558 = arith.constant 1 : i32
    %1075 = vector.broadcast %c1_i32_558 : i32 to vector<8x1xi32>
    %1076 = arith.select %1074, %1075, %1069 : vector<8x1xi1>, vector<8x1xi32>
    %1077 = vector.broadcast %1076 : vector<8x1xi32> to vector<8x32xi32>
    %1078 = arith.cmpi eq, %1077, %183 : vector<8x32xi32>
    %1079 = arith.extui %1078 : vector<8x32xi1> to vector<8x32xi32>
    %1080 = arith.sitofp %1079 : vector<8x32xi32> to vector<8x32xf32>
    %c0_559 = arith.constant 0 : index
    %c0_560 = arith.constant 0 : index
    %1081 = vector.load %arg16[%c0_559, %c0_560] : memref<8x96xf32, #tpu.memory_space<vmem>>, vector<8x32xf32>
    tpu.vector_store %arg16[%c0_559, %c0_560], %1080 {strides = array<i32>} : memref<8x96xf32, #tpu.memory_space<vmem>>, vector<8x32xf32>,
    %c0_561 = arith.constant 0 : index
    %c32_562 = arith.constant 32 : index
    %1082 = vector.load %arg16[%c0_561, %c32_562] : memref<8x96xf32, #tpu.memory_space<vmem>>, vector<8x32xf32>
    tpu.vector_store %arg16[%c0_561, %c32_562], %978 {strides = array<i32>} : memref<8x96xf32, #tpu.memory_space<vmem>>, vector<8x32xf32>,
    %c0_563 = arith.constant 0 : index
    %c64_564 = arith.constant 64 : index
    %1083 = vector.load %arg16[%c0_563, %c64_564] : memref<8x96xf32, #tpu.memory_space<vmem>>, vector<8x32xf32>
    tpu.vector_store %arg16[%c0_563, %c64_564], %954 {strides = array<i32>} : memref<8x96xf32, #tpu.memory_space<vmem>>, vector<8x32xf32>,
    %c0_565 = arith.constant 0 : index
    %c0_566 = arith.constant 0 : index
    %1084 = vector.load %arg16[%c0_565, %c0_566] : memref<8x96xf32, #tpu.memory_space<vmem>>, vector<8x96xf32>
    %c0_567 = arith.constant 0 : index
    %c0_568 = arith.constant 0 : index
    %1085 = vector.load %arg5[%c0_567, %c0_568] : memref<96x128xf32, #tpu.memory_space<vmem>>, vector<96x128xf32>
    %cst_569 = arith.constant dense<0.000000e+00> : vector<8x128xf32>
    %1086 = tpu.matmul %1084, %1085, %cst_569 {dimension_numbers = #tpu.dot_dimension_numbers<[1], [0], [0], [1], [0, 0, 1, 1], [], []>} : vector<8x96xf32>, vector<96x128xf32>, vector<8x128xf32> -> vector<8x128xf32>
    %1087 = vector.extract_strided_slice %1086 {offsets = [0, 0], sizes = [8, 96], strides = [1, 1]} : vector<8x128xf32> to vector<8x96xf32>
    %1088 = arith.negf %1087 : vector<8x96xf32>
    %1089 = math.exp %1088 : vector<8x96xf32>
    %cst_570 = arith.constant 1.000000e+00 : f32
    %1090 = vector.broadcast %cst_570 : f32 to vector<8x96xf32>
    %1091 = arith.addf %1090, %1089 : vector<8x96xf32>
    %1092 = arith.divf %1090, %1091 : vector<8x96xf32>
    %1093 = vector.extract_strided_slice %1086 {offsets = [0, 96], sizes = [8, 32], strides = [1, 1]} : vector<8x128xf32> to vector<8x32xf32>
    %1094 = math.tanh %1093 : vector<8x32xf32>
    %1095 = vector.extract_strided_slice %1092 {offsets = [0, 0], sizes = [8, 32], strides = [1, 1]} : vector<8x96xf32> to vector<8x32xf32>
    %1096 = vector.extract_strided_slice %1092 {offsets = [0, 32], sizes = [8, 32], strides = [1, 1]} : vector<8x96xf32> to vector<8x32xf32>
    %1097 = vector.extract_strided_slice %1092 {offsets = [0, 64], sizes = [8, 32], strides = [1, 1]} : vector<8x96xf32> to vector<8x32xf32>
    %1098 = arith.mulf %1096, %952 : vector<8x32xf32>
    %1099 = arith.mulf %1095, %1094 : vector<8x32xf32>
    %1100 = arith.addf %1098, %1099 : vector<8x32xf32>
    %1101 = math.tanh %1100 : vector<8x32xf32>
    %1102 = arith.mulf %1097, %1101 : vector<8x32xf32>
    %c0_571 = arith.constant 0 : index
    %c0_572 = arith.constant 0 : index
    %1103 = vector.load %arg7[%c0_571, %c0_572] : memref<32x256xf32, #tpu.memory_space<vmem>>, vector<32x256xf32>
    %cst_573 = arith.constant dense<0.000000e+00> : vector<8x256xf32>
    %1104 = tpu.matmul %1102, %1103, %cst_573 {dimension_numbers = #tpu.dot_dimension_numbers<[1], [0], [0], [1], [0, 0, 1, 1], [], []>} : vector<8x32xf32>, vector<32x256xf32>, vector<8x256xf32> -> vector<8x256xf32>
    %c0_574 = arith.constant 0 : index
    %c0_575 = arith.constant 0 : index
    %1105 = vector.load %arg15[%c0_574, %c0_575] : memref<8x256xf32, #tpu.memory_space<vmem>>, vector<8x256xf32>
    %1106 = arith.addf %1105, %1104 : vector<8x256xf32>
    %1107 = math.tanh %1106 : vector<8x256xf32>
    %c0_576 = arith.constant 0 : index
    %c0_577 = arith.constant 0 : index
    %1108 = vector.load %arg9[%c0_576, %c0_577] : memref<256x8xf32, #tpu.memory_space<vmem>>, vector<256x8xf32>
    %cst_578 = arith.constant dense<0.000000e+00> : vector<8x8xf32>
    %1109 = tpu.matmul %1107, %1108, %cst_578 {dimension_numbers = #tpu.dot_dimension_numbers<[1], [0], [0], [1], [0, 0, 1, 1], [], []>} : vector<8x256xf32>, vector<256x8xf32>, vector<8x8xf32> -> vector<8x8xf32>
    %1110 = math.exp %1109 : vector<8x8xf32>
    %1111 = arith.divf %1110, %964 : vector<8x8xf32>
    %1112 = arith.addf %964, %1110 : vector<8x8xf32>
    %c0_579 = arith.constant 0 : index
    %c0_580 = arith.constant 0 : index
    %1113 = vector.load %arg1[%c0_579, %c0_580] : memref<8x8xf32, #tpu.memory_space<vmem>>, vector<8x8xf32>
    %1114 = arith.mulf %1111, %1113 : vector<8x8xf32>
    %cst_581 = arith.constant dense<0.000000e+00> : vector<8xf32>
    %1115 = vector.multi_reduction <add>, %1114, %cst_581 [1] : vector<8x8xf32> to vector<8xf32>
    %1116 = vector.shape_cast %1115 : vector<8xf32> to vector<8x1xf32>
    %cst_582 = arith.constant 9.99999996E-13 : f32
    %1117 = vector.broadcast %cst_582 : f32 to vector<8x1xf32>
    %1118 = arith.addf %1116, %1117 : vector<8x1xf32>
    %1119 = vector.broadcast %1118 : vector<8x1xf32> to vector<8x8xf32>
    %1120 = arith.divf %1114, %1119 : vector<8x8xf32>
    %c0_583 = arith.constant 0 : index
    %c0_584 = arith.constant 0 : index
    %1121 = vector.load %arg10[%c0_583, %c0_584] : memref<8x256xf32, #tpu.memory_space<vmem>>, vector<8x256xf32>
    %cst_585 = arith.constant dense<0.000000e+00> : vector<8x256xf32>
    %1122 = tpu.matmul %1120, %1121, %cst_585 {dimension_numbers = #tpu.dot_dimension_numbers<[1], [0], [0], [1], [0, 0, 1, 1], [], []>} : vector<8x8xf32>, vector<8x256xf32>, vector<8x256xf32> -> vector<8x256xf32>
    %c0_586 = arith.constant 0 : index
    %c0_587 = arith.constant 0 : index
    %1123 = vector.load %arg14[%c0_586, %c0_587] : memref<8x256xf32, #tpu.memory_space<vmem>>, vector<8x256xf32>
    %1124 = arith.mulf %1122, %1123 : vector<8x256xf32>
    %c0_588 = arith.constant 0 : index
    %c0_589 = arith.constant 0 : index
    %1125 = vector.load %arg11[%c0_588, %c0_589] : memref<256x32xf32, #tpu.memory_space<vmem>>, vector<256x32xf32>
    %cst_590 = arith.constant dense<0.000000e+00> : vector<8x32xf32>
    %1126 = tpu.matmul %1124, %1125, %cst_590 {dimension_numbers = #tpu.dot_dimension_numbers<[1], [0], [0], [1], [0, 0, 1, 1], [], []>} : vector<8x256xf32>, vector<256x32xf32>, vector<8x32xf32> -> vector<8x32xf32>
    %c0_591 = arith.constant 0 : index
    %c0_592 = arith.constant 0 : index
    %1127 = vector.load %arg16[%c0_591, %c0_592] : memref<8x96xf32, #tpu.memory_space<vmem>>, vector<8x32xf32>
    tpu.vector_store %arg16[%c0_591, %c0_592], %1080 {strides = array<i32>} : memref<8x96xf32, #tpu.memory_space<vmem>>, vector<8x32xf32>,
    %c0_593 = arith.constant 0 : index
    %c32_594 = arith.constant 32 : index
    %1128 = vector.load %arg16[%c0_593, %c32_594] : memref<8x96xf32, #tpu.memory_space<vmem>>, vector<8x32xf32>
    tpu.vector_store %arg16[%c0_593, %c32_594], %1126 {strides = array<i32>} : memref<8x96xf32, #tpu.memory_space<vmem>>, vector<8x32xf32>,
    %c0_595 = arith.constant 0 : index
    %c64_596 = arith.constant 64 : index
    %1129 = vector.load %arg16[%c0_595, %c64_596] : memref<8x96xf32, #tpu.memory_space<vmem>>, vector<8x32xf32>
    tpu.vector_store %arg16[%c0_595, %c64_596], %1102 {strides = array<i32>} : memref<8x96xf32, #tpu.memory_space<vmem>>, vector<8x32xf32>,
    %c0_597 = arith.constant 0 : index
    %c0_598 = arith.constant 0 : index
    %1130 = vector.load %arg16[%c0_597, %c0_598] : memref<8x96xf32, #tpu.memory_space<vmem>>, vector<8x96xf32>
    %c0_599 = arith.constant 0 : index
    %c0_600 = arith.constant 0 : index
    %1131 = vector.load %arg6[%c0_599, %c0_600] : memref<96x128xf32, #tpu.memory_space<vmem>>, vector<96x128xf32>
    %cst_601 = arith.constant dense<0.000000e+00> : vector<8x128xf32>
    %1132 = tpu.matmul %1130, %1131, %cst_601 {dimension_numbers = #tpu.dot_dimension_numbers<[1], [0], [0], [1], [0, 0, 1, 1], [], []>} : vector<8x96xf32>, vector<96x128xf32>, vector<8x128xf32> -> vector<8x128xf32>
    %1133 = vector.extract_strided_slice %1132 {offsets = [0, 127], sizes = [8, 1], strides = [1, 1]} : vector<8x128xf32> to vector<8x1xf32>
    %1134 = arith.negf %1133 : vector<8x1xf32>
    %1135 = math.exp %1134 : vector<8x1xf32>
    %cst_602 = arith.constant 1.000000e+00 : f32
    %1136 = vector.broadcast %cst_602 : f32 to vector<8x1xf32>
    %1137 = arith.addf %1136, %1135 : vector<8x1xf32>
    %1138 = arith.divf %1136, %1137 : vector<8x1xf32>
    %1139 = vector.broadcast %190 : vector<1x128xf32> to vector<8x128xf32>
    %1140 = arith.addf %1132, %1139 : vector<8x128xf32>
    %cst_603 = arith.constant dense<0xFF800000> : vector<8xf32>
    %1141 = vector.multi_reduction <maximumf>, %1140, %cst_603 [1] : vector<8x128xf32> to vector<8xf32>
    %1142 = vector.shape_cast %1141 : vector<8xf32> to vector<8x1xf32>
    %1143 = vector.broadcast %1142 : vector<8x1xf32> to vector<8x128xf32>
    %1144 = arith.subf %1140, %1143 : vector<8x128xf32>
    %1145 = math.exp %1144 : vector<8x128xf32>
    %cst_604 = arith.constant dense<0.000000e+00> : vector<8xf32>
    %1146 = vector.multi_reduction <add>, %1145, %cst_604 [1] : vector<8x128xf32> to vector<8xf32>
    %1147 = vector.shape_cast %1146 : vector<8xf32> to vector<8x1xf32>
    %1148 = vector.broadcast %1147 : vector<8x1xf32> to vector<8x128xf32>
    %1149 = arith.divf %1145, %1148 : vector<8x128xf32>
    %1150 = vector.extract_strided_slice %1120 {offsets = [0, 0], sizes = [8, 1], strides = [1, 1]} : vector<8x8xf32> to vector<8x1xf32>
    %c0_605 = arith.constant 0 : index
    %c0_606 = arith.constant 0 : index
    %c0_607 = arith.constant 0 : index
    %1151 = vector.load %arg2[%c0_605, %c0_606, %c0_607] : memref<8x8x128xf32, #tpu.memory_space<vmem>>, vector<1x8x128xf32>
    %1152 = vector.shape_cast %1151 : vector<1x8x128xf32> to vector<8x128xf32>
    %1153 = vector.broadcast %1150 : vector<8x1xf32> to vector<8x128xf32>
    %1154 = arith.mulf %1153, %1152 : vector<8x128xf32>
    %1155 = vector.extract_strided_slice %1120 {offsets = [0, 1], sizes = [8, 1], strides = [1, 1]} : vector<8x8xf32> to vector<8x1xf32>
    %c1_608 = arith.constant 1 : index
    %c0_609 = arith.constant 0 : index
    %c0_610 = arith.constant 0 : index
    %1156 = vector.load %arg2[%c1_608, %c0_609, %c0_610] : memref<8x8x128xf32, #tpu.memory_space<vmem>>, vector<1x8x128xf32>
    %1157 = vector.shape_cast %1156 : vector<1x8x128xf32> to vector<8x128xf32>
    %1158 = vector.broadcast %1155 : vector<8x1xf32> to vector<8x128xf32>
    %1159 = arith.mulf %1158, %1157 : vector<8x128xf32>
    %1160 = arith.addf %1154, %1159 : vector<8x128xf32>
    %1161 = vector.extract_strided_slice %1120 {offsets = [0, 2], sizes = [8, 1], strides = [1, 1]} : vector<8x8xf32> to vector<8x1xf32>
    %c2_611 = arith.constant 2 : index
    %c0_612 = arith.constant 0 : index
    %c0_613 = arith.constant 0 : index
    %1162 = vector.load %arg2[%c2_611, %c0_612, %c0_613] : memref<8x8x128xf32, #tpu.memory_space<vmem>>, vector<1x8x128xf32>
    %1163 = vector.shape_cast %1162 : vector<1x8x128xf32> to vector<8x128xf32>
    %1164 = vector.broadcast %1161 : vector<8x1xf32> to vector<8x128xf32>
    %1165 = arith.mulf %1164, %1163 : vector<8x128xf32>
    %1166 = arith.addf %1160, %1165 : vector<8x128xf32>
    %1167 = vector.extract_strided_slice %1120 {offsets = [0, 3], sizes = [8, 1], strides = [1, 1]} : vector<8x8xf32> to vector<8x1xf32>
    %c3_614 = arith.constant 3 : index
    %c0_615 = arith.constant 0 : index
    %c0_616 = arith.constant 0 : index
    %1168 = vector.load %arg2[%c3_614, %c0_615, %c0_616] : memref<8x8x128xf32, #tpu.memory_space<vmem>>, vector<1x8x128xf32>
    %1169 = vector.shape_cast %1168 : vector<1x8x128xf32> to vector<8x128xf32>
    %1170 = vector.broadcast %1167 : vector<8x1xf32> to vector<8x128xf32>
    %1171 = arith.mulf %1170, %1169 : vector<8x128xf32>
    %1172 = arith.addf %1166, %1171 : vector<8x128xf32>
    %1173 = vector.extract_strided_slice %1120 {offsets = [0, 4], sizes = [8, 1], strides = [1, 1]} : vector<8x8xf32> to vector<8x1xf32>
    %c4_617 = arith.constant 4 : index
    %c0_618 = arith.constant 0 : index
    %c0_619 = arith.constant 0 : index
    %1174 = vector.load %arg2[%c4_617, %c0_618, %c0_619] : memref<8x8x128xf32, #tpu.memory_space<vmem>>, vector<1x8x128xf32>
    %1175 = vector.shape_cast %1174 : vector<1x8x128xf32> to vector<8x128xf32>
    %1176 = vector.broadcast %1173 : vector<8x1xf32> to vector<8x128xf32>
    %1177 = arith.mulf %1176, %1175 : vector<8x128xf32>
    %1178 = arith.addf %1172, %1177 : vector<8x128xf32>
    %1179 = vector.extract_strided_slice %1120 {offsets = [0, 5], sizes = [8, 1], strides = [1, 1]} : vector<8x8xf32> to vector<8x1xf32>
    %c5_620 = arith.constant 5 : index
    %c0_621 = arith.constant 0 : index
    %c0_622 = arith.constant 0 : index
    %1180 = vector.load %arg2[%c5_620, %c0_621, %c0_622] : memref<8x8x128xf32, #tpu.memory_space<vmem>>, vector<1x8x128xf32>
    %1181 = vector.shape_cast %1180 : vector<1x8x128xf32> to vector<8x128xf32>
    %1182 = vector.broadcast %1179 : vector<8x1xf32> to vector<8x128xf32>
    %1183 = arith.mulf %1182, %1181 : vector<8x128xf32>
    %1184 = arith.addf %1178, %1183 : vector<8x128xf32>
    %1185 = vector.extract_strided_slice %1120 {offsets = [0, 6], sizes = [8, 1], strides = [1, 1]} : vector<8x8xf32> to vector<8x1xf32>
    %c6_623 = arith.constant 6 : index
    %c0_624 = arith.constant 0 : index
    %c0_625 = arith.constant 0 : index
    %1186 = vector.load %arg2[%c6_623, %c0_624, %c0_625] : memref<8x8x128xf32, #tpu.memory_space<vmem>>, vector<1x8x128xf32>
    %1187 = vector.shape_cast %1186 : vector<1x8x128xf32> to vector<8x128xf32>
    %1188 = vector.broadcast %1185 : vector<8x1xf32> to vector<8x128xf32>
    %1189 = arith.mulf %1188, %1187 : vector<8x128xf32>
    %1190 = arith.addf %1184, %1189 : vector<8x128xf32>
    %1191 = vector.extract_strided_slice %1120 {offsets = [0, 7], sizes = [8, 1], strides = [1, 1]} : vector<8x8xf32> to vector<8x1xf32>
    %c7_626 = arith.constant 7 : index
    %c0_627 = arith.constant 0 : index
    %c0_628 = arith.constant 0 : index
    %1192 = vector.load %arg2[%c7_626, %c0_627, %c0_628] : memref<8x8x128xf32, #tpu.memory_space<vmem>>, vector<1x8x128xf32>
    %1193 = vector.shape_cast %1192 : vector<1x8x128xf32> to vector<8x128xf32>
    %1194 = vector.broadcast %1191 : vector<8x1xf32> to vector<8x128xf32>
    %1195 = arith.mulf %1194, %1193 : vector<8x128xf32>
    %1196 = arith.addf %1190, %1195 : vector<8x128xf32>
    %1197 = vector.broadcast %1138 : vector<8x1xf32> to vector<8x128xf32>
    %1198 = arith.mulf %1197, %1149 : vector<8x128xf32>
    %cst_629 = arith.constant 1.000000e+00 : f32
    %1199 = vector.broadcast %cst_629 : f32 to vector<8x1xf32>
    %1200 = arith.subf %1199, %1138 : vector<8x1xf32>
    %1201 = vector.broadcast %1200 : vector<8x1xf32> to vector<8x128xf32>
    %1202 = arith.mulf %1201, %1196 : vector<8x128xf32>
    %1203 = arith.addf %1198, %1202 : vector<8x128xf32>
    %c6_630 = arith.constant 6 : index
    %c0_631 = arith.constant 0 : index
    %c0_632 = arith.constant 0 : index
    %1204 = vector.load %arg12[%c6_630, %c0_631, %c0_632] : memref<8x8x128xf32, #tpu.memory_space<vmem>>, vector<1x8x128xf32>
    %1205 = vector.shape_cast %1204 : vector<1x8x128xf32> to vector<8x128xf32>
    %1206 = vector.shape_cast %1203 : vector<8x128xf32> to vector<1x8x128xf32>
    tpu.vector_store %arg12[%c6_630, %c0_631, %c0_632], %1206 {strides = array<i32>} : memref<8x8x128xf32, #tpu.memory_space<vmem>>, vector<1x8x128xf32>,
    %cst_633 = arith.constant dense<0xFF800000> : vector<8xf32>
    %1207 = vector.multi_reduction <maximumf>, %1203, %cst_633 [1] : vector<8x128xf32> to vector<8xf32>
    %1208 = vector.shape_cast %1207 : vector<8xf32> to vector<8x1xf32>
    %1209 = vector.broadcast %1208 : vector<8x1xf32> to vector<8x128xf32>
    %1210 = arith.cmpf oeq, %1203, %1209 : vector<8x128xf32>
    %cst_634 = arith.constant 1.280000e+02 : f32
    %1211 = vector.shape_cast %185 : vector<1x128xf32> to vector<1x128xf32>
    %1212 = vector.broadcast %1211 : vector<1x128xf32> to vector<8x128xf32>
    %1213 = vector.broadcast %cst_634 : f32 to vector<8x128xf32>
    %1214 = arith.select %1210, %1212, %1213 : vector<8x128xi1>, vector<8x128xf32>
    %cst_635 = arith.constant dense<0x7F800000> : vector<8xf32>
    %1215 = vector.multi_reduction <minimumf>, %1214, %cst_635 [1] : vector<8x128xf32> to vector<8xf32>
    %1216 = vector.shape_cast %1215 : vector<8xf32> to vector<8x1xf32>
    %1217 = arith.fptosi %1216 : vector<8x1xf32> to vector<8x1xi32>
    %c6_636 = arith.constant 6 : index
    %c0_637 = arith.constant 0 : index
    %c0_638 = arith.constant 0 : index
    %1218 = vector.load %arg13[%c6_636, %c0_637, %c0_638] : memref<8x8x1xi32, #tpu.memory_space<vmem>>, vector<1x8x1xi32>
    %1219 = vector.shape_cast %1218 : vector<1x8x1xi32> to vector<8x1xi32>
    %1220 = vector.shape_cast %1217 : vector<8x1xi32> to vector<1x8x1xi32>
    tpu.vector_store %arg13[%c6_636, %c0_637, %c0_638], %1220 {strides = array<i32>} : memref<8x8x1xi32, #tpu.memory_space<vmem>>, vector<1x8x1xi32>,
    %c32_i32_639 = arith.constant 32 : i32
    %1221 = vector.broadcast %c32_i32_639 : i32 to vector<8x1xi32>
    %1222 = arith.cmpi sge, %1217, %1221 : vector<8x1xi32>
    %c1_i32_640 = arith.constant 1 : i32
    %1223 = vector.broadcast %c1_i32_640 : i32 to vector<8x1xi32>
    %1224 = arith.select %1222, %1223, %1217 : vector<8x1xi1>, vector<8x1xi32>
    %1225 = vector.broadcast %1224 : vector<8x1xi32> to vector<8x32xi32>
    %1226 = arith.cmpi eq, %1225, %183 : vector<8x32xi32>
    %1227 = arith.extui %1226 : vector<8x32xi1> to vector<8x32xi32>
    %1228 = arith.sitofp %1227 : vector<8x32xi32> to vector<8x32xf32>
    %c0_641 = arith.constant 0 : index
    %c0_642 = arith.constant 0 : index
    %1229 = vector.load %arg16[%c0_641, %c0_642] : memref<8x96xf32, #tpu.memory_space<vmem>>, vector<8x32xf32>
    tpu.vector_store %arg16[%c0_641, %c0_642], %1228 {strides = array<i32>} : memref<8x96xf32, #tpu.memory_space<vmem>>, vector<8x32xf32>,
    %c0_643 = arith.constant 0 : index
    %c32_644 = arith.constant 32 : index
    %1230 = vector.load %arg16[%c0_643, %c32_644] : memref<8x96xf32, #tpu.memory_space<vmem>>, vector<8x32xf32>
    tpu.vector_store %arg16[%c0_643, %c32_644], %1126 {strides = array<i32>} : memref<8x96xf32, #tpu.memory_space<vmem>>, vector<8x32xf32>,
    %c0_645 = arith.constant 0 : index
    %c64_646 = arith.constant 64 : index
    %1231 = vector.load %arg16[%c0_645, %c64_646] : memref<8x96xf32, #tpu.memory_space<vmem>>, vector<8x32xf32>
    tpu.vector_store %arg16[%c0_645, %c64_646], %1102 {strides = array<i32>} : memref<8x96xf32, #tpu.memory_space<vmem>>, vector<8x32xf32>,
    %c0_647 = arith.constant 0 : index
    %c0_648 = arith.constant 0 : index
    %1232 = vector.load %arg16[%c0_647, %c0_648] : memref<8x96xf32, #tpu.memory_space<vmem>>, vector<8x96xf32>
    %c0_649 = arith.constant 0 : index
    %c0_650 = arith.constant 0 : index
    %1233 = vector.load %arg5[%c0_649, %c0_650] : memref<96x128xf32, #tpu.memory_space<vmem>>, vector<96x128xf32>
    %cst_651 = arith.constant dense<0.000000e+00> : vector<8x128xf32>
    %1234 = tpu.matmul %1232, %1233, %cst_651 {dimension_numbers = #tpu.dot_dimension_numbers<[1], [0], [0], [1], [0, 0, 1, 1], [], []>} : vector<8x96xf32>, vector<96x128xf32>, vector<8x128xf32> -> vector<8x128xf32>
    %1235 = vector.extract_strided_slice %1234 {offsets = [0, 0], sizes = [8, 96], strides = [1, 1]} : vector<8x128xf32> to vector<8x96xf32>
    %1236 = arith.negf %1235 : vector<8x96xf32>
    %1237 = math.exp %1236 : vector<8x96xf32>
    %cst_652 = arith.constant 1.000000e+00 : f32
    %1238 = vector.broadcast %cst_652 : f32 to vector<8x96xf32>
    %1239 = arith.addf %1238, %1237 : vector<8x96xf32>
    %1240 = arith.divf %1238, %1239 : vector<8x96xf32>
    %1241 = vector.extract_strided_slice %1234 {offsets = [0, 96], sizes = [8, 32], strides = [1, 1]} : vector<8x128xf32> to vector<8x32xf32>
    %1242 = math.tanh %1241 : vector<8x32xf32>
    %1243 = vector.extract_strided_slice %1240 {offsets = [0, 0], sizes = [8, 32], strides = [1, 1]} : vector<8x96xf32> to vector<8x32xf32>
    %1244 = vector.extract_strided_slice %1240 {offsets = [0, 32], sizes = [8, 32], strides = [1, 1]} : vector<8x96xf32> to vector<8x32xf32>
    %1245 = vector.extract_strided_slice %1240 {offsets = [0, 64], sizes = [8, 32], strides = [1, 1]} : vector<8x96xf32> to vector<8x32xf32>
    %1246 = arith.mulf %1244, %1100 : vector<8x32xf32>
    %1247 = arith.mulf %1243, %1242 : vector<8x32xf32>
    %1248 = arith.addf %1246, %1247 : vector<8x32xf32>
    %1249 = math.tanh %1248 : vector<8x32xf32>
    %1250 = arith.mulf %1245, %1249 : vector<8x32xf32>
    %c0_653 = arith.constant 0 : index
    %c0_654 = arith.constant 0 : index
    %1251 = vector.load %arg7[%c0_653, %c0_654] : memref<32x256xf32, #tpu.memory_space<vmem>>, vector<32x256xf32>
    %cst_655 = arith.constant dense<0.000000e+00> : vector<8x256xf32>
    %1252 = tpu.matmul %1250, %1251, %cst_655 {dimension_numbers = #tpu.dot_dimension_numbers<[1], [0], [0], [1], [0, 0, 1, 1], [], []>} : vector<8x32xf32>, vector<32x256xf32>, vector<8x256xf32> -> vector<8x256xf32>
    %c0_656 = arith.constant 0 : index
    %c0_657 = arith.constant 0 : index
    %1253 = vector.load %arg15[%c0_656, %c0_657] : memref<8x256xf32, #tpu.memory_space<vmem>>, vector<8x256xf32>
    %1254 = arith.addf %1253, %1252 : vector<8x256xf32>
    %1255 = math.tanh %1254 : vector<8x256xf32>
    %c0_658 = arith.constant 0 : index
    %c0_659 = arith.constant 0 : index
    %1256 = vector.load %arg9[%c0_658, %c0_659] : memref<256x8xf32, #tpu.memory_space<vmem>>, vector<256x8xf32>
    %cst_660 = arith.constant dense<0.000000e+00> : vector<8x8xf32>
    %1257 = tpu.matmul %1255, %1256, %cst_660 {dimension_numbers = #tpu.dot_dimension_numbers<[1], [0], [0], [1], [0, 0, 1, 1], [], []>} : vector<8x256xf32>, vector<256x8xf32>, vector<8x8xf32> -> vector<8x8xf32>
    %1258 = math.exp %1257 : vector<8x8xf32>
    %1259 = arith.divf %1258, %1112 : vector<8x8xf32>
    %c0_661 = arith.constant 0 : index
    %c0_662 = arith.constant 0 : index
    %1260 = vector.load %arg1[%c0_661, %c0_662] : memref<8x8xf32, #tpu.memory_space<vmem>>, vector<8x8xf32>
    %1261 = arith.mulf %1259, %1260 : vector<8x8xf32>
    %cst_663 = arith.constant dense<0.000000e+00> : vector<8xf32>
    %1262 = vector.multi_reduction <add>, %1261, %cst_663 [1] : vector<8x8xf32> to vector<8xf32>
    %1263 = vector.shape_cast %1262 : vector<8xf32> to vector<8x1xf32>
    %cst_664 = arith.constant 9.99999996E-13 : f32
    %1264 = vector.broadcast %cst_664 : f32 to vector<8x1xf32>
    %1265 = arith.addf %1263, %1264 : vector<8x1xf32>
    %1266 = vector.broadcast %1265 : vector<8x1xf32> to vector<8x8xf32>
    %1267 = arith.divf %1261, %1266 : vector<8x8xf32>
    %c0_665 = arith.constant 0 : index
    %c0_666 = arith.constant 0 : index
    %1268 = vector.load %arg10[%c0_665, %c0_666] : memref<8x256xf32, #tpu.memory_space<vmem>>, vector<8x256xf32>
    %cst_667 = arith.constant dense<0.000000e+00> : vector<8x256xf32>
    %1269 = tpu.matmul %1267, %1268, %cst_667 {dimension_numbers = #tpu.dot_dimension_numbers<[1], [0], [0], [1], [0, 0, 1, 1], [], []>} : vector<8x8xf32>, vector<8x256xf32>, vector<8x256xf32> -> vector<8x256xf32>
    %c0_668 = arith.constant 0 : index
    %c0_669 = arith.constant 0 : index
    %1270 = vector.load %arg14[%c0_668, %c0_669] : memref<8x256xf32, #tpu.memory_space<vmem>>, vector<8x256xf32>
    %1271 = arith.mulf %1269, %1270 : vector<8x256xf32>
    %c0_670 = arith.constant 0 : index
    %c0_671 = arith.constant 0 : index
    %1272 = vector.load %arg11[%c0_670, %c0_671] : memref<256x32xf32, #tpu.memory_space<vmem>>, vector<256x32xf32>
    %cst_672 = arith.constant dense<0.000000e+00> : vector<8x32xf32>
    %1273 = tpu.matmul %1271, %1272, %cst_672 {dimension_numbers = #tpu.dot_dimension_numbers<[1], [0], [0], [1], [0, 0, 1, 1], [], []>} : vector<8x256xf32>, vector<256x32xf32>, vector<8x32xf32> -> vector<8x32xf32>
    %c0_673 = arith.constant 0 : index
    %c0_674 = arith.constant 0 : index
    %1274 = vector.load %arg16[%c0_673, %c0_674] : memref<8x96xf32, #tpu.memory_space<vmem>>, vector<8x32xf32>
    tpu.vector_store %arg16[%c0_673, %c0_674], %1228 {strides = array<i32>} : memref<8x96xf32, #tpu.memory_space<vmem>>, vector<8x32xf32>,
    %c0_675 = arith.constant 0 : index
    %c32_676 = arith.constant 32 : index
    %1275 = vector.load %arg16[%c0_675, %c32_676] : memref<8x96xf32, #tpu.memory_space<vmem>>, vector<8x32xf32>
    tpu.vector_store %arg16[%c0_675, %c32_676], %1273 {strides = array<i32>} : memref<8x96xf32, #tpu.memory_space<vmem>>, vector<8x32xf32>,
    %c0_677 = arith.constant 0 : index
    %c64_678 = arith.constant 64 : index
    %1276 = vector.load %arg16[%c0_677, %c64_678] : memref<8x96xf32, #tpu.memory_space<vmem>>, vector<8x32xf32>
    tpu.vector_store %arg16[%c0_677, %c64_678], %1250 {strides = array<i32>} : memref<8x96xf32, #tpu.memory_space<vmem>>, vector<8x32xf32>,
    %c0_679 = arith.constant 0 : index
    %c0_680 = arith.constant 0 : index
    %1277 = vector.load %arg16[%c0_679, %c0_680] : memref<8x96xf32, #tpu.memory_space<vmem>>, vector<8x96xf32>
    %c0_681 = arith.constant 0 : index
    %c0_682 = arith.constant 0 : index
    %1278 = vector.load %arg6[%c0_681, %c0_682] : memref<96x128xf32, #tpu.memory_space<vmem>>, vector<96x128xf32>
    %cst_683 = arith.constant dense<0.000000e+00> : vector<8x128xf32>
    %1279 = tpu.matmul %1277, %1278, %cst_683 {dimension_numbers = #tpu.dot_dimension_numbers<[1], [0], [0], [1], [0, 0, 1, 1], [], []>} : vector<8x96xf32>, vector<96x128xf32>, vector<8x128xf32> -> vector<8x128xf32>
    %1280 = vector.extract_strided_slice %1279 {offsets = [0, 127], sizes = [8, 1], strides = [1, 1]} : vector<8x128xf32> to vector<8x1xf32>
    %1281 = arith.negf %1280 : vector<8x1xf32>
    %1282 = math.exp %1281 : vector<8x1xf32>
    %cst_684 = arith.constant 1.000000e+00 : f32
    %1283 = vector.broadcast %cst_684 : f32 to vector<8x1xf32>
    %1284 = arith.addf %1283, %1282 : vector<8x1xf32>
    %1285 = arith.divf %1283, %1284 : vector<8x1xf32>
    %1286 = vector.broadcast %190 : vector<1x128xf32> to vector<8x128xf32>
    %1287 = arith.addf %1279, %1286 : vector<8x128xf32>
    %cst_685 = arith.constant dense<0xFF800000> : vector<8xf32>
    %1288 = vector.multi_reduction <maximumf>, %1287, %cst_685 [1] : vector<8x128xf32> to vector<8xf32>
    %1289 = vector.shape_cast %1288 : vector<8xf32> to vector<8x1xf32>
    %1290 = vector.broadcast %1289 : vector<8x1xf32> to vector<8x128xf32>
    %1291 = arith.subf %1287, %1290 : vector<8x128xf32>
    %1292 = math.exp %1291 : vector<8x128xf32>
    %cst_686 = arith.constant dense<0.000000e+00> : vector<8xf32>
    %1293 = vector.multi_reduction <add>, %1292, %cst_686 [1] : vector<8x128xf32> to vector<8xf32>
    %1294 = vector.shape_cast %1293 : vector<8xf32> to vector<8x1xf32>
    %1295 = vector.broadcast %1294 : vector<8x1xf32> to vector<8x128xf32>
    %1296 = arith.divf %1292, %1295 : vector<8x128xf32>
    %1297 = vector.extract_strided_slice %1267 {offsets = [0, 0], sizes = [8, 1], strides = [1, 1]} : vector<8x8xf32> to vector<8x1xf32>
    %c0_687 = arith.constant 0 : index
    %c0_688 = arith.constant 0 : index
    %c0_689 = arith.constant 0 : index
    %1298 = vector.load %arg2[%c0_687, %c0_688, %c0_689] : memref<8x8x128xf32, #tpu.memory_space<vmem>>, vector<1x8x128xf32>
    %1299 = vector.shape_cast %1298 : vector<1x8x128xf32> to vector<8x128xf32>
    %1300 = vector.broadcast %1297 : vector<8x1xf32> to vector<8x128xf32>
    %1301 = arith.mulf %1300, %1299 : vector<8x128xf32>
    %1302 = vector.extract_strided_slice %1267 {offsets = [0, 1], sizes = [8, 1], strides = [1, 1]} : vector<8x8xf32> to vector<8x1xf32>
    %c1_690 = arith.constant 1 : index
    %c0_691 = arith.constant 0 : index
    %c0_692 = arith.constant 0 : index
    %1303 = vector.load %arg2[%c1_690, %c0_691, %c0_692] : memref<8x8x128xf32, #tpu.memory_space<vmem>>, vector<1x8x128xf32>
    %1304 = vector.shape_cast %1303 : vector<1x8x128xf32> to vector<8x128xf32>
    %1305 = vector.broadcast %1302 : vector<8x1xf32> to vector<8x128xf32>
    %1306 = arith.mulf %1305, %1304 : vector<8x128xf32>
    %1307 = arith.addf %1301, %1306 : vector<8x128xf32>
    %1308 = vector.extract_strided_slice %1267 {offsets = [0, 2], sizes = [8, 1], strides = [1, 1]} : vector<8x8xf32> to vector<8x1xf32>
    %c2_693 = arith.constant 2 : index
    %c0_694 = arith.constant 0 : index
    %c0_695 = arith.constant 0 : index
    %1309 = vector.load %arg2[%c2_693, %c0_694, %c0_695] : memref<8x8x128xf32, #tpu.memory_space<vmem>>, vector<1x8x128xf32>
    %1310 = vector.shape_cast %1309 : vector<1x8x128xf32> to vector<8x128xf32>
    %1311 = vector.broadcast %1308 : vector<8x1xf32> to vector<8x128xf32>
    %1312 = arith.mulf %1311, %1310 : vector<8x128xf32>
    %1313 = arith.addf %1307, %1312 : vector<8x128xf32>
    %1314 = vector.extract_strided_slice %1267 {offsets = [0, 3], sizes = [8, 1], strides = [1, 1]} : vector<8x8xf32> to vector<8x1xf32>
    %c3_696 = arith.constant 3 : index
    %c0_697 = arith.constant 0 : index
    %c0_698 = arith.constant 0 : index
    %1315 = vector.load %arg2[%c3_696, %c0_697, %c0_698] : memref<8x8x128xf32, #tpu.memory_space<vmem>>, vector<1x8x128xf32>
    %1316 = vector.shape_cast %1315 : vector<1x8x128xf32> to vector<8x128xf32>
    %1317 = vector.broadcast %1314 : vector<8x1xf32> to vector<8x128xf32>
    %1318 = arith.mulf %1317, %1316 : vector<8x128xf32>
    %1319 = arith.addf %1313, %1318 : vector<8x128xf32>
    %1320 = vector.extract_strided_slice %1267 {offsets = [0, 4], sizes = [8, 1], strides = [1, 1]} : vector<8x8xf32> to vector<8x1xf32>
    %c4_699 = arith.constant 4 : index
    %c0_700 = arith.constant 0 : index
    %c0_701 = arith.constant 0 : index
    %1321 = vector.load %arg2[%c4_699, %c0_700, %c0_701] : memref<8x8x128xf32, #tpu.memory_space<vmem>>, vector<1x8x128xf32>
    %1322 = vector.shape_cast %1321 : vector<1x8x128xf32> to vector<8x128xf32>
    %1323 = vector.broadcast %1320 : vector<8x1xf32> to vector<8x128xf32>
    %1324 = arith.mulf %1323, %1322 : vector<8x128xf32>
    %1325 = arith.addf %1319, %1324 : vector<8x128xf32>
    %1326 = vector.extract_strided_slice %1267 {offsets = [0, 5], sizes = [8, 1], strides = [1, 1]} : vector<8x8xf32> to vector<8x1xf32>
    %c5_702 = arith.constant 5 : index
    %c0_703 = arith.constant 0 : index
    %c0_704 = arith.constant 0 : index
    %1327 = vector.load %arg2[%c5_702, %c0_703, %c0_704] : memref<8x8x128xf32, #tpu.memory_space<vmem>>, vector<1x8x128xf32>
    %1328 = vector.shape_cast %1327 : vector<1x8x128xf32> to vector<8x128xf32>
    %1329 = vector.broadcast %1326 : vector<8x1xf32> to vector<8x128xf32>
    %1330 = arith.mulf %1329, %1328 : vector<8x128xf32>
    %1331 = arith.addf %1325, %1330 : vector<8x128xf32>
    %1332 = vector.extract_strided_slice %1267 {offsets = [0, 6], sizes = [8, 1], strides = [1, 1]} : vector<8x8xf32> to vector<8x1xf32>
    %c6_705 = arith.constant 6 : index
    %c0_706 = arith.constant 0 : index
    %c0_707 = arith.constant 0 : index
    %1333 = vector.load %arg2[%c6_705, %c0_706, %c0_707] : memref<8x8x128xf32, #tpu.memory_space<vmem>>, vector<1x8x128xf32>
    %1334 = vector.shape_cast %1333 : vector<1x8x128xf32> to vector<8x128xf32>
    %1335 = vector.broadcast %1332 : vector<8x1xf32> to vector<8x128xf32>
    %1336 = arith.mulf %1335, %1334 : vector<8x128xf32>
    %1337 = arith.addf %1331, %1336 : vector<8x128xf32>
    %1338 = vector.extract_strided_slice %1267 {offsets = [0, 7], sizes = [8, 1], strides = [1, 1]} : vector<8x8xf32> to vector<8x1xf32>
    %c7_708 = arith.constant 7 : index
    %c0_709 = arith.constant 0 : index
    %c0_710 = arith.constant 0 : index
    %1339 = vector.load %arg2[%c7_708, %c0_709, %c0_710] : memref<8x8x128xf32, #tpu.memory_space<vmem>>, vector<1x8x128xf32>
    %1340 = vector.shape_cast %1339 : vector<1x8x128xf32> to vector<8x128xf32>
    %1341 = vector.broadcast %1338 : vector<8x1xf32> to vector<8x128xf32>
    %1342 = arith.mulf %1341, %1340 : vector<8x128xf32>
    %1343 = arith.addf %1337, %1342 : vector<8x128xf32>
    %1344 = vector.broadcast %1285 : vector<8x1xf32> to vector<8x128xf32>
    %1345 = arith.mulf %1344, %1296 : vector<8x128xf32>
    %cst_711 = arith.constant 1.000000e+00 : f32
    %1346 = vector.broadcast %cst_711 : f32 to vector<8x1xf32>
    %1347 = arith.subf %1346, %1285 : vector<8x1xf32>
    %1348 = vector.broadcast %1347 : vector<8x1xf32> to vector<8x128xf32>
    %1349 = arith.mulf %1348, %1343 : vector<8x128xf32>
    %1350 = arith.addf %1345, %1349 : vector<8x128xf32>
    %c7_712 = arith.constant 7 : index
    %c0_713 = arith.constant 0 : index
    %c0_714 = arith.constant 0 : index
    %1351 = vector.load %arg12[%c7_712, %c0_713, %c0_714] : memref<8x8x128xf32, #tpu.memory_space<vmem>>, vector<1x8x128xf32>
    %1352 = vector.shape_cast %1351 : vector<1x8x128xf32> to vector<8x128xf32>
    %1353 = vector.shape_cast %1350 : vector<8x128xf32> to vector<1x8x128xf32>
    tpu.vector_store %arg12[%c7_712, %c0_713, %c0_714], %1353 {strides = array<i32>} : memref<8x8x128xf32, #tpu.memory_space<vmem>>, vector<1x8x128xf32>,
    %cst_715 = arith.constant dense<0xFF800000> : vector<8xf32>
    %1354 = vector.multi_reduction <maximumf>, %1350, %cst_715 [1] : vector<8x128xf32> to vector<8xf32>
    %1355 = vector.shape_cast %1354 : vector<8xf32> to vector<8x1xf32>
    %1356 = vector.broadcast %1355 : vector<8x1xf32> to vector<8x128xf32>
    %1357 = arith.cmpf oeq, %1350, %1356 : vector<8x128xf32>
    %cst_716 = arith.constant 1.280000e+02 : f32
    %1358 = vector.shape_cast %185 : vector<1x128xf32> to vector<1x128xf32>
    %1359 = vector.broadcast %1358 : vector<1x128xf32> to vector<8x128xf32>
    %1360 = vector.broadcast %cst_716 : f32 to vector<8x128xf32>
    %1361 = arith.select %1357, %1359, %1360 : vector<8x128xi1>, vector<8x128xf32>
    %cst_717 = arith.constant dense<0x7F800000> : vector<8xf32>
    %1362 = vector.multi_reduction <minimumf>, %1361, %cst_717 [1] : vector<8x128xf32> to vector<8xf32>
    %1363 = vector.shape_cast %1362 : vector<8xf32> to vector<8x1xf32>
    %1364 = arith.fptosi %1363 : vector<8x1xf32> to vector<8x1xi32>
    %c7_718 = arith.constant 7 : index
    %c0_719 = arith.constant 0 : index
    %c0_720 = arith.constant 0 : index
    %1365 = vector.load %arg13[%c7_718, %c0_719, %c0_720] : memref<8x8x1xi32, #tpu.memory_space<vmem>>, vector<1x8x1xi32>
    %1366 = vector.shape_cast %1365 : vector<1x8x1xi32> to vector<8x1xi32>
    %1367 = vector.shape_cast %1364 : vector<8x1xi32> to vector<1x8x1xi32>
    tpu.vector_store %arg13[%c7_718, %c0_719, %c0_720], %1367 {strides = array<i32>} : memref<8x8x1xi32, #tpu.memory_space<vmem>>, vector<1x8x1xi32>,
    return
  }
}

</mosaic_0001>

<bundles_post_ra>
// kernel: tile.9
= control target key start
LH: loop header
LB: loop body
LE: loop exit
PB: predicated region body
PF: predicated region fallthrough
CT: control target
= control target key end

     0   :  { %vm92_vm0 = vcmask 1047556   ;;  %s459_s14 = smov 96   ;;  %s460_s22 = smov 64   ;;  %vm3_vm1 = vcmask 261120   ;;  %vm96_vm2 = vcmask 1048320   ;;  %vm183_vm3 = vcmask 785920   ;;  %s896_s0 = inlined_call_operand.vmem [shape: f32[32,8,32], index: 0, kind: input, shape index: {}]   ;;  %s897_s1 = inlined_call_operand.vmem [shape: f32[32,256], index: 1, kind: output, shape index: {}]  }
   0x1   :  { %v392_v0 = vld [vmem:[%s896_s0 + $0x7] ss:$8 sm:$0xf]   ;;  %v387_v3 = vld [vmem:[%s896_s0 + $0x3] ss:$8 sm:$0xf]  }
   0x2   :  { %v393_v1 = vld [vmem:[%s896_s0 + $0x7] ss:$8 sm:$0xf0]   ;;  %v388_v4 = vld [vmem:[%s896_s0 + $0x3] ss:$8 sm:$0xf0]  }
   0x3   :  { %v114_v2 = vsel %vm92_vm0, %v393_v1, %v392_v0  ;;  %v93_v5 = vsel %vm92_vm0, %v388_v4, %v387_v3  ;;  %v395_v6 = vld [vmem:[%s896_s0 + $0x87] ss:$8 sm:$0xf]   ;;  %v389_v8 = vld [vmem:[%s896_s0 + $0x83] ss:$8 sm:$0xf]  }
   0x4   :  { %115 = vrot.lane.b32.xlu1 %v114_v2, %s459_s14  ;;  %94 = vrot.lane.b32.xlu0 %v93_v5, %s459_s14  ;;  %v396_v7 = vld [vmem:[%s896_s0 + $0x87] ss:$8 sm:$0xf0]   ;;  %v390_v9 = vld [vmem:[%s896_s0 + $0x83] ss:$8 sm:$0xf0]  }
   0x5   :  { %v398_v10 = vld [vmem:[%s896_s0 + $0x43] ss:$8 sm:$0xf]   ;;  %v125_v12 = vsel %vm92_vm0, %v396_v7, %v395_v6  ;;  %v103_v14 = vsel %vm92_vm0, %v390_v9, %v389_v8  ;;  %v407_v17 = vld [vmem:[%s896_s0 + $0xc7] ss:$8 sm:$0xf]  }
   0x6   :  { %v399_v11 = vld [vmem:[%s896_s0 + $0x43] ss:$8 sm:$0xf0]   ;;  %v408_v18 = vld [vmem:[%s896_s0 + $0xc7] ss:$8 sm:$0xf0]  }
   0x7   :  { %v136_v13 = vsel %vm92_vm0, %v399_v11, %v398_v10  ;;  %v401_v15 = vld [vmem:[%s896_s0 + $0xc3] ss:$8 sm:$0xf]   ;;  %v404_v19 = vld [vmem:[%s896_s0 + $0x47] ss:$8 sm:$0xf]   ;;  %v169_v22 = vsel %vm92_vm0, %v408_v18, %v407_v17 }
   0x8   :  { %137 = vrot.lane.b32.xlu2 %v136_v13, %s459_s14  ;;  %v402_v16 = vld [vmem:[%s896_s0 + $0xc3] ss:$8 sm:$0xf0]   ;;  %v405_v20 = vld [vmem:[%s896_s0 + $0x47] ss:$8 sm:$0xf0]  }
   0x9   :  { %v147_v21 = vsel %vm92_vm0, %v402_v16, %v401_v15  ;;  %v158_v23 = vsel %vm92_vm0, %v405_v20, %v404_v19  ;;  %v410_v24 = vld [vmem:[%s896_s0 + $0x2] ss:$8 sm:$0xf]   ;;  %v415_v26 = vld [vmem:[%s896_s0 + $0x6] ss:$8 sm:$0xf]  }
   0xa   :  { %v411_v25 = vld [vmem:[%s896_s0 + $0x2] ss:$8 sm:$0xf0]   ;;  %v416_v27 = vld [vmem:[%s896_s0 + $0x6] ss:$8 sm:$0xf0]  }
   0xb   :  { %v412_v28 = vld [vmem:[%s896_s0 + $0x82] ss:$8 sm:$0xf]   ;;  %v180_v30 = vsel %vm92_vm0, %v411_v25, %v410_v24  ;;  %v201_v31 = vsel %vm92_vm0, %v416_v27, %v415_v26  ;;  %v418_v33 = vld [vmem:[%s896_s0 + $0x86] ss:$8 sm:$0xf]  }
   0xc   :  { %126 = vrot.lane.b32.xlu1 %v125_v12, %s459_s14  ;;  %104 = vrot.lane.b32.xlu0 %v103_v14, %s459_s14  ;;  %v413_v29 = vld [vmem:[%s896_s0 + $0x82] ss:$8 sm:$0xf0]   ;;  %v419_v34 = vld [vmem:[%s896_s0 + $0x86] ss:$8 sm:$0xf0]  }
   0xd   :  { %v190_v32 = vsel %vm92_vm0, %v413_v29, %v412_v28  ;;  %v424_v35 = vld [vmem:[%s896_s0 + $0xc2] ss:$8 sm:$0xf]   ;;  %v212_v39 = vsel %vm92_vm0, %v419_v34, %v418_v33  ;;  %v427_v42 = vld [vmem:[%s896_s0 + $0x46] ss:$8 sm:$0xf]  }
   0xe   :  { %v425_v36 = vld [vmem:[%s896_s0 + $0xc2] ss:$8 sm:$0xf0]   ;;  %v428_v43 = vld [vmem:[%s896_s0 + $0x46] ss:$8 sm:$0xf0]  }
   0xf   :  { %v421_v37 = vld [vmem:[%s896_s0 + $0x42] ss:$8 sm:$0xf]   ;;  %v234_v40 = vsel %vm92_vm0, %v425_v36, %v424_v35  ;;  %v433_v44 = vld [vmem:[%s896_s0 + $0x1] ss:$8 sm:$0xf]   ;;  %v245_v48 = vsel %vm92_vm0, %v428_v43, %v427_v42 }
  0x10   :  { %148 = vrot.lane.b32.xlu2 %v147_v21, %s459_s14  ;;  %v422_v38 = vld [vmem:[%s896_s0 + $0x42] ss:$8 sm:$0xf0]   ;;  %v434_v45 = vld [vmem:[%s896_s0 + $0x1] ss:$8 sm:$0xf0]  }
  0x11   :  { %v223_v41 = vsel %vm92_vm0, %v422_v38, %v421_v37  ;;  %v430_v46 = vld [vmem:[%s896_s0 + $0xc6] ss:$8 sm:$0xf]   ;;  %v267_v49 = vsel %vm92_vm0, %v434_v45, %v433_v44  ;;  %s461_s18 = smov 32   ;;  %v2_v8 = vld [vmem:[%s896_s0] ss:$4 sm:$0xff]  }
  0x12   :  { %v431_v47 = vld [vmem:[%s896_s0 + $0xc6] ss:$8 sm:$0xf0]   ;;  %v435_v51 = vld [vmem:[%s896_s0 + $0x81] ss:$8 sm:$0xf]  }
  0x13   :  { %v256_v50 = vsel %vm92_vm0, %v431_v47, %v430_v46  ;;  %v436_v52 = vld [vmem:[%s896_s0 + $0x81] ss:$8 sm:$0xf0]   ;;  %v441_v53 = vld [vmem:[%s896_s0 + $0x85] ss:$8 sm:$0xf]  }
  0x14   :  { %170 = vrot.lane.b32.xlu1 %v169_v22, %s459_s14  ;;  %159 = vrot.lane.b32.xlu0 %v158_v23, %s459_s14  ;;  %v442_v54 = vld [vmem:[%s896_s0 + $0x85] ss:$8 sm:$0xf0]   ;;  %v277_v57 = vsel %vm92_vm0, %v436_v52, %v435_v51  ;;  %v444_v60 = vld [vmem:[%s896_s0 + $0x41] ss:$8 sm:$0xf]  }
  0x15   :  { %v438_v55 = vld [vmem:[%s896_s0 + $0x5] ss:$8 sm:$0xf]   ;;  %v299_v58 = vsel %vm92_vm0, %v442_v54, %v441_v53  ;;  %v445_v61 = vld [vmem:[%s896_s0 + $0x41] ss:$8 sm:$0xf0]  }
  0x16   :  { %v439_v56 = vld [vmem:[%s896_s0 + $0x5] ss:$8 sm:$0xf0]   ;;  %v447_v0 = vld [vmem:[%s896_s0 + $0xc1] ss:$8 sm:$0xf]   ;;  %v310_v2 = vsel %vm92_vm0, %v445_v61, %v444_v60 }
  0x17   :  { %v288_v59 = vsel %vm92_vm0, %v439_v56, %v438_v55  ;;  %v450_v62 = vld [vmem:[%s896_s0 + $0x45] ss:$8 sm:$0xf]   ;;  %v448_v1 = vld [vmem:[%s896_s0 + $0xc1] ss:$8 sm:$0xf0]  }
  0x18   :  { %181 = vrot.lane.b32.xlu2 %v180_v30, %s460_s22  ;;  %v451_v63 = vld [vmem:[%s896_s0 + $0x45] ss:$8 sm:$0xf0]   ;;  %v321_v4 = vsel %vm92_vm0, %v448_v1, %v447_v0  ;;  %4 = vst.msk [vmem:[%s897_s1] ss:$8 sm:$0x3] %vm3_vm1, %v2_v8  }
  0x19   :  { %v332_v3 = vsel %vm92_vm0, %v451_v63, %v450_v62  ;;  %v453_v5 = vld [vmem:[%s896_s0 + $0xc5] ss:$8 sm:$0xf]   ;;  %349 = vst.msk [vmem:[%s897_s1 - $0xf] ss:$8 sm:$0xc] %vm3_vm1, %v2_v8  }
  0x1a   :  { %v454_v6 = vld [vmem:[%s896_s0 + $0xc5] ss:$8 sm:$0xf0]   ;;  %v352_v9 = vld [vmem:[%s896_s0 + $0x20] ss:$4 sm:$0xff]   ;;  %vm270_vm4 = vcmask 523520  }
  0x1b   :  { %v343_v7 = vsel %vm92_vm0, %v454_v6, %v453_v5  ;;  %350 = vst.msk [vmem:[%s897_s1 - $0x1e] ss:$8 sm:$0x30] %vm3_vm1, %v2_v8   ;;  %v367_v10 = vld [vmem:[%s896_s0 + $0x80] ss:$4 sm:$0xff]  }
  0x1c   :  { %202 = vrot.lane.b32.xlu1 %v201_v31, %s460_s22  ;;  %191 = vrot.lane.b32.xlu0 %v190_v32, %s460_s22  ;;  %351 = vst.msk [vmem:[%s897_s1 - $0x2d] ss:$8 sm:$0xc0] %vm3_vm1, %v2_v8   ;;  %v372_v11 = vld [vmem:[%s896_s0 + $0xa0] ss:$4 sm:$0xff]  }
  0x1d   :  { %353 = vst.msk [vmem:[%s897_s1 + $0x4] ss:$8 sm:$0x3] %vm3_vm1, %v352_v9   ;;  %v357_v13 = vld [vmem:[%s896_s0 + $0x40] ss:$4 sm:$0xff]  }
  0x1e   :  { %354 = vst.msk [vmem:[%s897_s1 - $0xb] ss:$8 sm:$0xc] %vm3_vm1, %v352_v9   ;;  %v362_v14 = vld [vmem:[%s896_s0 + $0x60] ss:$4 sm:$0xff]  }
  0x1f   :  { %355 = vst.msk [vmem:[%s897_s1 - $0x1a] ss:$8 sm:$0x30] %vm3_vm1, %v352_v9   ;;  %v377_v16 = vld [vmem:[%s896_s0 + $0xc0] ss:$4 sm:$0xff]  }
  0x20   :  { %213 = vrot.lane.b32.xlu2 %v212_v39, %s460_s22  ;;  %356 = vst.msk [vmem:[%s897_s1 - $0x29] ss:$8 sm:$0xc0] %vm3_vm1, %v352_v9   ;;  %v382_v17 = vld [vmem:[%s896_s0 + $0xe0] ss:$4 sm:$0xff]  }
  0x21   :  { %368 = vst.msk [vmem:[%s897_s1 + $0x20] ss:$8 sm:$0x3] %vm3_vm1, %v367_v10  }
  0x22   :  { %369 = vst.msk [vmem:[%s897_s1 + $0x11] ss:$8 sm:$0xc] %vm3_vm1, %v367_v10  }
  0x23   :  { %370 = vst.msk [vmem:[%s897_s1 + $0x2] ss:$8 sm:$0x30] %vm3_vm1, %v367_v10  }
  0x24   :  { %235 = vrot.lane.b32.xlu1 %v234_v40, %s460_s22  ;;  %224 = vrot.lane.b32.xlu0 %v223_v41, %s460_s22  ;;  %371 = vst.msk [vmem:[%s897_s1 - $0xd] ss:$8 sm:$0xc0] %vm3_vm1, %v367_v10  }
  0x25   :  { %373 = vst.msk [vmem:[%s897_s1 + $0x24] ss:$8 sm:$0x3] %vm3_vm1, %v372_v11  }
  0x26   :  { %374 = vst.msk [vmem:[%s897_s1 + $0x15] ss:$8 sm:$0xc] %vm3_vm1, %v372_v11  }
  0x27   :  { %375 = vst.msk [vmem:[%s897_s1 + $0x6] ss:$8 sm:$0x30] %vm3_vm1, %v372_v11  }
  0x28   :  { %246 = vrot.lane.b32.xlu2 %v245_v48, %s460_s22  ;;  %376 = vst.msk [vmem:[%s897_s1 - $0x9] ss:$8 sm:$0xc0] %vm3_vm1, %v372_v11  }
  0x29   :  { %358 = vst.msk [vmem:[%s897_s1 + $0x10] ss:$8 sm:$0x3] %vm3_vm1, %v357_v13  }
  0x2a   :  { %359 = vst.msk [vmem:[%s897_s1 + $0x1] ss:$8 sm:$0xc] %vm3_vm1, %v357_v13  }
  0x2b   :  { %360 = vst.msk [vmem:[%s897_s1 - $0xe] ss:$8 sm:$0x30] %vm3_vm1, %v357_v13  }
  0x2c   :  { %268 = vrot.lane.b32.xlu1 %v267_v49, %s461_s18  ;;  %257 = vrot.lane.b32.xlu0 %v256_v50, %s460_s22  ;;  %361 = vst.msk [vmem:[%s897_s1 - $0x1d] ss:$8 sm:$0xc0] %vm3_vm1, %v357_v13  }
  0x2d   :  { %363 = vst.msk [vmem:[%s897_s1 + $0x14] ss:$8 sm:$0x3] %vm3_vm1, %v362_v14  }
  0x2e   :  { %364 = vst.msk [vmem:[%s897_s1 + $0x5] ss:$8 sm:$0xc] %vm3_vm1, %v362_v14  }
  0x2f   :  { %365 = vst.msk [vmem:[%s897_s1 - $0xa] ss:$8 sm:$0x30] %vm3_vm1, %v362_v14  }
  0x30   :  { %278 = vrot.lane.b32.xlu2 %v277_v57, %s461_s18  ;;  %366 = vst.msk [vmem:[%s897_s1 - $0x19] ss:$8 sm:$0xc0] %vm3_vm1, %v362_v14  }
  0x31   :  { %378 = vst.msk [vmem:[%s897_s1 + $0x30] ss:$8 sm:$0x3] %vm3_vm1, %v377_v16  }
  0x32   :  { %379 = vst.msk [vmem:[%s897_s1 + $0x21] ss:$8 sm:$0xc] %vm3_vm1, %v377_v16  }
  0x33   :  { %380 = vst.msk [vmem:[%s897_s1 + $0x12] ss:$8 sm:$0x30] %vm3_vm1, %v377_v16  }
  0x34   :  { %300 = vrot.lane.b32.xlu1 %v299_v58, %s461_s18  ;;  %289 = vrot.lane.b32.xlu0 %v288_v59, %s461_s18  ;;  %381 = vst.msk [vmem:[%s897_s1 + $0x3] ss:$8 sm:$0xc0] %vm3_vm1, %v377_v16  }
  0x35   :  { %383 = vst.msk [vmem:[%s897_s1 + $0x34] ss:$8 sm:$0x3] %vm3_vm1, %v382_v17  }
  0x36   :  { %384 = vst.msk [vmem:[%s897_s1 + $0x25] ss:$8 sm:$0xc] %vm3_vm1, %v382_v17  }
  0x37   :  { %385 = vst.msk [vmem:[%s897_s1 + $0x16] ss:$8 sm:$0x30] %vm3_vm1, %v382_v17  }
  0x38   :  { %311 = vrot.lane.b32.xlu2 %v310_v2, %s461_s18  ;;  %386 = vst.msk [vmem:[%s897_s1 + $0x7] ss:$8 sm:$0xc0] %vm3_vm1, %v382_v17  }
  0x3c   :  { %333 = vrot.lane.b32.xlu1 %v332_v3, %s461_s18  ;;  %322 = vrot.lane.b32.xlu0 %v321_v4, %s461_s18 }
  0x40   :  { %344 = vrot.lane.b32.xlu2 %v343_v7, %s461_s18 }
  0x62   :  { %v138_v12 = vpop.permute.xlu2 %137  }
  0x63   :  { %400 = vst.msk [vmem:[%s897_s1 + $0x10] sm:$0xff] %vm96_vm2, %v138_v12  }
  0x6a   :  { %v149_v15 = vpop.permute.xlu2 %148  }
  0x6b   :  { %403 = vst.msk [vmem:[%s897_s1 + $0x30] sm:$0xff] %vm96_vm2, %v149_v15  }
  0x72   :  { %v182_v18 = vpop.permute.xlu2 %181  }
  0x76   :  { %v116_v19 = vpop.permute.xlu1 %115   ;;  %v95_v20 = vpop.permute.xlu0 %94  }
  0x77   :  { %394 = vst.msk [vmem:[%s897_s1 + $0x8] sm:$0xff] %vm96_vm2, %v116_v19  }
  0x78   :  { %97 = vst.msk [vmem:[%s897_s1] sm:$0xff] %vm96_vm2, %v95_v20  }
  0x79   :  { %184 = vst.msk [vmem:[%s897_s1] sm:$0xff] %vm183_vm3, %v182_v18  }
  0x7a   :  { %v214_v21 = vpop.permute.xlu2 %213  }
  0x7e   :  { %v127_v22 = vpop.permute.xlu1 %126   ;;  %v105_v23 = vpop.permute.xlu0 %104  }
  0x7f   :  { %397 = vst.msk [vmem:[%s897_s1 + $0x28] sm:$0xff] %vm96_vm2, %v127_v22  }
  0x80   :  { %420 = vst.msk [vmem:[%s897_s1 + $0x28] sm:$0xff] %vm183_vm3, %v214_v21  }
  0x81   :  { %391 = vst.msk [vmem:[%s897_s1 + $0x20] sm:$0xff] %vm96_vm2, %v105_v23  }
  0x82   :  { %v247_v24 = vpop.permute.xlu2 %246  }
  0x86   :  { %v171_v25 = vpop.permute.xlu1 %170   ;;  %v160_v26 = vpop.permute.xlu0 %159  }
  0x87   :  { %409 = vst.msk [vmem:[%s897_s1 + $0x38] sm:$0xff] %vm96_vm2, %v171_v25  }
  0x88   :  { %406 = vst.msk [vmem:[%s897_s1 + $0x18] sm:$0xff] %vm96_vm2, %v160_v26  }
  0x89   :  { %429 = vst.msk [vmem:[%s897_s1 + $0x18] sm:$0xff] %vm183_vm3, %v247_v24  }
  0x8a   :  { %v279_v27 = vpop.permute.xlu2 %278  }
  0x8e   :  { %v203_v28 = vpop.permute.xlu1 %202   ;;  %v192_v29 = vpop.permute.xlu0 %191  }
  0x8f   :  { %417 = vst.msk [vmem:[%s897_s1 + $0x8] sm:$0xff] %vm183_vm3, %v203_v28  }
  0x90   :  { %414 = vst.msk [vmem:[%s897_s1 + $0x20] sm:$0xff] %vm183_vm3, %v192_v29  }
  0x91   :  { %437 = vst.msk [vmem:[%s897_s1 + $0x20] sm:$0xff] %vm270_vm4, %v279_v27  }
  0x92   :  { %v312_v30 = vpop.permute.xlu2 %311  }
  0x96   :  { %v236_v31 = vpop.permute.xlu1 %235   ;;  %v225_v32 = vpop.permute.xlu0 %224  }
  0x97   :  { %426 = vst.msk [vmem:[%s897_s1 + $0x30] sm:$0xff] %vm183_vm3, %v236_v31  }
  0x98   :  { %423 = vst.msk [vmem:[%s897_s1 + $0x10] sm:$0xff] %vm183_vm3, %v225_v32  }
  0x99   :  { %446 = vst.msk [vmem:[%s897_s1 + $0x10] sm:$0xff] %vm270_vm4, %v312_v30  }
  0x9a   :  { %v345_v33 = vpop.permute.xlu2 %344  }
  0x9e   :  { %v269_v34 = vpop.permute.xlu1 %268   ;;  %v258_v35 = vpop.permute.xlu0 %257  }
  0x9f   :  { %271 = vst.msk [vmem:[%s897_s1] sm:$0xff] %vm270_vm4, %v269_v34  }
  0xa0   :  { %432 = vst.msk [vmem:[%s897_s1 + $0x38] sm:$0xff] %vm183_vm3, %v258_v35  }
  0xa1   :  { %455 = vst.msk [vmem:[%s897_s1 + $0x38] sm:$0xff] %vm270_vm4, %v345_v33  }
  0xa6   :  { %v301_v36 = vpop.permute.xlu1 %300   ;;  %v290_v37 = vpop.permute.xlu0 %289  }
  0xa7   :  { %443 = vst.msk [vmem:[%s897_s1 + $0x28] sm:$0xff] %vm270_vm4, %v301_v36  }
  0xa8   :  { %440 = vst.msk [vmem:[%s897_s1 + $0x8] sm:$0xff] %vm270_vm4, %v290_v37  }
  0xae   :  { %v334_v38 = vpop.permute.xlu1 %333   ;;  %v323_v39 = vpop.permute.xlu0 %322  }
  0xaf   :  { %452 = vst.msk [vmem:[%s897_s1 + $0x18] sm:$0xff] %vm270_vm4, %v334_v38  }
  0xb0   :  { %449 = vst.msk [vmem:[%s897_s1 + $0x30] sm:$0xff] %vm270_vm4, %v323_v39  }

// kernel: _generator_device.1
= control target key start
LH: loop header
LB: loop body
LE: loop exit
PB: predicated region body
PF: predicated region fallthrough
CT: control target
= control target key end

     0   :  { %v9603_v4 = vmov 0.0   ;;  %s5644_s17 = smov 32   ;;  %s5645_s18 = smov 64   ;;  %vm48_vm4 = vcmask 261120   ;;  %s9587_s3 = inlined_call_operand.vmem [shape: f32[32,128], index: 3, kind: input, shape index: {}]   ;;  %s9588_s0 = inlined_call_operand.vmem [shape: f32[8,8,128], index: 0, kind: input, shape index: {}]   ;;  %s9589_s8 = inlined_call_operand.vmem [shape: f32[256,256], index: 8, kind: input, shape index: {}]   ;;  %s9590_s4 = inlined_call_operand.vmem [shape: f32[8,32], index: 4, kind: input, shape index: {}]   ;;  %s9591_s5 = inlined_call_operand.vmem [shape: f32[96,128], index: 5, kind: input, shape index: {}]   ;;  %s9592_s7 = inlined_call_operand.vmem [shape: f32[32,256], index: 7, kind: input, shape index: {}]   ;;  %s9593_s9 = inlined_call_operand.vmem [shape: f32[256,8], index: 9, kind: input, shape index: {}]   ;;  %s9594_s1 = inlined_call_operand.vmem [shape: f32[8,8], index: 1, kind: input, shape index: {}]   ;;  %s9595_s10 = inlined_call_operand.vmem [shape: f32[8,256], index: 10, kind: input, shape index: {}]   ;;  %s9596_s11 = inlined_call_operand.vmem [shape: f32[256,32], index: 11, kind: input, shape index: {}]   ;;  %s9597_s6 = inlined_call_operand.vmem [shape: f32[96,128], index: 6, kind: input, shape index: {}]   ;;  %s9598_s2 = inlined_call_operand.vmem [shape: f32[8,8,128], index: 2, kind: input, shape index: {}]   ;;  %s9599_s12 = inlined_call_operand.vmem [shape: f32[8,8,128], index: 12, kind: output, shape index: {0}]   ;;  %s9600_s13 = inlined_call_operand.vmem [shape: s32[8,8,1], index: 13, kind: output, shape index: {1}]  }
   0x1   :  { %v47_v0 = vld [vmem:[%s9587_s3 + $0x18] sm:$0xff]  ;;  %v46_v1 = vld [vmem:[%s9587_s3 + $0x10] sm:$0xff]  ;;  %v45_v2 = vld [vmem:[%s9587_s3 + $0x8] sm:$0xff]  ;;  %s5646_s14 = smov 96  }
   0x2   :  { %64 = vmatpush.msra.mxu0 %v47_v0  ;;  %135 = vmatpush.msra.mxu1 %v47_v0  ;;  %v44_v3 = vld [vmem:[%s9587_s3] sm:$0xff]  ;;  %v5071_v31 = vld [vmem:[%s9588_s0 + $0x8] sm:$0xff]  ;;  %v5074_v57 = vld [vmem:[%s9588_s0 + $0x10] sm:$0xff] }
   0x3   :  { %209 = vmatpush.msra.mxu2 %v47_v0  ;;  %568 = vmatpush.msra.mxu3 %v47_v0  ;;  %v43_v5 = vld [vmem:[%s9588_s0] sm:$0xff] }
   0x4   :  { %65 = vmatpush.msra.mxu0 %v46_v1  ;;  %136 = vmatpush.msra.mxu1 %v46_v1 }
   0x5   :  { %210 = vmatpush.msra.mxu2 %v46_v1  ;;  %569 = vmatpush.msra.mxu3 %v46_v1 }
   0x6   :  { %66 = vmatpush.msra.mxu0 %v45_v2  ;;  %137 = vmatpush.msra.mxu1 %v45_v2 }
   0x7   :  { %211 = vmatpush.msra.mxu2 %v45_v2  ;;  %570 = vmatpush.msra.mxu3 %v45_v2 }
   0x8   :  { %67 = vmatpush.msra.mxu0 %v44_v3  ;;  %138 = vmatpush.msra.mxu1 %v44_v3 }
   0x9   :  { %68 = vmatmul.f32.vlgmr.msra.gmra.mxu0 %v9603_v4  ;;  %212 = vmatpush.msra.mxu2 %v44_v3 }
   0xa   :  { %280 = vmatpush.msrb.mxu0 %v47_v0  ;;  %425 = vmatpush.msrb.mxu1 %v47_v0 }
   0xb   :  { %498 = vmatpush.msrb.mxu2 %v47_v0  ;;  %571 = vmatpush.msra.mxu3 %v44_v3 }
   0xc   :  { %281 = vmatpush.msrb.mxu0 %v46_v1  ;;  %426 = vmatpush.msrb.mxu1 %v46_v1 }
   0xd   :  { %499 = vmatpush.msrb.mxu2 %v46_v1 }
   0xe   :  { %282 = vmatpush.msrb.mxu0 %v45_v2  ;;  %427 = vmatpush.msrb.mxu1 %v45_v2 }
   0xf   :  { %500 = vmatpush.msrb.mxu2 %v45_v2 }
  0x10   :  { %283 = vmatpush.msrb.mxu0 %v44_v3  ;;  %428 = vmatpush.msrb.mxu1 %v44_v3 }
  0x11   :  { %501 = vmatpush.msrb.mxu2 %v44_v3 }
  0x12   :  { %354 = vmatpush.msra.mxu0 %v47_v0 }
  0x14   :  { %355 = vmatpush.msra.mxu0 %v46_v1 }
  0x16   :  { %356 = vmatpush.msra.mxu0 %v45_v2 }
  0x18   :  { %357 = vmatpush.msra.mxu0 %v44_v3 }
  0x86   :  { %v69_v6 = vpop.f32.mrf.mxu0 }
  0x87   :  { %v72_v7 = vadd.f32 %v69_v6, %v43_v5 }
  0x89   :  { %5368 = vtanh.f32 %v72_v7  ;;  %v5070_v9 = vmul.f32 -1.442695, %v72_v7 }
  0x8b   :  { %5370 = vpow2.f32 %v5070_v9 }
  0x8f   :  { %v5369_v8 = vpop.eup %5368 }
  0x90   :  { %95 = vrot.lane.b32.xlu0 %v5369_v8, %s5644_s17 }
  0x91   :  { %v5371_v10 = vpop.eup %5370 }
  0x92   :  { %v76_v11 = vadd.f32 1.0, %v5371_v10 }
  0x94   :  { %5372 = vrcp.f32 %v76_v11  ;;  %v88_v17 = vand.u32 2147483648, %v76_v11  ;;  %vm82_vm1 = vweird.f32 %v76_v11  ;;  %v86_v18 = vand.u32 2147483647, %v76_v11 }
  0x96   :  { %v89_v20 = vor.u32 1.1754944e-38, %v88_v17  ;;  %vm87_vm3 = vcmp.eq.f32.partialorder %v86_v18, 8.507059e+37 }
  0x9a   :  { %v5373_v12 = vpop.eup %5372 }
  0x9b   :  { %v78_v13 = vmul.f32 %v5373_v12, %v76_v11  ;;  %vm83_vm0 = vweird.f32 %v5373_v12 }
  0x9c   :  { %vm84_vm2 = vmor %vm82_vm1, %vm83_vm0 }
  0x9d   :  { %v79_v14 = vsub.f32 1.0, %v78_v13 }
  0x9f   :  { %v80_v15 = vmul.f32 %v5373_v12, %v79_v14 }
  0xa1   :  { %v81_v16 = vadd.f32 %v5373_v12, %v80_v15 }
  0xa3   :  { %v85_v19 = vsel %vm84_vm2, %v5373_v12, %v81_v16 }
  0xa4   :  { %v90_v22 = vsel %vm87_vm3, %v89_v20, %v85_v19  ;;  %v5077_v20 = vld [vmem:[%s9588_s0 + $0x18] sm:$0xff] }
  0xa5   :  { %v93_v24 = vmul.f32 0.0, %v90_v22 }
 0x102   :  { %v96_v21 = vpop.permute.xlu0 %95 }
 0x103   :  { %v98_v23 = vmul.f32 %v96_v21, %v90_v22 }
 0x105   :  { %100 = vrot.lane.b32.xlu0 %v98_v23, %s5644_s17 }
 0x177   :  { %v101_v25 = vpop.permute.xlu0 %100 }
 0x178   :  { %v103_v26 = vadd.f32 %v101_v25, %v93_v24 }
 0x17a   :  { %5374 = vtanh.f32 %v103_v26 }
 0x180   :  { %v5375_v27 = vpop.eup %5374 }
 0x181   :  { %106 = vrot.lane.b32.xlu1 %v5375_v27, %s5644_s17 }
 0x1f3   :  { %v107_v28 = vpop.permute.xlu1 %106 }
 0x1f4   :  { %v109_v29 = vmul.f32 %v107_v28, %v90_v22 }
 0x1f6   :  { %111 = vrot.lane.b32.xlu1 %v109_v29, %s5645_s18 }
 0x268   :  { %v112_v30 = vpop.permute.xlu1 %111 }
 0x269   :  { %114 = vst.msk [vmem:[#allocation2] sm:$0xff] %vm48_vm4, %v112_v30  ;;  %5072 = vmatmul.msk.f32.vlgmr.msra.gmra.mxu1 %vm48_vm4, %v112_v30 }
 0x2e6   :  { %v140_v32 = vpop.f32.mrf.mxu1 }
 0x2e7   :  { %v143_v33 = vadd.f32 %v5071_v31, %v140_v32 }
 0x2e9   :  { %5376 = vtanh.f32 %v143_v33  ;;  %v5073_v35 = vmul.f32 -1.442695, %v143_v33 }
 0x2eb   :  { %5378 = vpow2.f32 %v5073_v35 }
 0x2ef   :  { %v5377_v34 = vpop.eup %5376 }
 0x2f0   :  { %166 = vrot.lane.b32.xlu2 %v5377_v34, %s5644_s17 }
 0x2f1   :  { %v5379_v36 = vpop.eup %5378 }
 0x2f2   :  { %v147_v37 = vadd.f32 1.0, %v5379_v36 }
 0x2f4   :  { %5380 = vrcp.f32 %v147_v37  ;;  %v159_v43 = vand.u32 2147483648, %v147_v37  ;;  %vm153_vm6 = vweird.f32 %v147_v37  ;;  %v157_v44 = vand.u32 2147483647, %v147_v37 }
 0x2f6   :  { %v160_v46 = vor.u32 1.1754944e-38, %v159_v43  ;;  %vm158_vm8 = vcmp.eq.f32.partialorder %v157_v44, 8.507059e+37 }
 0x2fa   :  { %v5381_v38 = vpop.eup %5380 }
 0x2fb   :  { %v149_v39 = vmul.f32 %v5381_v38, %v147_v37  ;;  %vm154_vm5 = vweird.f32 %v5381_v38 }
 0x2fc   :  { %vm155_vm7 = vmor %vm153_vm6, %vm154_vm5 }
 0x2fd   :  { %v150_v40 = vsub.f32 1.0, %v149_v39 }
 0x2ff   :  { %v151_v41 = vmul.f32 %v5381_v38, %v150_v40 }
 0x301   :  { %v152_v42 = vadd.f32 %v5381_v38, %v151_v41 }
 0x303   :  { %v156_v45 = vsel %vm155_vm7, %v5381_v38, %v152_v42 }
 0x304   :  { %v161_v48 = vsel %vm158_vm8, %v160_v46, %v156_v45  ;;  %v5080_v46 = vld [vmem:[%s9588_s0 + $0x20] sm:$0xff] }
 0x305   :  { %v164_v50 = vmul.f32 %v161_v48, %v103_v26 }
 0x34a   :  { %v167_v47 = vpop.permute.xlu2 %166 }
 0x34b   :  { %v169_v49 = vmul.f32 %v167_v47, %v161_v48 }
 0x34d   :  { %171 = vrot.lane.b32.xlu2 %v169_v49, %s5644_s17 }
 0x3a7   :  { %v172_v51 = vpop.permute.xlu2 %171 }
 0x3a8   :  { %v174_v52 = vadd.f32 %v172_v51, %v164_v50 }
 0x3aa   :  { %5382 = vtanh.f32 %v174_v52 }
 0x3b0   :  { %v5383_v53 = vpop.eup %5382 }
 0x3b1   :  { %177 = vrot.lane.b32.xlu0 %v5383_v53, %s5644_s17 }
 0x423   :  { %v178_v54 = vpop.permute.xlu0 %177 }
 0x424   :  { %v5754_v55 = vmul.f32 %v178_v54, %v161_v48 }
 0x426   :  { %193 = vrot.lane.b32.xlu1 %v5754_v55, %s5645_s18 }
 0x498   :  { %v194_v56 = vpop.permute.xlu1 %193 }
 0x499   :  { %5075 = vmatmul.msk.f32.vlgmr.msra.gmra.mxu2 %vm48_vm4, %v194_v56 }
 0x51c   :  { %v214_v58 = vpop.f32.mrf.mxu2 }
 0x51d   :  { %v217_v59 = vadd.f32 %v5074_v57, %v214_v58 }
 0x51f   :  { %5384 = vtanh.f32 %v217_v59  ;;  %v5076_v61 = vmul.f32 -1.442695, %v217_v59 }
 0x521   :  { %5386 = vpow2.f32 %v5076_v61 }
 0x525   :  { %v5385_v60 = vpop.eup %5384 }
 0x526   :  { %240 = vrot.lane.b32.xlu2 %v5385_v60, %s5644_s17 }
 0x527   :  { %v5387_v62 = vpop.eup %5386 }
 0x528   :  { %v221_v63 = vadd.f32 1.0, %v5387_v62 }
 0x52a   :  { %5388 = vrcp.f32 %v221_v63  ;;  %v233_v6 = vand.u32 2147483648, %v221_v63  ;;  %vm227_vm10 = vweird.f32 %v221_v63  ;;  %v231_v7 = vand.u32 2147483647, %v221_v63 }
 0x52c   :  { %v234_v9 = vor.u32 1.1754944e-38, %v233_v6  ;;  %vm232_vm12 = vcmp.eq.f32.partialorder %v231_v7, 8.507059e+37 }
 0x530   :  { %v5389_v0 = vpop.eup %5388 }
 0x531   :  { %v223_v1 = vmul.f32 %v5389_v0, %v221_v63  ;;  %vm228_vm9 = vweird.f32 %v5389_v0 }
 0x532   :  { %vm229_vm11 = vmor %vm227_vm10, %vm228_vm9 }
 0x533   :  { %v224_v2 = vsub.f32 1.0, %v223_v1 }
 0x535   :  { %v225_v3 = vmul.f32 %v5389_v0, %v224_v2 }
 0x537   :  { %v226_v5 = vadd.f32 %v5389_v0, %v225_v3 }
 0x539   :  { %v230_v8 = vsel %vm229_vm11, %v5389_v0, %v226_v5 }
 0x53a   :  { %v235_v11 = vsel %vm232_vm12, %v234_v9, %v230_v8 }
 0x53b   :  { %v238_v13 = vmul.f32 %v235_v11, %v174_v52 }
 0x580   :  { %v241_v10 = vpop.permute.xlu2 %240 }
 0x581   :  { %v243_v12 = vmul.f32 %v241_v10, %v235_v11  ;;  %v5083_v10 = vld [vmem:[%s9588_s0 + $0x28] sm:$0xff] }
 0x583   :  { %245 = vrot.lane.b32.xlu0 %v243_v12, %s5644_s17 }
 0x5f5   :  { %v246_v14 = vpop.permute.xlu0 %245 }
 0x5f6   :  { %v248_v15 = vadd.f32 %v246_v14, %v238_v13 }
 0x5f8   :  { %5390 = vtanh.f32 %v248_v15 }
 0x5fe   :  { %v5391_v16 = vpop.eup %5390 }
 0x5ff   :  { %251 = vrot.lane.b32.xlu1 %v5391_v16, %s5644_s17 }
 0x671   :  { %v252_v17 = vpop.permute.xlu1 %251 }
 0x672   :  { %v5765_v18 = vmul.f32 %v252_v17, %v235_v11 }
 0x674   :  { %264 = vrot.lane.b32.xlu2 %v5765_v18, %s5645_s18 }
 0x6ce   :  { %v265_v19 = vpop.permute.xlu2 %264 }
 0x6cf   :  { %5078 = vmatmul.msk.f32.vlgmr.msrb.gmra.mxu0 %vm48_vm4, %v265_v19 }
 0x74c   :  { %v285_v21 = vpop.f32.mrf.mxu0 }
 0x74d   :  { %v288_v22 = vadd.f32 %v5077_v20, %v285_v21 }
 0x74f   :  { %5392 = vtanh.f32 %v288_v22  ;;  %v5079_v24 = vmul.f32 -1.442695, %v288_v22 }
 0x751   :  { %5394 = vpow2.f32 %v5079_v24 }
 0x755   :  { %v5393_v23 = vpop.eup %5392 }
 0x756   :  { %311 = vrot.lane.b32.xlu0 %v5393_v23, %s5644_s17 }
 0x757   :  { %v5395_v25 = vpop.eup %5394 }
 0x758   :  { %v292_v26 = vadd.f32 1.0, %v5395_v25 }
 0x75a   :  { %5396 = vrcp.f32 %v292_v26  ;;  %v304_v32 = vand.u32 2147483648, %v292_v26  ;;  %vm298_vm14 = vweird.f32 %v292_v26  ;;  %v302_v33 = vand.u32 2147483647, %v292_v26 }
 0x75c   :  { %v305_v35 = vor.u32 1.1754944e-38, %v304_v32  ;;  %vm303_vm0 = vcmp.eq.f32.partialorder %v302_v33, 8.507059e+37 }
 0x760   :  { %v5397_v27 = vpop.eup %5396 }
 0x761   :  { %v294_v28 = vmul.f32 %v5397_v27, %v292_v26  ;;  %vm299_vm13 = vweird.f32 %v5397_v27 }
 0x762   :  { %vm300_vm15 = vmor %vm298_vm14, %vm299_vm13  ;;  %vm185_vm14 = vcmask 523520  }
 0x763   :  { %v295_v29 = vsub.f32 1.0, %v294_v28 }
 0x765   :  { %v296_v30 = vmul.f32 %v5397_v27, %v295_v29 }
 0x767   :  { %v297_v31 = vadd.f32 %v5397_v27, %v296_v30 }
 0x769   :  { %v301_v34 = vsel %vm300_vm15, %v5397_v27, %v297_v31  ;;  %vm255_vm15 = vcmask 785920  }
 0x76a   :  { %v306_v37 = vsel %vm303_vm0, %v305_v35, %v301_v34 }
 0x76b   :  { %v309_v39 = vmul.f32 %v306_v37, %v248_v15 }
 0x7c8   :  { %v312_v36 = vpop.permute.xlu0 %311 }
 0x7c9   :  { %v314_v38 = vmul.f32 %v312_v36, %v306_v37 }
 0x7cb   :  { %316 = vrot.lane.b32.xlu1 %v314_v38, %s5644_s17 }
 0x83d   :  { %v317_v40 = vpop.permute.xlu1 %316 }
 0x83e   :  { %v319_v41 = vadd.f32 %v317_v40, %v309_v39 }
 0x840   :  { %5398 = vtanh.f32 %v319_v41 }
 0x846   :  { %v5399_v42 = vpop.eup %5398 }
 0x847   :  { %322 = vrot.lane.b32.xlu2 %v5399_v42, %s5644_s17 }
 0x8a1   :  { %v323_v43 = vpop.permute.xlu2 %322 }
 0x8a2   :  { %v5776_v44 = vmul.f32 %v323_v43, %v306_v37  ;;  %v5086_v37 = vld [vmem:[%s9588_s0 + $0x30] sm:$0xff] }
 0x8a4   :  { %338 = vrot.lane.b32.xlu0 %v5776_v44, %s5645_s18 }
 0x916   :  { %v339_v45 = vpop.permute.xlu0 %338 }
 0x917   :  { %5081 = vmatmul.msk.f32.vlgmr.msra.gmra.mxu0 %vm48_vm4, %v339_v45 }
 0x994   :  { %v359_v47 = vpop.f32.mrf.mxu0 }
 0x995   :  { %v362_v48 = vadd.f32 %v5080_v46, %v359_v47 }
 0x997   :  { %5400 = vtanh.f32 %v362_v48  ;;  %v5082_v50 = vmul.f32 -1.442695, %v362_v48 }
 0x999   :  { %5402 = vpow2.f32 %v5082_v50 }
 0x99d   :  { %v5401_v49 = vpop.eup %5400 }
 0x99e   :  { %385 = vrot.lane.b32.xlu1 %v5401_v49, %s5644_s17 }
 0x99f   :  { %v5403_v51 = vpop.eup %5402 }
 0x9a0   :  { %v366_v52 = vadd.f32 1.0, %v5403_v51 }
 0x9a2   :  { %5404 = vrcp.f32 %v366_v52  ;;  %v378_v59 = vand.u32 2147483648, %v366_v52  ;;  %vm372_vm2 = vweird.f32 %v366_v52  ;;  %v376_v60 = vand.u32 2147483647, %v366_v52 }
 0x9a4   :  { %v379_v62 = vor.u32 1.1754944e-38, %v378_v59  ;;  %vm377_vm5 = vcmp.eq.f32.partialorder %v376_v60, 8.507059e+37 }
 0x9a8   :  { %v5405_v53 = vpop.eup %5404 }
 0x9a9   :  { %v368_v54 = vmul.f32 %v5405_v53, %v366_v52  ;;  %vm373_vm1 = vweird.f32 %v5405_v53 }
 0x9aa   :  { %vm374_vm3 = vmor %vm372_vm2, %vm373_vm1 }
 0x9ab   :  { %v369_v56 = vsub.f32 1.0, %v368_v54 }
 0x9ad   :  { %v370_v57 = vmul.f32 %v5405_v53, %v369_v56 }
 0x9af   :  { %v371_v58 = vadd.f32 %v5405_v53, %v370_v57 }
 0x9b1   :  { %v375_v61 = vsel %vm374_vm3, %v5405_v53, %v371_v58 }
 0x9b2   :  { %v380_v0 = vsel %vm377_vm5, %v379_v62, %v375_v61  ;;  %vm330_vm5 = vcmask 1048320  }
 0x9b3   :  { %v383_v2 = vmul.f32 %v380_v0, %v319_v41 }
 0xa10   :  { %v386_v63 = vpop.permute.xlu1 %385 }
 0xa11   :  { %v388_v1 = vmul.f32 %v386_v63, %v380_v0 }
 0xa13   :  { %390 = vrot.lane.b32.xlu2 %v388_v1, %s5644_s17 }
 0xa6d   :  { %v391_v3 = vpop.permute.xlu2 %390 }
 0xa6e   :  { %v393_v5 = vadd.f32 %v391_v3, %v383_v2  ;;  %v651_v2 = vld [vmem:[%s9589_s8 + $0xf0] sm:$0xff]  ;;  %v652_v3 = vld [vmem:[%s9589_s8 + $0xf8] sm:$0xff] }
 0xa6f   :  { %685 = vmatpush.msrb.mxu0 %v651_v2  ;;  %725 = vmatpush.msra.mxu2 %v652_v3  ;;  %v792_v2 = vld [vmem:[%s9591_s5 + $0x40] sm:$0xff]  ;;  %v791_v3 = vld [vmem:[%s9591_s5 + $0x38] sm:$0xff] }
 0xa70   :  { %5406 = vtanh.f32 %v393_v5 }
 0xa76   :  { %v5407_v6 = vpop.eup %5406 }
 0xa77   :  { %396 = vrot.lane.b32.xlu0 %v5407_v6, %s5644_s17  ;;  %v648_v6 = vld [vmem:[%s9589_s8 + $0xd8] sm:$0xff] }
 0xae9   :  { %v397_v7 = vpop.permute.xlu0 %396 }
 0xaea   :  { %v399_v8 = vmul.f32 %v397_v7, %v380_v0  ;;  %v645_v7 = vld [vmem:[%s9589_s8 + $0xc0] sm:$0xff] }
 0xaec   :  { %401 = vrot.lane.b32.xlu1 %v399_v8, %s5645_s18  ;;  %v646_v8 = vld [vmem:[%s9589_s8 + $0xc8] sm:$0xff] }
 0xb5e   :  { %v402_v9 = vpop.permute.xlu1 %401 }
 0xb5f   :  { %404 = vst.msk [vmem:[#allocation2 + $0x8] sm:$0xff] %vm48_vm4, %v402_v9  ;;  %5084 = vmatmul.msk.f32.vlgmr.msrb.gmra.mxu1 %vm48_vm4, %v402_v9  ;;  %v643_v9 = vld [vmem:[%s9589_s8 + $0xb0] sm:$0xff] }
 0xbdc   :  { %v430_v11 = vpop.f32.mrf.mxu1 }
 0xbdd   :  { %v433_v12 = vadd.f32 %v5083_v10, %v430_v11  ;;  %v644_v10 = vld [vmem:[%s9589_s8 + $0xb8] sm:$0xff]  ;;  %v641_v11 = vld [vmem:[%s9589_s8 + $0xa0] sm:$0xff] }
 0xbdf   :  { %5408 = vtanh.f32 %v433_v12  ;;  %v5085_v14 = vmul.f32 -1.442695, %v433_v12  ;;  %v642_v12 = vld [vmem:[%s9589_s8 + $0xa8] sm:$0xff] }
 0xbe1   :  { %5410 = vpow2.f32 %v5085_v14  ;;  %v640_v14 = vld [vmem:[%s9589_s8 + $0x98] sm:$0xff] }
 0xbe5   :  { %v5409_v13 = vpop.eup %5408 }
 0xbe6   :  { %456 = vrot.lane.b32.xlu2 %v5409_v13, %s5644_s17  ;;  %v639_v13 = vld [vmem:[%s9589_s8 + $0x90] sm:$0xff] }
 0xbe7   :  { %v5411_v15 = vpop.eup %5410 }
 0xbe8   :  { %v437_v16 = vadd.f32 1.0, %v5411_v15  ;;  %v5089_v15 = vld [vmem:[%s9588_s0 + $0x38] sm:$0xff] }
 0xbea   :  { %5412 = vrcp.f32 %v437_v16  ;;  %v449_v23 = vand.u32 2147483648, %v437_v16  ;;  %vm443_vm7 = vweird.f32 %v437_v16  ;;  %v447_v24 = vand.u32 2147483647, %v437_v16 }
 0xbec   :  { %v450_v26 = vor.u32 1.1754944e-38, %v449_v23  ;;  %vm448_vm9 = vcmp.eq.f32.partialorder %v447_v24, 8.507059e+37 }
 0xbf0   :  { %v5413_v17 = vpop.eup %5412 }
 0xbf1   :  { %v439_v19 = vmul.f32 %v5413_v17, %v437_v16  ;;  %vm444_vm6 = vweird.f32 %v5413_v17  ;;  %v637_v16 = vld [vmem:[%s9589_s8 + $0x80] sm:$0xff] }
 0xbf2   :  { %vm445_vm8 = vmor %vm443_vm7, %vm444_vm6  ;;  %vm796_vm7 = vcmask 785408  }
 0xbf3   :  { %v440_v20 = vsub.f32 1.0, %v439_v19 }
 0xbf5   :  { %v441_v21 = vmul.f32 %v5413_v17, %v440_v20 }
 0xbf7   :  { %v442_v22 = vadd.f32 %v5413_v17, %v441_v21 }
 0xbf9   :  { %v446_v25 = vsel %vm445_vm8, %v5413_v17, %v442_v22  ;;  %v638_v17 = vld [vmem:[%s9589_s8 + $0x88] sm:$0xff] }
 0xbfa   :  { %v451_v28 = vsel %vm448_vm9, %v450_v26, %v446_v25  ;;  %v635_v25 = vld [vmem:[%s9589_s8 + $0x70] sm:$0xff]  ;;  %v636_v26 = vld [vmem:[%s9589_s8 + $0x78] sm:$0xff] }
 0xbfb   :  { %v454_v30 = vmul.f32 %v451_v28, %v393_v5  ;;  %v650_v5 = vld [vmem:[%s9589_s8 + $0xe8] sm:$0xff] }
 0xbfc   :  { %726 = vmatpush.msra.mxu2 %v650_v5  ;;  %v789_v5 = vld [vmem:[%s9591_s5 + $0x28] sm:$0xff] }
 0xbfe   :  { %727 = vmatpush.msra.mxu2 %v648_v6 }
 0xc00   :  { %728 = vmatpush.msra.mxu2 %v646_v8 }
 0xc02   :  { %729 = vmatpush.msra.mxu2 %v644_v10  ;;  %v787_v10 = vld [vmem:[%s9591_s5 + $0x18] sm:$0xff] }
 0xc04   :  { %730 = vmatpush.msra.mxu2 %v642_v12  ;;  %v785_v12 = vld [vmem:[%s9591_s5 + $0x8] sm:$0xff] }
 0xc06   :  { %731 = vmatpush.msra.mxu2 %v640_v14 }
 0xc08   :  { %732 = vmatpush.msra.mxu2 %v638_v17 }
 0xc0a   :  { %733 = vmatpush.msra.mxu2 %v636_v26  ;;  %v684_v26 = vld [vmem:[%s9589_s8 + $0x1f8] sm:$0xff] }
 0xc0b   :  { %745 = vmatpush.msrb.mxu3 %v684_v26 }
 0xc40   :  { %v457_v27 = vpop.permute.xlu2 %456 }
 0xc41   :  { %v459_v29 = vmul.f32 %v457_v27, %v451_v28  ;;  %v633_v27 = vld [vmem:[%s9589_s8 + $0x60] sm:$0xff] }
 0xc43   :  { %461 = vrot.lane.b32.xlu0 %v459_v29, %s5644_s17  ;;  %v632_v29 = vld [vmem:[%s9589_s8 + $0x58] sm:$0xff] }
 0xcb5   :  { %v462_v31 = vpop.permute.xlu0 %461 }
 0xcb6   :  { %v464_v32 = vadd.f32 %v462_v31, %v454_v30  ;;  %v629_v30 = vld [vmem:[%s9589_s8 + $0x40] sm:$0xff]  ;;  %v630_v31 = vld [vmem:[%s9589_s8 + $0x48] sm:$0xff] }
 0xcb8   :  { %5414 = vtanh.f32 %v464_v32 }
 0xcbe   :  { %v5415_v33 = vpop.eup %5414 }
 0xcbf   :  { %467 = vrot.lane.b32.xlu1 %v5415_v33, %s5644_s17  ;;  %v628_v33 = vld [vmem:[%s9589_s8 + $0x38] sm:$0xff] }
 0xd31   :  { %v468_v34 = vpop.permute.xlu1 %467 }
 0xd32   :  { %v5796_v35 = vmul.f32 %v468_v34, %v451_v28  ;;  %v631_v28 = vld [vmem:[%s9589_s8 + $0x50] sm:$0xff]  ;;  %v625_v34 = vld [vmem:[%s9589_s8 + $0x20] sm:$0xff] }
 0xd34   :  { %482 = vrot.lane.b32.xlu2 %v5796_v35, %s5645_s18 }
 0xd8e   :  { %v483_v36 = vpop.permute.xlu2 %482 }
 0xd8f   :  { %5087 = vmatmul.msk.f32.vlgmr.msrb.gmra.mxu2 %vm48_vm4, %v483_v36 }
 0xe12   :  { %v503_v38 = vpop.f32.mrf.mxu2 }
 0xe13   :  { %v506_v39 = vadd.f32 %v5086_v37, %v503_v38  ;;  %v626_v37 = vld [vmem:[%s9589_s8 + $0x28] sm:$0xff]  ;;  %v623_v38 = vld [vmem:[%s9589_s8 + $0x10] sm:$0xff] }
 0xe15   :  { %5416 = vtanh.f32 %v506_v39  ;;  %v5088_v41 = vmul.f32 -1.442695, %v506_v39  ;;  %v624_v39 = vld [vmem:[%s9589_s8 + $0x18] sm:$0xff] }
 0xe17   :  { %5418 = vpow2.f32 %v5088_v41  ;;  %v621_v41 = vld [vmem:[%s9589_s8] sm:$0xff] }
 0xe1b   :  { %v5417_v40 = vpop.eup %5416 }
 0xe1c   :  { %529 = vrot.lane.b32.xlu0 %v5417_v40, %s5644_s17 }
 0xe1d   :  { %v5419_v42 = vpop.eup %5418 }
 0xe1e   :  { %v510_v43 = vadd.f32 1.0, %v5419_v42  ;;  %v622_v42 = vld [vmem:[%s9589_s8 + $0x8] sm:$0xff] }
 0xe20   :  { %5420 = vrcp.f32 %v510_v43  ;;  %v522_v50 = vand.u32 2147483648, %v510_v43  ;;  %vm516_vm11 = vweird.f32 %v510_v43  ;;  %v520_v51 = vand.u32 2147483647, %v510_v43 }
 0xe22   :  { %v523_v53 = vor.u32 1.1754944e-38, %v522_v50  ;;  %vm521_vm13 = vcmp.eq.f32.partialorder %v520_v51, 8.507059e+37 }
 0xe26   :  { %v5421_v45 = vpop.eup %5420 }
 0xe27   :  { %v512_v46 = vmul.f32 %v5421_v45, %v510_v43  ;;  %vm517_vm10 = vweird.f32 %v5421_v45 }
 0xe28   :  { %vm518_vm12 = vmor %vm516_vm11, %vm517_vm10 }
 0xe29   :  { %v513_v47 = vsub.f32 1.0, %v512_v46 }
 0xe2b   :  { %v514_v48 = vmul.f32 %v5421_v45, %v513_v47 }
 0xe2d   :  { %v515_v49 = vadd.f32 %v5421_v45, %v514_v48 }
 0xe2f   :  { %v519_v52 = vsel %vm518_vm12, %v5421_v45, %v515_v49  ;;  %v767_v45 = vld [vmem:[%s9590_s4] sm:$0xff]  ;;  %vm992_vm12 = vcmask 64512  }
 0xe30   :  { %v524_v56 = vsel %vm521_vm13, %v523_v53, %v519_v52 }
 0xe31   :  { %v527_v58 = vmul.f32 %v524_v56, %v464_v32  ;;  %v627_v32 = vld [vmem:[%s9589_s8 + $0x30] sm:$0xff] }
 0xe8e   :  { %v530_v54 = vpop.permute.xlu0 %529 }
 0xe8f   :  { %v532_v57 = vmul.f32 %v530_v54, %v524_v56 }
 0xe91   :  { %534 = vrot.lane.b32.xlu1 %v532_v57, %s5644_s17 }
 0xf03   :  { %v535_v59 = vpop.permute.xlu1 %534 }
 0xf04   :  { %v5806_v60 = vadd.f32 %v535_v59, %v527_v58 }
 0xf06   :  { %5422 = vtanh.f32 %v5806_v60 }
 0xf0c   :  { %v5423_v61 = vpop.eup %5422 }
 0xf0d   :  { %540 = vrot.lane.b32.xlu2 %v5423_v61, %s5644_s17 }
 0xf67   :  { %v541_v62 = vpop.permute.xlu2 %540 }
 0xf68   :  { %v5810_v63 = vmul.f32 %v541_v62, %v524_v56 }
 0xf6a   :  { %552 = vrot.lane.b32.xlu0 %v5810_v63, %s5645_s18 }
 0xf72   :  { %182 = vrot.lane.b32.xlu0 %v5754_v55, %s5646_s14  ;;  %v649_v55 = vld [vmem:[%s9589_s8 + $0xe0] sm:$0xff] }
 0xf73   :  { %686 = vmatpush.msrb.mxu0 %v649_v55  ;;  %v790_v55 = vld [vmem:[%s9591_s5 + $0x30] sm:$0xff] }
 0xf7a   :  { %778 = vrot.lane.b32.xlu0 %v767_v45, %s5644_s17 }
 0xfdc   :  { %v553_v0 = vpop.permute.xlu0 %552 }
 0xfdd   :  { %5090 = vmatmul.msk.f32.vlgmr.msra.gmra.mxu3 %vm48_vm4, %v553_v0  ;;  %v5940_v0 = vld [vmem:[%s9591_s5 + $0x58] sm:$0xff] }
 0xfe4   :  { %v183_v1 = vpop.permute.xlu0 %182 }
 0xfe5   :  { %186 = vst.msk [vmem:[#allocation2] sm:$0xff] %vm185_vm14, %v183_v1  ;;  %v5945_v1 = vld [vmem:[%s9591_s5 + $0x50] sm:$0xff] }
 0xfe6   :  { %256 = vst.msk [vmem:[#allocation2] sm:$0xff] %vm255_vm15, %v5765_v18  ;;  %v647_v18 = vld [vmem:[%s9589_s8 + $0xd0] sm:$0xff] }
 0xfe7   :  { %687 = vmatpush.msrb.mxu0 %v647_v18  ;;  %v768_v18 = vlaneseq }
 0xfe9   :  { %688 = vmatpush.msrb.mxu0 %v645_v7  ;;  %v5964_v6 = vand.u32 127, %v768_v18  ;;  %v655_v18 = vld [vmem:[%s9589_s8 + $0x110] sm:$0xff] }
 0xfeb   :  { %689 = vmatpush.msrb.mxu0 %v643_v9  ;;  %9765 = vst [vmem:[#allocation5_spill] sm:$0xff] %v5964_v6  ;;  %vm773_vm6 = vcmp.eq.s32.totalorder %v5964_v6, 2  ;;  %v788_v9 = vld [vmem:[%s9591_s5 + $0x20] sm:$0xff] }
 0xfec   :  { %v5092_v7 = vsel %vm773_vm6, 1.0, %v9603_v4  ;;  %v779_v8 = vpop.permute.xlu0 %778 }
 0xfed   :  { %690 = vmatpush.msrb.mxu0 %v641_v11  ;;  %776 = vst.msk [vmem:[#allocation4] sm:$0xff] %vm48_vm4, %v5092_v7  ;;  %v786_v11 = vld [vmem:[%s9591_s5 + $0x10] sm:$0xff] }
 0xfee   :  { %781 = vst.msk [vmem:[#allocation4] sm:$0xff] %vm185_vm14, %v779_v8  ;;  %v653_v8 = vld [vmem:[%s9589_s8 + $0x100] sm:$0xff] }
 0xfef   :  { %691 = vmatpush.msrb.mxu0 %v639_v13  ;;  %v784_v13 = vld [vmem:[%s9591_s5] sm:$0xff] }
 0xff1   :  { %692 = vmatpush.msrb.mxu0 %v637_v16 }
 0xff3   :  { %693 = vmatpush.msrb.mxu0 %v635_v25  ;;  %v683_v25 = vld [vmem:[%s9589_s8 + $0x1f0] sm:$0xff] }
 0xff4   :  { %705 = vmatpush.msra.mxu1 %v683_v25 }
 0xff5   :  { %694 = vmatpush.msrb.mxu0 %v633_v27  ;;  %v681_v27 = vld [vmem:[%s9589_s8 + $0x1e0] sm:$0xff] }
 0xff6   :  { %706 = vmatpush.msra.mxu1 %v681_v27  ;;  %v6168_v27 = vld [vmem:[%s9593_s9 + $0x78] sm:$0xff] }
 0xff7   :  { %695 = vmatpush.msrb.mxu0 %v631_v28  ;;  %v679_v28 = vld [vmem:[%s9589_s8 + $0x1d0] sm:$0xff] }
 0xff8   :  { %707 = vmatpush.msra.mxu1 %v679_v28  ;;  %v6184_v28 = vld [vmem:[%s9593_s9 + $0x68] sm:$0xff] }
 0xff9   :  { %696 = vmatpush.msrb.mxu0 %v629_v30  ;;  %v677_v30 = vld [vmem:[%s9589_s8 + $0x1c0] sm:$0xff] }
 0xffa   :  { %708 = vmatpush.msra.mxu1 %v677_v30  ;;  %v6196_v30 = vld [vmem:[%s9593_s9 + $0xe8] sm:$0xff] }
 0xffb   :  { %697 = vmatpush.msrb.mxu0 %v627_v32 }
 0xffd   :  { %698 = vmatpush.msrb.mxu0 %v625_v34  ;;  %v676_v34 = vld [vmem:[%s9589_s8 + $0x1b8] sm:$0xff] }
 0xfff   :  { %699 = vmatpush.msrb.mxu0 %v623_v38 }
0x1001   :  { %700 = vmatpush.msrb.mxu0 %v621_v41  ;;  %v669_v41 = vld [vmem:[%s9589_s8 + $0x180] sm:$0xff] }
0x1003   :  { %804 = vmatpush.msra.mxu0 %v5940_v0 }
0x1005   :  { %805 = vmatpush.msra.mxu0 %v5945_v1 }
0x1060   :  { %v573_v19 = vpop.f32.mrf.mxu3 }
0x1061   :  { %v576_v20 = vadd.f32 %v5089_v15, %v573_v19 }
0x1063   :  { %5424 = vtanh.f32 %v576_v20  ;;  %v5091_v22 = vmul.f32 -1.442695, %v576_v20 }
0x1065   :  { %5426 = vpow2.f32 %v5091_v22 }
0x1069   :  { %v5425_v21 = vpop.eup %5424 }
0x106a   :  { %599 = vrot.lane.b32.xlu1 %v5425_v21, %s5644_s17 }
0x106b   :  { %v5427_v23 = vpop.eup %5426 }
0x106c   :  { %v580_v24 = vadd.f32 1.0, %v5427_v23 }
0x106e   :  { %5428 = vrcp.f32 %v580_v24  ;;  %v592_v48 = vand.u32 2147483648, %v580_v24  ;;  %vm586_vm1 = vweird.f32 %v580_v24  ;;  %v590_v49 = vand.u32 2147483647, %v580_v24 }
0x1070   :  { %v593_v51 = vor.u32 1.1754944e-38, %v592_v48  ;;  %vm591_vm3 = vcmp.eq.f32.partialorder %v590_v49, 8.507059e+37 }
0x1072   :  { %327 = vrot.lane.b32.xlu1 %v5776_v44, %s5644_s17  ;;  %v634_v44 = vld [vmem:[%s9589_s8 + $0x68] sm:$0xff] }
0x1073   :  { %734 = vmatpush.msra.mxu2 %v634_v44 }
0x1074   :  { %v5429_v36 = vpop.eup %5428 }
0x1075   :  { %735 = vmatpush.msra.mxu2 %v632_v29  ;;  %v582_v40 = vmul.f32 %v5429_v36, %v580_v24  ;;  %vm587_vm0 = vweird.f32 %v5429_v36  ;;  %v680_v29 = vld [vmem:[%s9589_s8 + $0x1d8] sm:$0xff] }
0x1076   :  { %vm588_vm2 = vmor %vm586_vm1, %vm587_vm0 }
0x1077   :  { %736 = vmatpush.msra.mxu2 %v630_v31  ;;  %v583_v43 = vsub.f32 1.0, %v582_v40  ;;  %v678_v31 = vld [vmem:[%s9589_s8 + $0x1c8] sm:$0xff]  ;;  %v672_v40 = vld [vmem:[%s9589_s8 + $0x198] sm:$0xff] }
0x1079   :  { %737 = vmatpush.msra.mxu2 %v628_v33  ;;  %v584_v46 = vmul.f32 %v5429_v36, %v583_v43  ;;  %v675_v33 = vld [vmem:[%s9589_s8 + $0x1b0] sm:$0xff] }
0x107a   :  { %709 = vmatpush.msra.mxu1 %v675_v33  ;;  %v6213_v33 = vld [vmem:[%s9593_s9 + $0x58] sm:$0xff] }
0x107b   :  { %738 = vmatpush.msra.mxu2 %v626_v37  ;;  %v585_v47 = vadd.f32 %v5429_v36, %v584_v46  ;;  %v674_v37 = vld [vmem:[%s9589_s8 + $0x1a8] sm:$0xff] }
0x107d   :  { %739 = vmatpush.msra.mxu2 %v624_v39  ;;  %v589_v50 = vsel %vm588_vm2, %v5429_v36, %v585_v47  ;;  %v673_v36 = vld [vmem:[%s9589_s8 + $0x1a0] sm:$0xff]  ;;  %v671_v39 = vld [vmem:[%s9589_s8 + $0x190] sm:$0xff] }
0x107e   :  { %v594_v53 = vsel %vm591_vm3, %v593_v51, %v589_v50  ;;  %710 = vmatpush.msra.mxu1 %v673_v36  ;;  %v6225_v36 = vld [vmem:[%s9593_s9 + $0x50] sm:$0xff]  ;;  %vm771_vm3 = vcmp.eq.s32.totalorder %v5964_v6, 127 }
0x107f   :  { %740 = vmatpush.msra.mxu2 %v622_v42  ;;  %v597_v58 = vmul.f32 %v594_v53, %v5806_v60  ;;  %v793_v60 = vld [vmem:[%s9591_s5 + $0x48] sm:$0xff] }
0x1080   :  { %806 = vmatpush.msra.mxu0 %v793_v60  ;;  %v670_v42 = vld [vmem:[%s9589_s8 + $0x188] sm:$0xff]  ;;  %711 = vmatpush.msra.mxu1 %v671_v39 }
0x1081   :  { %v662_v60 = vld [vmem:[%s9589_s8 + $0x148] sm:$0xff] }
0x1082   :  { %807 = vmatpush.msra.mxu0 %v792_v2  ;;  %712 = vmatpush.msra.mxu1 %v669_v41  ;;  %v659_v2 = vld [vmem:[%s9589_s8 + $0x130] sm:$0xff]  ;;  %v6244_v39 = vld [vmem:[%s9593_s9 + $0xc8] sm:$0xff]  ;;  %v6256_v41 = vld [vmem:[%s9593_s9 + $0xc0] sm:$0xff] }
0x1084   :  { %808 = vmatpush.msra.mxu0 %v791_v3  ;;  %v660_v3 = vld [vmem:[%s9589_s8 + $0x138] sm:$0xff] }
0x1086   :  { %809 = vmatpush.msra.mxu0 %v790_v55  ;;  %v657_v55 = vld [vmem:[%s9589_s8 + $0x120] sm:$0xff] }
0x1088   :  { %810 = vmatpush.msra.mxu0 %v789_v5  ;;  %v658_v5 = vld [vmem:[%s9589_s8 + $0x128] sm:$0xff] }
0x108a   :  { %811 = vmatpush.msra.mxu0 %v788_v9  ;;  %v654_v9 = vld [vmem:[%s9589_s8 + $0x108] sm:$0xff] }
0x108c   :  { %812 = vmatpush.msra.mxu0 %v787_v10 }
0x108e   :  { %813 = vmatpush.msra.mxu0 %v786_v11 }
0x1090   :  { %814 = vmatpush.msra.mxu0 %v785_v12 }
0x1092   :  { %815 = vmatpush.msra.mxu0 %v784_v13 }
0x10dc   :  { %v600_v52 = vpop.permute.xlu1 %599 }
0x10dd   :  { %v602_v54 = vmul.f32 %v600_v52, %v594_v53 }
0x10df   :  { %604 = vrot.lane.b32.xlu2 %v602_v54, %s5644_s17  ;;  %v668_v54 = vld [vmem:[%s9589_s8 + $0x178] sm:$0xff] }
0x10e4   :  { %v328_v56 = vpop.permute.xlu1 %327 }
0x10e5   :  { %331 = vst.msk [vmem:[#allocation2] sm:$0xff] %vm330_vm5, %v328_v56  ;;  %v665_v56 = vld [vmem:[%s9589_s8 + $0x160] sm:$0xff] }
0x10ec   :  { %v5928_v57 = vld [vmem:[#allocation2] sm:$0xff] }
0x10ed   :  { %701 = vmatmul.f32.vlgmr.msrb.gmra.mxu0 %v5928_v57  ;;  %741 = vmatmul.f32.vlgmr.msra.gmra.mxu2 %v5928_v57 }
0x1139   :  { %v605_v59 = vpop.permute.xlu2 %604 }
0x113a   :  { %v5933_v61 = vadd.f32 %v605_v59, %v597_v58  ;;  %v663_v58 = vld [vmem:[%s9589_s8 + $0x150] sm:$0xff]  ;;  %v664_v59 = vld [vmem:[%s9589_s8 + $0x158] sm:$0xff] }
0x113c   :  { %5430 = vtanh.f32 %v5933_v61 }
0x1142   :  { %v5431_v62 = vpop.eup %5430 }
0x1143   :  { %610 = vrot.lane.b32.xlu2 %v5431_v62, %s5644_s17  ;;  %v661_v62 = vld [vmem:[%s9589_s8 + $0x140] sm:$0xff] }
0x116a   :  { %v5991_v17 = vpop.f32.mrf.mxu0 }
0x119d   :  { %v611_v14 = vpop.permute.xlu2 %610 }
0x119e   :  { %v5985_v15 = vmul.f32 %v611_v14, %v594_v53  ;;  %v667_v53 = vld [vmem:[%s9589_s8 + $0x170] sm:$0xff] }
0x119f   :  { %713 = vmatpush.msra.mxu1 %v667_v53  ;;  %v6320_v53 = vld [vmem:[%s9593_s9 + $0x8] sm:$0xff] }
0x11a0   :  { %782 = vst.msk [vmem:[#allocation4] sm:$0xff] %vm255_vm15, %v5985_v15 }
0x11a1   :  { %714 = vmatpush.msra.mxu1 %v665_v56  ;;  %v6332_v56 = vld [vmem:[%s9593_s9] sm:$0xff] }
0x11a3   :  { %715 = vmatpush.msra.mxu1 %v663_v58  ;;  %v6344_v58 = vld [vmem:[%s9593_s9 + $0x90] sm:$0xff] }
0x11a5   :  { %716 = vmatpush.msra.mxu1 %v661_v62  ;;  %v6355_v62 = vld [vmem:[%s9593_s9 + $0x80] sm:$0xff] }
0x11a7   :  { %v783_v16 = vld [vmem:[#allocation4] sm:$0xff]  ;;  %717 = vmatpush.msra.mxu1 %v659_v2  ;;  %v742_v2 = vpop.f32.mrf.mxu2 }
0x11a8   :  { %5093 = vmatmul.msk.f32.vlgmr.msra.gmra.mxu0 %vm796_vm7, %v783_v16  ;;  %1133 = vst.msk [vmem:[#allocation4] sm:$0xff] %vm48_vm4, %v5092_v7  ;;  %v656_v7 = vld [vmem:[%s9589_s8 + $0x118] sm:$0xff] }
0x11a9   :  { %718 = vmatpush.msra.mxu1 %v657_v55  ;;  %v6120_v16 = vld [vmem:[%s9592_s7 + $0x38] sm:$0xff] }
0x11aa   :  { %902 = vmatpush.msrb.mxu2 %v6120_v16 }
0x11ab   :  { %719 = vmatpush.msra.mxu1 %v655_v18 }
0x11ad   :  { %720 = vmatpush.msra.mxu1 %v653_v8 }
0x1225   :  { %v817_v19 = vpop.f32.mrf.mxu0 }
0x1226   :  { %5432 = vtanh.f32 %v817_v19  ;;  %v5094_v21 = vmul.f32 -1.442695, %v817_v19  ;;  %v6125_v19 = vld [vmem:[%s9592_s7 + $0x20] sm:$0xff] }
0x1228   :  { %5434 = vpow2.f32 %v5094_v21  ;;  %v6137_v21 = vld [vmem:[%s9592_s7 + $0x10] sm:$0xff] }
0x122c   :  { %v5433_v20 = vpop.eup %5432 }
0x122d   :  { %842 = vrot.lane.b32.xlu1 %v5433_v20, %s5644_s17  ;;  %v6132_v20 = vld [vmem:[%s9592_s7 + $0x28] sm:$0xff] }
0x122e   :  { %v5435_v22 = vpop.eup %5434  ;;  %903 = vmatpush.msrb.mxu2 %v6132_v20 }
0x122f   :  { %v823_v23 = vadd.f32 1.0, %v5435_v22  ;;  %v6142_v22 = vld [vmem:[%s9592_s7 + $0x18] sm:$0xff] }
0x1230   :  { %904 = vmatpush.msrb.mxu2 %v6142_v22 }
0x1231   :  { %5436 = vrcp.f32 %v823_v23  ;;  %v835_v45 = vand.u32 2147483648, %v823_v23  ;;  %vm829_vm9 = vweird.f32 %v823_v23  ;;  %v833_v46 = vand.u32 2147483647, %v823_v23 }
0x1233   :  { %v836_v48 = vor.u32 1.1754944e-38, %v835_v45  ;;  %vm834_vm11 = vcmp.eq.f32.partialorder %v833_v46, 8.507059e+37  ;;  %v6275_v45 = vld [vmem:[%s9593_s9 + $0x28] sm:$0xff] }
0x1235   :  { %472 = vrot.lane.b32.xlu1 %v5796_v35, %s5646_s14  ;;  %v682_v35 = vld [vmem:[%s9589_s8 + $0x1e8] sm:$0xff] }
0x1236   :  { %746 = vmatpush.msrb.mxu3 %v682_v35  ;;  %v6173_v35 = vld [vmem:[%s9593_s9 + $0x70] sm:$0xff] }
0x1237   :  { %v5437_v24 = vpop.eup %5436 }
0x1238   :  { %v825_v44 = vmul.f32 %v5437_v24, %v823_v23  ;;  %747 = vmatpush.msrb.mxu3 %v680_v29  ;;  %vm830_vm8 = vweird.f32 %v5437_v24  ;;  %v6149_v23 = vld [vmem:[%s9592_s7] sm:$0xff]  ;;  %v6190_v29 = vld [vmem:[%s9593_s9 + $0xf0] sm:$0xff] }
0x1239   :  { %vm831_vm10 = vmor %vm829_vm9, %vm830_vm8 }
0x123a   :  { %v826_v32 = vsub.f32 1.0, %v825_v44  ;;  %748 = vmatpush.msrb.mxu3 %v678_v31  ;;  %v6179_v44 = vld [vmem:[%s9593_s9 + $0xf8] sm:$0xff]  ;;  %v6201_v31 = vld [vmem:[%s9593_s9 + $0x60] sm:$0xff] }
0x123c   :  { %749 = vmatpush.msrb.mxu3 %v676_v34  ;;  %v827_v38 = vmul.f32 %v5437_v24, %v826_v32  ;;  %v6208_v32 = vld [vmem:[%s9593_s9 + $0xe0] sm:$0xff]  ;;  %v6220_v34 = vld [vmem:[%s9593_s9 + $0xd8] sm:$0xff] }
0x123e   :  { %750 = vmatpush.msrb.mxu3 %v674_v37  ;;  %v828_v43 = vadd.f32 %v5437_v24, %v827_v38  ;;  %v6232_v37 = vld [vmem:[%s9593_s9 + $0xd0] sm:$0xff]  ;;  %v6237_v38 = vld [vmem:[%s9593_s9 + $0x48] sm:$0xff] }
0x1240   :  { %751 = vmatpush.msrb.mxu3 %v672_v40  ;;  %v832_v47 = vsel %vm831_vm10, %v5437_v24, %v828_v43  ;;  %v6154_v24 = vld [vmem:[%s9592_s7 + $0x8] sm:$0xff]  ;;  %v6249_v40 = vld [vmem:[%s9593_s9 + $0x40] sm:$0xff]  ;;  %v6268_v43 = vld [vmem:[%s9593_s9 + $0x30] sm:$0xff] }
0x1241   :  { %v6044_v50 = vsel %vm834_vm11, %v836_v48, %v832_v47  ;;  %905 = vmatpush.msrb.mxu2 %v6154_v24  ;;  %v6284_v47 = vld [vmem:[%s9593_s9 + $0x20] sm:$0xff]  ;;  %v6289_v48 = vld [vmem:[%s9593_s9 + $0xb8] sm:$0xff] }
0x1242   :  { %752 = vmatpush.msrb.mxu3 %v670_v42  ;;  %v840_v10 = vmul.f32 %v6044_v50, %v5933_v61  ;;  %v6115_v61 = vld [vmem:[%s9592_s7 + $0x30] sm:$0xff]  ;;  %v6261_v42 = vld [vmem:[%s9593_s9 + $0x38] sm:$0xff] }
0x1243   :  { %882 = vmatpush.msrb.mxu1 %v6115_v61 }
0x1244   :  { %753 = vmatpush.msrb.mxu3 %v668_v54  ;;  %v6325_v54 = vld [vmem:[%s9593_s9 + $0xa0] sm:$0xff] }
0x1245   :  { %883 = vmatpush.msrb.mxu1 %v6125_v19 }
0x1247   :  { %884 = vmatpush.msrb.mxu1 %v6137_v21 }
0x1249   :  { %885 = vmatpush.msrb.mxu1 %v6149_v23 }
0x129f   :  { %v843_v49 = vpop.permute.xlu1 %842 }
0x12a0   :  { %v845_v51 = vmul.f32 %v843_v49, %v6044_v50  ;;  %v6296_v49 = vld [vmem:[%s9593_s9 + $0x18] sm:$0xff] }
0x12a2   :  { %847 = vrot.lane.b32.xlu2 %v845_v51, %s5644_s17  ;;  %v6308_v51 = vld [vmem:[%s9593_s9 + $0x10] sm:$0xff] }
0x12a7   :  { %v473_v52 = vpop.permute.xlu1 %472 }
0x12a8   :  { %475 = vst.msk [vmem:[#allocation2 + $0x8] sm:$0xff] %vm185_vm14, %v473_v52  ;;  %v6313_v52 = vld [vmem:[%s9593_s9 + $0xa8] sm:$0xff] }
0x12a9   :  { %544 = vst.msk [vmem:[#allocation2 + $0x8] sm:$0xff] %vm255_vm15, %v5810_v63  ;;  %v666_v63 = vld [vmem:[%s9589_s8 + $0x168] sm:$0xff] }
0x12aa   :  { %615 = vrot.lane.b32.xlu2 %v5985_v15, %s5644_s17  ;;  %754 = vmatpush.msrb.mxu3 %v666_v63  ;;  %v6337_v63 = vld [vmem:[%s9593_s9 + $0x98] sm:$0xff] }
0x12ac   :  { %755 = vmatpush.msrb.mxu3 %v664_v59  ;;  %v6349_v59 = vld [vmem:[%s9593_s9 + $0x88] sm:$0xff] }
0x12ae   :  { %756 = vmatpush.msrb.mxu3 %v662_v60 }
0x12b0   :  { %757 = vmatpush.msrb.mxu3 %v660_v3 }
0x12b2   :  { %758 = vmatpush.msrb.mxu3 %v658_v5 }
0x12b4   :  { %759 = vmatpush.msrb.mxu3 %v656_v7 }
0x12b6   :  { %760 = vmatpush.msrb.mxu3 %v654_v9 }
0x12b8   :  { %948 = vmatpush.msra.mxu3 %v6168_v27 }
0x12ba   :  { %949 = vmatpush.msra.mxu3 %v6173_v35 }
0x12bc   :  { %950 = vmatpush.msra.mxu3 %v6184_v28 }
0x12be   :  { %951 = vmatpush.msra.mxu3 %v6201_v31 }
0x12c0   :  { %952 = vmatpush.msra.mxu3 %v6213_v33 }
0x12c2   :  { %953 = vmatpush.msra.mxu3 %v6225_v36 }
0x12c4   :  { %954 = vmatpush.msra.mxu3 %v6237_v38 }
0x12c6   :  { %955 = vmatpush.msra.mxu3 %v6249_v40 }
0x12c8   :  { %956 = vmatpush.msra.mxu3 %v6261_v42 }
0x12ca   :  { %957 = vmatpush.msra.mxu3 %v6268_v43 }
0x12cc   :  { %958 = vmatpush.msra.mxu3 %v6275_v45 }
0x12ce   :  { %959 = vmatpush.msra.mxu3 %v6284_v47 }
0x12d0   :  { %960 = vmatpush.msra.mxu3 %v6296_v49 }
0x12d2   :  { %961 = vmatpush.msra.mxu3 %v6308_v51 }
0x12d4   :  { %962 = vmatpush.msra.mxu3 %v6320_v53 }
0x12d6   :  { %963 = vmatpush.msra.mxu3 %v6332_v56 }
0x12fc   :  { %v848_v11 = vpop.permute.xlu2 %847 }
0x12fd   :  { %v6103_v12 = vadd.f32 %v848_v11, %v840_v10 }
0x12ff   :  { %9766 = vst [vmem:[#allocation6_spill] sm:$0xff] %v6103_v12  ;;  %5438 = vtanh.f32 %v6103_v12  ;;  %v6542_v12 = vld [vmem:[%s9596_s11 + $0xb0] sm:$0xff] }
0x1300   :  { %9781 = vst [vmem:[#allocation21_spill] sm:$0xff] %v6542_v12 }
0x1304   :  { %v616_v13 = vpop.permute.xlu2 %615 }
0x1305   :  { %v5439_v14 = vpop.eup %5438  ;;  %618 = vst.msk [vmem:[#allocation2 + $0x8] sm:$0xff] %vm330_vm5, %v616_v13 }
0x1306   :  { %853 = vrot.lane.b32.xlu0 %v5439_v14, %s5644_s17  ;;  %v6371_v14 = vld [vmem:[%s9594_s1] sm:$0xff] }
0x1307   :  { %9769 = vst [vmem:[#allocation9_spill] sm:$0xff] %v6371_v14 }
0x130c   :  { %v6108_v15 = vld [vmem:[#allocation2 + $0x8] sm:$0xff] }
0x130d   :  { %721 = vmatmul.f32.vlgmr.msra.gmra.mxu1 %v6108_v15  ;;  %761 = vmatmul.f32.vlgmr.msrb.gmra.mxu3 %v6108_v15 }
0x130e   :  { %968 = vmatpush.msra.mxu1 %v6179_v44 }
0x1310   :  { %969 = vmatpush.msra.mxu1 %v6190_v29 }
0x1312   :  { %970 = vmatpush.msra.mxu1 %v6196_v30 }
0x1314   :  { %971 = vmatpush.msra.mxu1 %v6208_v32 }
0x1316   :  { %972 = vmatpush.msra.mxu1 %v6220_v34 }
0x1318   :  { %973 = vmatpush.msra.mxu1 %v6232_v37 }
0x131a   :  { %974 = vmatpush.msra.mxu1 %v6244_v39 }
0x131c   :  { %975 = vmatpush.msra.mxu1 %v6256_v41 }
0x131e   :  { %976 = vmatpush.msra.mxu1 %v6289_v48 }
0x1378   :  { %v854_v25 = vpop.permute.xlu0 %853 }
0x1379   :  { %v6161_v26 = vmul.f32 %v854_v25, %v6044_v50  ;;  %v6301_v50 = vld [vmem:[%s9593_s9 + $0xb0] sm:$0xff] }
0x137a   :  { %977 = vmatpush.msra.mxu1 %v6301_v50 }
0x137b   :  { %866 = vrot.lane.b32.xlu0 %v6161_v26, %s5645_s18 }
0x137c   :  { %978 = vmatpush.msra.mxu1 %v6313_v52 }
0x137e   :  { %979 = vmatpush.msra.mxu1 %v6325_v54 }
0x1380   :  { %980 = vmatpush.msra.mxu1 %v6337_v63 }
0x1382   :  { %981 = vmatpush.msra.mxu1 %v6344_v58 }
0x1384   :  { %982 = vmatpush.msra.mxu1 %v6349_v59 }
0x1386   :  { %983 = vmatpush.msra.mxu1 %v6355_v62 }
0x138a   :  { %v722_v60 = vpop.f32.mrf.mxu1 }
0x138b   :  { %v6362_v3 = vadd.f32 %v722_v60, %v5991_v17 }
0x138d   :  { %9767 = vst [vmem:[#allocation7_spill] sm:$0xff] %v6362_v3 }
0x1390   :  { %v762_v18 = vpop.f32.mrf.mxu3 }
0x1391   :  { %v6365_v7 = vadd.f32 %v762_v18, %v742_v2  ;;  %v6381_v2 = vld [vmem:[%s9595_s10] sm:$0xff] }
0x1392   :  { %1032 = vmatpush.msra.mxu2 %v6381_v2 }
0x1393   :  { %9768 = vst [vmem:[#allocation8_spill] sm:$0xff] %v6365_v7 }
0x13ed   :  { %v867_v46 = vpop.permute.xlu0 %866 }
0x13ee   :  { %5095 = vmatmul.msk.f32.vlgmr.msrb.gmra.mxu1 %vm48_vm4, %v867_v46  ;;  %5096 = vmatmul.msk.f32.vlgmr.msrb.gmra.mxu2 %vm48_vm4, %v867_v46 }
0x13ef   :  { %1332 = vmatpush.msrb.mxu1 %v5940_v0 }
0x13f1   :  { %1333 = vmatpush.msrb.mxu1 %v5945_v1 }
0x146b   :  { %v887_v55 = vpop.f32.mrf.mxu1 }
0x146c   :  { %v912_v5 = vadd.f32 %v887_v55, %v6362_v3  ;;  %v6386_v55 = vld [vmem:[%s9595_s10 + $0x8] sm:$0xff]  ;;  %v6494_v3 = vld [vmem:[%s9596_s11 + $0xd0] sm:$0xff] }
0x146d   :  { %1052 = vmatpush.msrb.mxu2 %v6386_v55  ;;  %9776 = vst [vmem:[#allocation16_spill] sm:$0xff] %v6494_v3 }
0x146e   :  { %5440 = vtanh.f32 %v912_v5  ;;  %v9601_v5 = vmov 0  }
0x146f   :  { %5287 = vset.pattern.permute.xlu1 %v9601_v5  ;;  %v6394_v5 = vld [vmem:[%s9596_s11 + $0x78] sm:$0xff] }
0x1470   :  { %1093 = vmatpush.msrb.mxu0 %v6394_v5 }
0x1471   :  { %v907_v8 = vpop.f32.mrf.mxu2 }
0x1472   :  { %v913_v9 = vadd.f32 %v907_v8, %v6365_v7  ;;  %v6489_v7 = vld [vmem:[%s9596_s11 + $0x30] sm:$0xff] }
0x1474   :  { %v5441_v10 = vpop.eup %5440  ;;  %5442 = vtanh.f32 %v913_v9 }
0x1475   :  { %964 = vmatmul.f32.vlgmr.msra.gmra.mxu3 %v5441_v10 }
0x147a   :  { %v5443_v0 = vpop.eup %5442 }
0x147b   :  { %984 = vmatmul.f32.vlgmr.msra.gmra.mxu1 %v5443_v0 }
0x14f8   :  { %v965_v1 = vpop.f32.mrf.mxu3  ;;  %v985_v11 = vpop.f32.mrf.mxu1 }
0x14f9   :  { %v986_v13 = vadd.f32 %v985_v11, %v965_v1 }
0x14fb   :  { %v988_v17 = vmul.f32 1.442695, %v986_v13 }
0x14fd   :  { %5444 = vpow2.f32 %v988_v17 }
0x1503   :  { %v6373_v25 = vpop.eup %5444 }
0x1504   :  { %9770 = vst [vmem:[#allocation10_spill] sm:$0xff] %v6373_v25  ;;  %v991_v46 = vmul.f32 %v6373_v25, %v6371_v14  ;;  %v6477_v14 = vld [vmem:[%s9596_s11 + $0x38] sm:$0xff] }
0x1505   :  { %v6482_v25 = vld [vmem:[%s9596_s11 + $0xd8] sm:$0xff] }
0x1506   :  { %v993_v60 = vsel %vm992_vm12, %v991_v46, 0.0  ;;  %9775 = vst [vmem:[#allocation15_spill] sm:$0xff] %v6482_v25 }
0x1507   :  { %994 = vadd.xlane.f32.xlu1 %v993_v60 }
0x157a   :  { %v995_v18 = vpop.xlane.xlu1 %994 }
0x157b   :  { %v996_v8 = vadd.f32 1e-12, %v995_v18  ;;  %v6399_v18 = vld [vmem:[%s9596_s11 + $0x70] sm:$0xff] }
0x157c   :  { %1094 = vmatpush.msrb.mxu0 %v6399_v18 }
0x157d   :  { %5446 = vrcp.f32 %v996_v8  ;;  %v1008_v1 = vand.u32 2147483648, %v996_v8  ;;  %v1006_v13 = vand.u32 2147483647, %v996_v8  ;;  %vm1002_vm0 = vweird.f32 %v996_v8 }
0x157f   :  { %v1009_v60 = vor.u32 1.1754944e-38, %v1008_v1  ;;  %vm1007_vm2 = vcmp.eq.f32.partialorder %v1006_v13, 8.507059e+37  ;;  %v6413_v1 = vld [vmem:[%s9596_s11 + $0xf8] sm:$0xff]  ;;  %v9605_v13 = vmov 3  }
0x1580   :  { %9771 = vst [vmem:[#allocation11_spill] sm:$0xff] %v6413_v1 }
0x1583   :  { %v5447_v9 = vpop.eup %5446 }
0x1584   :  { %v998_v10 = vmul.f32 %v5447_v9, %v996_v8  ;;  %vm1003_vm13 = vweird.f32 %v5447_v9  ;;  %v6408_v8 = vld [vmem:[%s9596_s11 + $0x68] sm:$0xff] }
0x1585   :  { %vm1004_vm1 = vmor %vm1002_vm0, %vm1003_vm13  ;;  %1095 = vmatpush.msrb.mxu0 %v6408_v8 }
0x1586   :  { %v999_v0 = vsub.f32 1.0, %v998_v10 }
0x1588   :  { %v1000_v11 = vmul.f32 %v5447_v9, %v999_v0 }
0x158a   :  { %v1001_v17 = vadd.f32 %v5447_v9, %v1000_v11  ;;  %v6440_v11 = vld [vmem:[%s9596_s11 + $0x50] sm:$0xff] }
0x158c   :  { %v1005_v4 = vsel %vm1004_vm1, %v5447_v9, %v1001_v17  ;;  %v6433_v9 = vld [vmem:[%s9596_s11 + $0x58] sm:$0xff]  ;;  %v9609_v17 = vmov 5  }
0x158d   :  { %v1010_v10 = vsel %vm1007_vm2, %v1009_v60, %v1005_v4  ;;  %v6421_v4 = vld [vmem:[%s9596_s11 + $0x60] sm:$0xff]  ;;  %v9607_v60 = vmov 7  }
0x158e   :  { %v6402_v0 = vmul.f32 %v1010_v10, %v991_v46  ;;  %v6426_v46 = vld [vmem:[%s9596_s11 + $0xf0] sm:$0xff]  ;;  %1096 = vmatpush.msrb.mxu0 %v6421_v4  ;;  %v6455_v10 = vld [vmem:[%s9596_s11 + $0x48] sm:$0xff] }
0x158f   :  { %9772 = vst [vmem:[#allocation12_spill] sm:$0xff] %v6426_v46 }
0x1590   :  { %1220 = vperm.xlu1 %5287, %v6402_v0   ;;  %5097 = vmatmul.msk.f32.vlgmr.msra.gmra.mxu2 %vm992_vm12, %v6402_v0 }
0x1591   :  { %1113 = vmatpush.msra.mxu2 %v6413_v1  ;;  %1097 = vmatpush.msrb.mxu0 %v6433_v9  ;;  %v6537_v1 = vld [vmem:[%s9596_s11 + $0x10] sm:$0xff] }
0x1593   :  { %1114 = vmatpush.msra.mxu2 %v6426_v46  ;;  %1098 = vmatpush.msrb.mxu0 %v6440_v11  ;;  %v6520_v46 = vld [vmem:[%s9596_s11 + $0xc0] sm:$0xff] }
0x1594   :  { %9779 = vst [vmem:[#allocation19_spill] sm:$0xff] %v6520_v46 }
0x1595   :  { %1099 = vmatpush.msrb.mxu0 %v6455_v10 }
0x1598   :  { %5290 = vset.pattern.permute.xlu1 %v9605_v13  ;;  %5098 = vmatmul.msk.f32.vlgmr.msrb.gmra.mxu2 %vm992_vm12, %v6402_v0  ;;  %v6460_v13 = vld [vmem:[%s9596_s11 + $0xe8] sm:$0xff] }
0x1599   :  { %1243 = vperm.xlu1 %5290, %v6402_v0   ;;  %9773 = vst [vmem:[#allocation13_spill] sm:$0xff] %v6460_v13  ;;  %1115 = vmatpush.msra.mxu2 %v6460_v13  ;;  %v6501_v13 = vld [vmem:[%s9596_s11 + $0x28] sm:$0xff] }
0x15a1   :  { %5292 = vset.pattern.permute.xlu1 %v9609_v17  ;;  %v6472_v17 = vld [vmem:[%s9596_s11 + $0xe0] sm:$0xff] }
0x15a2   :  { %1259 = vperm.xlu1 %5292, %v6402_v0   ;;  %9774 = vst [vmem:[#allocation14_spill] sm:$0xff] %v6472_v17  ;;  %1116 = vmatpush.msra.mxu2 %v6472_v17  ;;  %v6508_v17 = vld [vmem:[%s9596_s11 + $0xc8] sm:$0xff] }
0x15a3   :  { %9777 = vst [vmem:[#allocation17_spill] sm:$0xff] %v6508_v17 }
0x15a4   :  { %1117 = vmatpush.msra.mxu2 %v6482_v25  ;;  %v6515_v25 = vld [vmem:[%s9596_s11 + $0x20] sm:$0xff] }
0x15a5   :  { %9778 = vst [vmem:[#allocation18_spill] sm:$0xff] %v6515_v25 }
0x15a6   :  { %1118 = vmatpush.msra.mxu2 %v6494_v3  ;;  %v6525_v3 = vld [vmem:[%s9596_s11 + $0x18] sm:$0xff] }
0x15a8   :  { %1119 = vmatpush.msra.mxu2 %v6508_v17  ;;  %v6532_v17 = vld [vmem:[%s9596_s11 + $0xb8] sm:$0xff] }
0x15a9   :  { %9780 = vst [vmem:[#allocation20_spill] sm:$0xff] %v6532_v17 }
0x15aa   :  { %5294 = vset.pattern.permute.xlu1 %v9607_v60  ;;  %v6467_v60 = vld [vmem:[%s9596_s11 + $0x40] sm:$0xff]  ;;  %1120 = vmatpush.msra.mxu2 %v6520_v46  ;;  %v6551_v46 = vld [vmem:[%s9596_s11 + $0x8] sm:$0xff] }
0x15ab   :  { %1275 = vperm.xlu1 %5294, %v6402_v0   ;;  %1100 = vmatpush.msrb.mxu0 %v6467_v60  ;;  %9782 = vst [vmem:[#allocation22_spill] sm:$0xff] %v6551_v46 }
0x15ac   :  { %1121 = vmatpush.msra.mxu2 %v6532_v17  ;;  %v6563_v17 = vld [vmem:[%s9596_s11] sm:$0xff] }
0x15ad   :  { %1101 = vmatpush.msrb.mxu0 %v6477_v14  ;;  %9784 = vst [vmem:[#allocation24_spill] sm:$0xff] %v6563_v17 }
0x15ae   :  { %1122 = vmatpush.msra.mxu2 %v6542_v12  ;;  %v6568_v12 = vld [vmem:[%s9596_s11 + $0xa0] sm:$0xff] }
0x15af   :  { %1102 = vmatpush.msrb.mxu0 %v6489_v7  ;;  %9785 = vst [vmem:[#allocation25_spill] sm:$0xff] %v6568_v12 }
0x15b1   :  { %1103 = vmatpush.msrb.mxu0 %v6501_v13 }
0x15b3   :  { %1104 = vmatpush.msrb.mxu0 %v6515_v25  ;;  %v6556_v25 = vld [vmem:[%s9596_s11 + $0xa8] sm:$0xff] }
0x15b4   :  { %9783 = vst [vmem:[#allocation23_spill] sm:$0xff] %v6556_v25  ;;  %1123 = vmatpush.msra.mxu2 %v6556_v25  ;;  %v6580_v25 = vld [vmem:[%s9596_s11 + $0x90] sm:$0xff] }
0x15b5   :  { %1105 = vmatpush.msrb.mxu0 %v6525_v3 }
0x15b6   :  { %1124 = vmatpush.msra.mxu2 %v6568_v12  ;;  %v6589_v12 = vld [vmem:[%s9596_s11 + $0x88] sm:$0xff] }
0x15b7   :  { %1106 = vmatpush.msrb.mxu0 %v6537_v1 }
0x15b9   :  { %1107 = vmatpush.msrb.mxu0 %v6551_v46  ;;  %v6575_v46 = vld [vmem:[%s9596_s11 + $0x98] sm:$0xff] }
0x15ba   :  { %1125 = vmatpush.msra.mxu2 %v6575_v46 }
0x15bb   :  { %1108 = vmatpush.msrb.mxu0 %v6563_v17  ;;  %v6596_v17 = vld [vmem:[%s9596_s11 + $0x80] sm:$0xff] }
0x15bc   :  { %1126 = vmatpush.msra.mxu2 %v6580_v25 }
0x15bd   :  { %1410 = vmatpush.msra.mxu0 %v6115_v61 }
0x15be   :  { %1127 = vmatpush.msra.mxu2 %v6589_v12 }
0x15bf   :  { %1411 = vmatpush.msra.mxu0 %v6125_v19 }
0x15c0   :  { %1128 = vmatpush.msra.mxu2 %v6596_v17 }
0x15c1   :  { %1412 = vmatpush.msra.mxu0 %v6137_v21 }
0x15c2   :  { %1430 = vmatpush.msrb.mxu2 %v6120_v16  ;;  %v1151_v16 = vld [vmem:[%s9597_s6 + $0x50] sm:$0xff] }
0x15c3   :  { %1413 = vmatpush.msra.mxu0 %v6149_v23 }
0x15c4   :  { %1431 = vmatpush.msrb.mxu2 %v6132_v20  ;;  %v1150_v20 = vld [vmem:[%s9597_s6 + $0x48] sm:$0xff] }
0x15c6   :  { %1432 = vmatpush.msrb.mxu2 %v6142_v22 }
0x15c8   :  { %1433 = vmatpush.msrb.mxu2 %v6154_v24 }
0x1613   :  { %v1034_v61 = vpop.f32.mrf.mxu2 }
0x1614   :  { %v1059_v19 = vmul.f32 %v1034_v61, %v5928_v57  ;;  %v9642_v57 = vmov 1  }
0x1615   :  { %5288 = vset.pattern.permute.xlu2 %v9642_v57 }
0x1616   :  { %1109 = vmatmul.f32.vlgmr.msrb.gmra.mxu0 %v1059_v19  ;;  %v9788_v19 = vmov 0  }
0x1617   :  { %1496 = vmatpush.msrb.mxu0 %v6179_v44 }
0x1619   :  { %1497 = vmatpush.msrb.mxu0 %v6190_v29  ;;  %v1149_v29 = vld [vmem:[%s9597_s6 + $0x40] sm:$0xff] }
0x161b   :  { %v1054_v21 = vpop.f32.mrf.mxu2  ;;  %1498 = vmatpush.msrb.mxu0 %v6196_v30  ;;  %v1148_v30 = vld [vmem:[%s9597_s6 + $0x38] sm:$0xff] }
0x161c   :  { %v1060_v23 = vmul.f32 %v1054_v21, %v6108_v15  ;;  %v1152_v15 = vld [vmem:[%s9597_s6 + $0x58] sm:$0xff] }
0x161d   :  { %1499 = vmatpush.msrb.mxu0 %v6208_v32  ;;  %1160 = vmatpush.msrb.mxu3 %v1152_v15  ;;  %v1147_v32 = vld [vmem:[%s9597_s6 + $0x30] sm:$0xff] }
0x161e   :  { %1129 = vmatmul.f32.vlgmr.msra.gmra.mxu2 %v1060_v23 }
0x161f   :  { %1500 = vmatpush.msrb.mxu0 %v6220_v34  ;;  %1595 = vmatpush.msra.mxu2 %v6386_v55  ;;  %v1146_v34 = vld [vmem:[%s9597_s6 + $0x28] sm:$0xff] }
0x1620   :  { %1161 = vmatpush.msrb.mxu3 %v1151_v16 }
0x1621   :  { %1501 = vmatpush.msrb.mxu0 %v6232_v37  ;;  %v9638_v37 = vmov 4  }
0x1622   :  { %1162 = vmatpush.msrb.mxu3 %v1150_v20 }
0x1623   :  { %1502 = vmatpush.msrb.mxu0 %v6244_v39  ;;  %v9636_v39 = vmov 6  }
0x1624   :  { %1163 = vmatpush.msrb.mxu3 %v1149_v29 }
0x1625   :  { %1503 = vmatpush.msrb.mxu0 %v6256_v41  ;;  %v1145_v41 = vld [vmem:[%s9597_s6 + $0x20] sm:$0xff] }
0x1626   :  { %1164 = vmatpush.msrb.mxu3 %v1148_v30 }
0x1627   :  { %1504 = vmatpush.msrb.mxu0 %v6289_v48  ;;  %v1144_v48 = vld [vmem:[%s9597_s6 + $0x18] sm:$0xff] }
0x1628   :  { %1165 = vmatpush.msrb.mxu3 %v1147_v32 }
0x1629   :  { %1505 = vmatpush.msrb.mxu0 %v6301_v50  ;;  %v1143_v50 = vld [vmem:[%s9597_s6 + $0x10] sm:$0xff] }
0x162a   :  { %1166 = vmatpush.msrb.mxu3 %v1146_v34 }
0x162b   :  { %1506 = vmatpush.msrb.mxu0 %v6313_v52  ;;  %v1142_v52 = vld [vmem:[%s9597_s6 + $0x8] sm:$0xff] }
0x162c   :  { %1167 = vmatpush.msrb.mxu3 %v1145_v41 }
0x162d   :  { %1507 = vmatpush.msrb.mxu0 %v6325_v54  ;;  %v1141_v54 = vld [vmem:[%s9597_s6] sm:$0xff] }
0x162e   :  { %1168 = vmatpush.msrb.mxu3 %v1144_v48 }
0x162f   :  { %1508 = vmatpush.msrb.mxu0 %v6337_v63 }
0x1630   :  { %1169 = vmatpush.msrb.mxu3 %v1143_v50 }
0x1631   :  { %1509 = vmatpush.msrb.mxu0 %v6344_v58 }
0x1632   :  { %1170 = vmatpush.msrb.mxu3 %v1142_v52 }
0x1633   :  { %1510 = vmatpush.msrb.mxu0 %v6349_v59 }
0x1634   :  { %1171 = vmatpush.msrb.mxu3 %v1141_v54 }
0x1635   :  { %1511 = vmatpush.msrb.mxu0 %v6355_v62 }
0x1636   :  { %1476 = vmatpush.msra.mxu3 %v6168_v27 }
0x1638   :  { %1477 = vmatpush.msra.mxu3 %v6173_v35 }
0x163a   :  { %1478 = vmatpush.msra.mxu3 %v6184_v28  ;;  %v9640_v28 = vmov 2  }
0x163b   :  { %5289 = vset.pattern.permute.xlu0 %v9640_v28  ;;  %5299 = vset.pattern.permute.xlu1 %v9640_v28  ;;  %v7213_v28 = vld [vmem:[%s9593_s9 + $0x90] sm:$0xff] }
0x163c   :  { %1479 = vmatpush.msra.mxu3 %v6201_v31  ;;  %v9634_v31 = vmov 127  }
0x163e   :  { %1480 = vmatpush.msra.mxu3 %v6213_v33  ;;  %v9786_v33 = vmov 0.0  }
0x1640   :  { %1481 = vmatpush.msra.mxu3 %v6225_v36  ;;  %v6694_v36 = vsel %vm771_vm3, -2e+09, %v9786_v33  ;;  %vm1302_vm3 = vcmask 7168  }
0x1641   :  { %9787 = vst [vmem:[#allocation26_spill] sm:$0xff] %v6694_v36 }
0x1642   :  { %1482 = vmatpush.msra.mxu3 %v6237_v38 }
0x1644   :  { %1483 = vmatpush.msra.mxu3 %v6249_v40 }
0x1646   :  { %1484 = vmatpush.msra.mxu3 %v6261_v42 }
0x1648   :  { %1485 = vmatpush.msra.mxu3 %v6268_v43 }
0x164a   :  { %1486 = vmatpush.msra.mxu3 %v6275_v45 }
0x164c   :  { %1487 = vmatpush.msra.mxu3 %v6284_v47 }
0x164e   :  { %1488 = vmatpush.msra.mxu3 %v6296_v49 }
0x1650   :  { %1489 = vmatpush.msra.mxu3 %v6308_v51 }
0x1652   :  { %1490 = vmatpush.msra.mxu3 %v6320_v53 }
0x1654   :  { %1491 = vmatpush.msra.mxu3 %v6332_v56 }
0x1693   :  { %v1110_v22 = vpop.f32.mrf.mxu0 }
0x16a1   :  { %v1130_v24 = vpop.f32.mrf.mxu2 }
0x16a2   :  { %v1131_v44 = vadd.f32 %v1130_v24, %v1110_v22  ;;  %v6704_v24 = vld [vmem:[%s9598_s2 + $0x8] sm:$0xff] }
0x16a4   :  { %1135 = vrot.lane.b32.xlu2 %v1131_v44, %s5644_s17  ;;  %v1218_v44 = vld [vmem:[%s9598_s2] sm:$0xff] }
0x16ac   :  { %1227 = vperm.xlu2 %5288, %v6402_v0  }
0x16b4   :  { %5291 = vset.pattern.permute.xlu2 %v9638_v37 }
0x16b5   :  { %1251 = vperm.xlu2 %5291, %v6402_v0  }
0x16bd   :  { %5293 = vset.pattern.permute.xlu2 %v9636_v39 }
0x16be   :  { %1267 = vperm.xlu2 %5293, %v6402_v0  }
0x16c6   :  { %5295 = vset.pattern.permute.xlu2 %v9634_v31 }
0x16fe   :  { %v6677_v27 = vpop.permute.xlu2 %1135 }
0x16ff   :  { %1138 = vst.msk [vmem:[#allocation4] sm:$0xff] %vm185_vm14, %v6677_v27 }
0x1700   :  { %1139 = vst.msk [vmem:[#allocation4] sm:$0xff] %vm255_vm15, %v6161_v26 }
0x1707   :  { %v1140_v35 = vld [vmem:[#allocation4] sm:$0xff] }
0x1708   :  { %5099 = vmatmul.msk.f32.vlgmr.msrb.gmra.mxu3 %vm796_vm7, %v1140_v35 }
0x1709   :  { %1703 = vmatpush.msrb.mxu3 %v1152_v15 }
0x170b   :  { %1704 = vmatpush.msrb.mxu3 %v1151_v16  ;;  %v1228_v16 = vpop.permute.xlu2 %1227 }
0x170d   :  { %1705 = vmatpush.msrb.mxu3 %v1150_v20  ;;  %v1221_v20 = vpop.permute.xlu1 %1220 }
0x170f   :  { %1706 = vmatpush.msrb.mxu3 %v1149_v29  ;;  %v6712_v29 = vld [vmem:[%s9598_s2 + $0x10] sm:$0xff] }
0x1711   :  { %1707 = vmatpush.msrb.mxu3 %v1148_v30 }
0x1713   :  { %1708 = vmatpush.msrb.mxu3 %v1147_v32  ;;  %v1252_v22 = vpop.permute.xlu2 %1251  ;;  %v1230_v32 = vmul.f32 %v6704_v24, %v1228_v16 }
0x1715   :  { %1709 = vmatpush.msrb.mxu3 %v1146_v34  ;;  %v1244_v34 = vpop.permute.xlu1 %1243 }
0x1717   :  { %1710 = vmatpush.msrb.mxu3 %v1145_v41  ;;  %v1223_v41 = vmul.f32 %v1221_v20, %v1218_v44 }
0x1719   :  { %1711 = vmatpush.msrb.mxu3 %v1144_v48 }
0x171b   :  { %1712 = vmatpush.msrb.mxu3 %v1143_v50  ;;  %v1268_v48 = vpop.permute.xlu2 %1267 }
0x171d   :  { %1713 = vmatpush.msrb.mxu3 %v1142_v52  ;;  %v1231_v52 = vadd.f32 %v1230_v32, %v1223_v41 }
0x171f   :  { %1714 = vmatpush.msrb.mxu3 %v1141_v54  ;;  %v6719_v54 = vld [vmem:[%s9598_s2 + $0x18] sm:$0xff] }
0x178b   :  { %v1173_v38 = vpop.f32.mrf.mxu3 }
0x178c   :  { %v5100_v40 = vmul.f32 -1.442695, %v1173_v38  ;;  %v1195_v42 = vadd.f32 %v1173_v38, %v6694_v36  ;;  %v1246_v38 = vmul.f32 %v6719_v54, %v1244_v34 }
0x178e   :  { %5448 = vpow2.f32 %v5100_v40  ;;  %1196 = vmax.xlane.f32.xlu0 %v1195_v42  ;;  %v6725_v40 = vld [vmem:[%s9598_s2 + $0x20] sm:$0xff] }
0x1794   :  { %v5449_v43 = vpop.eup %5448 }
0x1795   :  { %v1179_v45 = vadd.f32 1.0, %v5449_v43 }
0x1797   :  { %5450 = vrcp.f32 %v1179_v45  ;;  %v1191_v53 = vand.u32 2147483648, %v1179_v45  ;;  %v1189_v63 = vand.u32 2147483647, %v1179_v45  ;;  %vm1185_vm6 = vweird.f32 %v1179_v45 }
0x1799   :  { %v1192_v59 = vor.u32 1.1754944e-38, %v1191_v53  ;;  %vm1190_vm9 = vcmp.eq.f32.partialorder %v1189_v63, 8.507059e+37  ;;  %v6737_v63 = vld [vmem:[%s9598_s2 + $0x30] sm:$0xff] }
0x179d   :  { %v5451_v47 = vpop.eup %5450 }
0x179e   :  { %v1181_v49 = vmul.f32 %v5451_v47, %v1179_v45  ;;  %vm1186_vm5 = vweird.f32 %v5451_v47  ;;  %v1260_v45 = vpop.permute.xlu1 %1259 }
0x179f   :  { %vm1187_vm8 = vmor %vm1185_vm6, %vm1186_vm5 }
0x17a0   :  { %v1182_v51 = vsub.f32 1.0, %v1181_v49  ;;  %v6731_v49 = vld [vmem:[%s9598_s2 + $0x28] sm:$0xff] }
0x17a1   :  { %v1262_v53 = vmul.f32 %v6731_v49, %v1260_v45  ;;  %v6747_v45 = vcvt.s32.f32 %v5964_v6 }
0x17a2   :  { %1235 = vperm.xlu0 %5289, %v6402_v0   ;;  %v1183_v56 = vmul.f32 %v5451_v47, %v1182_v51 }
0x17a3   :  { %9789 = vst [vmem:[#allocation27_spill] sm:$0xff] %v6747_v45 }
0x17a4   :  { %v1184_v58 = vadd.f32 %v5451_v47, %v1183_v56 }
0x17a6   :  { %v1188_v62 = vsel %vm1187_vm8, %v5451_v47, %v1184_v58  ;;  %v1254_v47 = vmul.f32 %v6725_v40, %v1252_v22 }
0x17a7   :  { %v1193_v55 = vsel %vm1190_vm9, %v1192_v59, %v1188_v62  ;;  %v1270_v62 = vmul.f32 %v6737_v63, %v1268_v48 }
0x17a8   :  { %v1286_v61 = vsub.f32 1.0, %v1193_v55 }
0x17aa   :  { %5296 = vset.pattern.permute.xlu0 %v9634_v31 }
0x17ab   :  { %1289 = vperm.xlu0 %5296, %v1286_v61   ;;  %v5107_v61 = vld [vmem:[%s9598_s2 + $0x38] sm:$0xff] }
0x17b3   :  { %5297 = vset.pattern.permute.xlu0 %v9788_v19 }
0x1801   :  { %v1197_v21 = vpop.xlane.xlu0 %1196 }
0x1802   :  { %v1198_v23 = vsub.f32 %v1195_v42, %v1197_v21  ;;  %v1276_v21 = vpop.permute.xlu1 %1275 }
0x1803   :  { %v1278_v22 = vmul.f32 %v5107_v61, %v1276_v21  ;;  %v5641_v61 = vld [vmem:[%s9591_s5 + $0x8] sm:$0xff]  ;;  %v5642_v21 = vld [vmem:[%s9591_s5] sm:$0xff] }
0x1804   :  { %v1199_v15 = vmul.f32 1.442695, %v1198_v23 }
0x1806   :  { %5452 = vpow2.f32 %v1199_v15 }
0x180c   :  { %v5453_v0 = vpop.eup %5452 }
0x180d   :  { %1201 = vadd.xlane.f32.xlu2 %v5453_v0 }
0x1814   :  { %v1236_v30 = vpop.permute.xlu0 %1235 }
0x1815   :  { %v1238_v50 = vmul.f32 %v6712_v29, %v1236_v30 }
0x1817   :  { %v1239_v35 = vadd.f32 %v1238_v50, %v1231_v52 }
0x1819   :  { %v1247_v42 = vadd.f32 %v1246_v38, %v1239_v35 }
0x181b   :  { %v1255_v51 = vadd.f32 %v1254_v47, %v1247_v42 }
0x181d   :  { %v1263_v58 = vadd.f32 %v1262_v53, %v1255_v51  ;;  %v1290_v50 = vpop.permute.xlu0 %1289  ;;  %v6759_v51 = vld [vmem:[%s9591_s5 + $0x40] sm:$0xff]  ;;  %v6765_v53 = vld [vmem:[%s9591_s5 + $0x38] sm:$0xff] }
0x181f   :  { %v1271_v15 = vadd.f32 %v1270_v62, %v1263_v58  ;;  %v6777_v58 = vld [vmem:[%s9591_s5 + $0x28] sm:$0xff]  ;;  %v5639_v62 = vld [vmem:[%s9591_s5 + $0x18] sm:$0xff] }
0x1821   :  { %v1279_v32 = vadd.f32 %v1278_v22, %v1271_v15 }
0x1823   :  { %v1292_v35 = vmul.f32 %v1290_v50, %v1279_v32 }
0x1825   :  { %1282 = vperm.xlu2 %5295, %v1193_v55  }
0x182d   :  { %5298 = vset.pattern.permute.xlu2 %v9642_v57 }
0x1880   :  { %v1202_v43 = vpop.xlane.xlu2 %1201 }
0x1881   :  { %5454 = vrcp.f32 %v1202_v43  ;;  %v1214_v23 = vand.u32 2147483648, %v1202_v43  ;;  %v1212_v20 = vand.u32 2147483647, %v1202_v43  ;;  %vm1208_vm11 = vweird.f32 %v1202_v43 }
0x1883   :  { %v1215_v30 = vor.u32 1.1754944e-38, %v1214_v23  ;;  %vm1213_vm0 = vcmp.eq.f32.partialorder %v1212_v20, 8.507059e+37 }
0x1887   :  { %v5455_v56 = vpop.eup %5454 }
0x1888   :  { %v1204_v59 = vmul.f32 %v5455_v56, %v1202_v43  ;;  %vm1209_vm10 = vweird.f32 %v5455_v56  ;;  %v1283_v52 = vpop.permute.xlu2 %1282 }
0x1889   :  { %vm1210_vm13 = vmor %vm1208_vm11, %vm1209_vm10 }
0x188a   :  { %v1205_v55 = vsub.f32 1.0, %v1204_v59  ;;  %v5638_v59 = vld [vmem:[%s9591_s5 + $0x20] sm:$0xff] }
0x188c   :  { %v1206_v16 = vmul.f32 %v5455_v56, %v1205_v55  ;;  %v5640_v55 = vld [vmem:[%s9591_s5 + $0x10] sm:$0xff] }
0x188e   :  { %v1207_v44 = vadd.f32 %v5455_v56, %v1206_v16 }
0x1890   :  { %v1211_v34 = vsel %vm1210_vm13, %v5455_v56, %v1207_v44  ;;  %v6771_v56 = vld [vmem:[%s9591_s5 + $0x30] sm:$0xff] }
0x1891   :  { %v1216_v41 = vsel %vm1213_vm0, %v1215_v30, %v1211_v34 }
0x1892   :  { %v1217_v48 = vmul.f32 %v5453_v0, %v1216_v41  ;;  %v6753_v0 = vld [vmem:[%s9591_s5 + $0x48] sm:$0xff] }
0x1893   :  { %1334 = vmatpush.msrb.mxu1 %v6753_v0 }
0x1894   :  { %v1285_v38 = vmul.f32 %v1283_v52, %v1217_v48  ;;  %v9793_v52 = vld [vmem:[#allocation6_spill] sm:$0xff] }
0x1895   :  { %1335 = vmatpush.msrb.mxu1 %v6759_v51 }
0x1896   :  { %v1293_v42 = vadd.f32 %v1292_v35, %v1285_v38 }
0x1897   :  { %1336 = vmatpush.msrb.mxu1 %v6765_v53 }
0x1898   :  { %1294 = vst [vmem:[%s9599_s12] sm:$0xff] %v1293_v42  ;;  %1295 = vmax.xlane.f32.xlu1 %v1293_v42 }
0x1899   :  { %1337 = vmatpush.msrb.mxu1 %v6771_v56 }
0x189b   :  { %1338 = vmatpush.msrb.mxu1 %v6777_v58 }
0x189d   :  { %1339 = vmatpush.msrb.mxu1 %v5638_v59 }
0x189f   :  { %1340 = vmatpush.msrb.mxu1 %v5639_v62 }
0x18a1   :  { %1341 = vmatpush.msrb.mxu1 %v5640_v55  ;;  %v9794_v55 = vld [vmem:[#allocation11_spill] sm:$0xff] }
0x18a3   :  { %1342 = vmatpush.msrb.mxu1 %v5641_v61  ;;  %v9795_v61 = vld [vmem:[#allocation12_spill] sm:$0xff] }
0x18a5   :  { %1343 = vmatpush.msrb.mxu1 %v5642_v21  ;;  %v9796_v21 = vld [vmem:[#allocation13_spill] sm:$0xff] }
0x18a7   :  { %1575 = vmatpush.msra.mxu1 %v6381_v2 }
0x190b   :  { %v1296_v43 = vpop.xlane.xlu1 %1295 }
0x190c   :  { %vm1297_vm1 = vcmp.eq.f32.partialorder %v1293_v42, %v1296_v43 }
0x190d   :  { %v1298_v47 = vsel %vm1297_vm1, %v6747_v45, 128.0 }
0x190e   :  { %1299 = vmin.xlane.f32.xlu2 %v1298_v47 }
0x1981   :  { %v1300_v23 = vpop.xlane.xlu2 %1299 }
0x1982   :  { %vm5234_vm2 = vcmp.lt.s32.totalorder %v1300_v23, 0  ;;  %v5235_v15 = vceil.f32 %v1300_v23  ;;  %v5236_v16 = vfloor.f32 %v1300_v23  ;;  %v9797_v23 = vld [vmem:[#allocation14_spill] sm:$0xff] }
0x1984   :  { %v5237_v20 = vsel %vm5234_vm2, %v5235_v15, %v5236_v16  ;;  %v9798_v15 = vld [vmem:[#allocation15_spill] sm:$0xff]  ;;  %v9799_v16 = vld [vmem:[#allocation16_spill] sm:$0xff] }
0x1985   :  { %v5238_v22 = vcvt.f32.s32 %v5237_v20  ;;  %v9800_v20 = vld [vmem:[#allocation17_spill] sm:$0xff] }
0x1987   :  { %1303 = vst.msk [vmem:[%s9600_s13] sm:$0xff] %vm1302_vm3, %v5238_v22  ;;  %vm1304_vm5 = vcmp.ge.s32.totalorder %v5238_v22, 32 }
0x1988   :  { %v1305_v44 = vsel %vm1304_vm5, 1, %v5238_v22  ;;  %v9801_v22 = vld [vmem:[#allocation19_spill] sm:$0xff] }
0x1989   :  { %vm1306_vm6 = vcmp.eq.s32.totalorder %v1305_v44, %v5964_v6  ;;  %v9802_v44 = vld [vmem:[#allocation20_spill] sm:$0xff] }
0x198a   :  { %v5108_v30 = vsel %vm1306_vm6, 1.0, %v9786_v33 }
0x198b   :  { %1309 = vst.msk [vmem:[#allocation4] sm:$0xff] %vm48_vm4, %v5108_v30 }
0x198c   :  { %1310 = vst.msk [vmem:[#allocation4] sm:$0xff] %vm185_vm14, %v6677_v27 }
0x198d   :  { %1311 = vst.msk [vmem:[#allocation4] sm:$0xff] %vm255_vm15, %v6161_v26  ;;  %v9790_v26 = vld [vmem:[#allocation18_spill] sm:$0xff] }
0x1994   :  { %v1312_v2 = vld [vmem:[#allocation4] sm:$0xff] }
0x1995   :  { %5109 = vmatmul.msk.f32.vlgmr.msrb.gmra.mxu1 %vm796_vm7, %v1312_v2  ;;  %1676 = vst.msk [vmem:[#allocation4] sm:$0xff] %vm48_vm4, %v5108_v30  ;;  %v9803_v30 = vld [vmem:[#allocation21_spill] sm:$0xff]  ;;  %v9804_v2 = vld [vmem:[#allocation23_spill] sm:$0xff] }
0x1996   :  { %1636 = vmatpush.msrb.mxu1 %v6394_v5  ;;  %v9791_v5 = vld [vmem:[#allocation22_spill] sm:$0xff] }
0x1998   :  { %1637 = vmatpush.msrb.mxu1 %v6399_v18  ;;  %v9792_v18 = vld [vmem:[#allocation24_spill] sm:$0xff] }
0x199a   :  { %1638 = vmatpush.msrb.mxu1 %v6408_v8 }
0x199c   :  { %1639 = vmatpush.msrb.mxu1 %v6421_v4 }
0x199e   :  { %1640 = vmatpush.msrb.mxu1 %v6433_v9 }
0x19a0   :  { %1641 = vmatpush.msrb.mxu1 %v6440_v11 }
0x19a2   :  { %1642 = vmatpush.msrb.mxu1 %v6455_v10 }
0x19a4   :  { %1643 = vmatpush.msrb.mxu1 %v6467_v60 }
0x19a6   :  { %1644 = vmatpush.msrb.mxu1 %v6477_v14 }
0x19a8   :  { %1645 = vmatpush.msrb.mxu1 %v6489_v7 }
0x19aa   :  { %1646 = vmatpush.msrb.mxu1 %v6501_v13 }
0x19ac   :  { %1647 = vmatpush.msrb.mxu1 %v9790_v26  ;;  %v9805_v26 = vld [vmem:[#allocation25_spill] sm:$0xff] }
0x19ae   :  { %1648 = vmatpush.msrb.mxu1 %v6525_v3 }
0x19b0   :  { %1649 = vmatpush.msrb.mxu1 %v6537_v1 }
0x19b2   :  { %1650 = vmatpush.msrb.mxu1 %v9791_v5 }
0x19b4   :  { %1651 = vmatpush.msrb.mxu1 %v9792_v18  ;;  %v9806_v18 = vld [vmem:[#allocation7_spill] sm:$0xff] }
0x1a12   :  { %v1345_v8 = vpop.f32.mrf.mxu1 }
0x1a13   :  { %5456 = vtanh.f32 %v1345_v8  ;;  %v5110_v14 = vmul.f32 -1.442695, %v1345_v8 }
0x1a15   :  { %5458 = vpow2.f32 %v5110_v14  ;;  %v9807_v14 = vld [vmem:[#allocation8_spill] sm:$0xff] }
0x1a19   :  { %v5457_v4 = vpop.eup %5456 }
0x1a1a   :  { %1370 = vrot.lane.b32.xlu0 %v5457_v4, %s5644_s17 }
0x1a1b   :  { %v5459_v7 = vpop.eup %5458 }
0x1a1c   :  { %v1351_v9 = vadd.f32 1.0, %v5459_v7 }
0x1a1e   :  { %5460 = vrcp.f32 %v1351_v9  ;;  %v1363_v1 = vand.u32 2147483648, %v1351_v9  ;;  %vm1357_vm9 = vweird.f32 %v1351_v9  ;;  %v1361_v27 = vand.u32 2147483647, %v1351_v9 }
0x1a20   :  { %v1364_v34 = vor.u32 1.1754944e-38, %v1363_v1  ;;  %vm1362_vm11 = vcmp.eq.f32.partialorder %v1361_v27, 8.507059e+37 }
0x1a24   :  { %v5461_v11 = vpop.eup %5460 }
0x1a25   :  { %v1353_v13 = vmul.f32 %v5461_v11, %v1351_v9  ;;  %vm1358_vm8 = vweird.f32 %v5461_v11 }
0x1a26   :  { %vm1359_vm10 = vmor %vm1357_vm9, %vm1358_vm8 }
0x1a27   :  { %v1354_v60 = vsub.f32 1.0, %v1353_v13  ;;  %v9808_v13 = vld [vmem:[#allocation10_spill] sm:$0xff] }
0x1a28   :  { %vm1523_vm0 = vweird.f32 %v9808_v13 }
0x1a29   :  { %v1355_v3 = vmul.f32 %v5461_v11, %v1354_v60 }
0x1a2b   :  { %v1356_v10 = vadd.f32 %v5461_v11, %v1355_v3 }
0x1a2d   :  { %v1360_v32 = vsel %vm1359_vm10, %v5461_v11, %v1356_v10 }
0x1a2e   :  { %v1365_v48 = vsel %vm1362_vm11, %v1364_v34, %v1360_v32  ;;  %v1529_v32 = vand.u32 2147483648, %v9808_v13  ;;  %v1527_v34 = vand.u32 2147483647, %v9808_v13 }
0x1a2f   :  { %v1368_v35 = vmul.f32 %v1365_v48, %v9793_v52 }
0x1a30   :  { %vm1528_vm2 = vcmp.eq.f32.partialorder %v1527_v34, 8.507059e+37 }
0x1a8c   :  { %v1371_v41 = vpop.permute.xlu0 %1370 }
0x1a8d   :  { %v1373_v50 = vmul.f32 %v1371_v41, %v1365_v48 }
0x1a8f   :  { %1375 = vrot.lane.b32.xlu0 %v1373_v50, %s5644_s17 }
0x1b01   :  { %v1376_v38 = vpop.permute.xlu0 %1375 }
0x1b02   :  { %v6828_v42 = vadd.f32 %v1376_v38, %v1368_v35  ;;  %v9809_v38 = vld [vmem:[#allocation9_spill] sm:$0xff] }
0x1b04   :  { %5462 = vtanh.f32 %v6828_v42 }
0x1b0a   :  { %v5463_v43 = vpop.eup %5462 }
0x1b0b   :  { %1381 = vrot.lane.b32.xlu0 %v5463_v43, %s5644_s17 }
0x1b7d   :  { %v1382_v47 = vpop.permute.xlu0 %1381 }
0x1b7e   :  { %v6832_v59 = vmul.f32 %v1382_v47, %v1365_v48  ;;  %v1530_v48 = vor.u32 1.1754944e-38, %v1529_v32 }
0x1b80   :  { %1394 = vrot.lane.b32.xlu0 %v6832_v59, %s5645_s18 }
0x1bf2   :  { %v1395_v62 = vpop.permute.xlu0 %1394 }
0x1bf3   :  { %5111 = vmatmul.msk.f32.vlgmr.msra.gmra.mxu0 %vm48_vm4, %v1395_v62  ;;  %5112 = vmatmul.msk.f32.vlgmr.msrb.gmra.mxu2 %vm48_vm4, %v1395_v62 }
0x1bf4   :  { %1656 = vmatpush.msrb.mxu2 %v9794_v55 }
0x1bf6   :  { %1657 = vmatpush.msrb.mxu2 %v9795_v61 }
0x1bf8   :  { %1658 = vmatpush.msrb.mxu2 %v9796_v21 }
0x1bfa   :  { %1659 = vmatpush.msrb.mxu2 %v9797_v23 }
0x1bfc   :  { %1660 = vmatpush.msrb.mxu2 %v9798_v15 }
0x1bfe   :  { %1661 = vmatpush.msrb.mxu2 %v9799_v16 }
0x1c00   :  { %1662 = vmatpush.msrb.mxu2 %v9800_v20 }
0x1c02   :  { %1663 = vmatpush.msrb.mxu2 %v9801_v22 }
0x1c04   :  { %1664 = vmatpush.msrb.mxu2 %v9802_v44 }
0x1c06   :  { %1665 = vmatpush.msrb.mxu2 %v9803_v30 }
0x1c08   :  { %1666 = vmatpush.msrb.mxu2 %v9804_v2 }
0x1c0a   :  { %1667 = vmatpush.msrb.mxu2 %v9805_v26 }
0x1c0c   :  { %1668 = vmatpush.msrb.mxu2 %v6575_v46 }
0x1c0e   :  { %1669 = vmatpush.msrb.mxu2 %v6580_v25 }
0x1c10   :  { %1670 = vmatpush.msrb.mxu2 %v6589_v12 }
0x1c12   :  { %1671 = vmatpush.msrb.mxu2 %v6596_v17 }
0x1c70   :  { %v1415_v5 = vpop.f32.mrf.mxu0 }
0x1c71   :  { %v1440_v8 = vadd.f32 %v1415_v5, %v9806_v18  ;;  %v9810_v5 = vmov 5  }
0x1c73   :  { %5464 = vtanh.f32 %v1440_v8 }
0x1c76   :  { %v1435_v4 = vpop.f32.mrf.mxu2 }
0x1c77   :  { %v1441_v7 = vadd.f32 %v1435_v4, %v9807_v14  ;;  %v6870_v4 = vld [vmem:[#allocation2] sm:$0xff] }
0x1c79   :  { %v5465_v9 = vpop.eup %5464  ;;  %5466 = vtanh.f32 %v1441_v7 }
0x1c7a   :  { %1492 = vmatmul.f32.vlgmr.msra.gmra.mxu3 %v5465_v9  ;;  %5468 = vrcp.f32 %v9808_v13 }
0x1c7f   :  { %v5467_v11 = vpop.eup %5466 }
0x1c80   :  { %1512 = vmatmul.f32.vlgmr.msrb.gmra.mxu0 %v5467_v11  ;;  %v5469_v46 = vpop.eup %5468  ;;  %v6873_v11 = vld [vmem:[#allocation2 + $0x8] sm:$0xff] }
0x1c81   :  { %v1519_v25 = vmul.f32 %v5469_v46, %v9808_v13  ;;  %vm1524_vm13 = vweird.f32 %v5469_v46 }
0x1c82   :  { %vm1525_vm1 = vmor %vm1523_vm0, %vm1524_vm13 }
0x1c83   :  { %v1520_v12 = vsub.f32 1.0, %v1519_v25 }
0x1c85   :  { %v1521_v3 = vmul.f32 %v5469_v46, %v1520_v12 }
0x1c87   :  { %v1522_v27 = vadd.f32 %v5469_v46, %v1521_v3 }
0x1c89   :  { %v1526_v41 = vsel %vm1525_vm1, %v5469_v46, %v1522_v27 }
0x1c8a   :  { %v1531_v52 = vsel %vm1528_vm2, %v1530_v48, %v1526_v41 }
0x1cfd   :  { %v1493_v60 = vpop.f32.mrf.mxu3  ;;  %v1513_v17 = vpop.f32.mrf.mxu0 }
0x1cfe   :  { %v1514_v10 = vadd.f32 %v1513_v17, %v1493_v60  ;;  %v9811_v17 = vmov 3  }
0x1d00   :  { %v1516_v1 = vmul.f32 1.442695, %v1514_v10 }
0x1d02   :  { %5470 = vpow2.f32 %v1516_v1 }
0x1d08   :  { %v6861_v50 = vpop.eup %5470 }
0x1d09   :  { %v1532_v35 = vmul.f32 %v6861_v50, %v1531_v52 }
0x1d0b   :  { %v1535_v43 = vmul.f32 %v1532_v35, %v9809_v38 }
0x1d0d   :  { %v1536_v47 = vsel %vm992_vm12, %v1535_v43, 0.0 }
0x1d0e   :  { %1537 = vadd.xlane.f32.xlu1 %v1536_v47 }
0x1d81   :  { %v1538_v62 = vpop.xlane.xlu1 %1537 }
0x1d82   :  { %v1539_v55 = vadd.f32 1e-12, %v1538_v62  ;;  %v9812_v62 = vmov 7  }
0x1d84   :  { %5472 = vrcp.f32 %v1539_v55  ;;  %v1551_v15 = vand.u32 2147483648, %v1539_v55  ;;  %v1549_v20 = vand.u32 2147483647, %v1539_v55  ;;  %vm1545_vm6 = vweird.f32 %v1539_v55 }
0x1d86   :  { %v1552_v44 = vor.u32 1.1754944e-38, %v1551_v15  ;;  %vm1550_vm9 = vcmp.eq.f32.partialorder %v1549_v20, 8.507059e+37 }
0x1d8a   :  { %v5473_v61 = vpop.eup %5472 }
0x1d8b   :  { %v1541_v21 = vmul.f32 %v5473_v61, %v1539_v55  ;;  %vm1546_vm5 = vweird.f32 %v5473_v61 }
0x1d8c   :  { %vm1547_vm8 = vmor %vm1545_vm6, %vm1546_vm5 }
0x1d8d   :  { %v1542_v23 = vsub.f32 1.0, %v1541_v21 }
0x1d8f   :  { %v1543_v16 = vmul.f32 %v5473_v61, %v1542_v23 }
0x1d91   :  { %v1544_v22 = vadd.f32 %v5473_v61, %v1543_v16 }
0x1d93   :  { %v1548_v30 = vsel %vm1547_vm8, %v5473_v61, %v1544_v22 }
0x1d94   :  { %v1553_v2 = vsel %vm1550_vm9, %v1552_v44, %v1548_v30 }
0x1d95   :  { %v1554_v26 = vmul.f32 %v1553_v2, %v1535_v43 }
0x1d97   :  { %1776 = vperm.xlu1 %5299, %v1554_v26   ;;  %5113 = vmatmul.msk.f32.vlgmr.msra.gmra.mxu1 %vm992_vm12, %v1554_v26 }
0x1d98   :  { %5114 = vmatmul.msk.f32.vlgmr.msra.gmra.mxu2 %vm992_vm12, %v1554_v26 }
0x1d9f   :  { %5302 = vset.pattern.permute.xlu1 %v9810_v5 }
0x1da0   :  { %1797 = vperm.xlu1 %5302, %v1554_v26  }
0x1da8   :  { %5305 = vset.pattern.permute.xlu1 %v9634_v31 }
0x1e09   :  { %v1777_v30 = vpop.permute.xlu1 %1776 }
0x1e12   :  { %v1798_v2 = vpop.permute.xlu1 %1797 }
0x1e14   :  { %v1577_v8 = vpop.f32.mrf.mxu1 }
0x1e15   :  { %v1602_v7 = vmul.f32 %v6870_v4, %v1577_v8 }
0x1e17   :  { %1652 = vmatmul.f32.vlgmr.msrb.gmra.mxu1 %v1602_v7  ;;  %v6896_v7 = vld [vmem:[%s9598_s2] sm:$0xff] }
0x1e18   :  { %9813 = vst [vmem:[#allocation18_spill] sm:$0xff] %v6896_v7 }
0x1e1b   :  { %v1597_v9 = vpop.f32.mrf.mxu2 }
0x1e1c   :  { %v1603_v46 = vmul.f32 %v6873_v11, %v1597_v9 }
0x1e1e   :  { %1672 = vmatmul.f32.vlgmr.msrb.gmra.mxu2 %v1603_v46 }
0x1e94   :  { %v1653_v25 = vpop.f32.mrf.mxu1 }
0x1ea1   :  { %v1673_v12 = vpop.f32.mrf.mxu2 }
0x1ea2   :  { %v1674_v60 = vadd.f32 %v1673_v12, %v1653_v25 }
0x1ea4   :  { %1678 = vrot.lane.b32.xlu0 %v1674_v60, %s5644_s17 }
0x1eac   :  { %1763 = vperm.xlu0 %5297, %v1554_v26  }
0x1eb4   :  { %5300 = vset.pattern.permute.xlu0 %v9811_v17 }
0x1eb5   :  { %1783 = vperm.xlu0 %5300, %v1554_v26  }
0x1ebd   :  { %5303 = vset.pattern.permute.xlu0 %v9636_v39  ;;  %v7201_v39 = vld [vmem:[%s9593_s9] sm:$0xff] }
0x1ebe   :  { %1804 = vperm.xlu0 %5303, %v1554_v26  }
0x1ec6   :  { %5307 = vset.pattern.permute.xlu0 %v9788_v19 }
0x1f16   :  { %v6880_v3 = vpop.permute.xlu0 %1678 }
0x1f17   :  { %1681 = vst.msk [vmem:[#allocation4] sm:$0xff] %vm185_vm14, %v6880_v3 }
0x1f18   :  { %1682 = vst.msk [vmem:[#allocation4] sm:$0xff] %vm255_vm15, %v6832_v59 }
0x1f1e   :  { %v1764_v8 = vpop.permute.xlu0 %1763 }
0x1f1f   :  { %v1683_v10 = vld [vmem:[#allocation4] sm:$0xff]  ;;  %v1766_v25 = vmul.f32 %v1764_v8, %v6896_v7 }
0x1f20   :  { %5115 = vmatmul.msk.f32.vlgmr.msrb.gmra.mxu3 %vm796_vm7, %v1683_v10  ;;  %v1779_v10 = vmul.f32 %v6712_v29, %v1777_v30  ;;  %v7450_v7 = vld [vmem:[%s9596_s11 + $0x10] sm:$0xff] }
0x1fa3   :  { %v1716_v1 = vpop.f32.mrf.mxu3 }
0x1fa4   :  { %v1738_v27 = vadd.f32 %v1716_v1, %v6694_v36  ;;  %v5116_v32 = vmul.f32 -1.442695, %v1716_v1  ;;  %v1784_v1 = vpop.permute.xlu0 %1783 }
0x1fa6   :  { %1739 = vmax.xlane.f32.xlu2 %v1738_v27  ;;  %5474 = vpow2.f32 %v5116_v32 }
0x1fac   :  { %v5475_v34 = vpop.eup %5474 }
0x1fad   :  { %v1722_v41 = vadd.f32 1.0, %v5475_v34 }
0x1faf   :  { %5476 = vrcp.f32 %v1722_v41  ;;  %v1734_v47 = vand.u32 2147483648, %v1722_v41  ;;  %vm1728_vm11 = vweird.f32 %v1722_v41  ;;  %v1732_v55 = vand.u32 2147483647, %v1722_v41 }
0x1fb1   :  { %v1735_v21 = vor.u32 1.1754944e-38, %v1734_v47  ;;  %vm1733_vm0 = vcmp.eq.f32.partialorder %v1732_v55, 8.507059e+37 }
0x1fb5   :  { %v5477_v48 = vpop.eup %5476 }
0x1fb6   :  { %v1724_v52 = vmul.f32 %v5477_v48, %v1722_v41  ;;  %vm1729_vm10 = vweird.f32 %v5477_v48  ;;  %v1786_v41 = vmul.f32 %v6719_v54, %v1784_v1 }
0x1fb7   :  { %vm1730_vm13 = vmor %vm1728_vm11, %vm1729_vm10 }
0x1fb8   :  { %v1725_v35 = vsub.f32 1.0, %v1724_v52 }
0x1fba   :  { %v1726_v38 = vmul.f32 %v5477_v48, %v1725_v35 }
0x1fbc   :  { %v1727_v43 = vadd.f32 %v5477_v48, %v1726_v38 }
0x1fbe   :  { %1769 = vperm.xlu2 %5298, %v1554_v26   ;;  %v1731_v61 = vsel %vm1730_vm13, %v5477_v48, %v1727_v43 }
0x1fbf   :  { %v1736_v23 = vsel %vm1733_vm0, %v1735_v21, %v1731_v61  ;;  %v1800_v61 = vmul.f32 %v6731_v49, %v1798_v2  ;;  %v1805_v21 = vpop.permute.xlu0 %1804 }
0x1fc0   :  { %v1822_v15 = vsub.f32 1.0, %v1736_v23 }
0x1fc6   :  { %5301 = vset.pattern.permute.xlu2 %v9638_v37  ;;  %v7206_v37 = vld [vmem:[%s9593_s9 + $0x98] sm:$0xff] }
0x1fc7   :  { %1790 = vperm.xlu2 %5301, %v1554_v26  }
0x1fcf   :  { %5304 = vset.pattern.permute.xlu2 %v9812_v62 }
0x1fd0   :  { %1811 = vperm.xlu2 %5304, %v1554_v26  }
0x1fd8   :  { %5306 = vset.pattern.permute.xlu2 %v9634_v31  ;;  %v7194_v31 = vld [vmem:[%s9593_s9 + $0xa0] sm:$0xff] }
0x1fd9   :  { %1825 = vperm.xlu2 %5306, %v1822_v15  }
0x1fe1   :  { %5310 = vset.pattern.permute.xlu2 %v9811_v17  ;;  %v7224_v17 = vld [vmem:[%s9593_s9 + $0x80] sm:$0xff] }
0x2019   :  { %v1740_v16 = vpop.xlane.xlu2 %1739 }
0x201a   :  { %v1741_v20 = vsub.f32 %v1738_v27, %v1740_v16  ;;  %v1807_v16 = vmul.f32 %v6737_v63, %v1805_v21  ;;  %v6917_v63 = vld [vmem:[%s9591_s5 + $0x58] sm:$0xff] }
0x201b   :  { %1869 = vmatpush.msra.mxu0 %v6917_v63 }
0x201c   :  { %v1742_v22 = vmul.f32 1.442695, %v1741_v20 }
0x201e   :  { %5478 = vpow2.f32 %v1742_v22 }
0x2021   :  { %v1770_v26 = vpop.permute.xlu2 %1769 }
0x2022   :  { %v1772_v9 = vmul.f32 %v6704_v24, %v1770_v26 }
0x2024   :  { %v5479_v44 = vpop.eup %5478  ;;  %v1773_v60 = vadd.f32 %v1772_v9, %v1766_v25 }
0x2025   :  { %1744 = vadd.xlane.f32.xlu1 %v5479_v44 }
0x2026   :  { %v1780_v32 = vadd.f32 %v1779_v10, %v1773_v60  ;;  %v6935_v10 = vld [vmem:[%s9591_s5 + $0x20] sm:$0xff] }
0x2027   :  { %9815 = vst [vmem:[#allocation24_spill] sm:$0xff] %v6935_v10 }
0x2028   :  { %v1787_v35 = vadd.f32 %v1786_v41, %v1780_v32 }
0x2029   :  { %v1791_v12 = vpop.permute.xlu2 %1790 }
0x202a   :  { %v1793_v48 = vmul.f32 %v6725_v40, %v1791_v12  ;;  %v6922_v12 = vld [vmem:[%s9591_s5 + $0x50] sm:$0xff] }
0x202b   :  { %1870 = vmatpush.msra.mxu0 %v6922_v12 }
0x202c   :  { %v1794_v43 = vadd.f32 %v1793_v48, %v1787_v35 }
0x202d   :  { %1871 = vmatpush.msra.mxu0 %v6753_v0  ;;  %v6941_v0 = vld [vmem:[%s9591_s5 + $0x18] sm:$0xff] }
0x202e   :  { %v1801_v54 = vadd.f32 %v1800_v61, %v1794_v43  ;;  %9816 = vst [vmem:[#allocation6_spill] sm:$0xff] %v6941_v0 }
0x202f   :  { %1872 = vmatpush.msra.mxu0 %v6759_v51  ;;  %v6946_v51 = vld [vmem:[%s9591_s5 + $0x10] sm:$0xff] }
0x2030   :  { %v1808_v30 = vadd.f32 %v1807_v16, %v1801_v54  ;;  %9817 = vst [vmem:[#allocation11_spill] sm:$0xff] %v6946_v51 }
0x2031   :  { %v1812_v38 = vpop.permute.xlu2 %1811  ;;  %1873 = vmatpush.msra.mxu0 %v6765_v53  ;;  %v6952_v53 = vld [vmem:[%s9591_s5 + $0x8] sm:$0xff] }
0x2032   :  { %9818 = vst [vmem:[#allocation12_spill] sm:$0xff] %v6952_v53 }
0x2033   :  { %1874 = vmatpush.msra.mxu0 %v6771_v56  ;;  %v6958_v56 = vld [vmem:[%s9591_s5] sm:$0xff] }
0x2034   :  { %9819 = vst [vmem:[#allocation13_spill] sm:$0xff] %v6958_v56 }
0x2035   :  { %1875 = vmatpush.msra.mxu0 %v6777_v58 }
0x2037   :  { %1876 = vmatpush.msra.mxu0 %v6935_v10 }
0x2039   :  { %v1826_v49 = vpop.permute.xlu2 %1825  ;;  %1877 = vmatpush.msra.mxu0 %v6941_v0  ;;  %v7234_v0 = vadd.f32 %v6861_v50, %v9808_v13 }
0x203b   :  { %1878 = vmatpush.msra.mxu0 %v6946_v51  ;;  %9821 = vst [vmem:[#allocation15_spill] sm:$0xff] %v7234_v0  ;;  %v2064_v13 = vand.u32 2147483647, %v7234_v0 }
0x203d   :  { %1879 = vmatpush.msra.mxu0 %v6952_v53 }
0x203e   :  { %1818 = vperm.xlu1 %5305, %v1736_v23   ;;  %v6907_v23 = vld [vmem:[%s9598_s2 + $0x38] sm:$0xff] }
0x203f   :  { %9814 = vst [vmem:[#allocation22_spill] sm:$0xff] %v6907_v23  ;;  %v1814_v20 = vmul.f32 %v6907_v23, %v1812_v38  ;;  %1880 = vmatpush.msra.mxu0 %v6958_v56 }
0x2041   :  { %v1815_v2 = vadd.f32 %v1814_v20, %v1808_v30 }
0x2043   :  { %v1828_v9 = vmul.f32 %v1826_v49, %v1815_v2 }
0x2046   :  { %5308 = vset.pattern.permute.xlu1 %v9642_v57  ;;  %v7218_v57 = vld [vmem:[%s9593_s9 + $0x88] sm:$0xff] }
0x2098   :  { %v1745_v46 = vpop.xlane.xlu1 %1744 }
0x2099   :  { %5480 = vrcp.f32 %v1745_v46  ;;  %v1757_v55 = vand.u32 2147483648, %v1745_v46  ;;  %vm1751_vm2 = vweird.f32 %v1745_v46  ;;  %v1755_v29 = vand.u32 2147483647, %v1745_v46 }
0x209b   :  { %v1758_v15 = vor.u32 1.1754944e-38, %v1757_v55  ;;  %vm1756_vm6 = vcmp.eq.f32.partialorder %v1755_v29, 8.507059e+37 }
0x209f   :  { %v5481_v27 = vpop.eup %5480 }
0x20a0   :  { %v1747_v34 = vmul.f32 %v5481_v27, %v1745_v46  ;;  %vm1752_vm1 = vweird.f32 %v5481_v27 }
0x20a1   :  { %vm1753_vm5 = vmor %vm1751_vm2, %vm1752_vm1 }
0x20a2   :  { %v1748_v52 = vsub.f32 1.0, %v1747_v34 }
0x20a4   :  { %v1749_v24 = vmul.f32 %v5481_v27, %v1748_v52 }
0x20a6   :  { %v1750_v47 = vadd.f32 %v5481_v27, %v1749_v24 }
0x20a8   :  { %v1754_v40 = vsel %vm1753_vm5, %v5481_v27, %v1750_v47 }
0x20a9   :  { %v1759_v22 = vsel %vm1756_vm6, %v1758_v15, %v1754_v40  ;;  %vm2060_vm6 = vweird.f32 %v7234_v0 }
0x20aa   :  { %v1760_v26 = vmul.f32 %v5479_v44, %v1759_v22 }
0x20b0   :  { %v1819_v8 = vpop.permute.xlu1 %1818 }
0x20b1   :  { %v1821_v46 = vmul.f32 %v1819_v8, %v1760_v26  ;;  %v6985_v8 = vld [vmem:[%s9592_s7 + $0x38] sm:$0xff] }
0x20b2   :  { %1967 = vmatpush.msra.mxu2 %v6985_v8 }
0x20b3   :  { %v1829_v25 = vadd.f32 %v1828_v9, %v1821_v46  ;;  %v6990_v9 = vld [vmem:[%s9592_s7 + $0x30] sm:$0xff]  ;;  %v7002_v46 = vld [vmem:[%s9592_s7 + $0x20] sm:$0xff] }
0x20b4   :  { %1947 = vmatpush.msra.mxu1 %v6990_v9 }
0x20b5   :  { %5124 = vst [vmem:[%s9599_s12 + $0x8] sm:$0xff] %v1829_v25  ;;  %1832 = vmax.xlane.f32.xlu1 %v1829_v25 }
0x20b6   :  { %1948 = vmatpush.msra.mxu1 %v7002_v46 }
0x2128   :  { %v1833_v44 = vpop.xlane.xlu1 %1832 }
0x2129   :  { %vm1834_vm8 = vcmp.eq.f32.partialorder %v1829_v25, %v1833_v44  ;;  %v7007_v25 = vld [vmem:[%s9592_s7 + $0x18] sm:$0xff]  ;;  %v7012_v44 = vld [vmem:[%s9592_s7 + $0x10] sm:$0xff] }
0x212a   :  { %v1835_v60 = vsel %vm1834_vm8, %v6747_v45, 128.0  ;;  %1949 = vmatpush.msra.mxu1 %v7012_v44 }
0x212b   :  { %1836 = vmin.xlane.f32.xlu0 %v1835_v60  ;;  %v7019_v60 = vld [vmem:[%s9592_s7 + $0x8] sm:$0xff] }
0x219e   :  { %v1837_v58 = vpop.xlane.xlu0 %1836 }
0x219f   :  { %vm5239_vm9 = vcmp.lt.s32.totalorder %v1837_v58, 0  ;;  %v5240_v1 = vceil.f32 %v1837_v58  ;;  %v5241_v27 = vfloor.f32 %v1837_v58  ;;  %v7024_v58 = vld [vmem:[%s9592_s7] sm:$0xff] }
0x21a0   :  { %1950 = vmatpush.msra.mxu1 %v7024_v58 }
0x21a1   :  { %v5242_v32 = vsel %vm5239_vm9, %v5240_v1, %v5241_v27  ;;  %vm2065_vm9 = vcmp.eq.f32.partialorder %v2064_v13, 8.507059e+37 }
0x21a2   :  { %v5243_v34 = vcvt.f32.s32 %v5242_v32  ;;  %v7037_v32 = vld [vmem:[%s9593_s9 + $0x78] sm:$0xff] }
0x21a3   :  { %2013 = vmatpush.msrb.mxu1 %v7037_v32 }
0x21a4   :  { %5125 = vst.msk [vmem:[%s9600_s13 + $0x8] sm:$0xff] %vm1302_vm3, %v5243_v34  ;;  %vm1841_vm10 = vcmp.ge.s32.totalorder %v5243_v34, 32 }
0x21a5   :  { %v1842_v41 = vsel %vm1841_vm10, 1, %v5243_v34  ;;  %v7042_v34 = vld [vmem:[%s9593_s9 + $0x70] sm:$0xff] }
0x21a6   :  { %vm1843_vm11 = vcmp.eq.s32.totalorder %v1842_v41, %v5964_v6  ;;  %v7048_v41 = vld [vmem:[%s9593_s9 + $0xf8] sm:$0xff]  ;;  %2014 = vmatpush.msrb.mxu1 %v7042_v34 }
0x21a7   :  { %v5126_v48 = vsel %vm1843_vm11, 1.0, %v9786_v33 }
0x21a8   :  { %1846 = vst.msk [vmem:[#allocation4] sm:$0xff] %vm48_vm4, %v5126_v48 }
0x21a9   :  { %1847 = vst.msk [vmem:[#allocation4] sm:$0xff] %vm185_vm14, %v6880_v3 }
0x21aa   :  { %1848 = vst.msk [vmem:[#allocation4] sm:$0xff] %vm255_vm15, %v6832_v59 }
0x21b1   :  { %v1849_v52 = vld [vmem:[#allocation4] sm:$0xff] }
0x21b2   :  { %5127 = vmatmul.msk.f32.vlgmr.msra.gmra.mxu0 %vm796_vm7, %v1849_v52  ;;  %2213 = vst.msk [vmem:[#allocation4] sm:$0xff] %vm48_vm4, %v5126_v48  ;;  %v7053_v48 = vld [vmem:[%s9593_s9 + $0x68] sm:$0xff]  ;;  %v7059_v52 = vld [vmem:[%s9593_s9 + $0xf0] sm:$0xff] }
0x21b3   :  { %2015 = vmatpush.msrb.mxu1 %v7053_v48 }
0x222f   :  { %v1882_v35 = vpop.f32.mrf.mxu0 }
0x2230   :  { %5482 = vtanh.f32 %v1882_v35  ;;  %v5128_v24 = vmul.f32 -1.442695, %v1882_v35  ;;  %v7065_v35 = vld [vmem:[%s9593_s9 + $0xe8] sm:$0xff] }
0x2232   :  { %5484 = vpow2.f32 %v5128_v24  ;;  %v7077_v24 = vld [vmem:[%s9593_s9 + $0xe0] sm:$0xff] }
0x2236   :  { %v5483_v38 = vpop.eup %5482 }
0x2237   :  { %1907 = vrot.lane.b32.xlu2 %v5483_v38, %s5644_s17  ;;  %v7070_v38 = vld [vmem:[%s9593_s9 + $0x60] sm:$0xff] }
0x2238   :  { %v5485_v43 = vpop.eup %5484  ;;  %2016 = vmatpush.msrb.mxu1 %v7070_v38 }
0x2239   :  { %v1888_v47 = vadd.f32 1.0, %v5485_v43  ;;  %v7082_v43 = vld [vmem:[%s9593_s9 + $0x58] sm:$0xff] }
0x223a   :  { %2017 = vmatpush.msrb.mxu1 %v7082_v43 }
0x223b   :  { %5486 = vrcp.f32 %v1888_v47  ;;  %v1900_v21 = vand.u32 2147483648, %v1888_v47  ;;  %vm1894_vm0 = vweird.f32 %v1888_v47  ;;  %v1898_v54 = vand.u32 2147483647, %v1888_v47 }
0x223d   :  { %v1901_v15 = vor.u32 1.1754944e-38, %v1900_v21  ;;  %vm1899_vm2 = vcmp.eq.f32.partialorder %v1898_v54, 8.507059e+37  ;;  %v7125_v21 = vld [vmem:[%s9593_s9 + $0xc0] sm:$0xff]  ;;  %v7130_v54 = vld [vmem:[%s9593_s9 + $0x38] sm:$0xff] }
0x2241   :  { %v5487_v55 = vpop.eup %5486 }
0x2242   :  { %v1890_v3 = vmul.f32 %v5487_v55, %v1888_v47  ;;  %vm1895_vm13 = vweird.f32 %v5487_v55  ;;  %v7089_v47 = vld [vmem:[%s9593_s9 + $0xd8] sm:$0xff] }
0x2243   :  { %vm1896_vm1 = vmor %vm1894_vm0, %vm1895_vm13 }
0x2244   :  { %v1891_v61 = vsub.f32 1.0, %v1890_v3  ;;  %v7101_v3 = vld [vmem:[%s9593_s9 + $0xd0] sm:$0xff] }
0x2246   :  { %v1892_v29 = vmul.f32 %v5487_v55, %v1891_v61  ;;  %v7106_v61 = vld [vmem:[%s9593_s9 + $0x48] sm:$0xff] }
0x2248   :  { %v1893_v59 = vadd.f32 %v5487_v55, %v1892_v29  ;;  %v7113_v29 = vld [vmem:[%s9593_s9 + $0xc8] sm:$0xff] }
0x224a   :  { %v1897_v40 = vsel %vm1896_vm1, %v5487_v55, %v1893_v59  ;;  %v7094_v55 = vld [vmem:[%s9593_s9 + $0x50] sm:$0xff]  ;;  %v7118_v59 = vld [vmem:[%s9593_s9 + $0x40] sm:$0xff] }
0x224b   :  { %v1902_v20 = vsel %vm1899_vm2, %v1901_v15, %v1897_v40  ;;  %2018 = vmatpush.msrb.mxu1 %v7094_v55  ;;  %v7137_v40 = vld [vmem:[%s9593_s9 + $0x30] sm:$0xff]  ;;  %v7144_v15 = vld [vmem:[%s9593_s9 + $0x28] sm:$0xff] }
0x224c   :  { %v1905_v30 = vmul.f32 %v1902_v20, %v6828_v42  ;;  %v6995_v42 = vld [vmem:[%s9592_s7 + $0x28] sm:$0xff] }
0x224d   :  { %1968 = vmatpush.msra.mxu2 %v6995_v42  ;;  %2019 = vmatpush.msrb.mxu1 %v7106_v61 }
0x224f   :  { %1969 = vmatpush.msra.mxu2 %v7007_v25  ;;  %2020 = vmatpush.msrb.mxu1 %v7118_v59 }
0x2251   :  { %1970 = vmatpush.msra.mxu2 %v7019_v60  ;;  %2021 = vmatpush.msrb.mxu1 %v7130_v54 }
0x2253   :  { %2033 = vmatpush.msrb.mxu2 %v7048_v41  ;;  %2022 = vmatpush.msrb.mxu1 %v7137_v40 }
0x2255   :  { %2034 = vmatpush.msrb.mxu2 %v7059_v52  ;;  %2023 = vmatpush.msrb.mxu1 %v7144_v15 }
0x2257   :  { %2035 = vmatpush.msrb.mxu2 %v7065_v35 }
0x2259   :  { %2036 = vmatpush.msrb.mxu2 %v7077_v24 }
0x225b   :  { %2037 = vmatpush.msrb.mxu2 %v7089_v47 }
0x225d   :  { %2038 = vmatpush.msrb.mxu2 %v7101_v3 }
0x225f   :  { %2039 = vmatpush.msrb.mxu2 %v7113_v29 }
0x2261   :  { %2040 = vmatpush.msrb.mxu2 %v7125_v21 }
0x2291   :  { %v1908_v16 = vpop.permute.xlu2 %1907 }
0x2292   :  { %v1910_v22 = vmul.f32 %v1908_v16, %v1902_v20 }
0x2294   :  { %1912 = vrot.lane.b32.xlu2 %v1910_v22, %s5644_s17  ;;  %v7158_v22 = vld [vmem:[%s9593_s9 + $0xb8] sm:$0xff] }
0x2295   :  { %2041 = vmatpush.msrb.mxu2 %v7158_v22 }
0x22ee   :  { %v1913_v49 = vpop.permute.xlu2 %1912 }
0x22ef   :  { %v6978_v2 = vadd.f32 %v1913_v49, %v1905_v30  ;;  %v7165_v30 = vld [vmem:[%s9593_s9 + $0x18] sm:$0xff]  ;;  %v7170_v49 = vld [vmem:[%s9593_s9 + $0xb0] sm:$0xff] }
0x22f0   :  { %2042 = vmatpush.msrb.mxu2 %v7170_v49 }
0x22f1   :  { %9820 = vst [vmem:[#allocation14_spill] sm:$0xff] %v6978_v2  ;;  %5488 = vtanh.f32 %v6978_v2 }
0x22f7   :  { %v5489_v26 = vpop.eup %5488 }
0x22f8   :  { %1918 = vrot.lane.b32.xlu2 %v5489_v26, %s5644_s17  ;;  %v7177_v26 = vld [vmem:[%s9593_s9 + $0x10] sm:$0xff] }
0x2352   :  { %v1919_v1 = vpop.permute.xlu2 %1918 }
0x2353   :  { %v7030_v27 = vmul.f32 %v1919_v1, %v1902_v20  ;;  %v7153_v20 = vld [vmem:[%s9593_s9 + $0x20] sm:$0xff]  ;;  %v7182_v1 = vld [vmem:[%s9593_s9 + $0xa8] sm:$0xff] }
0x2354   :  { %2024 = vmatpush.msrb.mxu1 %v7153_v20  ;;  %2043 = vmatpush.msrb.mxu2 %v7182_v1 }
0x2355   :  { %1931 = vrot.lane.b32.xlu2 %v7030_v27, %s5645_s18 }
0x2356   :  { %2025 = vmatpush.msrb.mxu1 %v7165_v30  ;;  %2044 = vmatpush.msrb.mxu2 %v7194_v31 }
0x2358   :  { %2026 = vmatpush.msrb.mxu1 %v7177_v26  ;;  %2045 = vmatpush.msrb.mxu2 %v7206_v37 }
0x235a   :  { %2046 = vmatpush.msrb.mxu2 %v7213_v28 }
0x235c   :  { %2047 = vmatpush.msrb.mxu2 %v7218_v57 }
0x235e   :  { %2048 = vmatpush.msrb.mxu2 %v7224_v17 }
0x23af   :  { %v1932_v16 = vpop.permute.xlu2 %1931 }
0x23b0   :  { %5129 = vmatmul.msk.f32.vlgmr.msra.gmra.mxu1 %vm48_vm4, %v1932_v16  ;;  %5130 = vmatmul.msk.f32.vlgmr.msra.gmra.mxu2 %vm48_vm4, %v1932_v16  ;;  %v7189_v16 = vld [vmem:[%s9593_s9 + $0x8] sm:$0xff] }
0x23b1   :  { %2027 = vmatpush.msrb.mxu1 %v7189_v16  ;;  %2406 = vmatpush.msra.mxu2 %v6917_v63 }
0x23b3   :  { %2028 = vmatpush.msrb.mxu1 %v7201_v39  ;;  %2407 = vmatpush.msra.mxu2 %v6922_v12 }
0x242d   :  { %v1952_v2 = vpop.f32.mrf.mxu1 }
0x242e   :  { %v1977_v33 = vadd.f32 %v1952_v2, %v9806_v18 }
0x2430   :  { %5490 = vtanh.f32 %v1977_v33 }
0x2433   :  { %v1972_v6 = vpop.f32.mrf.mxu2 }
0x2434   :  { %v1978_v56 = vadd.f32 %v1972_v6, %v9807_v14 }
0x2436   :  { %v5491_v53 = vpop.eup %5490  ;;  %5492 = vtanh.f32 %v1978_v56 }
0x2437   :  { %2029 = vmatmul.f32.vlgmr.msrb.gmra.mxu1 %v5491_v53  ;;  %5494 = vrcp.f32 %v7234_v0 }
0x243c   :  { %v5493_v51 = vpop.eup %5492 }
0x243d   :  { %2049 = vmatmul.f32.vlgmr.msrb.gmra.mxu2 %v5493_v51  ;;  %v5495_v63 = vpop.eup %5494  ;;  %v2066_v51 = vand.u32 2147483648, %v7234_v0 }
0x243e   :  { %v2056_v12 = vmul.f32 %v5495_v63, %v7234_v0  ;;  %vm2061_vm5 = vweird.f32 %v5495_v63 }
0x243f   :  { %vm2062_vm8 = vmor %vm2060_vm6, %vm2061_vm5  ;;  %v2067_v53 = vor.u32 1.1754944e-38, %v2066_v51 }
0x2440   :  { %v2057_v10 = vsub.f32 1.0, %v2056_v12 }
0x2442   :  { %v2058_v18 = vmul.f32 %v5495_v63, %v2057_v10 }
0x2444   :  { %v2059_v14 = vadd.f32 %v5495_v63, %v2058_v18 }
0x2446   :  { %v2063_v50 = vsel %vm2062_vm8, %v5495_v63, %v2059_v14  ;;  %v7254_v14 = vld [vmem:[%s9595_s10] sm:$0xff]  ;;  %v7259_v63 = vld [vmem:[%s9595_s10 + $0x8] sm:$0xff] }
0x2447   :  { %v2068_v12 = vsel %vm2065_vm9, %v2067_v53, %v2063_v50  ;;  %9824 = vst [vmem:[#allocation19_spill] sm:$0xff] %v7259_v63  ;;  %2112 = vmatpush.msra.mxu3 %v7254_v14  ;;  %2132 = vmatpush.msrb.mxu0 %v7259_v63  ;;  %v7426_v63 = vld [vmem:[%s9596_s11 + $0x20] sm:$0xff] }
0x24b4   :  { %v2030_v2 = vpop.f32.mrf.mxu1 }
0x24c0   :  { %v2050_v33 = vpop.f32.mrf.mxu2 }
0x24c1   :  { %v2051_v45 = vadd.f32 %v2050_v33, %v2030_v2 }
0x24c3   :  { %v2053_v6 = vmul.f32 1.442695, %v2051_v45  ;;  %v7246_v45 = vld [vmem:[%s9594_s1] sm:$0xff] }
0x24c4   :  { %9823 = vst [vmem:[#allocation17_spill] sm:$0xff] %v7246_v45 }
0x24c5   :  { %5496 = vpow2.f32 %v2053_v6 }
0x24cb   :  { %v7241_v56 = vpop.eup %5496 }
0x24cc   :  { %9822 = vst [vmem:[#allocation16_spill] sm:$0xff] %v7241_v56  ;;  %v2069_v18 = vmul.f32 %v7241_v56, %v2068_v12 }
0x24ce   :  { %v2072_v10 = vmul.f32 %v7246_v45, %v2069_v18 }
0x24d0   :  { %v2073_v2 = vsel %vm992_vm12, %v2072_v10, 0.0 }
0x24d1   :  { %2074 = vadd.xlane.f32.xlu2 %v2073_v2 }
0x2544   :  { %v2075_v33 = vpop.xlane.xlu2 %2074 }
0x2545   :  { %v2076_v6 = vadd.f32 1e-12, %v2075_v33  ;;  %v9825_v33 = vmov 1  }
0x2547   :  { %5498 = vrcp.f32 %v2076_v6  ;;  %v2088_v53 = vand.u32 2147483648, %v2076_v6  ;;  %v2086_v18 = vand.u32 2147483647, %v2076_v6  ;;  %vm2082_vm11 = vweird.f32 %v2076_v6 }
0x2549   :  { %v2089_v45 = vor.u32 1.1754944e-38, %v2088_v53  ;;  %vm2087_vm0 = vcmp.eq.f32.partialorder %v2086_v18, 8.507059e+37  ;;  %v7322_v53 = vld [vmem:[%s9596_s11 + $0xd0] sm:$0xff]  ;;  %v7334_v18 = vld [vmem:[%s9596_s11 + $0xc8] sm:$0xff] }
0x254a   :  { %9831 = vst [vmem:[#allocation9_spill] sm:$0xff] %v7322_v53 }
0x254b   :  { %9832 = vst [vmem:[#allocation28_spill] sm:$0xff] %v7334_v18 }
0x254d   :  { %v5499_v51 = vpop.eup %5498 }
0x254e   :  { %v2078_v13 = vmul.f32 %v5499_v51, %v2076_v6  ;;  %vm2083_vm10 = vweird.f32 %v5499_v51  ;;  %v7298_v6 = vld [vmem:[%s9596_s11 + $0xe0] sm:$0xff] }
0x254f   :  { %vm2084_vm13 = vmor %vm2082_vm11, %vm2083_vm10  ;;  %9829 = vst [vmem:[#allocation25_spill] sm:$0xff] %v7298_v6 }
0x2550   :  { %v2079_v50 = vsub.f32 1.0, %v2078_v13  ;;  %v7310_v13 = vld [vmem:[%s9596_s11 + $0xd8] sm:$0xff] }
0x2551   :  { %9830 = vst [vmem:[#allocation10_spill] sm:$0xff] %v7310_v13 }
0x2552   :  { %v2080_v12 = vmul.f32 %v5499_v51, %v2079_v50  ;;  %v7315_v50 = vld [vmem:[%s9596_s11 + $0x68] sm:$0xff] }
0x2554   :  { %v2081_v2 = vadd.f32 %v5499_v51, %v2080_v12  ;;  %v7327_v12 = vld [vmem:[%s9596_s11 + $0x60] sm:$0xff] }
0x2556   :  { %v2085_v56 = vsel %vm2084_vm13, %v5499_v51, %v2081_v2  ;;  %v7305_v51 = vld [vmem:[%s9596_s11 + $0x70] sm:$0xff]  ;;  %v7339_v2 = vld [vmem:[%s9596_s11 + $0x58] sm:$0xff] }
0x2557   :  { %v2090_v0 = vsel %vm2087_vm0, %v2089_v45, %v2085_v56  ;;  %v7276_v56 = vld [vmem:[%s9596_s11 + $0xf8] sm:$0xff]  ;;  %v7288_v45 = vld [vmem:[%s9596_s11 + $0xe8] sm:$0xff] }
0x2558   :  { %v7263_v23 = vmul.f32 %v2090_v0, %v2072_v10  ;;  %9826 = vst [vmem:[#allocation20_spill] sm:$0xff] %v7276_v56  ;;  %v7281_v0 = vld [vmem:[%s9596_s11 + $0xf0] sm:$0xff]  ;;  %2193 = vmatpush.msra.mxu0 %v7276_v56  ;;  %v7293_v10 = vld [vmem:[%s9596_s11 + $0x78] sm:$0xff]  ;;  %v7411_v56 = vld [vmem:[%s9596_s11 + $0x28] sm:$0xff] }
0x2559   :  { %9827 = vst [vmem:[#allocation21_spill] sm:$0xff] %v7281_v0  ;;  %2173 = vmatpush.msrb.mxu3 %v7293_v10 }
0x255a   :  { %2320 = vperm.xlu2 %5310, %v7263_v23   ;;  %5131 = vmatmul.msk.f32.vlgmr.msra.gmra.mxu3 %vm992_vm12, %v7263_v23  ;;  %9828 = vst [vmem:[#allocation23_spill] sm:$0xff] %v7288_v45 }
0x255b   :  { %5132 = vmatmul.msk.f32.vlgmr.msrb.gmra.mxu0 %vm992_vm12, %v7263_v23  ;;  %2174 = vmatpush.msrb.mxu3 %v7305_v51 }
0x255c   :  { %2194 = vmatpush.msra.mxu0 %v7281_v0  ;;  %v7399_v0 = vld [vmem:[%s9596_s11 + $0x30] sm:$0xff] }
0x255d   :  { %2175 = vmatpush.msrb.mxu3 %v7315_v50 }
0x255e   :  { %2195 = vmatpush.msra.mxu0 %v7288_v45  ;;  %v7387_v45 = vld [vmem:[%s9596_s11 + $0x38] sm:$0xff] }
0x255f   :  { %2176 = vmatpush.msrb.mxu3 %v7327_v12 }
0x2560   :  { %2196 = vmatpush.msra.mxu0 %v7298_v6  ;;  %v7375_v6 = vld [vmem:[%s9596_s11 + $0x40] sm:$0xff] }
0x2561   :  { %2177 = vmatpush.msrb.mxu3 %v7339_v2 }
0x2562   :  { %5314 = vset.pattern.permute.xlu2 %v9812_v62  ;;  %2197 = vmatpush.msra.mxu0 %v7310_v13  ;;  %v7351_v62 = vld [vmem:[%s9596_s11 + $0x50] sm:$0xff]  ;;  %v7363_v13 = vld [vmem:[%s9596_s11 + $0x48] sm:$0xff] }
0x2563   :  { %2348 = vperm.xlu2 %5314, %v7263_v23   ;;  %2178 = vmatpush.msrb.mxu3 %v7351_v62 }
0x2564   :  { %2198 = vmatpush.msra.mxu0 %v7322_v53  ;;  %v7358_v53 = vld [vmem:[%s9596_s11 + $0xb8] sm:$0xff] }
0x2565   :  { %9834 = vst [vmem:[#allocation30_spill] sm:$0xff] %v7358_v53  ;;  %2179 = vmatpush.msrb.mxu3 %v7363_v13 }
0x2566   :  { %2199 = vmatpush.msra.mxu0 %v7334_v18  ;;  %v7370_v18 = vld [vmem:[%s9596_s11 + $0xb0] sm:$0xff] }
0x2567   :  { %9835 = vst [vmem:[#allocation31_spill] sm:$0xff] %v7370_v18  ;;  %2180 = vmatpush.msrb.mxu3 %v7375_v6 }
0x2569   :  { %2181 = vmatpush.msrb.mxu3 %v7387_v45 }
0x256b   :  { %5318 = vset.pattern.permute.xlu2 %v9825_v33  ;;  %v7346_v33 = vld [vmem:[%s9596_s11 + $0xc0] sm:$0xff]  ;;  %2182 = vmatpush.msrb.mxu3 %v7399_v0 }
0x256c   :  { %9833 = vst [vmem:[#allocation29_spill] sm:$0xff] %v7346_v33  ;;  %2200 = vmatpush.msra.mxu0 %v7346_v33  ;;  %v7382_v33 = vld [vmem:[%s9596_s11 + $0xa8] sm:$0xff] }
0x256d   :  { %9836 = vst [vmem:[#allocation32_spill] sm:$0xff] %v7382_v33  ;;  %2183 = vmatpush.msrb.mxu3 %v7411_v56 }
0x256e   :  { %2201 = vmatpush.msra.mxu0 %v7358_v53  ;;  %v7394_v53 = vld [vmem:[%s9596_s11 + $0xa0] sm:$0xff] }
0x256f   :  { %9837 = vst [vmem:[#allocation33_spill] sm:$0xff] %v7394_v53  ;;  %2184 = vmatpush.msrb.mxu3 %v7426_v63 }
0x2570   :  { %2202 = vmatpush.msra.mxu0 %v7370_v18  ;;  %v7406_v18 = vld [vmem:[%s9596_s11 + $0x98] sm:$0xff] }
0x2571   :  { %9838 = vst [vmem:[#allocation34_spill] sm:$0xff] %v7406_v18 }
0x2572   :  { %2203 = vmatpush.msra.mxu0 %v7382_v33  ;;  %v7418_v33 = vld [vmem:[%s9596_s11 + $0x90] sm:$0xff] }
0x2573   :  { %9839 = vst [vmem:[#allocation35_spill] sm:$0xff] %v7418_v33 }
0x2574   :  { %2204 = vmatpush.msra.mxu0 %v7394_v53  ;;  %v7431_v53 = vld [vmem:[%s9596_s11 + $0x88] sm:$0xff] }
0x2575   :  { %9840 = vst [vmem:[#allocation36_spill] sm:$0xff] %v7431_v53 }
0x2576   :  { %2205 = vmatpush.msra.mxu0 %v7406_v18  ;;  %v7438_v18 = vld [vmem:[%s9596_s11 + $0x18] sm:$0xff] }
0x2577   :  { %2185 = vmatpush.msrb.mxu3 %v7438_v18 }
0x2578   :  { %2206 = vmatpush.msra.mxu0 %v7418_v33  ;;  %v7443_v33 = vld [vmem:[%s9596_s11 + $0x80] sm:$0xff] }
0x2579   :  { %9841 = vst [vmem:[#allocation37_spill] sm:$0xff] %v7443_v33  ;;  %2186 = vmatpush.msrb.mxu3 %v7450_v7 }
0x257a   :  { %2207 = vmatpush.msra.mxu0 %v7431_v53  ;;  %v7457_v53 = vld [vmem:[%s9596_s11 + $0x8] sm:$0xff] }
0x257b   :  { %2187 = vmatpush.msrb.mxu3 %v7457_v53 }
0x257c   :  { %2208 = vmatpush.msra.mxu0 %v7443_v33  ;;  %v7464_v33 = vld [vmem:[%s9596_s11] sm:$0xff] }
0x257d   :  { %2188 = vmatpush.msrb.mxu3 %v7464_v33 }
0x257e   :  { %2504 = vmatpush.msrb.mxu0 %v6985_v8 }
0x257f   :  { %2484 = vmatpush.msra.mxu3 %v6990_v9  ;;  %v7543_v9 = vld [vmem:[%s9597_s6 + $0x30] sm:$0xff] }
0x2580   :  { %2505 = vmatpush.msrb.mxu0 %v6995_v42 }
0x2581   :  { %2485 = vmatpush.msra.mxu3 %v7002_v46  ;;  %v7549_v46 = vld [vmem:[%s9597_s6 + $0x28] sm:$0xff] }
0x2582   :  { %2506 = vmatpush.msrb.mxu0 %v7007_v25 }
0x2583   :  { %2486 = vmatpush.msra.mxu3 %v7012_v44  ;;  %v9843_v44 = vmov 4  }
0x2584   :  { %2507 = vmatpush.msrb.mxu0 %v7019_v60  ;;  %v9844_v60 = vmov 6  }
0x2585   :  { %2487 = vmatpush.msra.mxu3 %v7024_v58  ;;  %v9845_v58 = vmov 127  }
0x25d8   :  { %v2134_v8 = vpop.f32.mrf.mxu0 }
0x25d9   :  { %v2140_v42 = vmul.f32 %v2134_v8, %v6873_v11  ;;  %v7530_v11 = vld [vmem:[%s9597_s6 + $0x40] sm:$0xff] }
0x25da   :  { %v7638_v8 = vld [vmem:[%s9598_s2 + $0x20] sm:$0xff] }
0x25db   :  { %2209 = vmatmul.f32.vlgmr.msra.gmra.mxu0 %v2140_v42 }
0x25dc   :  { %2570 = vmatpush.msra.mxu0 %v7048_v41  ;;  %v7574_v41 = vld [vmem:[%s9597_s6 + $0x10] sm:$0xff] }
0x25dd   :  { %v2114_v19 = vpop.f32.mrf.mxu3 }
0x25de   :  { %v2139_v25 = vmul.f32 %v2114_v19, %v6870_v4  ;;  %2571 = vmatpush.msra.mxu0 %v7059_v52  ;;  %v9842_v4 = vmov 2   ;;  %v7587_v52 = vld [vmem:[%s9597_s6] sm:$0xff] }
0x25e0   :  { %2189 = vmatmul.f32.vlgmr.msrb.gmra.mxu3 %v2139_v25  ;;  %2572 = vmatpush.msra.mxu0 %v7065_v35 }
0x25e1   :  { %2550 = vmatpush.msrb.mxu3 %v7037_v32  ;;  %v7563_v32 = vld [vmem:[%s9597_s6 + $0x20] sm:$0xff] }
0x25e2   :  { %2573 = vmatpush.msra.mxu0 %v7077_v24 }
0x25e3   :  { %2551 = vmatpush.msrb.mxu3 %v7042_v34  ;;  %v7569_v34 = vld [vmem:[%s9597_s6 + $0x18] sm:$0xff] }
0x25e4   :  { %2574 = vmatpush.msra.mxu0 %v7089_v47 }
0x25e5   :  { %2552 = vmatpush.msrb.mxu3 %v7053_v48  ;;  %v7580_v48 = vld [vmem:[%s9597_s6 + $0x8] sm:$0xff] }
0x25e6   :  { %2575 = vmatpush.msra.mxu0 %v7101_v3 }
0x25e7   :  { %2553 = vmatpush.msrb.mxu3 %v7070_v38 }
0x25e8   :  { %2576 = vmatpush.msra.mxu0 %v7113_v29 }
0x25e9   :  { %2554 = vmatpush.msrb.mxu3 %v7082_v43 }
0x25ea   :  { %2577 = vmatpush.msra.mxu0 %v7125_v21 }
0x25eb   :  { %2555 = vmatpush.msrb.mxu3 %v7094_v55 }
0x25ec   :  { %2578 = vmatpush.msra.mxu0 %v7158_v22 }
0x25ed   :  { %2556 = vmatpush.msrb.mxu3 %v7106_v61 }
0x25ee   :  { %2579 = vmatpush.msra.mxu0 %v7170_v49 }
0x25ef   :  { %2557 = vmatpush.msrb.mxu3 %v7118_v59 }
0x25f0   :  { %2580 = vmatpush.msra.mxu0 %v7182_v1 }
0x25f1   :  { %2558 = vmatpush.msrb.mxu3 %v7130_v54 }
0x25f2   :  { %2581 = vmatpush.msra.mxu0 %v7194_v31 }
0x25f3   :  { %2559 = vmatpush.msrb.mxu3 %v7137_v40 }
0x25f4   :  { %2582 = vmatpush.msra.mxu0 %v7206_v37 }
0x25f5   :  { %2560 = vmatpush.msrb.mxu3 %v7144_v15 }
0x25f6   :  { %2583 = vmatpush.msra.mxu0 %v7213_v28  ;;  %v7517_v28 = vld [vmem:[%s9597_s6 + $0x50] sm:$0xff] }
0x25f7   :  { %2561 = vmatpush.msrb.mxu3 %v7153_v20 }
0x25f8   :  { %2584 = vmatpush.msra.mxu0 %v7218_v57  ;;  %v7512_v57 = vld [vmem:[%s9597_s6 + $0x58] sm:$0xff] }
0x25f9   :  { %2562 = vmatpush.msrb.mxu3 %v7165_v30  ;;  %2240 = vmatpush.msra.mxu1 %v7512_v57  ;;  %v9846_v30 = vmov 0  }
0x25fa   :  { %2585 = vmatpush.msra.mxu0 %v7224_v17  ;;  %v7537_v17 = vld [vmem:[%s9597_s6 + $0x38] sm:$0xff] }
0x25fb   :  { %2563 = vmatpush.msrb.mxu3 %v7177_v26  ;;  %2241 = vmatpush.msra.mxu1 %v7517_v28 }
0x25fd   :  { %2564 = vmatpush.msrb.mxu3 %v7189_v16 }
0x25ff   :  { %2565 = vmatpush.msrb.mxu3 %v7201_v39  ;;  %v7523_v39 = vld [vmem:[%s9597_s6 + $0x48] sm:$0xff] }
0x2600   :  { %2242 = vmatpush.msra.mxu1 %v7523_v39 }
0x2602   :  { %2243 = vmatpush.msra.mxu1 %v7530_v11 }
0x2604   :  { %2244 = vmatpush.msra.mxu1 %v7537_v17 }
0x2606   :  { %2245 = vmatpush.msra.mxu1 %v7543_v9 }
0x2608   :  { %2246 = vmatpush.msra.mxu1 %v7549_v46 }
0x260a   :  { %2247 = vmatpush.msra.mxu1 %v7563_v32 }
0x260c   :  { %2248 = vmatpush.msra.mxu1 %v7569_v34 }
0x260e   :  { %2249 = vmatpush.msra.mxu1 %v7574_v41 }
0x2610   :  { %2250 = vmatpush.msra.mxu1 %v7580_v48 }
0x2612   :  { %2251 = vmatpush.msra.mxu1 %v7587_v52 }
0x2614   :  { %2649 = vmatpush.msrb.mxu1 %v7254_v14 }
0x2658   :  { %v2210_v31 = vpop.f32.mrf.mxu0 }
0x2663   :  { %v2190_v37 = vpop.f32.mrf.mxu3 }
0x2664   :  { %v2211_v19 = vadd.f32 %v2210_v31, %v2190_v37  ;;  %v7644_v37 = vld [vmem:[%s9598_s2 + $0x28] sm:$0xff] }
0x2666   :  { %2215 = vrot.lane.b32.xlu1 %v2211_v19, %s5644_s17 }
0x266e   :  { %2306 = vperm.xlu1 %5308, %v7263_v23  }
0x2676   :  { %5309 = vset.pattern.permute.xlu1 %v9842_v4 }
0x2677   :  { %2313 = vperm.xlu1 %5309, %v7263_v23  }
0x267f   :  { %5311 = vset.pattern.permute.xlu1 %v9843_v44 }
0x2680   :  { %2327 = vperm.xlu1 %5311, %v7263_v23  }
0x2688   :  { %5312 = vset.pattern.permute.xlu1 %v9810_v5 }
0x2689   :  { %2334 = vperm.xlu1 %5312, %v7263_v23  }
0x2691   :  { %5313 = vset.pattern.permute.xlu1 %v9844_v60 }
0x2692   :  { %2341 = vperm.xlu1 %5313, %v7263_v23  }
0x269a   :  { %5316 = vset.pattern.permute.xlu1 %v9845_v58 }
0x26d8   :  { %v7591_v35 = vpop.permute.xlu1 %2215 }
0x26d9   :  { %2218 = vst.msk [vmem:[#allocation4] sm:$0xff] %vm185_vm14, %v7591_v35 }
0x26da   :  { %2219 = vst.msk [vmem:[#allocation4] sm:$0xff] %vm255_vm15, %v7030_v27 }
0x26e0   :  { %v2307_v16 = vpop.permute.xlu1 %2306 }
0x26e1   :  { %v2220_v38 = vld [vmem:[#allocation4] sm:$0xff] }
0x26e2   :  { %5133 = vmatmul.msk.f32.vlgmr.msra.gmra.mxu1 %vm796_vm7, %v2220_v38 }
0x26e3   :  { %2710 = vmatpush.msra.mxu1 %v7293_v10 }
0x26e5   :  { %2711 = vmatpush.msra.mxu1 %v7305_v51 }
0x26e7   :  { %2712 = vmatpush.msra.mxu1 %v7315_v50  ;;  %v5137_v50 = vld [vmem:[%s9598_s2 + $0x18] sm:$0xff] }
0x26e9   :  { %2713 = vmatpush.msra.mxu1 %v7327_v12  ;;  %v2314_v14 = vpop.permute.xlu1 %2313 }
0x26eb   :  { %2714 = vmatpush.msra.mxu1 %v7339_v2 }
0x26ed   :  { %2715 = vmatpush.msra.mxu1 %v7351_v62 }
0x26ef   :  { %2716 = vmatpush.msra.mxu1 %v7363_v13 }
0x26f1   :  { %2717 = vmatpush.msra.mxu1 %v7375_v6  ;;  %v7629_v6 = vld [vmem:[%s9598_s2 + $0x10] sm:$0xff] }
0x26f2   :  { %v2316_v13 = vmul.f32 %v7629_v6, %v2314_v14 }
0x26f3   :  { %2718 = vmatpush.msra.mxu1 %v7387_v45 }
0x26f5   :  { %2719 = vmatpush.msra.mxu1 %v7399_v0  ;;  %v9847_v0 = vld [vmem:[#allocation18_spill] sm:$0xff] }
0x26f7   :  { %2720 = vmatpush.msra.mxu1 %v7411_v56  ;;  %v2328_v56 = vpop.permute.xlu1 %2327 }
0x26f8   :  { %v2330_v31 = vmul.f32 %v7638_v8, %v2328_v56 }
0x26f9   :  { %2721 = vmatpush.msra.mxu1 %v7426_v63 }
0x26fb   :  { %2722 = vmatpush.msra.mxu1 %v7438_v18 }
0x26fd   :  { %2723 = vmatpush.msra.mxu1 %v7450_v7 }
0x26ff   :  { %2724 = vmatpush.msra.mxu1 %v7457_v53  ;;  %v2321_v53 = vpop.permute.xlu2 %2320  ;;  %v2335_v18 = vpop.permute.xlu1 %2334 }
0x2700   :  { %v2323_v2 = vmul.f32 %v5137_v50, %v2321_v53  ;;  %v2337_v38 = vmul.f32 %v7644_v37, %v2335_v18  ;;  %v7661_v50 = vld [vmem:[%s9591_s5 + $0x48] sm:$0xff]  ;;  %v7673_v53 = vld [vmem:[%s9591_s5 + $0x38] sm:$0xff] }
0x2701   :  { %2725 = vmatpush.msra.mxu1 %v7464_v33  ;;  %v7622_v33 = vld [vmem:[%s9598_s2 + $0x8] sm:$0xff]  ;;  %2408 = vmatpush.msra.mxu2 %v7661_v50 }
0x2702   :  { %v2309_v10 = vmul.f32 %v7622_v33, %v2307_v16  ;;  %v7685_v18 = vld [vmem:[%s9591_s5 + $0x28] sm:$0xff] }
0x275f   :  { %v2253_v62 = vpop.f32.mrf.mxu1 }
0x2760   :  { %v5134_v24 = vmul.f32 -1.442695, %v2253_v62  ;;  %v2275_v43 = vadd.f32 %v2253_v62, %v6694_v36 }
0x2762   :  { %5500 = vpow2.f32 %v5134_v24  ;;  %2276 = vmax.xlane.f32.xlu0 %v2275_v43  ;;  %v7650_v24 = vld [vmem:[%s9598_s2 + $0x30] sm:$0xff] }
0x2768   :  { %v5501_v47 = vpop.eup %5500 }
0x2769   :  { %v2259_v55 = vadd.f32 1.0, %v5501_v47 }
0x276b   :  { %5502 = vrcp.f32 %v2259_v55  ;;  %v2271_v59 = vand.u32 2147483648, %v2259_v55  ;;  %v2269_v21 = vand.u32 2147483647, %v2259_v55  ;;  %vm2265_vm2 = vweird.f32 %v2259_v55 }
0x276d   :  { %v2272_v40 = vor.u32 1.1754944e-38, %v2271_v59  ;;  %vm2270_vm6 = vcmp.eq.f32.partialorder %v2269_v21, 8.507059e+37 }
0x2771   :  { %v5503_v3 = vpop.eup %5502 }
0x2772   :  { %v2261_v61 = vmul.f32 %v5503_v3, %v2259_v55  ;;  %vm2266_vm1 = vweird.f32 %v5503_v3 }
0x2773   :  { %vm2267_vm5 = vmor %vm2265_vm2, %vm2266_vm1 }
0x2774   :  { %v2262_v29 = vsub.f32 1.0, %v2261_v61 }
0x2776   :  { %2300 = vperm.xlu0 %5307, %v7263_v23   ;;  %v2263_v7 = vmul.f32 %v5503_v3, %v2262_v29  ;;  %v2349_v29 = vpop.permute.xlu2 %2348 }
0x2778   :  { %v2264_v54 = vadd.f32 %v5503_v3, %v2263_v7 }
0x277a   :  { %v2268_v15 = vsel %vm2267_vm5, %v5503_v3, %v2264_v54 }
0x277b   :  { %v2273_v20 = vsel %vm2270_vm6, %v2272_v40, %v2268_v15  ;;  %v9848_v40 = vld [vmem:[#allocation22_spill] sm:$0xff] }
0x277c   :  { %v2359_v22 = vsub.f32 1.0, %v2273_v20  ;;  %v2351_v15 = vmul.f32 %v9848_v40, %v2349_v29  ;;  %v9856_v29 = vld [vmem:[#allocation5_spill] sm:$0xff] }
0x277d   :  { %v9859_v40 = vld [vmem:[#allocation21_spill] sm:$0xff] }
0x277e   :  { %2362 = vperm.xlu1 %5316, %v2359_v22   ;;  %5315 = vset.pattern.permute.xlu0 %v9845_v58 }
0x2786   :  { %5317 = vset.pattern.permute.xlu1 %v9846_v30 }
0x27d5   :  { %v2277_v49 = vpop.xlane.xlu0 %2276 }
0x27d6   :  { %v2278_v26 = vsub.f32 %v2275_v43, %v2277_v49  ;;  %v2342_v43 = vpop.permute.xlu1 %2341 }
0x27d7   :  { %v2344_v3 = vmul.f32 %v7650_v24, %v2342_v43 }
0x27d8   :  { %v2279_v1 = vmul.f32 1.442695, %v2278_v26 }
0x27da   :  { %5504 = vpow2.f32 %v2279_v1 }
0x27e0   :  { %v5505_v23 = vpop.eup %5504 }
0x27e1   :  { %2281 = vadd.xlane.f32.xlu0 %v5505_v23 }
0x27e8   :  { %v2301_v63 = vpop.permute.xlu0 %2300 }
0x27e9   :  { %v2303_v45 = vmul.f32 %v2301_v63, %v9847_v0 }
0x27eb   :  { %v2310_v51 = vadd.f32 %v2309_v10, %v2303_v45 }
0x27ed   :  { %v2317_v12 = vadd.f32 %v2316_v13, %v2310_v51  ;;  %v9849_v51 = vld [vmem:[#allocation27_spill] sm:$0xff] }
0x27ef   :  { %v2324_v42 = vadd.f32 %v2323_v2, %v2317_v12  ;;  %v7679_v12 = vld [vmem:[%s9591_s5 + $0x30] sm:$0xff] }
0x27f0   :  { %v2363_v14 = vpop.permute.xlu1 %2362  ;;  %v9850_v2 = vld [vmem:[#allocation24_spill] sm:$0xff] }
0x27f1   :  { %v2331_v19 = vadd.f32 %v2330_v31, %v2324_v42  ;;  %v9851_v42 = vld [vmem:[#allocation6_spill] sm:$0xff]  ;;  %v9853_v31 = vld [vmem:[#allocation12_spill] sm:$0xff] }
0x27f3   :  { %v2338_v47 = vadd.f32 %v2337_v38, %v2331_v19  ;;  %v9854_v19 = vld [vmem:[#allocation13_spill] sm:$0xff]  ;;  %v9855_v38 = vld [vmem:[#allocation19_spill] sm:$0xff] }
0x27f5   :  { %2355 = vperm.xlu0 %5315, %v2273_v20   ;;  %v2345_v7 = vadd.f32 %v2344_v3, %v2338_v47 }
0x27f7   :  { %v2352_v49 = vadd.f32 %v2351_v15, %v2345_v7  ;;  %v9860_v15 = vld [vmem:[#allocation23_spill] sm:$0xff] }
0x27f9   :  { %v2365_v56 = vmul.f32 %v2363_v14, %v2352_v49  ;;  %v9863_v49 = vld [vmem:[#allocation9_spill] sm:$0xff] }
0x27fa   :  { %v9869_v14 = vld [vmem:[#allocation33_spill] sm:$0xff] }
0x27fd   :  { %5321 = vset.pattern.permute.xlu0 %v9843_v44 }
0x2854   :  { %v2282_v25 = vpop.xlane.xlu0 %2281 }
0x2855   :  { %5506 = vrcp.f32 %v2282_v25  ;;  %v2294_v59 = vand.u32 2147483648, %v2282_v25  ;;  %v2292_v54 = vand.u32 2147483647, %v2282_v25  ;;  %vm2288_vm9 = vweird.f32 %v2282_v25 }
0x2857   :  { %v2295_v22 = vor.u32 1.1754944e-38, %v2294_v59  ;;  %vm2293_vm11 = vcmp.eq.f32.partialorder %v2292_v54, 8.507059e+37  ;;  %v9857_v59 = vmov 0.0   ;;  %v9858_v54 = vld [vmem:[#allocation20_spill] sm:$0xff] }
0x285b   :  { %v5507_v62 = vpop.eup %5506 }
0x285c   :  { %v2284_v55 = vmul.f32 %v5507_v62, %v2282_v25  ;;  %vm2289_vm8 = vweird.f32 %v5507_v62  ;;  %v9852_v25 = vld [vmem:[#allocation11_spill] sm:$0xff] }
0x285d   :  { %vm2290_vm10 = vmor %vm2288_vm9, %vm2289_vm8 }
0x285e   :  { %v2285_v61 = vsub.f32 1.0, %v2284_v55 }
0x2860   :  { %v2286_v21 = vmul.f32 %v5507_v62, %v2285_v61 }
0x2862   :  { %v2287_v20 = vadd.f32 %v5507_v62, %v2286_v21 }
0x2864   :  { %v2291_v26 = vsel %vm2290_vm10, %v5507_v62, %v2287_v20  ;;  %v9861_v20 = vld [vmem:[#allocation25_spill] sm:$0xff] }
0x2865   :  { %v2296_v1 = vsel %vm2293_vm11, %v2295_v22, %v2291_v26  ;;  %v9862_v22 = vld [vmem:[#allocation10_spill] sm:$0xff] }
0x2866   :  { %v2297_v16 = vmul.f32 %v5505_v23, %v2296_v1  ;;  %v7667_v23 = vld [vmem:[%s9591_s5 + $0x40] sm:$0xff]  ;;  %v9867_v1 = vld [vmem:[#allocation31_spill] sm:$0xff] }
0x2867   :  { %v2356_v63 = vpop.permute.xlu0 %2355  ;;  %2409 = vmatpush.msra.mxu2 %v7667_v23  ;;  %v9866_v26 = vld [vmem:[#allocation30_spill] sm:$0xff] }
0x2868   :  { %v2358_v0 = vmul.f32 %v2356_v63, %v2297_v16  ;;  %v9868_v16 = vld [vmem:[#allocation32_spill] sm:$0xff]  ;;  %v9870_v63 = vld [vmem:[#allocation34_spill] sm:$0xff] }
0x2869   :  { %2410 = vmatpush.msra.mxu2 %v7673_v53 }
0x286a   :  { %v2366_v45 = vadd.f32 %v2365_v56, %v2358_v0  ;;  %v9871_v56 = vld [vmem:[#allocation35_spill] sm:$0xff]  ;;  %v9872_v0 = vld [vmem:[#allocation36_spill] sm:$0xff] }
0x286b   :  { %2411 = vmatpush.msra.mxu2 %v7679_v12 }
0x286c   :  { %5142 = vst [vmem:[%s9599_s12 + $0x10] sm:$0xff] %v2366_v45  ;;  %2369 = vmax.xlane.f32.xlu2 %v2366_v45 }
0x286d   :  { %2412 = vmatpush.msra.mxu2 %v7685_v18 }
0x286f   :  { %2413 = vmatpush.msra.mxu2 %v9850_v2 }
0x2871   :  { %2414 = vmatpush.msra.mxu2 %v9851_v42 }
0x2873   :  { %2415 = vmatpush.msra.mxu2 %v9852_v25 }
0x2875   :  { %2416 = vmatpush.msra.mxu2 %v9853_v31 }
0x2877   :  { %2417 = vmatpush.msra.mxu2 %v9854_v19 }
0x2879   :  { %2669 = vmatpush.msrb.mxu2 %v9855_v38 }
0x28df   :  { %v2370_v10 = vpop.xlane.xlu2 %2369 }
0x28e0   :  { %vm2371_vm13 = vcmp.eq.f32.partialorder %v2366_v45, %v2370_v10  ;;  %v9873_v45 = vld [vmem:[#allocation37_spill] sm:$0xff] }
0x28e1   :  { %v2372_v13 = vsel %vm2371_vm13, %v9849_v51, 128.0 }
0x28e2   :  { %2373 = vmin.xlane.f32.xlu1 %v2372_v13 }
0x2955   :  { %v2374_v62 = vpop.xlane.xlu1 %2373 }
0x2956   :  { %vm5244_vm0 = vcmp.lt.s32.totalorder %v2374_v62, 0  ;;  %v5245_v43 = vceil.f32 %v2374_v62  ;;  %v5246_v47 = vfloor.f32 %v2374_v62 }
0x2958   :  { %v5247_v55 = vsel %vm5244_vm0, %v5245_v43, %v5246_v47 }
0x2959   :  { %v5248_v3 = vcvt.f32.s32 %v5247_v55 }
0x295b   :  { %5143 = vst.msk [vmem:[%s9600_s13 + $0x10] sm:$0xff] %vm1302_vm3, %v5248_v3  ;;  %vm2378_vm1 = vcmp.ge.s32.totalorder %v5248_v3, 32 }
0x295c   :  { %v2379_v61 = vsel %vm2378_vm1, 1, %v5248_v3 }
0x295d   :  { %vm2380_vm2 = vcmp.eq.s32.totalorder %v2379_v61, %v9856_v29 }
0x295e   :  { %v5144_v7 = vsel %vm2380_vm2, 1.0, %v9857_v59 }
0x295f   :  { %2383 = vst.msk [vmem:[#allocation4] sm:$0xff] %vm48_vm4, %v5144_v7 }
0x2960   :  { %2384 = vst.msk [vmem:[#allocation4] sm:$0xff] %vm185_vm14, %v7591_v35  ;;  %v9864_v35 = vld [vmem:[#allocation28_spill] sm:$0xff] }
0x2961   :  { %2385 = vst.msk [vmem:[#allocation4] sm:$0xff] %vm255_vm15, %v7030_v27  ;;  %v9865_v27 = vld [vmem:[#allocation29_spill] sm:$0xff] }
0x2968   :  { %v2386_v21 = vld [vmem:[#allocation4] sm:$0xff] }
0x2969   :  { %5145 = vmatmul.msk.f32.vlgmr.msra.gmra.mxu2 %vm796_vm7, %v2386_v21  ;;  %2750 = vst.msk [vmem:[#allocation4] sm:$0xff] %vm48_vm4, %v5144_v7 }
0x296a   :  { %2730 = vmatpush.msra.mxu2 %v9858_v54 }
0x296c   :  { %2731 = vmatpush.msra.mxu2 %v9859_v40  ;;  %v9874_v40 = vld [vmem:[#allocation14_spill] sm:$0xff] }
0x296e   :  { %2732 = vmatpush.msra.mxu2 %v9860_v15 }
0x2970   :  { %2733 = vmatpush.msra.mxu2 %v9861_v20 }
0x2972   :  { %2734 = vmatpush.msra.mxu2 %v9862_v22 }
0x2974   :  { %2735 = vmatpush.msra.mxu2 %v9863_v49 }
0x2976   :  { %2736 = vmatpush.msra.mxu2 %v9864_v35 }
0x2978   :  { %2737 = vmatpush.msra.mxu2 %v9865_v27 }
0x297a   :  { %2738 = vmatpush.msra.mxu2 %v9866_v26 }
0x297c   :  { %2739 = vmatpush.msra.mxu2 %v9867_v1 }
0x297e   :  { %2740 = vmatpush.msra.mxu2 %v9868_v16 }
0x2980   :  { %2741 = vmatpush.msra.mxu2 %v9869_v14 }
0x2982   :  { %2742 = vmatpush.msra.mxu2 %v9870_v63 }
0x2984   :  { %2743 = vmatpush.msra.mxu2 %v9871_v56 }
0x2986   :  { %2744 = vmatpush.msra.mxu2 %v9872_v0 }
0x2988   :  { %2745 = vmatpush.msra.mxu2 %v9873_v45 }
0x29ec   :  { %v2419_v10 = vpop.f32.mrf.mxu2 }
0x29ed   :  { %5508 = vtanh.f32 %v2419_v10  ;;  %v5146_v2 = vmul.f32 -1.442695, %v2419_v10 }
0x29ef   :  { %5510 = vpow2.f32 %v5146_v2 }
0x29f3   :  { %v5509_v13 = vpop.eup %5508 }
0x29f4   :  { %2444 = vrot.lane.b32.xlu0 %v5509_v13, %s5644_s17 }
0x29f5   :  { %v5511_v42 = vpop.eup %5510 }
0x29f6   :  { %v2425_v25 = vadd.f32 1.0, %v5511_v42 }
0x29f8   :  { %5512 = vrcp.f32 %v2425_v25  ;;  %v2437_v47 = vand.u32 2147483648, %v2425_v25  ;;  %vm2431_vm6 = vweird.f32 %v2425_v25  ;;  %v2435_v55 = vand.u32 2147483647, %v2425_v25 }
0x29fa   :  { %v2438_v61 = vor.u32 1.1754944e-38, %v2437_v47  ;;  %vm2436_vm9 = vcmp.eq.f32.partialorder %v2435_v55, 8.507059e+37 }
0x29fe   :  { %v5513_v31 = vpop.eup %5512 }
0x29ff   :  { %v2427_v19 = vmul.f32 %v5513_v31, %v2425_v25  ;;  %vm2432_vm5 = vweird.f32 %v5513_v31 }
0x2a00   :  { %vm2433_vm8 = vmor %vm2431_vm6, %vm2432_vm5 }
0x2a01   :  { %v2428_v38 = vsub.f32 1.0, %v2427_v19 }
0x2a03   :  { %v2429_v62 = vmul.f32 %v5513_v31, %v2428_v38 }
0x2a05   :  { %v2430_v43 = vadd.f32 %v5513_v31, %v2429_v62  ;;  %v9879_v62 = vld [vmem:[#allocation17_spill] sm:$0xff] }
0x2a07   :  { %v2434_v3 = vsel %vm2433_vm8, %v5513_v31, %v2430_v43 }
0x2a08   :  { %v2439_v21 = vsel %vm2436_vm9, %v2438_v61, %v2434_v3 }
0x2a09   :  { %v2442_v15 = vmul.f32 %v2439_v21, %v9874_v40 }
0x2a66   :  { %v2445_v7 = vpop.permute.xlu0 %2444 }
0x2a67   :  { %v2447_v54 = vmul.f32 %v2445_v7, %v2439_v21 }
0x2a69   :  { %2449 = vrot.lane.b32.xlu0 %v2447_v54, %s5644_s17 }
0x2adb   :  { %v2450_v20 = vpop.permute.xlu0 %2449 }
0x2adc   :  { %v7726_v22 = vadd.f32 %v2450_v20, %v2442_v15 }
0x2ade   :  { %5514 = vtanh.f32 %v7726_v22 }
0x2ae4   :  { %v5515_v49 = vpop.eup %5514 }
0x2ae5   :  { %2455 = vrot.lane.b32.xlu0 %v5515_v49, %s5644_s17 }
0x2b57   :  { %v2456_v35 = vpop.permute.xlu0 %2455 }
0x2b58   :  { %v7730_v27 = vmul.f32 %v2456_v35, %v2439_v21 }
0x2b5a   :  { %2468 = vrot.lane.b32.xlu0 %v7730_v27, %s5645_s18 }
0x2bcc   :  { %v2469_v26 = vpop.permute.xlu0 %2468 }
0x2bcd   :  { %5147 = vmatmul.msk.f32.vlgmr.msra.gmra.mxu3 %vm48_vm4, %v2469_v26  ;;  %5148 = vmatmul.msk.f32.vlgmr.msrb.gmra.mxu0 %vm48_vm4, %v2469_v26 }
0x2bce   :  { %2777 = vmatpush.msra.mxu3 %v7512_v57 }
0x2bd0   :  { %2778 = vmatpush.msra.mxu3 %v7517_v28  ;;  %v9875_v28 = vld [vmem:[#allocation8_spill] sm:$0xff] }
0x2bd2   :  { %2779 = vmatpush.msra.mxu3 %v7523_v39 }
0x2bd4   :  { %2780 = vmatpush.msra.mxu3 %v7530_v11 }
0x2bd6   :  { %2781 = vmatpush.msra.mxu3 %v7537_v17  ;;  %v9876_v17 = vld [vmem:[#allocation7_spill] sm:$0xff] }
0x2bd8   :  { %2782 = vmatpush.msra.mxu3 %v7543_v9 }
0x2bda   :  { %2783 = vmatpush.msra.mxu3 %v7549_v46 }
0x2bdc   :  { %2784 = vmatpush.msra.mxu3 %v7563_v32  ;;  %v9877_v32 = vld [vmem:[#allocation15_spill] sm:$0xff] }
0x2bde   :  { %2785 = vmatpush.msra.mxu3 %v7569_v34  ;;  %v9878_v34 = vld [vmem:[#allocation16_spill] sm:$0xff] }
0x2bdf   :  { %v7752_v16 = vadd.f32 %v9878_v34, %v9877_v32  ;;  %v7772_v32 = vld [vmem:[#allocation2 + $0x8] sm:$0xff] }
0x2be0   :  { %2786 = vmatpush.msra.mxu3 %v7574_v41 }
0x2be1   :  { %v2603_v13 = vand.u32 2147483648, %v7752_v16  ;;  %vm2597_vm11 = vweird.f32 %v7752_v16  ;;  %v2601_v2 = vand.u32 2147483647, %v7752_v16 }
0x2be2   :  { %2787 = vmatpush.msra.mxu3 %v7580_v48 }
0x2be3   :  { %v2604_v25 = vor.u32 1.1754944e-38, %v2603_v13  ;;  %vm2602_vm0 = vcmp.eq.f32.partialorder %v2601_v2, 8.507059e+37 }
0x2be4   :  { %2788 = vmatpush.msra.mxu3 %v7587_v52 }
0x2c4a   :  { %v2509_v57 = vpop.f32.mrf.mxu0 }
0x2c4b   :  { %v2515_v39 = vadd.f32 %v2509_v57, %v9875_v28 }
0x2c4d   :  { %5516 = vtanh.f32 %v2515_v39  ;;  %v9880_v39 = vmov 7  }
0x2c50   :  { %v2489_v11 = vpop.f32.mrf.mxu3 }
0x2c51   :  { %v2514_v1 = vadd.f32 %v2489_v11, %v9876_v17 }
0x2c53   :  { %v5517_v9 = vpop.eup %5516  ;;  %5518 = vtanh.f32 %v2514_v1  ;;  %v7769_v1 = vld [vmem:[#allocation2] sm:$0xff] }
0x2c54   :  { %2586 = vmatmul.f32.vlgmr.msra.gmra.mxu0 %v5517_v9  ;;  %5520 = vrcp.f32 %v7752_v16 }
0x2c59   :  { %v5519_v46 = vpop.eup %5518 }
0x2c5a   :  { %2566 = vmatmul.f32.vlgmr.msrb.gmra.mxu3 %v5519_v46  ;;  %v5521_v41 = vpop.eup %5520 }
0x2c5b   :  { %v2593_v48 = vmul.f32 %v5521_v41, %v7752_v16  ;;  %vm2598_vm10 = vweird.f32 %v5521_v41 }
0x2c5c   :  { %vm2599_vm13 = vmor %vm2597_vm11, %vm2598_vm10 }
0x2c5d   :  { %v2594_v52 = vsub.f32 1.0, %v2593_v48 }
0x2c5f   :  { %v2595_v56 = vmul.f32 %v5521_v41, %v2594_v52 }
0x2c61   :  { %v2596_v10 = vadd.f32 %v5521_v41, %v2595_v56 }
0x2c63   :  { %v2600_v42 = vsel %vm2599_vm13, %v5521_v41, %v2596_v10 }
0x2c64   :  { %v2605_v19 = vsel %vm2602_vm0, %v2604_v25, %v2600_v42 }
0x2cd1   :  { %v2587_v14 = vpop.f32.mrf.mxu0 }
0x2cdd   :  { %v2567_v63 = vpop.f32.mrf.mxu3 }
0x2cde   :  { %v2588_v0 = vadd.f32 %v2587_v14, %v2567_v63  ;;  %v9881_v14 = vmov 3  }
0x2ce0   :  { %v2590_v45 = vmul.f32 1.442695, %v2588_v0 }
0x2ce2   :  { %5522 = vpow2.f32 %v2590_v45 }
0x2ce8   :  { %v7759_v31 = vpop.eup %5522 }
0x2ce9   :  { %v2606_v38 = vmul.f32 %v7759_v31, %v2605_v19 }
0x2ceb   :  { %v2609_v43 = vmul.f32 %v2606_v38, %v9879_v62 }
0x2ced   :  { %v2610_v47 = vsel %vm992_vm12, %v2609_v43, 0.0 }
0x2cee   :  { %2611 = vadd.xlane.f32.xlu0 %v2610_v47 }
0x2d61   :  { %v2612_v55 = vpop.xlane.xlu0 %2611 }
0x2d62   :  { %v2613_v3 = vadd.f32 1e-12, %v2612_v55 }
0x2d64   :  { %5524 = vrcp.f32 %v2613_v3  ;;  %v2625_v54 = vand.u32 2147483648, %v2613_v3  ;;  %v2623_v15 = vand.u32 2147483647, %v2613_v3  ;;  %vm2619_vm2 = vweird.f32 %v2613_v3 }
0x2d66   :  { %v2626_v49 = vor.u32 1.1754944e-38, %v2625_v54  ;;  %vm2624_vm6 = vcmp.eq.f32.partialorder %v2623_v15, 8.507059e+37 }
0x2d6a   :  { %v5525_v61 = vpop.eup %5524 }
0x2d6b   :  { %v2615_v7 = vmul.f32 %v5525_v61, %v2613_v3  ;;  %vm2620_vm1 = vweird.f32 %v5525_v61 }
0x2d6c   :  { %vm2621_vm5 = vmor %vm2619_vm2, %vm2620_vm1 }
0x2d6d   :  { %v2616_v21 = vsub.f32 1.0, %v2615_v7  ;;  %v9882_v7 = vmov 1  }
0x2d6f   :  { %v2617_v40 = vmul.f32 %v5525_v61, %v2616_v21 }
0x2d71   :  { %v2618_v20 = vadd.f32 %v5525_v61, %v2617_v40 }
0x2d73   :  { %v2622_v35 = vsel %vm2621_vm5, %v5525_v61, %v2618_v20 }
0x2d74   :  { %v2627_v26 = vsel %vm2624_vm6, %v2626_v49, %v2622_v35 }
0x2d75   :  { %v2628_v57 = vmul.f32 %v2627_v26, %v2609_v43 }
0x2d77   :  { %2864 = vperm.xlu0 %5321, %v2628_v57   ;;  %2837 = vperm.xlu1 %5317, %v2628_v57  }
0x2d78   :  { %5149 = vmatmul.msk.f32.vlgmr.msrb.gmra.mxu1 %vm992_vm12, %v2628_v57  ;;  %5150 = vmatmul.msk.f32.vlgmr.msrb.gmra.mxu2 %vm992_vm12, %v2628_v57 }
0x2d7f   :  { %5322 = vset.pattern.permute.xlu1 %v9810_v5  ;;  %5327 = vset.pattern.permute.xlu0 %v9846_v30 }
0x2d80   :  { %2871 = vperm.xlu1 %5322, %v2628_v57  }
0x2d88   :  { %5324 = vset.pattern.permute.xlu1 %v9880_v39 }
0x2de9   :  { %v2838_v21 = vpop.permute.xlu1 %2837 }
0x2df2   :  { %v2872_v54 = vpop.permute.xlu1 %2871 }
0x2df5   :  { %v2651_v11 = vpop.f32.mrf.mxu1 }
0x2df6   :  { %v2676_v9 = vmul.f32 %v7769_v1, %v2651_v11 }
0x2df8   :  { %2726 = vmatmul.f32.vlgmr.msra.gmra.mxu1 %v2676_v9 }
0x2dfb   :  { %v2671_v46 = vpop.f32.mrf.mxu2 }
0x2dfc   :  { %v2677_v34 = vmul.f32 %v7772_v32, %v2671_v46  ;;  %v7794_v46 = vld [vmem:[%s9598_s2] sm:$0xff] }
0x2dfd   :  { %9883 = vst [vmem:[#allocation18_spill] sm:$0xff] %v7794_v46 }
0x2dfe   :  { %2746 = vmatmul.f32.vlgmr.msra.gmra.mxu2 %v2677_v34 }
0x2e75   :  { %v2727_v41 = vpop.f32.mrf.mxu1 }
0x2e81   :  { %v2747_v48 = vpop.f32.mrf.mxu2 }
0x2e82   :  { %v2748_v52 = vadd.f32 %v2747_v48, %v2727_v41  ;;  %v7800_v41 = vld [vmem:[%s9598_s2 + $0x18] sm:$0xff] }
0x2e83   :  { %9884 = vst [vmem:[#allocation22_spill] sm:$0xff] %v7800_v41 }
0x2e84   :  { %2752 = vrot.lane.b32.xlu2 %v2748_v52, %s5644_s17  ;;  %v2840_v52 = vmul.f32 %v2838_v21, %v7794_v46 }
0x2e8c   :  { %2843 = vperm.xlu2 %5318, %v2628_v57  }
0x2e94   :  { %5319 = vset.pattern.permute.xlu2 %v9842_v4 }
0x2e95   :  { %2850 = vperm.xlu2 %5319, %v2628_v57  }
0x2e9d   :  { %5320 = vset.pattern.permute.xlu2 %v9881_v14 }
0x2e9e   :  { %2857 = vperm.xlu2 %5320, %v2628_v57  }
0x2ea6   :  { %5323 = vset.pattern.permute.xlu2 %v9844_v60 }
0x2ea7   :  { %2878 = vperm.xlu2 %5323, %v2628_v57  }
0x2eaf   :  { %5325 = vset.pattern.permute.xlu2 %v9845_v58 }
0x2ede   :  { %v7780_v63 = vpop.permute.xlu2 %2752 }
0x2edf   :  { %2755 = vst.msk [vmem:[#allocation4] sm:$0xff] %vm185_vm14, %v7780_v63 }
0x2ee0   :  { %2756 = vst.msk [vmem:[#allocation4] sm:$0xff] %vm255_vm15, %v7730_v27 }
0x2ee6   :  { %v2844_v26 = vpop.permute.xlu2 %2843 }
0x2ee7   :  { %v2757_v56 = vld [vmem:[#allocation4] sm:$0xff]  ;;  %v2846_v34 = vmul.f32 %v7622_v33, %v2844_v26 }
0x2ee8   :  { %5151 = vmatmul.msk.f32.vlgmr.msra.gmra.mxu3 %vm796_vm7, %v2757_v56 }
0x2eef   :  { %v2851_v11 = vpop.permute.xlu2 %2850 }
0x2ef0   :  { %v2853_v56 = vmul.f32 %v7629_v6, %v2851_v11  ;;  %v7809_v6 = vld [vmem:[%s9598_s2 + $0x38] sm:$0xff] }
0x2ef1   :  { %9885 = vst [vmem:[#allocation24_spill] sm:$0xff] %v7809_v6 }
0x2ef8   :  { %v2858_v48 = vpop.permute.xlu2 %2857 }
0x2f6b   :  { %v2790_v0 = vpop.f32.mrf.mxu3 }
0x2f6c   :  { %v5152_v45 = vmul.f32 -1.442695, %v2790_v0  ;;  %v2812_v10 = vadd.f32 %v2790_v0, %v6694_v36 }
0x2f6e   :  { %5526 = vpow2.f32 %v5152_v45  ;;  %2813 = vmax.xlane.f32.xlu1 %v2812_v10  ;;  %v2847_v45 = vadd.f32 %v2846_v34, %v2840_v52 }
0x2f74   :  { %v5527_v13 = vpop.eup %5526 }
0x2f75   :  { %v2796_v2 = vadd.f32 1.0, %v5527_v13 }
0x2f77   :  { %5528 = vrcp.f32 %v2796_v2  ;;  %v2808_v38 = vand.u32 2147483648, %v2796_v2  ;;  %v2806_v43 = vand.u32 2147483647, %v2796_v2  ;;  %vm2802_vm9 = vweird.f32 %v2796_v2 }
0x2f79   :  { %v2809_v55 = vor.u32 1.1754944e-38, %v2808_v38  ;;  %vm2807_vm11 = vcmp.eq.f32.partialorder %v2806_v43, 8.507059e+37 }
0x2f7d   :  { %v5529_v42 = vpop.eup %5528 }
0x2f7e   :  { %v2798_v25 = vmul.f32 %v5529_v42, %v2796_v2  ;;  %vm2803_vm8 = vweird.f32 %v5529_v42  ;;  %v2854_v2 = vadd.f32 %v2853_v56, %v2847_v45 }
0x2f7f   :  { %vm2804_vm10 = vmor %vm2802_vm9, %vm2803_vm8 }
0x2f80   :  { %v2799_v19 = vsub.f32 1.0, %v2798_v25 }
0x2f82   :  { %v2800_v62 = vmul.f32 %v5529_v42, %v2799_v19 }
0x2f84   :  { %v2801_v47 = vadd.f32 %v5529_v42, %v2800_v62 }
0x2f86   :  { %v2805_v3 = vsel %vm2804_vm10, %v5529_v42, %v2801_v47  ;;  %v2865_v42 = vpop.permute.xlu0 %2864  ;;  %v2879_v47 = vpop.permute.xlu2 %2878 }
0x2f87   :  { %2885 = vperm.xlu1 %5324, %v2628_v57   ;;  %v2810_v61 = vsel %vm2807_vm11, %v2809_v55, %v2805_v3  ;;  %v2867_v62 = vmul.f32 %v7638_v8, %v2865_v42 }
0x2f88   :  { %2892 = vperm.xlu2 %5325, %v2810_v61   ;;  %v2896_v35 = vsub.f32 1.0, %v2810_v61 }
0x2f8f   :  { %5326 = vset.pattern.permute.xlu1 %v9845_v58 }
0x2f90   :  { %5328 = vset.pattern.permute.xlu2 %v9882_v7  ;;  %v8137_v7 = vadd.f32 %v7759_v31, %v7752_v16 }
0x2f92   :  { %9892 = vst [vmem:[#allocation21_spill] sm:$0xff] %v8137_v7  ;;  %v3138_v16 = vand.u32 2147483647, %v8137_v7 }
0x2fe1   :  { %v2814_v40 = vpop.xlane.xlu1 %2813 }
0x2fe2   :  { %v2815_v15 = vsub.f32 %v2812_v10, %v2814_v40  ;;  %v2860_v10 = vmul.f32 %v7800_v41, %v2858_v48  ;;  %v2874_v40 = vmul.f32 %v7644_v37, %v2872_v54  ;;  %v2893_v34 = vpop.permute.xlu2 %2892  ;;  %v7820_v37 = vld [vmem:[%s9591_s5 + $0x58] sm:$0xff] }
0x2fe3   :  { %2943 = vmatpush.msrb.mxu0 %v7820_v37 }
0x2fe4   :  { %v2816_v20 = vmul.f32 1.442695, %v2815_v15  ;;  %v2861_v19 = vadd.f32 %v2860_v10, %v2854_v2  ;;  %v2881_v15 = vmul.f32 %v7650_v24, %v2879_v47  ;;  %v7825_v24 = vld [vmem:[%s9591_s5 + $0x50] sm:$0xff] }
0x2fe5   :  { %2944 = vmatpush.msrb.mxu0 %v7825_v24 }
0x2fe6   :  { %5530 = vpow2.f32 %v2816_v20  ;;  %v2868_v3 = vadd.f32 %v2867_v62, %v2861_v19 }
0x2fe7   :  { %2945 = vmatpush.msrb.mxu0 %v7661_v50  ;;  %v7844_v50 = vld [vmem:[%s9591_s5 + $0x18] sm:$0xff] }
0x2fe8   :  { %v2875_v8 = vadd.f32 %v2874_v40, %v2868_v3  ;;  %9887 = vst [vmem:[#allocation11_spill] sm:$0xff] %v7844_v50 }
0x2fe9   :  { %2946 = vmatpush.msrb.mxu0 %v7667_v23  ;;  %v7849_v23 = vld [vmem:[%s9591_s5 + $0x10] sm:$0xff] }
0x2fea   :  { %v2882_v26 = vadd.f32 %v2881_v15, %v2875_v8  ;;  %9888 = vst [vmem:[#allocation12_spill] sm:$0xff] %v7849_v23 }
0x2feb   :  { %2947 = vmatpush.msrb.mxu0 %v7673_v53  ;;  %v7855_v53 = vld [vmem:[%s9591_s5 + $0x8] sm:$0xff] }
0x2fec   :  { %v5531_v49 = vpop.eup %5530  ;;  %9889 = vst [vmem:[#allocation13_spill] sm:$0xff] %v7855_v53 }
0x2fed   :  { %2818 = vadd.xlane.f32.xlu1 %v5531_v49  ;;  %2948 = vmatpush.msrb.mxu0 %v7679_v12  ;;  %v7861_v12 = vld [vmem:[%s9591_s5] sm:$0xff] }
0x2fee   :  { %9890 = vst [vmem:[#allocation19_spill] sm:$0xff] %v7861_v12 }
0x2fef   :  { %2949 = vmatpush.msrb.mxu0 %v7685_v18 }
0x2ff9   :  { %v2886_v57 = vpop.permute.xlu1 %2885 }
0x3006   :  { %2899 = vperm.xlu1 %5326, %v2896_v35   ;;  %v2888_v35 = vmul.f32 %v7809_v6, %v2886_v57  ;;  %v7838_v57 = vld [vmem:[%s9591_s5 + $0x20] sm:$0xff] }
0x3007   :  { %9886 = vst [vmem:[#allocation6_spill] sm:$0xff] %v7838_v57  ;;  %2950 = vmatpush.msrb.mxu0 %v7838_v57 }
0x3009   :  { %2951 = vmatpush.msrb.mxu0 %v7844_v50 }
0x300b   :  { %2952 = vmatpush.msrb.mxu0 %v7849_v23  ;;  %v8127_v23 = vld [vmem:[%s9593_s9 + $0x80] sm:$0xff] }
0x300d   :  { %2953 = vmatpush.msrb.mxu0 %v7855_v53  ;;  %v8121_v53 = vld [vmem:[%s9593_s9 + $0x88] sm:$0xff] }
0x300e   :  { %5329 = vset.pattern.permute.xlu1 %v9842_v4  ;;  %v8092_v4 = vld [vmem:[%s9593_s9 + $0x8] sm:$0xff] }
0x300f   :  { %2954 = vmatpush.msrb.mxu0 %v7861_v12  ;;  %v8116_v12 = vld [vmem:[%s9593_s9 + $0x90] sm:$0xff] }
0x3060   :  { %v2819_v9 = vpop.xlane.xlu1 %2818 }
0x3061   :  { %5532 = vrcp.f32 %v2819_v9  ;;  %v2831_v38 = vand.u32 2147483648, %v2819_v9  ;;  %v2829_v43 = vand.u32 2147483647, %v2819_v9  ;;  %vm2825_vm0 = vweird.f32 %v2819_v9 }
0x3063   :  { %v2832_v61 = vor.u32 1.1754944e-38, %v2831_v38  ;;  %vm2830_vm2 = vcmp.eq.f32.partialorder %v2829_v43, 8.507059e+37 }
0x3067   :  { %v5533_v0 = vpop.eup %5532 }
0x3068   :  { %v2821_v13 = vmul.f32 %v5533_v0, %v2819_v9  ;;  %vm2826_vm13 = vweird.f32 %v5533_v0  ;;  %v2889_v9 = vadd.f32 %v2888_v35, %v2882_v26 }
0x3069   :  { %vm2827_vm1 = vmor %vm2825_vm0, %vm2826_vm13 }
0x306a   :  { %v2822_v25 = vsub.f32 1.0, %v2821_v13 }
0x306c   :  { %v2823_v33 = vmul.f32 %v5533_v0, %v2822_v25 }
0x306e   :  { %v2824_v55 = vadd.f32 %v5533_v0, %v2823_v33 }
0x3070   :  { %v2828_v21 = vsel %vm2827_vm1, %v5533_v0, %v2824_v55 }
0x3071   :  { %v2833_v20 = vsel %vm2830_vm2, %v2832_v61, %v2828_v21  ;;  %vm3134_vm2 = vweird.f32 %v8137_v7 }
0x3072   :  { %v2834_v11 = vmul.f32 %v5531_v49, %v2833_v20 }
0x3074   :  { %v2895_v52 = vmul.f32 %v2893_v34, %v2834_v11 }
0x3078   :  { %v2900_v48 = vpop.permute.xlu1 %2899 }
0x3079   :  { %v2902_v56 = vmul.f32 %v2900_v48, %v2889_v9 }
0x307b   :  { %v2903_v45 = vadd.f32 %v2902_v56, %v2895_v52  ;;  %v7888_v52 = vld [vmem:[%s9592_s7 + $0x38] sm:$0xff]  ;;  %v7893_v56 = vld [vmem:[%s9592_s7 + $0x30] sm:$0xff] }
0x307c   :  { %3041 = vmatpush.msrb.mxu2 %v7888_v52  ;;  %3021 = vmatpush.msrb.mxu1 %v7893_v56 }
0x307d   :  { %5160 = vst [vmem:[%s9599_s12 + $0x18] sm:$0xff] %v2903_v45  ;;  %2906 = vmax.xlane.f32.xlu2 %v2903_v45 }
0x30f0   :  { %v2907_v54 = vpop.xlane.xlu2 %2906 }
0x30f1   :  { %vm2908_vm5 = vcmp.eq.f32.partialorder %v2903_v45, %v2907_v54  ;;  %v7905_v45 = vld [vmem:[%s9592_s7 + $0x20] sm:$0xff]  ;;  %v7910_v54 = vld [vmem:[%s9592_s7 + $0x18] sm:$0xff] }
0x30f2   :  { %v2909_v49 = vsel %vm2908_vm5, %v9849_v51, 128.0  ;;  %3022 = vmatpush.msrb.mxu1 %v7905_v45 }
0x30f3   :  { %2910 = vmin.xlane.f32.xlu1 %v2909_v49  ;;  %v7915_v49 = vld [vmem:[%s9592_s7 + $0x10] sm:$0xff] }
0x30f4   :  { %3023 = vmatpush.msrb.mxu1 %v7915_v49 }
0x3166   :  { %v2911_v18 = vpop.xlane.xlu1 %2910 }
0x3167   :  { %vm5249_vm6 = vcmp.lt.s32.totalorder %v2911_v18, 0  ;;  %v5250_v0 = vceil.f32 %v2911_v18  ;;  %v5251_v10 = vfloor.f32 %v2911_v18  ;;  %v7922_v18 = vld [vmem:[%s9592_s7 + $0x8] sm:$0xff] }
0x3169   :  { %v5252_v13 = vsel %vm5249_vm6, %v5250_v0, %v5251_v10  ;;  %v7927_v0 = vld [vmem:[%s9592_s7] sm:$0xff]  ;;  %vm3139_vm6 = vcmp.eq.f32.partialorder %v3138_v16, 8.507059e+37  ;;  %v8174_v16 = vld [vmem:[%s9596_s11 + $0xf0] sm:$0xff] }
0x316a   :  { %v5253_v2 = vcvt.f32.s32 %v5252_v13  ;;  %3024 = vmatpush.msrb.mxu1 %v7927_v0  ;;  %9897 = vst [vmem:[#allocation28_spill] sm:$0xff] %v8174_v16 }
0x316c   :  { %5161 = vst.msk [vmem:[%s9600_s13 + $0x18] sm:$0xff] %vm1302_vm3, %v5253_v2  ;;  %vm2915_vm8 = vcmp.ge.s32.totalorder %v5253_v2, 32 }
0x316d   :  { %v2916_v42 = vsel %vm2915_vm8, 1, %v5253_v2  ;;  %v7940_v2 = vld [vmem:[%s9593_s9 + $0x78] sm:$0xff] }
0x316e   :  { %vm2917_vm9 = vcmp.eq.s32.totalorder %v2916_v42, %v9856_v29  ;;  %v7945_v42 = vld [vmem:[%s9593_s9 + $0x70] sm:$0xff]  ;;  %3087 = vmatpush.msra.mxu1 %v7940_v2  ;;  %v8109_v29 = vld [vmem:[%s9593_s9 + $0x98] sm:$0xff] }
0x316f   :  { %v5162_v25 = vsel %vm2917_vm9, 1.0, %v9857_v59  ;;  %v8104_v59 = vld [vmem:[%s9593_s9] sm:$0xff] }
0x3170   :  { %2920 = vst.msk [vmem:[#allocation4] sm:$0xff] %vm48_vm4, %v5162_v25  ;;  %3088 = vmatpush.msra.mxu1 %v7945_v42 }
0x3171   :  { %2921 = vst.msk [vmem:[#allocation4] sm:$0xff] %vm185_vm14, %v7780_v63 }
0x3172   :  { %2922 = vst.msk [vmem:[#allocation4] sm:$0xff] %vm255_vm15, %v7730_v27 }
0x3179   :  { %v2923_v19 = vld [vmem:[#allocation4] sm:$0xff] }
0x317a   :  { %5163 = vmatmul.msk.f32.vlgmr.msrb.gmra.mxu0 %vm796_vm7, %v2923_v19  ;;  %3287 = vst.msk [vmem:[#allocation4] sm:$0xff] %vm48_vm4, %v5162_v25  ;;  %v7951_v25 = vld [vmem:[%s9593_s9 + $0xf8] sm:$0xff]  ;;  %v7956_v19 = vld [vmem:[%s9593_s9 + $0x68] sm:$0xff] }
0x317b   :  { %3089 = vmatpush.msra.mxu1 %v7956_v19 }
0x31f7   :  { %v2956_v33 = vpop.f32.mrf.mxu0 }
0x31f8   :  { %5534 = vtanh.f32 %v2956_v33  ;;  %v5164_v62 = vmul.f32 -1.442695, %v2956_v33  ;;  %v7962_v33 = vld [vmem:[%s9593_s9 + $0xf0] sm:$0xff] }
0x31fa   :  { %5536 = vpow2.f32 %v5164_v62  ;;  %v7973_v62 = vld [vmem:[%s9593_s9 + $0x60] sm:$0xff] }
0x31fb   :  { %3090 = vmatpush.msra.mxu1 %v7973_v62 }
0x31fe   :  { %v5535_v38 = vpop.eup %5534 }
0x31ff   :  { %2981 = vrot.lane.b32.xlu0 %v5535_v38, %s5644_s17  ;;  %v7968_v38 = vld [vmem:[%s9593_s9 + $0xe8] sm:$0xff] }
0x3200   :  { %v5537_v43 = vpop.eup %5536 }
0x3201   :  { %v2962_v47 = vadd.f32 1.0, %v5537_v43  ;;  %v7980_v43 = vld [vmem:[%s9593_s9 + $0xe0] sm:$0xff] }
0x3203   :  { %5538 = vrcp.f32 %v2962_v47  ;;  %v2974_v21 = vand.u32 2147483648, %v2962_v47  ;;  %vm2968_vm11 = vweird.f32 %v2962_v47  ;;  %v2972_v40 = vand.u32 2147483647, %v2962_v47 }
0x3205   :  { %v2975_v20 = vor.u32 1.1754944e-38, %v2974_v21  ;;  %vm2973_vm0 = vcmp.eq.f32.partialorder %v2972_v40, 8.507059e+37  ;;  %v8021_v21 = vld [vmem:[%s9593_s9 + $0x40] sm:$0xff] }
0x3206   :  { %v8028_v40 = vld [vmem:[%s9593_s9 + $0xc0] sm:$0xff] }
0x3209   :  { %v5539_v55 = vpop.eup %5538 }
0x320a   :  { %v2964_v63 = vmul.f32 %v5539_v55, %v2962_v47  ;;  %vm2969_vm10 = vweird.f32 %v5539_v55  ;;  %v7985_v47 = vld [vmem:[%s9593_s9 + $0x58] sm:$0xff] }
0x320b   :  { %vm2970_vm13 = vmor %vm2968_vm11, %vm2969_vm10  ;;  %3091 = vmatpush.msra.mxu1 %v7985_v47 }
0x320c   :  { %v2965_v3 = vsub.f32 1.0, %v2964_v63  ;;  %v7997_v63 = vld [vmem:[%s9593_s9 + $0x50] sm:$0xff] }
0x320d   :  { %3092 = vmatpush.msra.mxu1 %v7997_v63 }
0x320e   :  { %v2966_v61 = vmul.f32 %v5539_v55, %v2965_v3  ;;  %v8004_v3 = vld [vmem:[%s9593_s9 + $0xd0] sm:$0xff] }
0x3210   :  { %v2967_v27 = vadd.f32 %v5539_v55, %v2966_v61  ;;  %v8009_v61 = vld [vmem:[%s9593_s9 + $0x48] sm:$0xff] }
0x3211   :  { %3093 = vmatpush.msra.mxu1 %v8009_v61 }
0x3212   :  { %v2971_v15 = vsel %vm2970_vm13, %v5539_v55, %v2967_v27  ;;  %v7992_v55 = vld [vmem:[%s9593_s9 + $0xd8] sm:$0xff]  ;;  %v8016_v27 = vld [vmem:[%s9593_s9 + $0xc8] sm:$0xff] }
0x3213   :  { %v2976_v35 = vsel %vm2973_vm0, %v2975_v20, %v2971_v15  ;;  %v8033_v15 = vld [vmem:[%s9593_s9 + $0x38] sm:$0xff]  ;;  %3094 = vmatpush.msra.mxu1 %v8021_v21  ;;  %v8040_v20 = vld [vmem:[%s9593_s9 + $0x30] sm:$0xff] }
0x3214   :  { %v2979_v11 = vmul.f32 %v2976_v35, %v7726_v22  ;;  %v7898_v22 = vld [vmem:[%s9592_s7 + $0x28] sm:$0xff] }
0x3215   :  { %3042 = vmatpush.msrb.mxu2 %v7898_v22  ;;  %3095 = vmatpush.msra.mxu1 %v8033_v15 }
0x3217   :  { %3043 = vmatpush.msrb.mxu2 %v7910_v54  ;;  %3096 = vmatpush.msra.mxu1 %v8040_v20 }
0x3219   :  { %3044 = vmatpush.msrb.mxu2 %v7922_v18 }
0x321b   :  { %3107 = vmatpush.msra.mxu2 %v7951_v25 }
0x321d   :  { %3108 = vmatpush.msra.mxu2 %v7962_v33 }
0x321f   :  { %3109 = vmatpush.msra.mxu2 %v7968_v38 }
0x3221   :  { %3110 = vmatpush.msra.mxu2 %v7980_v43 }
0x3223   :  { %3111 = vmatpush.msra.mxu2 %v7992_v55 }
0x3225   :  { %3112 = vmatpush.msra.mxu2 %v8004_v3 }
0x3227   :  { %3113 = vmatpush.msra.mxu2 %v8016_v27 }
0x3229   :  { %3114 = vmatpush.msra.mxu2 %v8028_v40 }
0x3271   :  { %v2982_v8 = vpop.permute.xlu0 %2981 }
0x3272   :  { %v2984_v26 = vmul.f32 %v2982_v8, %v2976_v35  ;;  %v8047_v8 = vld [vmem:[%s9593_s9 + $0x28] sm:$0xff] }
0x3273   :  { %3097 = vmatpush.msra.mxu1 %v8047_v8 }
0x3274   :  { %2986 = vrot.lane.b32.xlu0 %v2984_v26, %s5644_s17  ;;  %v8056_v26 = vld [vmem:[%s9593_s9 + $0x20] sm:$0xff] }
0x3275   :  { %3098 = vmatpush.msra.mxu1 %v8056_v26 }
0x32e6   :  { %v2987_v9 = vpop.permute.xlu0 %2986 }
0x32e7   :  { %v7881_v34 = vadd.f32 %v2987_v9, %v2979_v11  ;;  %v8061_v11 = vld [vmem:[%s9593_s9 + $0xb8] sm:$0xff] }
0x32e8   :  { %3115 = vmatpush.msra.mxu2 %v8061_v11  ;;  %v8068_v9 = vld [vmem:[%s9593_s9 + $0x18] sm:$0xff] }
0x32e9   :  { %9891 = vst [vmem:[#allocation20_spill] sm:$0xff] %v7881_v34  ;;  %5540 = vtanh.f32 %v7881_v34  ;;  %3099 = vmatpush.msra.mxu1 %v8068_v9  ;;  %v8097_v34 = vld [vmem:[%s9593_s9 + $0xa0] sm:$0xff] }
0x32ef   :  { %v5541_v48 = vpop.eup %5540 }
0x32f0   :  { %2992 = vrot.lane.b32.xlu0 %v5541_v48, %s5644_s17  ;;  %v8073_v48 = vld [vmem:[%s9593_s9 + $0xb0] sm:$0xff] }
0x32f1   :  { %3116 = vmatpush.msra.mxu2 %v8073_v48 }
0x3362   :  { %v2993_v10 = vpop.permute.xlu0 %2992 }
0x3363   :  { %v7933_v13 = vmul.f32 %v2993_v10, %v2976_v35  ;;  %v8080_v10 = vld [vmem:[%s9593_s9 + $0x10] sm:$0xff] }
0x3364   :  { %3100 = vmatpush.msra.mxu1 %v8080_v10 }
0x3365   :  { %3005 = vrot.lane.b32.xlu2 %v7933_v13, %s5645_s18 }
0x3366   :  { %3101 = vmatpush.msra.mxu1 %v8092_v4 }
0x3368   :  { %3102 = vmatpush.msra.mxu1 %v8104_v59 }
0x33bf   :  { %v3006_v35 = vpop.permute.xlu2 %3005 }
0x33c0   :  { %5165 = vmatmul.msk.f32.vlgmr.msrb.gmra.mxu1 %vm48_vm4, %v3006_v35  ;;  %5166 = vmatmul.msk.f32.vlgmr.msrb.gmra.mxu2 %vm48_vm4, %v3006_v35  ;;  %v8085_v35 = vld [vmem:[%s9593_s9 + $0xa8] sm:$0xff] }
0x33c1   :  { %3117 = vmatpush.msra.mxu2 %v8085_v35 }
0x33c3   :  { %3118 = vmatpush.msra.mxu2 %v8097_v34 }
0x33c5   :  { %3119 = vmatpush.msra.mxu2 %v8109_v29 }
0x33c7   :  { %3120 = vmatpush.msra.mxu2 %v8116_v12 }
0x33c9   :  { %3121 = vmatpush.msra.mxu2 %v8121_v53 }
0x33cb   :  { %3122 = vmatpush.msra.mxu2 %v8127_v23 }
0x33cd   :  { %3480 = vmatpush.msrb.mxu2 %v7820_v37 }
0x33cf   :  { %3481 = vmatpush.msrb.mxu2 %v7825_v24 }
0x343d   :  { %v3026_v50 = vpop.f32.mrf.mxu1 }
0x343e   :  { %v3051_v57 = vadd.f32 %v3026_v50, %v9876_v17 }
0x3440   :  { %5542 = vtanh.f32 %v3051_v57 }
0x3443   :  { %v3046_v51 = vpop.f32.mrf.mxu2 }
0x3444   :  { %v3052_v6 = vadd.f32 %v3046_v51, %v9875_v28 }
0x3446   :  { %v5543_v41 = vpop.eup %5542  ;;  %5544 = vtanh.f32 %v3052_v6 }
0x3447   :  { %3103 = vmatmul.f32.vlgmr.msra.gmra.mxu1 %v5543_v41  ;;  %5546 = vrcp.f32 %v8137_v7 }
0x344c   :  { %v5545_v46 = vpop.eup %5544 }
0x344d   :  { %3123 = vmatmul.f32.vlgmr.msra.gmra.mxu2 %v5545_v46  ;;  %v5547_v37 = vpop.eup %5546  ;;  %v3140_v46 = vand.u32 2147483648, %v8137_v7 }
0x344e   :  { %v3130_v24 = vmul.f32 %v5547_v37, %v8137_v7  ;;  %vm3135_vm1 = vweird.f32 %v5547_v37 }
0x344f   :  { %vm3136_vm5 = vmor %vm3134_vm2, %vm3135_vm1  ;;  %v3141_v41 = vor.u32 1.1754944e-38, %v3140_v46  ;;  %v8169_v46 = vld [vmem:[%s9596_s11 + $0xf8] sm:$0xff] }
0x3450   :  { %v3131_v5 = vsub.f32 1.0, %v3130_v24  ;;  %9896 = vst [vmem:[#allocation9_spill] sm:$0xff] %v8169_v46 }
0x3452   :  { %v3132_v17 = vmul.f32 %v5547_v37, %v3131_v5  ;;  %v8149_v5 = vld [vmem:[%s9594_s1] sm:$0xff] }
0x3453   :  { %9894 = vst [vmem:[#allocation25_spill] sm:$0xff] %v8149_v5 }
0x3454   :  { %v3133_v28 = vadd.f32 %v5547_v37, %v3132_v17 }
0x3456   :  { %v3137_v31 = vsel %vm3136_vm5, %v5547_v37, %v3133_v28  ;;  %v8157_v28 = vld [vmem:[%s9595_s10] sm:$0xff]  ;;  %v8162_v37 = vld [vmem:[%s9595_s10 + $0x8] sm:$0xff] }
0x3457   :  { %v3142_v24 = vsel %vm3139_vm6, %v3141_v41, %v3137_v31  ;;  %9895 = vst [vmem:[#allocation10_spill] sm:$0xff] %v8162_v37  ;;  %3186 = vmatpush.msrb.mxu3 %v8157_v28  ;;  %3206 = vmatpush.msra.mxu0 %v8162_v37  ;;  %v8180_v41 = vld [vmem:[%s9596_s11 + $0x78] sm:$0xff] }
0x3459   :  { %3267 = vmatpush.msrb.mxu0 %v8169_v46  ;;  %3247 = vmatpush.msra.mxu3 %v8180_v41 }
0x345b   :  { %3268 = vmatpush.msrb.mxu0 %v8174_v16  ;;  %v8209_v16 = vld [vmem:[%s9596_s11 + $0x60] sm:$0xff] }
0x34c4   :  { %v3104_v50 = vpop.f32.mrf.mxu1 }
0x34d0   :  { %v3124_v57 = vpop.f32.mrf.mxu2 }
0x34d1   :  { %v3125_v44 = vadd.f32 %v3124_v57, %v3104_v50 }
0x34d3   :  { %v3127_v51 = vmul.f32 1.442695, %v3125_v44 }
0x34d5   :  { %5548 = vpow2.f32 %v3127_v51 }
0x34db   :  { %v8144_v6 = vpop.eup %5548 }
0x34dc   :  { %9893 = vst [vmem:[#allocation23_spill] sm:$0xff] %v8144_v6  ;;  %v3143_v44 = vmul.f32 %v8144_v6, %v3142_v24  ;;  %v8185_v24 = vld [vmem:[%s9596_s11 + $0x70] sm:$0xff]  ;;  %v8202_v6 = vld [vmem:[%s9596_s11 + $0xe0] sm:$0xff] }
0x34dd   :  { %9898 = vst [vmem:[#allocation29_spill] sm:$0xff] %v8185_v24  ;;  %3248 = vmatpush.msra.mxu3 %v8185_v24 }
0x34de   :  { %v3146_v17 = vmul.f32 %v8149_v5, %v3143_v44  ;;  %9901 = vst [vmem:[#allocation32_spill] sm:$0xff] %v8202_v6 }
0x34e0   :  { %v3147_v50 = vsel %vm992_vm12, %v3146_v17, 0.0 }
0x34e1   :  { %3148 = vadd.xlane.f32.xlu0 %v3147_v50  ;;  %v8190_v50 = vld [vmem:[%s9596_s11 + $0xe8] sm:$0xff] }
0x34e2   :  { %9899 = vst [vmem:[#allocation30_spill] sm:$0xff] %v8190_v50  ;;  %3269 = vmatpush.msrb.mxu0 %v8190_v50  ;;  %v8221_v50 = vld [vmem:[%s9596_s11 + $0x58] sm:$0xff] }
0x34e4   :  { %3270 = vmatpush.msrb.mxu0 %v8202_v6  ;;  %v8233_v6 = vld [vmem:[%s9596_s11 + $0x50] sm:$0xff] }
0x3554   :  { %v3149_v57 = vpop.xlane.xlu0 %3148 }
0x3555   :  { %v3150_v51 = vadd.f32 1e-12, %v3149_v57  ;;  %v8197_v57 = vld [vmem:[%s9596_s11 + $0x68] sm:$0xff] }
0x3556   :  { %9900 = vst [vmem:[#allocation31_spill] sm:$0xff] %v8197_v57  ;;  %3249 = vmatpush.msra.mxu3 %v8197_v57 }
0x3557   :  { %5550 = vrcp.f32 %v3150_v51  ;;  %v3162_v7 = vand.u32 2147483648, %v3150_v51  ;;  %v3160_v37 = vand.u32 2147483647, %v3150_v51  ;;  %vm3156_vm9 = vweird.f32 %v3150_v51 }
0x3558   :  { %3250 = vmatpush.msra.mxu3 %v8209_v16 }
0x3559   :  { %v3163_v24 = vor.u32 1.1754944e-38, %v3162_v7  ;;  %vm3161_vm11 = vcmp.eq.f32.partialorder %v3160_v37, 8.507059e+37  ;;  %v8271_v37 = vld [vmem:[%s9596_s11 + $0x48] sm:$0xff] }
0x355a   :  { %3251 = vmatpush.msra.mxu3 %v8221_v50 }
0x355c   :  { %3252 = vmatpush.msra.mxu3 %v8233_v6 }
0x355d   :  { %v5551_v31 = vpop.eup %5550 }
0x355e   :  { %v3152_v44 = vmul.f32 %v5551_v31, %v3150_v51  ;;  %vm3157_vm8 = vweird.f32 %v5551_v31  ;;  %v8238_v51 = vld [vmem:[%s9596_s11 + $0xc8] sm:$0xff]  ;;  %3253 = vmatpush.msra.mxu3 %v8271_v37 }
0x355f   :  { %vm3158_vm10 = vmor %vm3156_vm9, %vm3157_vm8  ;;  %9903 = vst [vmem:[#allocation34_spill] sm:$0xff] %v8238_v51 }
0x3560   :  { %v3153_v5 = vsub.f32 1.0, %v3152_v44  ;;  %v8214_v44 = vld [vmem:[%s9596_s11 + $0xd8] sm:$0xff] }
0x3561   :  { %3271 = vmatpush.msrb.mxu0 %v8214_v44 }
0x3562   :  { %v3154_v46 = vmul.f32 %v5551_v31, %v3153_v5  ;;  %v8226_v5 = vld [vmem:[%s9596_s11 + $0xd0] sm:$0xff] }
0x3563   :  { %9902 = vst [vmem:[#allocation33_spill] sm:$0xff] %v8226_v5  ;;  %3272 = vmatpush.msrb.mxu0 %v8226_v5 }
0x3564   :  { %v3155_v36 = vadd.f32 %v5551_v31, %v3154_v46 }
0x3565   :  { %3273 = vmatpush.msrb.mxu0 %v8238_v51  ;;  %v8355_v51 = vld [vmem:[%s9596_s11 + $0x10] sm:$0xff] }
0x3566   :  { %v3159_v57 = vsel %vm3158_vm10, %v5551_v31, %v3155_v36  ;;  %v8249_v36 = vld [vmem:[%s9596_s11 + $0xc0] sm:$0xff]  ;;  %v8276_v31 = vld [vmem:[%s9596_s11 + $0xb0] sm:$0xff] }
0x3567   :  { %v3164_v46 = vsel %vm3161_vm11, %v3163_v24, %v3159_v57  ;;  %9904 = vst [vmem:[#allocation35_spill] sm:$0xff] %v8249_v36  ;;  %3274 = vmatpush.msrb.mxu0 %v8249_v36  ;;  %v8281_v24 = vld [vmem:[%s9596_s11 + $0x40] sm:$0xff]  ;;  %v8288_v57 = vld [vmem:[%s9596_s11 + $0xa8] sm:$0xff] }
0x3568   :  { %v8242_v7 = vmul.f32 %v3164_v46, %v3146_v17  ;;  %v8259_v17 = vld [vmem:[%s9596_s11 + $0xb8] sm:$0xff]  ;;  %9906 = vst [vmem:[#allocation37_spill] sm:$0xff] %v8276_v31  ;;  %3254 = vmatpush.msra.mxu3 %v8281_v24  ;;  %v8336_v36 = vld [vmem:[%s9596_s11 + $0x88] sm:$0xff] }
0x3569   :  { %9905 = vst [vmem:[#allocation36_spill] sm:$0xff] %v8259_v17  ;;  %3275 = vmatpush.msrb.mxu0 %v8259_v17  ;;  %v8293_v46 = vld [vmem:[%s9596_s11 + $0x38] sm:$0xff]  ;;  %v8317_v17 = vld [vmem:[%s9596_s11 + $0x28] sm:$0xff] }
0x356a   :  { %3374 = vperm.xlu0 %5327, %v8242_v7   ;;  %5167 = vmatmul.msk.f32.vlgmr.msrb.gmra.mxu3 %vm992_vm12, %v8242_v7  ;;  %9907 = vst [vmem:[#allocation14_spill] sm:$0xff] %v8288_v57 }
0x356b   :  { %5168 = vmatmul.msk.f32.vlgmr.msra.gmra.mxu0 %vm992_vm12, %v8242_v7  ;;  %3255 = vmatpush.msra.mxu3 %v8293_v46  ;;  %9911 = vst [vmem:[#allocation38_spill] sm:$0xff] %v8336_v36 }
0x356c   :  { %3276 = vmatpush.msrb.mxu0 %v8276_v31  ;;  %v8310_v31 = vld [vmem:[%s9596_s11 + $0x98] sm:$0xff] }
0x356d   :  { %9909 = vst [vmem:[#allocation16_spill] sm:$0xff] %v8310_v31 }
0x356e   :  { %3277 = vmatpush.msrb.mxu0 %v8288_v57  ;;  %v8322_v57 = vld [vmem:[%s9596_s11 + $0x90] sm:$0xff] }
0x356f   :  { %9910 = vst [vmem:[#allocation17_spill] sm:$0xff] %v8322_v57 }
0x3572   :  { %5330 = vset.pattern.permute.xlu0 %v9881_v14 }
0x3573   :  { %3394 = vperm.xlu0 %5330, %v8242_v7  }
0x357b   :  { %5333 = vset.pattern.permute.xlu0 %v9844_v60  ;;  %v8305_v60 = vld [vmem:[%s9596_s11 + $0x30] sm:$0xff] }
0x357c   :  { %3415 = vperm.xlu0 %5333, %v8242_v7   ;;  %3256 = vmatpush.msra.mxu3 %v8305_v60 }
0x357e   :  { %3257 = vmatpush.msra.mxu3 %v8317_v17 }
0x3584   :  { %5337 = vset.pattern.permute.xlu0 %v9846_v30  ;;  %v8298_v30 = vld [vmem:[%s9596_s11 + $0xa0] sm:$0xff] }
0x3585   :  { %9908 = vst [vmem:[#allocation15_spill] sm:$0xff] %v8298_v30  ;;  %3278 = vmatpush.msrb.mxu0 %v8298_v30  ;;  %v8331_v30 = vld [vmem:[%s9596_s11 + $0x20] sm:$0xff] }
0x3586   :  { %3258 = vmatpush.msra.mxu3 %v8331_v30 }
0x3587   :  { %3279 = vmatpush.msrb.mxu0 %v8310_v31  ;;  %v8343_v31 = vld [vmem:[%s9596_s11 + $0x18] sm:$0xff] }
0x3588   :  { %3259 = vmatpush.msra.mxu3 %v8343_v31 }
0x3589   :  { %3280 = vmatpush.msrb.mxu0 %v8322_v57  ;;  %v8348_v57 = vld [vmem:[%s9596_s11 + $0x80] sm:$0xff] }
0x358a   :  { %9912 = vst [vmem:[#allocation39_spill] sm:$0xff] %v8348_v57  ;;  %3260 = vmatpush.msra.mxu3 %v8355_v51 }
0x358b   :  { %3281 = vmatpush.msrb.mxu0 %v8336_v36  ;;  %v8362_v36 = vld [vmem:[%s9596_s11 + $0x8] sm:$0xff] }
0x358c   :  { %3261 = vmatpush.msra.mxu3 %v8362_v36 }
0x358d   :  { %3282 = vmatpush.msrb.mxu0 %v8348_v57  ;;  %v8369_v57 = vld [vmem:[%s9596_s11] sm:$0xff] }
0x358e   :  { %3262 = vmatpush.msra.mxu3 %v8369_v57 }
0x358f   :  { %3578 = vmatpush.msra.mxu0 %v7888_v52 }
0x3590   :  { %3558 = vmatpush.msrb.mxu3 %v7893_v56 }
0x3591   :  { %3579 = vmatpush.msra.mxu0 %v7898_v22 }
0x3592   :  { %3559 = vmatpush.msrb.mxu3 %v7905_v45  ;;  %v8462_v45 = vld [vmem:[%s9597_s6 + $0x20] sm:$0xff] }
0x3593   :  { %3580 = vmatpush.msra.mxu0 %v7910_v54 }
0x3594   :  { %3560 = vmatpush.msrb.mxu3 %v7915_v49  ;;  %v8468_v49 = vld [vmem:[%s9597_s6 + $0x18] sm:$0xff] }
0x3595   :  { %3581 = vmatpush.msra.mxu0 %v7922_v18  ;;  %v8473_v18 = vld [vmem:[%s9597_s6 + $0x10] sm:$0xff] }
0x3596   :  { %3561 = vmatpush.msrb.mxu3 %v7927_v0  ;;  %v8479_v0 = vld [vmem:[%s9597_s6 + $0x8] sm:$0xff] }
0x35e8   :  { %v3208_v52 = vpop.f32.mrf.mxu0 }
0x35e9   :  { %v3214_v22 = vmul.f32 %v3208_v52, %v7772_v32  ;;  %v8426_v32 = vld [vmem:[%s9597_s6 + $0x48] sm:$0xff] }
0x35eb   :  { %3283 = vmatmul.f32.vlgmr.msrb.gmra.mxu0 %v3214_v22  ;;  %v8538_v22 = vld [vmem:[%s9598_s2 + $0x20] sm:$0xff] }
0x35ec   :  { %3644 = vmatpush.msrb.mxu0 %v7951_v25 }
0x35ed   :  { %v3188_v5 = vpop.f32.mrf.mxu3 }
0x35ee   :  { %v3213_v54 = vmul.f32 %v3188_v5, %v7769_v1  ;;  %3645 = vmatpush.msrb.mxu0 %v7962_v33  ;;  %v8420_v1 = vld [vmem:[%s9597_s6 + $0x50] sm:$0xff]  ;;  %v9914_v33 = vld [vmem:[#allocation31_spill] sm:$0xff]  ;;  %v3375_v5 = vpop.permute.xlu0 %3374 }
0x35f0   :  { %3263 = vmatmul.f32.vlgmr.msra.gmra.mxu3 %v3213_v54  ;;  %3646 = vmatpush.msrb.mxu0 %v7968_v38 }
0x35f1   :  { %3624 = vmatpush.msra.mxu3 %v7940_v2  ;;  %v8486_v2 = vld [vmem:[%s9597_s6] sm:$0xff] }
0x35f2   :  { %3647 = vmatpush.msrb.mxu0 %v7980_v43 }
0x35f3   :  { %3625 = vmatpush.msra.mxu3 %v7945_v42 }
0x35f4   :  { %3648 = vmatpush.msrb.mxu0 %v7992_v55 }
0x35f5   :  { %3626 = vmatpush.msra.mxu3 %v7956_v19  ;;  %v9913_v19 = vld [vmem:[#allocation29_spill] sm:$0xff] }
0x35f6   :  { %3649 = vmatpush.msrb.mxu0 %v8004_v3  ;;  %v9916_v3 = vmov 4  }
0x35f7   :  { %3627 = vmatpush.msra.mxu3 %v7973_v62  ;;  %v9915_v62 = vld [vmem:[#allocation26_spill] sm:$0xff] }
0x35f8   :  { %3650 = vmatpush.msrb.mxu0 %v8016_v27 }
0x35f9   :  { %3628 = vmatpush.msra.mxu3 %v7985_v47 }
0x35fa   :  { %3651 = vmatpush.msrb.mxu0 %v8028_v40 }
0x35fb   :  { %3629 = vmatpush.msra.mxu3 %v7997_v63 }
0x35fc   :  { %3652 = vmatpush.msrb.mxu0 %v8061_v11 }
0x35fd   :  { %3630 = vmatpush.msra.mxu3 %v8009_v61 }
0x35fe   :  { %3653 = vmatpush.msrb.mxu0 %v8073_v48 }
0x35ff   :  { %3631 = vmatpush.msra.mxu3 %v8021_v21  ;;  %v9917_v21 = vmov 5  }
0x3600   :  { %3654 = vmatpush.msrb.mxu0 %v8085_v35 }
0x3601   :  { %3632 = vmatpush.msra.mxu3 %v8033_v15 }
0x3602   :  { %3655 = vmatpush.msrb.mxu0 %v8097_v34 }
0x3603   :  { %3633 = vmatpush.msra.mxu3 %v8040_v20 }
0x3604   :  { %3656 = vmatpush.msrb.mxu0 %v8109_v29  ;;  %v8415_v29 = vld [vmem:[%s9597_s6 + $0x58] sm:$0xff] }
0x3605   :  { %3634 = vmatpush.msra.mxu3 %v8047_v8  ;;  %3314 = vmatpush.msrb.mxu1 %v8415_v29 }
0x3606   :  { %3657 = vmatpush.msrb.mxu0 %v8116_v12 }
0x3607   :  { %3635 = vmatpush.msra.mxu3 %v8056_v26  ;;  %3315 = vmatpush.msrb.mxu1 %v8420_v1 }
0x3608   :  { %3658 = vmatpush.msrb.mxu0 %v8121_v53  ;;  %v8450_v53 = vld [vmem:[%s9597_s6 + $0x28] sm:$0xff] }
0x3609   :  { %3636 = vmatpush.msra.mxu3 %v8068_v9  ;;  %3316 = vmatpush.msrb.mxu1 %v8426_v32  ;;  %v9918_v9 = vmov 1  }
0x360a   :  { %3659 = vmatpush.msrb.mxu0 %v8127_v23  ;;  %v8444_v23 = vld [vmem:[%s9597_s6 + $0x30] sm:$0xff] }
0x360b   :  { %3637 = vmatpush.msra.mxu3 %v8080_v10 }
0x360d   :  { %3638 = vmatpush.msra.mxu3 %v8092_v4  ;;  %v8432_v4 = vld [vmem:[%s9597_s6 + $0x40] sm:$0xff] }
0x360e   :  { %3317 = vmatpush.msrb.mxu1 %v8432_v4 }
0x360f   :  { %3639 = vmatpush.msra.mxu3 %v8104_v59  ;;  %v8438_v59 = vld [vmem:[%s9597_s6 + $0x38] sm:$0xff] }
0x3610   :  { %3318 = vmatpush.msrb.mxu1 %v8438_v59 }
0x3612   :  { %3319 = vmatpush.msrb.mxu1 %v8444_v23 }
0x3614   :  { %3320 = vmatpush.msrb.mxu1 %v8450_v53 }
0x3616   :  { %3321 = vmatpush.msrb.mxu1 %v8462_v45 }
0x3618   :  { %3322 = vmatpush.msrb.mxu1 %v8468_v49 }
0x361a   :  { %3323 = vmatpush.msrb.mxu1 %v8473_v18 }
0x361c   :  { %3324 = vmatpush.msrb.mxu1 %v8479_v0 }
0x361e   :  { %3325 = vmatpush.msrb.mxu1 %v8486_v2 }
0x3620   :  { %3723 = vmatpush.msra.mxu1 %v8157_v28 }
0x3668   :  { %v3284_v12 = vpop.f32.mrf.mxu0 }
0x3673   :  { %v3264_v34 = vpop.f32.mrf.mxu3 }
0x3674   :  { %v3285_v56 = vadd.f32 %v3284_v12, %v3264_v34  ;;  %v8543_v34 = vld [vmem:[%s9598_s2 + $0x28] sm:$0xff] }
0x3676   :  { %3289 = vrot.lane.b32.xlu1 %v3285_v56, %s5644_s17 }
0x367e   :  { %3387 = vperm.xlu1 %5329, %v8242_v7  }
0x3686   :  { %5334 = vset.pattern.permute.xlu1 %v9880_v39 }
0x3687   :  { %3422 = vperm.xlu1 %5334, %v8242_v7  }
0x368f   :  { %5336 = vset.pattern.permute.xlu1 %v9845_v58 }
0x36e8   :  { %v8490_v42 = vpop.permute.xlu1 %3289 }
0x36e9   :  { %3292 = vst.msk [vmem:[#allocation4] sm:$0xff] %vm185_vm14, %v8490_v42 }
0x36ea   :  { %3293 = vst.msk [vmem:[#allocation4] sm:$0xff] %vm255_vm15, %v7933_v13 }
0x36f1   :  { %v3294_v25 = vld [vmem:[#allocation4] sm:$0xff] }
0x36f2   :  { %5169 = vmatmul.msk.f32.vlgmr.msrb.gmra.mxu1 %vm796_vm7, %v3294_v25 }
0x36f3   :  { %3784 = vmatpush.msrb.mxu1 %v8180_v41 }
0x36f5   :  { %3785 = vmatpush.msrb.mxu1 %v9913_v19  ;;  %v9920_v19 = vld [vmem:[#allocation22_spill] sm:$0xff] }
0x36f7   :  { %3786 = vmatpush.msrb.mxu1 %v9914_v33 }
0x36f9   :  { %3787 = vmatpush.msrb.mxu1 %v8209_v16  ;;  %v3388_v16 = vpop.permute.xlu1 %3387 }
0x36fb   :  { %3788 = vmatpush.msrb.mxu1 %v8221_v50 }
0x36fd   :  { %3789 = vmatpush.msrb.mxu1 %v8233_v6 }
0x36ff   :  { %3790 = vmatpush.msrb.mxu1 %v8271_v37  ;;  %v9919_v37 = vld [vmem:[#allocation18_spill] sm:$0xff] }
0x3701   :  { %3791 = vmatpush.msrb.mxu1 %v8281_v24  ;;  %v3423_v50 = vpop.permute.xlu1 %3422  ;;  %v8532_v24 = vld [vmem:[%s9598_s2 + $0x10] sm:$0xff] }
0x3702   :  { %v3390_v52 = vmul.f32 %v8532_v24, %v3388_v16 }
0x3703   :  { %3792 = vmatpush.msrb.mxu1 %v8293_v46  ;;  %v3395_v46 = vpop.permute.xlu0 %3394 }
0x3704   :  { %v3397_v33 = vmul.f32 %v9920_v19, %v3395_v46  ;;  %v9925_v19 = vld [vmem:[#allocation12_spill] sm:$0xff] }
0x3705   :  { %3793 = vmatpush.msrb.mxu1 %v8305_v60 }
0x3707   :  { %3794 = vmatpush.msrb.mxu1 %v8317_v17 }
0x3709   :  { %3795 = vmatpush.msrb.mxu1 %v8331_v30 }
0x370b   :  { %3796 = vmatpush.msrb.mxu1 %v8343_v31  ;;  %v3377_v31 = vmul.f32 %v3375_v5, %v9919_v37 }
0x370d   :  { %3797 = vmatpush.msrb.mxu1 %v8355_v51  ;;  %v8525_v51 = vld [vmem:[%s9598_s2 + $0x8] sm:$0xff] }
0x370f   :  { %3798 = vmatpush.msrb.mxu1 %v8362_v36 }
0x3711   :  { %3799 = vmatpush.msrb.mxu1 %v8369_v57 }
0x376f   :  { %v3327_v38 = vpop.f32.mrf.mxu1 }
0x3770   :  { %v3349_v43 = vadd.f32 %v3327_v38, %v9915_v62  ;;  %v5170_v47 = vmul.f32 -1.442695, %v3327_v38 }
0x3772   :  { %3350 = vmax.xlane.f32.xlu2 %v3349_v43  ;;  %5552 = vpow2.f32 %v5170_v47 }
0x3778   :  { %v5553_v55 = vpop.eup %5552 }
0x3779   :  { %v3333_v60 = vadd.f32 1.0, %v5553_v55 }
0x377b   :  { %5554 = vrcp.f32 %v3333_v60  ;;  %v3345_v15 = vand.u32 2147483648, %v3333_v60  ;;  %vm3339_vm0 = vweird.f32 %v3333_v60  ;;  %v3343_v20 = vand.u32 2147483647, %v3333_v60 }
0x377d   :  { %v3346_v26 = vor.u32 1.1754944e-38, %v3345_v15  ;;  %vm3344_vm2 = vcmp.eq.f32.partialorder %v3343_v20, 8.507059e+37 }
0x3781   :  { %v5555_v30 = vpop.eup %5554 }
0x3782   :  { %v3335_v63 = vmul.f32 %v5555_v30, %v3333_v60  ;;  %vm3340_vm13 = vweird.f32 %v5555_v30 }
0x3783   :  { %vm3341_vm1 = vmor %vm3339_vm0, %vm3340_vm13 }
0x3784   :  { %v3336_v61 = vsub.f32 1.0, %v3335_v63 }
0x3786   :  { %v3337_v27 = vmul.f32 %v5555_v30, %v3336_v61 }
0x3788   :  { %v3338_v40 = vadd.f32 %v5555_v30, %v3337_v27  ;;  %v8551_v27 = vld [vmem:[%s9598_s2 + $0x30] sm:$0xff] }
0x378a   :  { %3380 = vperm.xlu2 %5328, %v8242_v7   ;;  %v3342_v8 = vsel %vm3341_vm1, %v5555_v30, %v3338_v40  ;;  %v3416_v40 = vpop.permute.xlu0 %3415 }
0x378b   :  { %v3347_v11 = vsel %vm3344_vm2, %v3346_v26, %v3342_v8 }
0x378c   :  { %v3433_v28 = vsub.f32 1.0, %v3347_v11 }
0x3792   :  { %5331 = vset.pattern.permute.xlu2 %v9916_v3 }
0x3793   :  { %3401 = vperm.xlu2 %5331, %v8242_v7  }
0x379b   :  { %5332 = vset.pattern.permute.xlu2 %v9917_v21 }
0x379c   :  { %3408 = vperm.xlu2 %5332, %v8242_v7  }
0x37a4   :  { %5335 = vset.pattern.permute.xlu2 %v9845_v58 }
0x37a5   :  { %3429 = vperm.xlu2 %5335, %v3347_v11   ;;  %v3418_v11 = vmul.f32 %v8551_v27, %v3416_v40  ;;  %v9929_v40 = vld [vmem:[#allocation5_spill] sm:$0xff] }
0x37ad   :  { %5338 = vset.pattern.permute.xlu2 %v9918_v9 }
0x37e5   :  { %v3351_v48 = vpop.xlane.xlu2 %3350 }
0x37e6   :  { %v3352_v10 = vsub.f32 %v3349_v43, %v3351_v48 }
0x37e8   :  { %v3353_v35 = vmul.f32 1.442695, %v3352_v10 }
0x37ea   :  { %5556 = vpow2.f32 %v3353_v35  ;;  %v9921_v35 = vld [vmem:[#allocation24_spill] sm:$0xff] }
0x37ed   :  { %v3381_v41 = vpop.permute.xlu2 %3380 }
0x37ee   :  { %v3383_v36 = vmul.f32 %v8525_v51, %v3381_v41 }
0x37f0   :  { %v5557_v6 = vpop.eup %5556  ;;  %v3384_v57 = vadd.f32 %v3383_v36, %v3377_v31 }
0x37f1   :  { %3355 = vadd.xlane.f32.xlu1 %v5557_v6 }
0x37f2   :  { %v3391_v12 = vadd.f32 %v3390_v52, %v3384_v57  ;;  %v9922_v57 = vld [vmem:[#allocation27_spill] sm:$0xff]  ;;  %v8574_v52 = vld [vmem:[%s9591_s5 + $0x38] sm:$0xff] }
0x37f4   :  { %v3398_v47 = vadd.f32 %v3397_v33, %v3391_v12  ;;  %v8586_v12 = vld [vmem:[%s9591_s5 + $0x28] sm:$0xff]  ;;  %v9926_v33 = vld [vmem:[#allocation13_spill] sm:$0xff] }
0x37f5   :  { %v3402_v7 = vpop.permute.xlu2 %3401 }
0x37f6   :  { %v3404_v38 = vmul.f32 %v8538_v22, %v3402_v7 }
0x37f8   :  { %v3405_v63 = vadd.f32 %v3404_v38, %v3398_v47  ;;  %v9927_v38 = vld [vmem:[#allocation19_spill] sm:$0xff] }
0x37fd   :  { %v3409_v56 = vpop.permute.xlu2 %3408 }
0x37fe   :  { %v3411_v55 = vmul.f32 %v8543_v34, %v3409_v56  ;;  %v9923_v56 = vld [vmem:[#allocation6_spill] sm:$0xff] }
0x3800   :  { %v3412_v20 = vadd.f32 %v3411_v55, %v3405_v63 }
0x3802   :  { %v3419_v10 = vadd.f32 %v3418_v11, %v3412_v20  ;;  %v9932_v11 = vld [vmem:[#allocation28_spill] sm:$0xff] }
0x3805   :  { %v3430_v5 = vpop.permute.xlu2 %3429 }
0x380a   :  { %3436 = vperm.xlu1 %5336, %v3433_v28   ;;  %v3425_v28 = vmul.f32 %v9921_v35, %v3423_v50  ;;  %v8568_v50 = vld [vmem:[%s9591_s5 + $0x40] sm:$0xff]  ;;  %v9935_v35 = vld [vmem:[#allocation33_spill] sm:$0xff] }
0x380c   :  { %v3426_v41 = vadd.f32 %v3425_v28, %v3419_v10  ;;  %v9934_v10 = vld [vmem:[#allocation32_spill] sm:$0xff] }
0x380d   :  { %v9938_v28 = vld [vmem:[#allocation36_spill] sm:$0xff] }
0x3812   :  { %5340 = vset.pattern.permute.xlu1 %v9881_v14 }
0x3864   :  { %v3356_v17 = vpop.xlane.xlu1 %3355 }
0x3865   :  { %5558 = vrcp.f32 %v3356_v17  ;;  %v3368_v30 = vand.u32 2147483648, %v3356_v17  ;;  %v3366_v61 = vand.u32 2147483647, %v3356_v17  ;;  %vm3362_vm6 = vweird.f32 %v3356_v17 }
0x3867   :  { %v3369_v8 = vor.u32 1.1754944e-38, %v3368_v30  ;;  %vm3367_vm9 = vcmp.eq.f32.partialorder %v3366_v61, 8.507059e+37 }
0x386b   :  { %v5559_v54 = vpop.eup %5558 }
0x386c   :  { %v3358_v25 = vmul.f32 %v5559_v54, %v3356_v17  ;;  %vm3363_vm5 = vweird.f32 %v5559_v54 }
0x386d   :  { %vm3364_vm8 = vmor %vm3362_vm6, %vm3363_vm5 }
0x386e   :  { %v3359_v43 = vsub.f32 1.0, %v3358_v25  ;;  %v9924_v25 = vld [vmem:[#allocation11_spill] sm:$0xff] }
0x3870   :  { %v3360_v60 = vmul.f32 %v5559_v54, %v3359_v43  ;;  %v9928_v43 = vld [vmem:[#allocation10_spill] sm:$0xff] }
0x3872   :  { %v3361_v15 = vadd.f32 %v5559_v54, %v3360_v60 }
0x3874   :  { %v3365_v26 = vsel %vm3364_vm8, %v5559_v54, %v3361_v15  ;;  %v8580_v54 = vld [vmem:[%s9591_s5 + $0x30] sm:$0xff]  ;;  %v9930_v15 = vmov 0.0  }
0x3875   :  { %v3370_v48 = vsel %vm3367_vm9, %v3369_v8, %v3365_v26  ;;  %v9931_v26 = vld [vmem:[#allocation9_spill] sm:$0xff] }
0x3876   :  { %v3371_v16 = vmul.f32 %v5557_v6, %v3370_v48  ;;  %v8562_v6 = vld [vmem:[%s9591_s5 + $0x48] sm:$0xff]  ;;  %v9933_v48 = vld [vmem:[#allocation30_spill] sm:$0xff] }
0x3877   :  { %3482 = vmatpush.msrb.mxu2 %v8562_v6 }
0x3878   :  { %v3432_v36 = vmul.f32 %v3430_v5, %v3371_v16  ;;  %v9939_v16 = vld [vmem:[#allocation37_spill] sm:$0xff]  ;;  %v9941_v5 = vld [vmem:[#allocation15_spill] sm:$0xff] }
0x3879   :  { %3483 = vmatpush.msrb.mxu2 %v8568_v50 }
0x387b   :  { %3484 = vmatpush.msrb.mxu2 %v8574_v52 }
0x387c   :  { %v3437_v7 = vpop.permute.xlu1 %3436 }
0x387d   :  { %v3439_v37 = vmul.f32 %v3437_v7, %v3426_v41  ;;  %3485 = vmatpush.msrb.mxu2 %v8580_v54  ;;  %v9940_v41 = vld [vmem:[#allocation14_spill] sm:$0xff]  ;;  %v9942_v7 = vld [vmem:[#allocation16_spill] sm:$0xff] }
0x387f   :  { %v3440_v31 = vadd.f32 %v3439_v37, %v3432_v36  ;;  %3486 = vmatpush.msrb.mxu2 %v8586_v12  ;;  %v9943_v36 = vld [vmem:[#allocation17_spill] sm:$0xff]  ;;  %v9944_v37 = vld [vmem:[#allocation38_spill] sm:$0xff] }
0x3881   :  { %5178 = vst [vmem:[%s9599_s12 + $0x20] sm:$0xff] %v3440_v31  ;;  %3443 = vmax.xlane.f32.xlu2 %v3440_v31  ;;  %3487 = vmatpush.msrb.mxu2 %v9923_v56 }
0x3883   :  { %3488 = vmatpush.msrb.mxu2 %v9924_v25 }
0x3885   :  { %3489 = vmatpush.msrb.mxu2 %v9925_v19 }
0x3887   :  { %3490 = vmatpush.msrb.mxu2 %v9926_v33 }
0x3889   :  { %3491 = vmatpush.msrb.mxu2 %v9927_v38 }
0x388b   :  { %3743 = vmatpush.msra.mxu2 %v9928_v43 }
0x38f4   :  { %v3444_v17 = vpop.xlane.xlu2 %3443 }
0x38f5   :  { %vm3445_vm10 = vcmp.eq.f32.partialorder %v3440_v31, %v3444_v17 }
0x38f6   :  { %v3446_v46 = vsel %vm3445_vm10, %v9922_v57, 128.0 }
0x38f7   :  { %3447 = vmin.xlane.f32.xlu0 %v3446_v46 }
0x396a   :  { %v3448_v47 = vpop.xlane.xlu0 %3447 }
0x396b   :  { %vm5254_vm11 = vcmp.lt.s32.totalorder %v3448_v47, 0  ;;  %v5255_v55 = vceil.f32 %v3448_v47  ;;  %v5256_v60 = vfloor.f32 %v3448_v47 }
0x396d   :  { %v5257_v30 = vsel %vm5254_vm11, %v5255_v55, %v5256_v60 }
0x396e   :  { %v5258_v63 = vcvt.f32.s32 %v5257_v30 }
0x3970   :  { %5179 = vst.msk [vmem:[%s9600_s13 + $0x20] sm:$0xff] %vm1302_vm3, %v5258_v63  ;;  %vm3452_vm13 = vcmp.ge.s32.totalorder %v5258_v63, 32 }
0x3971   :  { %v3453_v61 = vsel %vm3452_vm13, 1, %v5258_v63 }
0x3972   :  { %vm3454_vm0 = vcmp.eq.s32.totalorder %v3453_v61, %v9929_v40 }
0x3973   :  { %v5180_v20 = vsel %vm3454_vm0, 1.0, %v9930_v15 }
0x3974   :  { %3457 = vst.msk [vmem:[#allocation4] sm:$0xff] %vm48_vm4, %v5180_v20 }
0x3975   :  { %3458 = vst.msk [vmem:[#allocation4] sm:$0xff] %vm185_vm14, %v8490_v42  ;;  %v9936_v42 = vld [vmem:[#allocation34_spill] sm:$0xff] }
0x3976   :  { %3459 = vst.msk [vmem:[#allocation4] sm:$0xff] %vm255_vm15, %v7933_v13  ;;  %v9937_v13 = vld [vmem:[#allocation35_spill] sm:$0xff] }
0x397d   :  { %v3460_v8 = vld [vmem:[#allocation4] sm:$0xff] }
0x397e   :  { %5181 = vmatmul.msk.f32.vlgmr.msrb.gmra.mxu2 %vm796_vm7, %v3460_v8  ;;  %3824 = vst.msk [vmem:[#allocation4] sm:$0xff] %vm48_vm4, %v5180_v20 }
0x397f   :  { %3804 = vmatpush.msrb.mxu2 %v9931_v26  ;;  %v9946_v26 = vld [vmem:[#allocation20_spill] sm:$0xff] }
0x3981   :  { %3805 = vmatpush.msrb.mxu2 %v9932_v11 }
0x3983   :  { %3806 = vmatpush.msrb.mxu2 %v9933_v48 }
0x3985   :  { %3807 = vmatpush.msrb.mxu2 %v9934_v10 }
0x3987   :  { %3808 = vmatpush.msrb.mxu2 %v8214_v44  ;;  %v9945_v44 = vld [vmem:[#allocation39_spill] sm:$0xff] }
0x3989   :  { %3809 = vmatpush.msrb.mxu2 %v9935_v35 }
0x398b   :  { %3810 = vmatpush.msrb.mxu2 %v9936_v42 }
0x398d   :  { %3811 = vmatpush.msrb.mxu2 %v9937_v13 }
0x398f   :  { %3812 = vmatpush.msrb.mxu2 %v9938_v28 }
0x3991   :  { %3813 = vmatpush.msrb.mxu2 %v9939_v16 }
0x3993   :  { %3814 = vmatpush.msrb.mxu2 %v9940_v41 }
0x3995   :  { %3815 = vmatpush.msrb.mxu2 %v9941_v5 }
0x3997   :  { %3816 = vmatpush.msrb.mxu2 %v9942_v7 }
0x3999   :  { %3817 = vmatpush.msrb.mxu2 %v9943_v36 }
0x399b   :  { %3818 = vmatpush.msrb.mxu2 %v9944_v37 }
0x399d   :  { %3819 = vmatpush.msrb.mxu2 %v9945_v44 }
0x3a01   :  { %v3493_v31 = vpop.f32.mrf.mxu2 }
0x3a02   :  { %5560 = vtanh.f32 %v3493_v31  ;;  %v5182_v46 = vmul.f32 -1.442695, %v3493_v31 }
0x3a04   :  { %5562 = vpow2.f32 %v5182_v46 }
0x3a08   :  { %v5561_v17 = vpop.eup %5560 }
0x3a09   :  { %3518 = vrot.lane.b32.xlu1 %v5561_v17, %s5644_s17 }
0x3a0a   :  { %v5563_v56 = vpop.eup %5562 }
0x3a0b   :  { %v3499_v25 = vadd.f32 1.0, %v5563_v56 }
0x3a0d   :  { %5564 = vrcp.f32 %v3499_v25  ;;  %v3511_v55 = vand.u32 2147483648, %v3499_v25  ;;  %vm3505_vm2 = vweird.f32 %v3499_v25  ;;  %v3509_v60 = vand.u32 2147483647, %v3499_v25 }
0x3a0f   :  { %v3512_v63 = vor.u32 1.1754944e-38, %v3511_v55  ;;  %vm3510_vm6 = vcmp.eq.f32.partialorder %v3509_v60, 8.507059e+37 }
0x3a13   :  { %v5565_v19 = vpop.eup %5564 }
0x3a14   :  { %v3501_v33 = vmul.f32 %v5565_v19, %v3499_v25  ;;  %vm3506_vm1 = vweird.f32 %v5565_v19 }
0x3a15   :  { %vm3507_vm5 = vmor %vm3505_vm2, %vm3506_vm1 }
0x3a16   :  { %v3502_v38 = vsub.f32 1.0, %v3501_v33 }
0x3a18   :  { %v3503_v43 = vmul.f32 %v5565_v19, %v3502_v38 }
0x3a1a   :  { %v3504_v47 = vadd.f32 %v5565_v19, %v3503_v43  ;;  %v9951_v43 = vld [vmem:[#allocation25_spill] sm:$0xff] }
0x3a1c   :  { %v3508_v30 = vsel %vm3507_vm5, %v5565_v19, %v3504_v47 }
0x3a1d   :  { %v3513_v20 = vsel %vm3510_vm6, %v3512_v63, %v3508_v30 }
0x3a1e   :  { %v3516_v11 = vmul.f32 %v3513_v20, %v9946_v26 }
0x3a7b   :  { %v3519_v61 = vpop.permute.xlu1 %3518 }
0x3a7c   :  { %v3521_v8 = vmul.f32 %v3519_v61, %v3513_v20 }
0x3a7e   :  { %3523 = vrot.lane.b32.xlu1 %v3521_v8, %s5644_s17 }
0x3af0   :  { %v3524_v48 = vpop.permute.xlu1 %3523 }
0x3af1   :  { %v8627_v10 = vadd.f32 %v3524_v48, %v3516_v11 }
0x3af3   :  { %5566 = vtanh.f32 %v8627_v10 }
0x3af9   :  { %v5567_v35 = vpop.eup %5566 }
0x3afa   :  { %3529 = vrot.lane.b32.xlu1 %v5567_v35, %s5644_s17 }
0x3b6c   :  { %v3530_v42 = vpop.permute.xlu1 %3529 }
0x3b6d   :  { %v8631_v13 = vmul.f32 %v3530_v42, %v3513_v20 }
0x3b6f   :  { %3542 = vrot.lane.b32.xlu1 %v8631_v13, %s5645_s18 }
0x3be1   :  { %v3543_v28 = vpop.permute.xlu1 %3542 }
0x3be2   :  { %5183 = vmatmul.msk.f32.vlgmr.msrb.gmra.mxu3 %vm48_vm4, %v3543_v28  ;;  %5184 = vmatmul.msk.f32.vlgmr.msra.gmra.mxu0 %vm48_vm4, %v3543_v28 }
0x3be3   :  { %3851 = vmatpush.msrb.mxu3 %v8415_v29 }
0x3be5   :  { %3852 = vmatpush.msrb.mxu3 %v8420_v1  ;;  %v9947_v1 = vld [vmem:[#allocation8_spill] sm:$0xff] }
0x3be7   :  { %3853 = vmatpush.msrb.mxu3 %v8426_v32 }
0x3be9   :  { %3854 = vmatpush.msrb.mxu3 %v8432_v4 }
0x3beb   :  { %3855 = vmatpush.msrb.mxu3 %v8438_v59  ;;  %v9948_v59 = vld [vmem:[#allocation7_spill] sm:$0xff] }
0x3bed   :  { %3856 = vmatpush.msrb.mxu3 %v8444_v23 }
0x3bef   :  { %3857 = vmatpush.msrb.mxu3 %v8450_v53 }
0x3bf1   :  { %3858 = vmatpush.msrb.mxu3 %v8462_v45  ;;  %v9949_v45 = vld [vmem:[#allocation21_spill] sm:$0xff] }
0x3bf3   :  { %3859 = vmatpush.msrb.mxu3 %v8468_v49  ;;  %v9950_v49 = vld [vmem:[#allocation23_spill] sm:$0xff] }
0x3bf4   :  { %v8653_v41 = vadd.f32 %v9950_v49, %v9949_v45 }
0x3bf5   :  { %3860 = vmatpush.msrb.mxu3 %v8473_v18 }
0x3bf6   :  { %v3677_v17 = vand.u32 2147483648, %v8653_v41  ;;  %vm3671_vm9 = vweird.f32 %v8653_v41  ;;  %v3675_v46 = vand.u32 2147483647, %v8653_v41 }
0x3bf7   :  { %3861 = vmatpush.msrb.mxu3 %v8479_v0 }
0x3bf8   :  { %v3678_v25 = vor.u32 1.1754944e-38, %v3677_v17  ;;  %vm3676_vm11 = vcmp.eq.f32.partialorder %v3675_v46, 8.507059e+37 }
0x3bf9   :  { %3862 = vmatpush.msrb.mxu3 %v8486_v2 }
0x3c5f   :  { %v3583_v29 = vpop.f32.mrf.mxu0 }
0x3c60   :  { %v3589_v32 = vadd.f32 %v3583_v29, %v9947_v1 }
0x3c62   :  { %5568 = vtanh.f32 %v3589_v32 }
0x3c65   :  { %v3563_v4 = vpop.f32.mrf.mxu3 }
0x3c66   :  { %v3588_v16 = vadd.f32 %v3563_v4, %v9948_v59  ;;  %v8673_v4 = vld [vmem:[#allocation2] sm:$0xff] }
0x3c68   :  { %v5569_v23 = vpop.eup %5568  ;;  %5570 = vtanh.f32 %v3588_v16 }
0x3c69   :  { %3660 = vmatmul.f32.vlgmr.msrb.gmra.mxu0 %v5569_v23  ;;  %5572 = vrcp.f32 %v8653_v41 }
0x3c6e   :  { %v5571_v53 = vpop.eup %5570 }
0x3c6f   :  { %3640 = vmatmul.f32.vlgmr.msra.gmra.mxu3 %v5571_v53  ;;  %v5573_v18 = vpop.eup %5572  ;;  %v8676_v53 = vld [vmem:[#allocation2 + $0x8] sm:$0xff] }
0x3c70   :  { %v3667_v0 = vmul.f32 %v5573_v18, %v8653_v41  ;;  %vm3672_vm8 = vweird.f32 %v5573_v18 }
0x3c71   :  { %vm3673_vm10 = vmor %vm3671_vm9, %vm3672_vm8 }
0x3c72   :  { %v3668_v2 = vsub.f32 1.0, %v3667_v0 }
0x3c74   :  { %v3669_v36 = vmul.f32 %v5573_v18, %v3668_v2  ;;  %v9952_v2 = vmov 2  }
0x3c76   :  { %v3670_v31 = vadd.f32 %v5573_v18, %v3669_v36 }
0x3c78   :  { %v3674_v56 = vsel %vm3673_vm10, %v5573_v18, %v3670_v31 }
0x3c79   :  { %v3679_v33 = vsel %vm3676_vm11, %v3678_v25, %v3674_v56 }
0x3ce6   :  { %v3661_v5 = vpop.f32.mrf.mxu0 }
0x3cf2   :  { %v3641_v7 = vpop.f32.mrf.mxu3 }
0x3cf3   :  { %v3662_v37 = vadd.f32 %v3661_v5, %v3641_v7  ;;  %v9953_v5 = vmov 6  }
0x3cf5   :  { %v3664_v44 = vmul.f32 1.442695, %v3662_v37 }
0x3cf7   :  { %5574 = vpow2.f32 %v3664_v44 }
0x3cfd   :  { %v8660_v19 = vpop.eup %5574 }
0x3cfe   :  { %v3680_v38 = vmul.f32 %v8660_v19, %v3679_v33 }
0x3d00   :  { %v3683_v47 = vmul.f32 %v3680_v38, %v9951_v43 }
0x3d02   :  { %v3684_v55 = vsel %vm992_vm12, %v3683_v47, 0.0 }
0x3d03   :  { %3685 = vadd.xlane.f32.xlu1 %v3684_v55 }
0x3d76   :  { %v3686_v60 = vpop.xlane.xlu1 %3685 }
0x3d77   :  { %v3687_v30 = vadd.f32 1e-12, %v3686_v60 }
0x3d79   :  { %5576 = vrcp.f32 %v3687_v30  ;;  %v3699_v8 = vand.u32 2147483648, %v3687_v30  ;;  %v3697_v11 = vand.u32 2147483647, %v3687_v30  ;;  %vm3693_vm0 = vweird.f32 %v3687_v30 }
0x3d7b   :  { %v3700_v35 = vor.u32 1.1754944e-38, %v3699_v8  ;;  %vm3698_vm2 = vcmp.eq.f32.partialorder %v3697_v11, 8.507059e+37 }
0x3d7f   :  { %v5577_v63 = vpop.eup %5576 }
0x3d80   :  { %v3689_v61 = vmul.f32 %v5577_v63, %v3687_v30  ;;  %vm3694_vm13 = vweird.f32 %v5577_v63 }
0x3d81   :  { %vm3695_vm1 = vmor %vm3693_vm0, %vm3694_vm13 }
0x3d82   :  { %v3690_v20 = vsub.f32 1.0, %v3689_v61 }
0x3d84   :  { %v3691_v26 = vmul.f32 %v5577_v63, %v3690_v20  ;;  %v9954_v20 = vmov 0  }
0x3d86   :  { %v3692_v48 = vadd.f32 %v5577_v63, %v3691_v26 }
0x3d88   :  { %v3696_v42 = vsel %vm3695_vm1, %v5577_v63, %v3692_v48 }
0x3d89   :  { %v3701_v28 = vsel %vm3698_vm2, %v3700_v35, %v3696_v42 }
0x3d8a   :  { %v8665_v29 = vmul.f32 %v3701_v28, %v3683_v47 }
0x3d8c   :  { %3931 = vperm.xlu1 %5340, %v8665_v29   ;;  %5185 = vmatmul.msk.f32.vlgmr.msra.gmra.mxu1 %vm992_vm12, %v8665_v29 }
0x3d8d   :  { %5186 = vmatmul.msk.f32.vlgmr.msra.gmra.mxu2 %vm992_vm12, %v8665_v29 }
0x3d94   :  { %5345 = vset.pattern.permute.xlu1 %v9845_v58 }
0x3e09   :  { %v3725_v32 = vpop.f32.mrf.mxu1 }
0x3e0a   :  { %v3750_v16 = vmul.f32 %v8673_v4, %v3725_v32  ;;  %v8707_v32 = vld [vmem:[%s9598_s2] sm:$0xff] }
0x3e0b   :  { %9955 = vst [vmem:[#allocation29_spill] sm:$0xff] %v8707_v32 }
0x3e0c   :  { %3800 = vmatmul.f32.vlgmr.msrb.gmra.mxu1 %v3750_v16 }
0x3e10   :  { %v3745_v23 = vpop.f32.mrf.mxu2 }
0x3e11   :  { %v3751_v45 = vmul.f32 %v8676_v53, %v3745_v23 }
0x3e13   :  { %3820 = vmatmul.f32.vlgmr.msrb.gmra.mxu2 %v3751_v45 }
0x3e89   :  { %v3801_v49 = vpop.f32.mrf.mxu1 }
0x3e96   :  { %v3821_v18 = vpop.f32.mrf.mxu2 }
0x3e97   :  { %v3822_v0 = vadd.f32 %v3821_v18, %v3801_v49 }
0x3e99   :  { %3826 = vrot.lane.b32.xlu2 %v3822_v0, %s5644_s17  ;;  %v8715_v0 = vld [vmem:[%s9598_s2 + $0x18] sm:$0xff] }
0x3e9a   :  { %9956 = vst [vmem:[#allocation31_spill] sm:$0xff] %v8715_v0 }
0x3ea1   :  { %3917 = vperm.xlu2 %5338, %v8665_v29  }
0x3ea9   :  { %5339 = vset.pattern.permute.xlu2 %v9952_v2 }
0x3eaa   :  { %3924 = vperm.xlu2 %5339, %v8665_v29  }
0x3eb2   :  { %5341 = vset.pattern.permute.xlu2 %v9916_v3 }
0x3eb3   :  { %3938 = vperm.xlu2 %5341, %v8665_v29  }
0x3ebb   :  { %5342 = vset.pattern.permute.xlu2 %v9917_v21 }
0x3ebc   :  { %3945 = vperm.xlu2 %5342, %v8665_v29  }
0x3ec4   :  { %5343 = vset.pattern.permute.xlu2 %v9953_v5 }
0x3ec5   :  { %3952 = vperm.xlu2 %5343, %v8665_v29  }
0x3ecd   :  { %5346 = vset.pattern.permute.xlu2 %v9845_v58 }
0x3ef3   :  { %v8690_v7 = vpop.permute.xlu2 %3826 }
0x3ef4   :  { %3829 = vst.msk [vmem:[#allocation4] sm:$0xff] %vm185_vm14, %v8690_v7 }
0x3ef5   :  { %3830 = vst.msk [vmem:[#allocation4] sm:$0xff] %vm255_vm15, %v8631_v13 }
0x3efb   :  { %v3918_v35 = vpop.permute.xlu2 %3917 }
0x3efc   :  { %v3831_v36 = vld [vmem:[#allocation4] sm:$0xff]  ;;  %v3920_v45 = vmul.f32 %v8525_v51, %v3918_v35 }
0x3efd   :  { %5187 = vmatmul.msk.f32.vlgmr.msrb.gmra.mxu3 %vm796_vm7, %v3831_v36  ;;  %v3932_v36 = vpop.permute.xlu1 %3931 }
0x3f04   :  { %v3925_v42 = vpop.permute.xlu2 %3924 }
0x3f0d   :  { %v3939_v16 = vpop.permute.xlu2 %3938 }
0x3f0e   :  { %v3941_v51 = vmul.f32 %v8538_v22, %v3939_v16  ;;  %v8723_v22 = vld [vmem:[%s9598_s2 + $0x38] sm:$0xff] }
0x3f0f   :  { %9957 = vst [vmem:[#allocation18_spill] sm:$0xff] %v8723_v22 }
0x3f80   :  { %v3864_v37 = vpop.f32.mrf.mxu3 }
0x3f81   :  { %v5188_v44 = vmul.f32 -1.442695, %v3864_v37  ;;  %v3886_v31 = vadd.f32 %v3864_v37, %v9915_v62 }
0x3f83   :  { %5578 = vpow2.f32 %v5188_v44  ;;  %3887 = vmax.xlane.f32.xlu0 %v3886_v31  ;;  %v3946_v44 = vpop.permute.xlu2 %3945 }
0x3f89   :  { %v5579_v17 = vpop.eup %5578 }
0x3f8a   :  { %v3870_v46 = vadd.f32 1.0, %v5579_v17 }
0x3f8c   :  { %5580 = vrcp.f32 %v3870_v46  ;;  %v3882_v38 = vand.u32 2147483648, %v3870_v46  ;;  %v3880_v47 = vand.u32 2147483647, %v3870_v46  ;;  %vm3876_vm6 = vweird.f32 %v3870_v46 }
0x3f8e   :  { %v3883_v60 = vor.u32 1.1754944e-38, %v3882_v38  ;;  %vm3881_vm9 = vcmp.eq.f32.partialorder %v3880_v47, 8.507059e+37  ;;  %v3948_v47 = vmul.f32 %v8543_v34, %v3946_v44 }
0x3f92   :  { %v5581_v56 = vpop.eup %5580 }
0x3f93   :  { %v3872_v25 = vmul.f32 %v5581_v56, %v3870_v46  ;;  %vm3877_vm5 = vweird.f32 %v5581_v56 }
0x3f94   :  { %vm3878_vm8 = vmor %vm3876_vm6, %vm3877_vm5 }
0x3f95   :  { %v3873_v33 = vsub.f32 1.0, %v3872_v25 }
0x3f97   :  { %3911 = vperm.xlu0 %5337, %v8665_v29   ;;  %v3874_v43 = vmul.f32 %v5581_v56, %v3873_v33 }
0x3f99   :  { %v3875_v55 = vadd.f32 %v5581_v56, %v3874_v43 }
0x3f9b   :  { %v3879_v30 = vsel %vm3878_vm8, %v5581_v56, %v3875_v55 }
0x3f9c   :  { %v3884_v63 = vsel %vm3881_vm9, %v3883_v60, %v3879_v30  ;;  %v3953_v60 = vpop.permute.xlu2 %3952 }
0x3f9d   :  { %3966 = vperm.xlu1 %5345, %v3884_v63   ;;  %v3970_v61 = vsub.f32 1.0, %v3884_v63 }
0x3f9f   :  { %3973 = vperm.xlu2 %5346, %v3970_v61   ;;  %5344 = vset.pattern.permute.xlu0 %v9880_v39 }
0x3fa5   :  { %5348 = vset.pattern.permute.xlu1 %v9918_v9 }
0x3fa7   :  { %5347 = vset.pattern.permute.xlu2 %v9954_v20  ;;  %v9050_v20 = vadd.f32 %v8660_v19, %v8653_v41 }
0x3fa9   :  { %9965 = vst [vmem:[#allocation10_spill] sm:$0xff] %v9050_v20  ;;  %v4212_v41 = vand.u32 2147483647, %v9050_v20 }
0x3ff6   :  { %v3888_v8 = vpop.xlane.xlu0 %3887 }
0x3ff7   :  { %v3889_v26 = vsub.f32 %v3886_v31, %v3888_v8  ;;  %v3934_v31 = vmul.f32 %v8715_v0, %v3932_v36 }
0x3ff9   :  { %v3890_v11 = vmul.f32 1.442695, %v3889_v26  ;;  %v3955_v26 = vmul.f32 %v8551_v27, %v3953_v60  ;;  %v3974_v16 = vpop.permute.xlu2 %3973  ;;  %v8733_v27 = vld [vmem:[%s9591_s5 + $0x58] sm:$0xff] }
0x3ffa   :  { %4017 = vmatpush.msra.mxu0 %v8733_v27 }
0x3ffb   :  { %5582 = vpow2.f32 %v3890_v11 }
0x4001   :  { %v5583_v48 = vpop.eup %5582 }
0x4002   :  { %3892 = vadd.xlane.f32.xlu0 %v5583_v48 }
0x4009   :  { %v3912_v28 = vpop.permute.xlu0 %3911 }
0x400a   :  { %v3914_v23 = vmul.f32 %v3912_v28, %v8707_v32 }
0x400c   :  { %v3921_v49 = vadd.f32 %v3920_v45, %v3914_v23 }
0x400f   :  { %v3967_v23 = vpop.permute.xlu1 %3966 }
0x4016   :  { %3959 = vperm.xlu0 %5344, %v8665_v29   ;;  %v3927_v29 = vmul.f32 %v8532_v24, %v3925_v42 }
0x4018   :  { %v3928_v37 = vadd.f32 %v3927_v29, %v3921_v49 }
0x401a   :  { %v3935_v46 = vadd.f32 %v3934_v31, %v3928_v37  ;;  %v8751_v37 = vld [vmem:[%s9591_s5 + $0x20] sm:$0xff] }
0x401b   :  { %9958 = vst [vmem:[#allocation22_spill] sm:$0xff] %v8751_v37 }
0x401c   :  { %v3942_v43 = vadd.f32 %v3941_v51, %v3935_v46 }
0x401e   :  { %5350 = vset.pattern.permute.xlu0 %v9881_v14  ;;  %v3949_v63 = vadd.f32 %v3948_v47, %v3942_v43  ;;  %v9005_v14 = vld [vmem:[%s9593_s9 + $0x8] sm:$0xff] }
0x4020   :  { %v3956_v35 = vadd.f32 %v3955_v26, %v3949_v63 }
0x4075   :  { %v3893_v18 = vpop.xlane.xlu0 %3892 }
0x4076   :  { %5584 = vrcp.f32 %v3893_v18  ;;  %v3905_v33 = vand.u32 2147483648, %v3893_v18  ;;  %v3903_v24 = vand.u32 2147483647, %v3893_v18  ;;  %vm3899_vm11 = vweird.f32 %v3893_v18 }
0x4078   :  { %v3906_v30 = vor.u32 1.1754944e-38, %v3905_v33  ;;  %vm3904_vm0 = vcmp.eq.f32.partialorder %v3903_v24, 8.507059e+37 }
0x407c   :  { %v5585_v17 = vpop.eup %5584 }
0x407d   :  { %v3895_v56 = vmul.f32 %v5585_v17, %v3893_v18  ;;  %vm3900_vm10 = vweird.f32 %v5585_v17 }
0x407e   :  { %vm3901_vm13 = vmor %vm3899_vm11, %vm3900_vm10 }
0x407f   :  { %v3896_v25 = vsub.f32 1.0, %v3895_v56 }
0x4081   :  { %v3897_v38 = vmul.f32 %v5585_v17, %v3896_v25 }
0x4083   :  { %v3898_v55 = vadd.f32 %v5585_v17, %v3897_v38 }
0x4085   :  { %v3902_v61 = vsel %vm3901_vm13, %v5585_v17, %v3898_v55 }
0x4086   :  { %v3907_v8 = vsel %vm3904_vm0, %v3906_v30, %v3902_v61  ;;  %vm4208_vm0 = vweird.f32 %v9050_v20 }
0x4087   :  { %v3908_v42 = vmul.f32 %v5583_v48, %v3907_v8  ;;  %v8738_v48 = vld [vmem:[%s9591_s5 + $0x50] sm:$0xff] }
0x4088   :  { %v3960_v11 = vpop.permute.xlu0 %3959  ;;  %4018 = vmatpush.msra.mxu0 %v8738_v48 }
0x4089   :  { %v3962_v34 = vmul.f32 %v8723_v22, %v3960_v11  ;;  %v3969_v49 = vmul.f32 %v3967_v23, %v3908_v42 }
0x408a   :  { %4019 = vmatpush.msra.mxu0 %v8562_v6  ;;  %v8757_v6 = vld [vmem:[%s9591_s5 + $0x18] sm:$0xff] }
0x408b   :  { %v3963_v28 = vadd.f32 %v3962_v34, %v3956_v35  ;;  %9959 = vst [vmem:[#allocation24_spill] sm:$0xff] %v8757_v6 }
0x408c   :  { %4020 = vmatpush.msra.mxu0 %v8568_v50  ;;  %v8762_v50 = vld [vmem:[%s9591_s5 + $0x10] sm:$0xff] }
0x408d   :  { %v3976_v45 = vmul.f32 %v3974_v16, %v3963_v28  ;;  %9960 = vst [vmem:[#allocation6_spill] sm:$0xff] %v8762_v50 }
0x408e   :  { %4021 = vmatpush.msra.mxu0 %v8574_v52  ;;  %v8768_v52 = vld [vmem:[%s9591_s5 + $0x8] sm:$0xff] }
0x408f   :  { %v3977_v18 = vadd.f32 %v3976_v45, %v3969_v49  ;;  %9961 = vst [vmem:[#allocation11_spill] sm:$0xff] %v8768_v52  ;;  %v8801_v45 = vld [vmem:[%s9592_s7 + $0x38] sm:$0xff]  ;;  %v8806_v49 = vld [vmem:[%s9592_s7 + $0x30] sm:$0xff] }
0x4090   :  { %4022 = vmatpush.msra.mxu0 %v8580_v54  ;;  %v8774_v54 = vld [vmem:[%s9591_s5] sm:$0xff]  ;;  %4115 = vmatpush.msra.mxu2 %v8801_v45 }
0x4091   :  { %3980 = vmax.xlane.f32.xlu1 %v3977_v18  ;;  %5196 = vst [vmem:[%s9599_s12 + $0x28] sm:$0xff] %v3977_v18  ;;  %4095 = vmatpush.msra.mxu1 %v8806_v49 }
0x4092   :  { %4023 = vmatpush.msra.mxu0 %v8586_v12  ;;  %9962 = vst [vmem:[#allocation12_spill] sm:$0xff] %v8774_v54 }
0x4094   :  { %4024 = vmatpush.msra.mxu0 %v8751_v37 }
0x4096   :  { %4025 = vmatpush.msra.mxu0 %v8757_v6 }
0x4098   :  { %4026 = vmatpush.msra.mxu0 %v8762_v50  ;;  %v9040_v50 = vld [vmem:[%s9593_s9 + $0x80] sm:$0xff] }
0x409a   :  { %4027 = vmatpush.msra.mxu0 %v8768_v52  ;;  %v9034_v52 = vld [vmem:[%s9593_s9 + $0x88] sm:$0xff] }
0x409c   :  { %4028 = vmatpush.msra.mxu0 %v8774_v54  ;;  %v9029_v54 = vld [vmem:[%s9593_s9 + $0x90] sm:$0xff] }
0x4104   :  { %v3981_v29 = vpop.xlane.xlu1 %3980 }
0x4105   :  { %vm3982_vm1 = vcmp.eq.f32.partialorder %v3977_v18, %v3981_v29  ;;  %v8818_v18 = vld [vmem:[%s9592_s7 + $0x20] sm:$0xff]  ;;  %v8823_v29 = vld [vmem:[%s9592_s7 + $0x18] sm:$0xff] }
0x4106   :  { %v3983_v36 = vsel %vm3982_vm1, %v9922_v57, 128.0  ;;  %4096 = vmatpush.msra.mxu1 %v8818_v18 }
0x4107   :  { %3984 = vmin.xlane.f32.xlu2 %v3983_v36  ;;  %v8828_v36 = vld [vmem:[%s9592_s7 + $0x10] sm:$0xff] }
0x4108   :  { %4097 = vmatpush.msra.mxu1 %v8828_v36 }
0x417a   :  { %v3985_v12 = vpop.xlane.xlu2 %3984 }
0x417b   :  { %vm5259_vm2 = vcmp.lt.s32.totalorder %v3985_v12, 0  ;;  %v5260_v44 = vceil.f32 %v3985_v12  ;;  %v5261_v31 = vfloor.f32 %v3985_v12  ;;  %v8835_v12 = vld [vmem:[%s9592_s7 + $0x8] sm:$0xff] }
0x417d   :  { %v5262_v17 = vsel %vm5259_vm2, %v5260_v44, %v5261_v31  ;;  %v8840_v44 = vld [vmem:[%s9592_s7] sm:$0xff]  ;;  %vm4213_vm2 = vcmp.eq.f32.partialorder %v4212_v41, 8.507059e+37 }
0x417e   :  { %v5263_v46 = vcvt.f32.s32 %v5262_v17  ;;  %4098 = vmatpush.msra.mxu1 %v8840_v44 }
0x4180   :  { %5197 = vst.msk [vmem:[%s9600_s13 + $0x28] sm:$0xff] %vm1302_vm3, %v5263_v46  ;;  %vm3989_vm5 = vcmp.ge.s32.totalorder %v5263_v46, 32 }
0x4181   :  { %v3990_v56 = vsel %vm3989_vm5, 1, %v5263_v46  ;;  %v8853_v46 = vld [vmem:[%s9593_s9 + $0x78] sm:$0xff] }
0x4182   :  { %vm3991_vm6 = vcmp.eq.s32.totalorder %v3990_v56, %v9929_v40  ;;  %v8858_v56 = vld [vmem:[%s9593_s9 + $0x70] sm:$0xff]  ;;  %4161 = vmatpush.msrb.mxu1 %v8853_v46  ;;  %v9022_v40 = vld [vmem:[%s9593_s9 + $0x98] sm:$0xff] }
0x4183   :  { %v5198_v51 = vsel %vm3991_vm6, 1.0, %v9930_v15  ;;  %v9017_v15 = vld [vmem:[%s9593_s9] sm:$0xff] }
0x4184   :  { %3994 = vst.msk [vmem:[#allocation4] sm:$0xff] %vm48_vm4, %v5198_v51  ;;  %4162 = vmatpush.msrb.mxu1 %v8858_v56 }
0x4185   :  { %3995 = vst.msk [vmem:[#allocation4] sm:$0xff] %vm185_vm14, %v8690_v7 }
0x4186   :  { %3996 = vst.msk [vmem:[#allocation4] sm:$0xff] %vm255_vm15, %v8631_v13 }
0x418d   :  { %v3997_v25 = vld [vmem:[#allocation4] sm:$0xff] }
0x418e   :  { %5199 = vmatmul.msk.f32.vlgmr.msra.gmra.mxu0 %vm796_vm7, %v3997_v25  ;;  %4361 = vst.msk [vmem:[#allocation4] sm:$0xff] %vm48_vm4, %v5198_v51  ;;  %v8864_v51 = vld [vmem:[%s9593_s9 + $0xf8] sm:$0xff]  ;;  %v8869_v25 = vld [vmem:[%s9593_s9 + $0x68] sm:$0xff] }
0x418f   :  { %4163 = vmatpush.msrb.mxu1 %v8869_v25 }
0x420b   :  { %v4030_v33 = vpop.f32.mrf.mxu0 }
0x420c   :  { %5586 = vtanh.f32 %v4030_v33  ;;  %v5200_v24 = vmul.f32 -1.442695, %v4030_v33  ;;  %v8875_v33 = vld [vmem:[%s9593_s9 + $0xf0] sm:$0xff] }
0x420e   :  { %5588 = vpow2.f32 %v5200_v24  ;;  %v8886_v24 = vld [vmem:[%s9593_s9 + $0x60] sm:$0xff] }
0x420f   :  { %4164 = vmatpush.msrb.mxu1 %v8886_v24 }
0x4212   :  { %v5587_v38 = vpop.eup %5586 }
0x4213   :  { %4055 = vrot.lane.b32.xlu0 %v5587_v38, %s5644_s17  ;;  %v8881_v38 = vld [vmem:[%s9593_s9 + $0xe8] sm:$0xff] }
0x4214   :  { %v5589_v43 = vpop.eup %5588 }
0x4215   :  { %v4036_v47 = vadd.f32 1.0, %v5589_v43  ;;  %v8893_v43 = vld [vmem:[%s9593_s9 + $0xe0] sm:$0xff] }
0x4217   :  { %5590 = vrcp.f32 %v4036_v47  ;;  %v4048_v63 = vand.u32 2147483648, %v4036_v47  ;;  %vm4042_vm9 = vweird.f32 %v4036_v47  ;;  %v4046_v61 = vand.u32 2147483647, %v4036_v47 }
0x4219   :  { %v4049_v26 = vor.u32 1.1754944e-38, %v4048_v63  ;;  %vm4047_vm11 = vcmp.eq.f32.partialorder %v4046_v61, 8.507059e+37  ;;  %v8934_v63 = vld [vmem:[%s9593_s9 + $0x40] sm:$0xff] }
0x421a   :  { %v8941_v61 = vld [vmem:[%s9593_s9 + $0xc0] sm:$0xff] }
0x421d   :  { %v5591_v55 = vpop.eup %5590 }
0x421e   :  { %v4038_v7 = vmul.f32 %v5591_v55, %v4036_v47  ;;  %vm4043_vm8 = vweird.f32 %v5591_v55  ;;  %v8898_v47 = vld [vmem:[%s9593_s9 + $0x58] sm:$0xff] }
0x421f   :  { %vm4044_vm10 = vmor %vm4042_vm9, %vm4043_vm8  ;;  %4165 = vmatpush.msrb.mxu1 %v8898_v47 }
0x4220   :  { %v4039_v60 = vsub.f32 1.0, %v4038_v7  ;;  %v8910_v7 = vld [vmem:[%s9593_s9 + $0x50] sm:$0xff] }
0x4221   :  { %4166 = vmatpush.msrb.mxu1 %v8910_v7 }
0x4222   :  { %v4040_v30 = vmul.f32 %v5591_v55, %v4039_v60  ;;  %v8917_v60 = vld [vmem:[%s9593_s9 + $0xd0] sm:$0xff] }
0x4224   :  { %v4041_v13 = vadd.f32 %v5591_v55, %v4040_v30  ;;  %v8922_v30 = vld [vmem:[%s9593_s9 + $0x48] sm:$0xff] }
0x4225   :  { %4167 = vmatpush.msrb.mxu1 %v8922_v30 }
0x4226   :  { %v4045_v8 = vsel %vm4044_vm10, %v5591_v55, %v4041_v13  ;;  %v8905_v55 = vld [vmem:[%s9593_s9 + $0xd8] sm:$0xff]  ;;  %v8929_v13 = vld [vmem:[%s9593_s9 + $0xc8] sm:$0xff] }
0x4227   :  { %v4050_v35 = vsel %vm4047_vm11, %v4049_v26, %v4045_v8  ;;  %v8946_v8 = vld [vmem:[%s9593_s9 + $0x38] sm:$0xff]  ;;  %4168 = vmatpush.msrb.mxu1 %v8934_v63  ;;  %v8953_v26 = vld [vmem:[%s9593_s9 + $0x30] sm:$0xff] }
0x4228   :  { %v4053_v42 = vmul.f32 %v4050_v35, %v8627_v10  ;;  %v8811_v10 = vld [vmem:[%s9592_s7 + $0x28] sm:$0xff] }
0x4229   :  { %4116 = vmatpush.msra.mxu2 %v8811_v10  ;;  %4169 = vmatpush.msrb.mxu1 %v8946_v8 }
0x422b   :  { %4117 = vmatpush.msra.mxu2 %v8823_v29  ;;  %4170 = vmatpush.msrb.mxu1 %v8953_v26 }
0x422d   :  { %4118 = vmatpush.msra.mxu2 %v8835_v12 }
0x422f   :  { %4181 = vmatpush.msrb.mxu2 %v8864_v51 }
0x4231   :  { %4182 = vmatpush.msrb.mxu2 %v8875_v33 }
0x4233   :  { %4183 = vmatpush.msrb.mxu2 %v8881_v38 }
0x4235   :  { %4184 = vmatpush.msrb.mxu2 %v8893_v43 }
0x4237   :  { %4185 = vmatpush.msrb.mxu2 %v8905_v55 }
0x4239   :  { %4186 = vmatpush.msrb.mxu2 %v8917_v60 }
0x423b   :  { %4187 = vmatpush.msrb.mxu2 %v8929_v13 }
0x423d   :  { %4188 = vmatpush.msrb.mxu2 %v8941_v61 }
0x4285   :  { %v4056_v11 = vpop.permute.xlu0 %4055 }
0x4286   :  { %v4058_v34 = vmul.f32 %v4056_v11, %v4050_v35  ;;  %v8960_v11 = vld [vmem:[%s9593_s9 + $0x28] sm:$0xff] }
0x4287   :  { %4171 = vmatpush.msrb.mxu1 %v8960_v11 }
0x4288   :  { %4060 = vrot.lane.b32.xlu0 %v4058_v34, %s5644_s17  ;;  %v8969_v34 = vld [vmem:[%s9593_s9 + $0x20] sm:$0xff] }
0x4289   :  { %4172 = vmatpush.msrb.mxu1 %v8969_v34 }
0x42fa   :  { %v4061_v28 = vpop.permute.xlu0 %4060 }
0x42fb   :  { %v8794_v16 = vadd.f32 %v4061_v28, %v4053_v42  ;;  %v8974_v42 = vld [vmem:[%s9593_s9 + $0xb8] sm:$0xff] }
0x42fc   :  { %4189 = vmatpush.msrb.mxu2 %v8974_v42  ;;  %v8981_v28 = vld [vmem:[%s9593_s9 + $0x18] sm:$0xff] }
0x42fd   :  { %9963 = vst [vmem:[#allocation13_spill] sm:$0xff] %v8794_v16  ;;  %5592 = vtanh.f32 %v8794_v16  ;;  %4173 = vmatpush.msrb.mxu1 %v8981_v28  ;;  %v9010_v16 = vld [vmem:[%s9593_s9 + $0xa0] sm:$0xff] }
0x4303   :  { %v5593_v23 = vpop.eup %5592 }
0x4304   :  { %4066 = vrot.lane.b32.xlu0 %v5593_v23, %s5644_s17  ;;  %v8986_v23 = vld [vmem:[%s9593_s9 + $0xb0] sm:$0xff] }
0x4305   :  { %4190 = vmatpush.msrb.mxu2 %v8986_v23 }
0x4376   :  { %v4067_v31 = vpop.permute.xlu0 %4066 }
0x4377   :  { %v8846_v17 = vmul.f32 %v4067_v31, %v4050_v35  ;;  %v8993_v31 = vld [vmem:[%s9593_s9 + $0x10] sm:$0xff] }
0x4378   :  { %4174 = vmatpush.msrb.mxu1 %v8993_v31 }
0x4379   :  { %9964 = vst [vmem:[#allocation19_spill] sm:$0xff] %v8846_v17  ;;  %4079 = vrot.lane.b32.xlu0 %v8846_v17, %s5645_s18 }
0x437a   :  { %4175 = vmatpush.msrb.mxu1 %v9005_v14 }
0x437c   :  { %4176 = vmatpush.msrb.mxu1 %v9017_v15 }
0x43eb   :  { %v4080_v35 = vpop.permute.xlu0 %4079 }
0x43ec   :  { %5201 = vmatmul.msk.f32.vlgmr.msra.gmra.mxu1 %vm48_vm4, %v4080_v35  ;;  %5202 = vmatmul.msk.f32.vlgmr.msra.gmra.mxu2 %vm48_vm4, %v4080_v35  ;;  %v8998_v35 = vld [vmem:[%s9593_s9 + $0xa8] sm:$0xff] }
0x43ed   :  { %4191 = vmatpush.msrb.mxu2 %v8998_v35 }
0x43ef   :  { %4192 = vmatpush.msrb.mxu2 %v9010_v16 }
0x43f1   :  { %4193 = vmatpush.msrb.mxu2 %v9022_v40 }
0x43f3   :  { %4194 = vmatpush.msrb.mxu2 %v9029_v54 }
0x43f5   :  { %4195 = vmatpush.msrb.mxu2 %v9034_v52 }
0x43f7   :  { %4196 = vmatpush.msrb.mxu2 %v9040_v50 }
0x43f9   :  { %4554 = vmatpush.msra.mxu2 %v8733_v27 }
0x43fb   :  { %4555 = vmatpush.msra.mxu2 %v8738_v48 }
0x4469   :  { %v4100_v6 = vpop.f32.mrf.mxu1 }
0x446a   :  { %v4125_v37 = vadd.f32 %v4100_v6, %v9948_v59 }
0x446c   :  { %5594 = vtanh.f32 %v4125_v37 }
0x446f   :  { %v4120_v57 = vpop.f32.mrf.mxu2 }
0x4470   :  { %v4126_v22 = vadd.f32 %v4120_v57, %v9947_v1 }
0x4472   :  { %v5595_v0 = vpop.eup %5594  ;;  %5596 = vtanh.f32 %v4126_v22 }
0x4473   :  { %4177 = vmatmul.f32.vlgmr.msrb.gmra.mxu1 %v5595_v0  ;;  %5598 = vrcp.f32 %v9050_v20 }
0x4478   :  { %v5597_v32 = vpop.eup %5596 }
0x4479   :  { %4197 = vmatmul.f32.vlgmr.msrb.gmra.mxu2 %v5597_v32  ;;  %v5599_v27 = vpop.eup %5598  ;;  %v4214_v32 = vand.u32 2147483648, %v9050_v20 }
0x447a   :  { %v4204_v48 = vmul.f32 %v5599_v27, %v9050_v20  ;;  %vm4209_vm13 = vweird.f32 %v5599_v27 }
0x447b   :  { %vm4210_vm1 = vmor %vm4208_vm0, %vm4209_vm13  ;;  %v4215_v0 = vor.u32 1.1754944e-38, %v4214_v32 }
0x447c   :  { %v4205_v9 = vsub.f32 1.0, %v4204_v48 }
0x447e   :  { %v4206_v59 = vmul.f32 %v5599_v27, %v4205_v9 }
0x4480   :  { %v4207_v1 = vadd.f32 %v5599_v27, %v4206_v59 }
0x4482   :  { %v4211_v19 = vsel %vm4210_vm1, %v5599_v27, %v4207_v1  ;;  %v9070_v1 = vld [vmem:[%s9595_s10] sm:$0xff]  ;;  %v9075_v27 = vld [vmem:[%s9595_s10 + $0x8] sm:$0xff] }
0x4483   :  { %v4216_v48 = vsel %vm4213_vm2, %v4215_v0, %v4211_v19  ;;  %9968 = vst [vmem:[#allocation30_spill] sm:$0xff] %v9075_v27  ;;  %4260 = vmatpush.msra.mxu3 %v9070_v1  ;;  %4280 = vmatpush.msrb.mxu0 %v9075_v27  ;;  %v9268_v27 = vld [vmem:[%s9596_s11 + $0x10] sm:$0xff] }
0x44f0   :  { %v4178_v6 = vpop.f32.mrf.mxu1 }
0x44fc   :  { %v4198_v37 = vpop.f32.mrf.mxu2 }
0x44fd   :  { %v4199_v62 = vadd.f32 %v4198_v37, %v4178_v6 }
0x44ff   :  { %v4201_v57 = vmul.f32 1.442695, %v4199_v62  ;;  %v9062_v62 = vld [vmem:[%s9594_s1] sm:$0xff] }
0x4500   :  { %9967 = vst [vmem:[#allocation28_spill] sm:$0xff] %v9062_v62 }
0x4501   :  { %5600 = vpow2.f32 %v4201_v57 }
0x4507   :  { %v9057_v22 = vpop.eup %5600 }
0x4508   :  { %9966 = vst [vmem:[#allocation9_spill] sm:$0xff] %v9057_v22  ;;  %v4217_v9 = vmul.f32 %v9057_v22, %v4216_v48 }
0x450a   :  { %v4220_v59 = vmul.f32 %v9062_v62, %v4217_v9 }
0x450c   :  { %v4221_v6 = vsel %vm992_vm12, %v4220_v59, 0.0 }
0x450d   :  { %4222 = vadd.xlane.f32.xlu0 %v4221_v6 }
0x4580   :  { %v4223_v37 = vpop.xlane.xlu0 %4222 }
0x4581   :  { %v4224_v57 = vadd.f32 1e-12, %v4223_v37  ;;  %v9123_v37 = vld [vmem:[%s9596_s11 + $0x70] sm:$0xff] }
0x4583   :  { %5602 = vrcp.f32 %v4224_v57  ;;  %v4236_v0 = vand.u32 2147483648, %v4224_v57  ;;  %v4234_v9 = vand.u32 2147483647, %v4224_v57  ;;  %vm4230_vm6 = vweird.f32 %v4224_v57 }
0x4585   :  { %v4237_v62 = vor.u32 1.1754944e-38, %v4236_v0  ;;  %vm4235_vm9 = vcmp.eq.f32.partialorder %v4234_v9, 8.507059e+37  ;;  %v9152_v0 = vld [vmem:[%s9596_s11 + $0xc8] sm:$0xff]  ;;  %v9164_v9 = vld [vmem:[%s9596_s11 + $0xc0] sm:$0xff] }
0x4586   :  { %9975 = vst [vmem:[#allocation14_spill] sm:$0xff] %v9152_v0 }
0x4587   :  { %9976 = vst [vmem:[#allocation15_spill] sm:$0xff] %v9164_v9 }
0x4589   :  { %v5603_v32 = vpop.eup %5602 }
0x458a   :  { %v4226_v41 = vmul.f32 %v5603_v32, %v4224_v57  ;;  %vm4231_vm5 = vweird.f32 %v5603_v32  ;;  %v9128_v57 = vld [vmem:[%s9596_s11 + $0xd8] sm:$0xff] }
0x458b   :  { %vm4232_vm8 = vmor %vm4230_vm6, %vm4231_vm5  ;;  %9973 = vst [vmem:[#allocation36_spill] sm:$0xff] %v9128_v57 }
0x458c   :  { %v4227_v19 = vsub.f32 1.0, %v4226_v41  ;;  %v9140_v41 = vld [vmem:[%s9596_s11 + $0xd0] sm:$0xff] }
0x458d   :  { %9974 = vst [vmem:[#allocation37_spill] sm:$0xff] %v9140_v41 }
0x458e   :  { %v4228_v48 = vmul.f32 %v5603_v32, %v4227_v19  ;;  %v9145_v19 = vld [vmem:[%s9596_s11 + $0x60] sm:$0xff] }
0x4590   :  { %v4229_v6 = vadd.f32 %v5603_v32, %v4228_v48  ;;  %v9157_v48 = vld [vmem:[%s9596_s11 + $0x58] sm:$0xff] }
0x4592   :  { %v4233_v22 = vsel %vm4232_vm8, %v5603_v32, %v4229_v6  ;;  %v9133_v32 = vld [vmem:[%s9596_s11 + $0x68] sm:$0xff]  ;;  %v9169_v6 = vld [vmem:[%s9596_s11 + $0x50] sm:$0xff] }
0x4593   :  { %v4238_v20 = vsel %vm4235_vm9, %v4237_v62, %v4233_v22  ;;  %v9099_v22 = vld [vmem:[%s9596_s11 + $0xf0] sm:$0xff]  ;;  %v9111_v62 = vld [vmem:[%s9596_s11 + $0x78] sm:$0xff] }
0x4594   :  { %v9079_v17 = vmul.f32 %v4238_v20, %v4220_v59  ;;  %v9094_v20 = vld [vmem:[%s9596_s11 + $0xf8] sm:$0xff]  ;;  %9970 = vst [vmem:[#allocation33_spill] sm:$0xff] %v9099_v22  ;;  %v9116_v59 = vld [vmem:[%s9596_s11 + $0xe0] sm:$0xff]  ;;  %4321 = vmatpush.msrb.mxu3 %v9111_v62 }
0x4595   :  { %9969 = vst [vmem:[#allocation32_spill] sm:$0xff] %v9094_v20  ;;  %4341 = vmatpush.msra.mxu0 %v9094_v20  ;;  %v9249_v20 = vld [vmem:[%s9596_s11 + $0x88] sm:$0xff] }
0x4596   :  { %4468 = vperm.xlu0 %5350, %v9079_v17   ;;  %4448 = vperm.xlu2 %5347, %v9079_v17   ;;  %9972 = vst [vmem:[#allocation35_spill] sm:$0xff] %v9116_v59 }
0x4597   :  { %5203 = vmatmul.msk.f32.vlgmr.msra.gmra.mxu3 %vm992_vm12, %v9079_v17  ;;  %5204 = vmatmul.msk.f32.vlgmr.msrb.gmra.mxu0 %vm992_vm12, %v9079_v17  ;;  %9983 = vst [vmem:[#allocation23_spill] sm:$0xff] %v9249_v20 }
0x4598   :  { %4342 = vmatpush.msra.mxu0 %v9099_v22  ;;  %4322 = vmatpush.msrb.mxu3 %v9123_v37  ;;  %v9230_v22 = vld [vmem:[%s9596_s11 + $0x28] sm:$0xff] }
0x459a   :  { %4323 = vmatpush.msrb.mxu3 %v9133_v32 }
0x459c   :  { %4324 = vmatpush.msrb.mxu3 %v9145_v19 }
0x459e   :  { %5352 = vset.pattern.permute.xlu2 %v9917_v21  ;;  %5362 = vset.pattern.permute.xlu0 %v9917_v21  ;;  %v9106_v21 = vld [vmem:[%s9596_s11 + $0xe8] sm:$0xff] }
0x459f   :  { %4482 = vperm.xlu2 %5352, %v9079_v17   ;;  %9971 = vst [vmem:[#allocation34_spill] sm:$0xff] %v9106_v21  ;;  %4343 = vmatpush.msra.mxu0 %v9106_v21  ;;  %v9223_v21 = vld [vmem:[%s9596_s11 + $0x98] sm:$0xff] }
0x45a0   :  { %4325 = vmatpush.msrb.mxu3 %v9157_v48  ;;  %9981 = vst [vmem:[#allocation20_spill] sm:$0xff] %v9223_v21 }
0x45a1   :  { %4344 = vmatpush.msra.mxu0 %v9116_v59  ;;  %v9211_v59 = vld [vmem:[%s9596_s11 + $0xa0] sm:$0xff] }
0x45a2   :  { %4326 = vmatpush.msrb.mxu3 %v9169_v6  ;;  %9980 = vst [vmem:[#allocation39_spill] sm:$0xff] %v9211_v59 }
0x45a3   :  { %4345 = vmatpush.msra.mxu0 %v9128_v57  ;;  %v9194_v57 = vld [vmem:[%s9596_s11 + $0x40] sm:$0xff] }
0x45a5   :  { %4346 = vmatpush.msra.mxu0 %v9140_v41  ;;  %v9184_v41 = vld [vmem:[%s9596_s11 + $0x48] sm:$0xff] }
0x45a6   :  { %4327 = vmatpush.msrb.mxu3 %v9184_v41 }
0x45a7   :  { %5354 = vset.pattern.permute.xlu2 %v9880_v39  ;;  %4347 = vmatpush.msra.mxu0 %v9152_v0  ;;  %v9176_v39 = vld [vmem:[%s9596_s11 + $0xb8] sm:$0xff]  ;;  %v9189_v0 = vld [vmem:[%s9596_s11 + $0xb0] sm:$0xff] }
0x45a8   :  { %9977 = vst [vmem:[#allocation16_spill] sm:$0xff] %v9176_v39  ;;  %4328 = vmatpush.msrb.mxu3 %v9194_v57 }
0x45a9   :  { %4348 = vmatpush.msra.mxu0 %v9164_v9  ;;  %9978 = vst [vmem:[#allocation17_spill] sm:$0xff] %v9189_v0  ;;  %v9206_v9 = vld [vmem:[%s9596_s11 + $0x38] sm:$0xff] }
0x45aa   :  { %4329 = vmatpush.msrb.mxu3 %v9206_v9 }
0x45ab   :  { %4349 = vmatpush.msra.mxu0 %v9176_v39  ;;  %v9201_v39 = vld [vmem:[%s9596_s11 + $0xa8] sm:$0xff] }
0x45ac   :  { %9979 = vst [vmem:[#allocation38_spill] sm:$0xff] %v9201_v39 }
0x45ad   :  { %4350 = vmatpush.msra.mxu0 %v9189_v0  ;;  %v9218_v0 = vld [vmem:[%s9596_s11 + $0x30] sm:$0xff] }
0x45ae   :  { %4330 = vmatpush.msrb.mxu3 %v9218_v0 }
0x45af   :  { %4351 = vmatpush.msra.mxu0 %v9201_v39  ;;  %v9235_v39 = vld [vmem:[%s9596_s11 + $0x90] sm:$0xff] }
0x45b0   :  { %9982 = vst [vmem:[#allocation21_spill] sm:$0xff] %v9235_v39  ;;  %4331 = vmatpush.msrb.mxu3 %v9230_v22 }
0x45b1   :  { %4352 = vmatpush.msra.mxu0 %v9211_v59  ;;  %v9244_v59 = vld [vmem:[%s9596_s11 + $0x20] sm:$0xff] }
0x45b2   :  { %4332 = vmatpush.msrb.mxu3 %v9244_v59 }
0x45b3   :  { %4353 = vmatpush.msra.mxu0 %v9223_v21  ;;  %v9256_v21 = vld [vmem:[%s9596_s11 + $0x18] sm:$0xff] }
0x45b4   :  { %4333 = vmatpush.msrb.mxu3 %v9256_v21 }
0x45b5   :  { %4354 = vmatpush.msra.mxu0 %v9235_v39  ;;  %v9261_v39 = vld [vmem:[%s9596_s11 + $0x80] sm:$0xff] }
0x45b6   :  { %9984 = vst [vmem:[#allocation25_spill] sm:$0xff] %v9261_v39  ;;  %4334 = vmatpush.msrb.mxu3 %v9268_v27 }
0x45b7   :  { %4355 = vmatpush.msra.mxu0 %v9249_v20  ;;  %v9275_v20 = vld [vmem:[%s9596_s11 + $0x8] sm:$0xff] }
0x45b8   :  { %9985 = vst [vmem:[#allocation40_spill] sm:$0xff] %v9275_v20  ;;  %4335 = vmatpush.msrb.mxu3 %v9275_v20 }
0x45b9   :  { %4356 = vmatpush.msra.mxu0 %v9261_v39  ;;  %v9282_v39 = vld [vmem:[%s9596_s11] sm:$0xff] }
0x45ba   :  { %4336 = vmatpush.msrb.mxu3 %v9282_v39 }
0x45bb   :  { %4652 = vmatpush.msrb.mxu0 %v8801_v45 }
0x45bc   :  { %4632 = vmatpush.msra.mxu3 %v8806_v49  ;;  %v9365_v49 = vld [vmem:[%s9597_s6 + $0x28] sm:$0xff] }
0x45bd   :  { %4653 = vmatpush.msrb.mxu0 %v8811_v10 }
0x45be   :  { %4633 = vmatpush.msra.mxu3 %v8818_v18  ;;  %v9379_v18 = vld [vmem:[%s9597_s6 + $0x20] sm:$0xff] }
0x45bf   :  { %4654 = vmatpush.msrb.mxu0 %v8823_v29 }
0x45c0   :  { %4634 = vmatpush.msra.mxu3 %v8828_v36  ;;  %v9385_v36 = vld [vmem:[%s9597_s6 + $0x18] sm:$0xff] }
0x45c1   :  { %4655 = vmatpush.msrb.mxu0 %v8835_v12  ;;  %v9390_v12 = vld [vmem:[%s9597_s6 + $0x10] sm:$0xff] }
0x45c2   :  { %4635 = vmatpush.msra.mxu3 %v8840_v44  ;;  %v9396_v44 = vld [vmem:[%s9597_s6 + $0x8] sm:$0xff] }
0x4614   :  { %v4282_v45 = vpop.f32.mrf.mxu0 }
0x4615   :  { %v4288_v10 = vmul.f32 %v4282_v45, %v8676_v53  ;;  %v9451_v45 = vld [vmem:[%s9598_s2 + $0x20] sm:$0xff] }
0x4617   :  { %4357 = vmatmul.f32.vlgmr.msra.gmra.mxu0 %v4288_v10 }
0x4618   :  { %4718 = vmatpush.msra.mxu0 %v8864_v51  ;;  %v9986_v51 = vld [vmem:[#allocation19_spill] sm:$0xff] }
0x461a   :  { %v4262_v20 = vpop.f32.mrf.mxu3  ;;  %4719 = vmatpush.msra.mxu0 %v8875_v33  ;;  %v9987_v33 = vld [vmem:[#allocation40_spill] sm:$0xff] }
0x461b   :  { %v4287_v29 = vmul.f32 %v4262_v20, %v8673_v4 }
0x461c   :  { %4720 = vmatpush.msra.mxu0 %v8881_v38 }
0x461d   :  { %4337 = vmatmul.f32.vlgmr.msrb.gmra.mxu3 %v4287_v29  ;;  %v9992_v29 = vld [vmem:[#allocation31_spill] sm:$0xff] }
0x461e   :  { %4698 = vmatpush.msrb.mxu3 %v8853_v46  ;;  %4721 = vmatpush.msra.mxu0 %v8893_v43  ;;  %v9403_v46 = vld [vmem:[%s9597_s6] sm:$0xff] }
0x461f   :  { %v9988_v43 = vld [vmem:[#allocation26_spill] sm:$0xff] }
0x4620   :  { %4699 = vmatpush.msrb.mxu3 %v8858_v56  ;;  %4722 = vmatpush.msra.mxu0 %v8905_v55 }
0x4622   :  { %4700 = vmatpush.msrb.mxu3 %v8869_v25  ;;  %4723 = vmatpush.msra.mxu0 %v8917_v60 }
0x4624   :  { %4701 = vmatpush.msrb.mxu3 %v8886_v24  ;;  %4724 = vmatpush.msra.mxu0 %v8929_v13 }
0x4626   :  { %4702 = vmatpush.msrb.mxu3 %v8898_v47  ;;  %4725 = vmatpush.msra.mxu0 %v8941_v61 }
0x4628   :  { %4703 = vmatpush.msrb.mxu3 %v8910_v7  ;;  %4726 = vmatpush.msra.mxu0 %v8974_v42  ;;  %v9989_v42 = vmov 1  }
0x462a   :  { %4704 = vmatpush.msrb.mxu3 %v8922_v30  ;;  %4727 = vmatpush.msra.mxu0 %v8986_v23 }
0x462c   :  { %4705 = vmatpush.msrb.mxu3 %v8934_v63  ;;  %4728 = vmatpush.msra.mxu0 %v8998_v35 }
0x462e   :  { %4706 = vmatpush.msrb.mxu3 %v8946_v8  ;;  %4729 = vmatpush.msra.mxu0 %v9010_v16  ;;  %v9359_v16 = vld [vmem:[%s9597_s6 + $0x30] sm:$0xff] }
0x4630   :  { %4707 = vmatpush.msrb.mxu3 %v8953_v26  ;;  %4730 = vmatpush.msra.mxu0 %v9022_v40 }
0x4632   :  { %4708 = vmatpush.msrb.mxu3 %v8960_v11  ;;  %4731 = vmatpush.msra.mxu0 %v9029_v54  ;;  %v9329_v54 = vld [vmem:[%s9597_s6 + $0x58] sm:$0xff] }
0x4633   :  { %4388 = vmatpush.msra.mxu1 %v9329_v54 }
0x4634   :  { %4709 = vmatpush.msrb.mxu3 %v8969_v34  ;;  %4732 = vmatpush.msra.mxu0 %v9034_v52  ;;  %v9353_v52 = vld [vmem:[%s9597_s6 + $0x38] sm:$0xff] }
0x4636   :  { %4710 = vmatpush.msrb.mxu3 %v8981_v28  ;;  %4733 = vmatpush.msra.mxu0 %v9040_v50  ;;  %v9334_v50 = vld [vmem:[%s9597_s6 + $0x50] sm:$0xff]  ;;  %v4449_v28 = vpop.permute.xlu2 %4448 }
0x4637   :  { %4389 = vmatpush.msra.mxu1 %v9334_v50 }
0x4638   :  { %4711 = vmatpush.msrb.mxu3 %v8993_v31 }
0x463a   :  { %4712 = vmatpush.msrb.mxu3 %v9005_v14  ;;  %v9340_v14 = vld [vmem:[%s9597_s6 + $0x48] sm:$0xff] }
0x463b   :  { %4390 = vmatpush.msra.mxu1 %v9340_v14 }
0x463c   :  { %4713 = vmatpush.msrb.mxu3 %v9017_v15  ;;  %v9346_v15 = vld [vmem:[%s9597_s6 + $0x40] sm:$0xff] }
0x463d   :  { %4391 = vmatpush.msra.mxu1 %v9346_v15 }
0x463e   :  { %v4483_v23 = vpop.permute.xlu2 %4482 }
0x463f   :  { %4392 = vmatpush.msra.mxu1 %v9353_v52 }
0x4641   :  { %4393 = vmatpush.msra.mxu1 %v9359_v16 }
0x4643   :  { %4394 = vmatpush.msra.mxu1 %v9365_v49 }
0x4645   :  { %4395 = vmatpush.msra.mxu1 %v9379_v18 }
0x4647   :  { %4396 = vmatpush.msra.mxu1 %v9385_v36 }
0x4649   :  { %4397 = vmatpush.msra.mxu1 %v9390_v12 }
0x464b   :  { %4398 = vmatpush.msra.mxu1 %v9396_v44 }
0x464d   :  { %4399 = vmatpush.msra.mxu1 %v9403_v46 }
0x464f   :  { %4796 = vmatpush.msrb.mxu1 %v9070_v1 }
0x4694   :  { %v4358_v4 = vpop.f32.mrf.mxu0 }
0x46a0   :  { %v4338_v40 = vpop.f32.mrf.mxu3 }
0x46a1   :  { %v4359_v53 = vadd.f32 %v4358_v4, %v4338_v40 }
0x46a3   :  { %4363 = vrot.lane.b32.xlu1 %v4359_v53, %s5644_s17 }
0x46ab   :  { %4454 = vperm.xlu1 %5348, %v9079_v17  }
0x46b3   :  { %5349 = vset.pattern.permute.xlu1 %v9952_v2 }
0x46b4   :  { %4461 = vperm.xlu1 %5349, %v9079_v17  }
0x46bc   :  { %5351 = vset.pattern.permute.xlu1 %v9916_v3 }
0x46bd   :  { %4475 = vperm.xlu1 %5351, %v9079_v17  }
0x46c5   :  { %5353 = vset.pattern.permute.xlu1 %v9953_v5 }
0x46c6   :  { %4489 = vperm.xlu1 %5353, %v9079_v17  }
0x46ce   :  { %5355 = vset.pattern.permute.xlu1 %v9845_v58 }
0x4715   :  { %v9407_v56 = vpop.permute.xlu1 %4363 }
0x4716   :  { %4366 = vst.msk [vmem:[#allocation4] sm:$0xff] %vm185_vm14, %v9407_v56 }
0x4717   :  { %4367 = vst.msk [vmem:[#allocation4] sm:$0xff] %vm255_vm15, %v9986_v51 }
0x471e   :  { %v4368_v25 = vld [vmem:[#allocation4] sm:$0xff] }
0x471f   :  { %5205 = vmatmul.msk.f32.vlgmr.msra.gmra.mxu1 %vm796_vm7, %v4368_v25  ;;  %v5211_v25 = vld [vmem:[%s9598_s2 + $0x28] sm:$0xff] }
0x4720   :  { %4857 = vmatpush.msra.mxu1 %v9111_v62 }
0x4722   :  { %4858 = vmatpush.msra.mxu1 %v9123_v37  ;;  %v9443_v37 = vld [vmem:[%s9598_s2 + $0x10] sm:$0xff] }
0x4724   :  { %4859 = vmatpush.msra.mxu1 %v9133_v32 }
0x4726   :  { %4860 = vmatpush.msra.mxu1 %v9145_v19 }
0x4728   :  { %4861 = vmatpush.msra.mxu1 %v9157_v48 }
0x472a   :  { %4862 = vmatpush.msra.mxu1 %v9169_v6  ;;  %v4469_v6 = vpop.permute.xlu0 %4468 }
0x472b   :  { %v4471_v4 = vmul.f32 %v9992_v29, %v4469_v6  ;;  %v9996_v6 = vld [vmem:[#allocation24_spill] sm:$0xff]  ;;  %v9998_v29 = vld [vmem:[#allocation11_spill] sm:$0xff] }
0x472c   :  { %4863 = vmatpush.msra.mxu1 %v9184_v41  ;;  %v9991_v41 = vld [vmem:[#allocation29_spill] sm:$0xff] }
0x472d   :  { %v4451_v19 = vmul.f32 %v4449_v28, %v9991_v41  ;;  %v4544_v41 = vld [vmem:[%s9591_s5 + $0x48] sm:$0xff] }
0x472e   :  { %4864 = vmatpush.msra.mxu1 %v9194_v57  ;;  %4556 = vmatpush.msra.mxu2 %v4544_v41 }
0x4730   :  { %4865 = vmatpush.msra.mxu1 %v9206_v9 }
0x4732   :  { %4866 = vmatpush.msra.mxu1 %v9218_v0 }
0x4734   :  { %4867 = vmatpush.msra.mxu1 %v9230_v22  ;;  %v9990_v22 = vmov 0  }
0x4736   :  { %4868 = vmatpush.msra.mxu1 %v9244_v59  ;;  %v9438_v59 = vld [vmem:[%s9598_s2 + $0x8] sm:$0xff] }
0x4738   :  { %4869 = vmatpush.msra.mxu1 %v9256_v21 }
0x473a   :  { %4870 = vmatpush.msra.mxu1 %v9268_v27 }
0x473c   :  { %4871 = vmatpush.msra.mxu1 %v9987_v33 }
0x473e   :  { %4872 = vmatpush.msra.mxu1 %v9282_v39 }
0x479c   :  { %v4401_v38 = vpop.f32.mrf.mxu1 }
0x479d   :  { %v5206_v24 = vmul.f32 -1.442695, %v4401_v38  ;;  %v4423_v47 = vadd.f32 %v4401_v38, %v9988_v43 }
0x479f   :  { %5604 = vpow2.f32 %v5206_v24  ;;  %4424 = vmax.xlane.f32.xlu2 %v4423_v47  ;;  %v9461_v24 = vld [vmem:[%s9598_s2 + $0x30] sm:$0xff] }
0x47a5   :  { %v5605_v55 = vpop.eup %5604 }
0x47a6   :  { %v4407_v7 = vadd.f32 1.0, %v5605_v55 }
0x47a8   :  { %5606 = vrcp.f32 %v4407_v7  ;;  %v4419_v63 = vand.u32 2147483648, %v4407_v7  ;;  %v4417_v8 = vand.u32 2147483647, %v4407_v7  ;;  %vm4413_vm11 = vweird.f32 %v4407_v7 }
0x47aa   :  { %v4420_v39 = vor.u32 1.1754944e-38, %v4419_v63  ;;  %vm4418_vm0 = vcmp.eq.f32.partialorder %v4417_v8, 8.507059e+37 }
0x47ae   :  { %v5607_v60 = vpop.eup %5606 }
0x47af   :  { %v4409_v30 = vmul.f32 %v5607_v60, %v4407_v7  ;;  %vm4414_vm10 = vweird.f32 %v5607_v60 }
0x47b0   :  { %vm4415_vm13 = vmor %vm4413_vm11, %vm4414_vm10 }
0x47b1   :  { %v4410_v13 = vsub.f32 1.0, %v4409_v30 }
0x47b3   :  { %v4411_v61 = vmul.f32 %v5607_v60, %v4410_v13 }
0x47b5   :  { %v4412_v26 = vadd.f32 %v5607_v60, %v4411_v61 }
0x47b7   :  { %4496 = vperm.xlu2 %5354, %v9079_v17   ;;  %v4416_v11 = vsel %vm4415_vm13, %v5607_v60, %v4412_v26  ;;  %v4455_v17 = vpop.permute.xlu1 %4454  ;;  %v4485_v60 = vmul.f32 %v5211_v25, %v4483_v23  ;;  %v9993_v26 = vld [vmem:[#allocation18_spill] sm:$0xff] }
0x47b8   :  { %v4421_v34 = vsel %vm4418_vm0, %v4420_v39, %v4416_v11  ;;  %v4457_v57 = vmul.f32 %v9438_v59, %v4455_v17 }
0x47b9   :  { %4503 = vperm.xlu1 %5355, %v4421_v34   ;;  %v4507_v20 = vsub.f32 1.0, %v4421_v34 }
0x47ba   :  { %v4458_v9 = vadd.f32 %v4457_v57, %v4451_v19  ;;  %v9994_v57 = vld [vmem:[#allocation27_spill] sm:$0xff]  ;;  %v4542_v19 = vld [vmem:[%s9591_s5 + $0x38] sm:$0xff] }
0x47bf   :  { %5356 = vset.pattern.permute.xlu2 %v9845_v58  ;;  %v4462_v21 = vpop.permute.xlu1 %4461 }
0x47c0   :  { %v4464_v0 = vmul.f32 %v9443_v37, %v4462_v21 }
0x47c1   :  { %5358 = vset.pattern.permute.xlu1 %v9989_v42 }
0x47c2   :  { %v4465_v10 = vadd.f32 %v4464_v0, %v4458_v9  ;;  %v4541_v0 = vld [vmem:[%s9591_s5 + $0x30] sm:$0xff]  ;;  %v9995_v9 = vld [vmem:[#allocation22_spill] sm:$0xff] }
0x47c4   :  { %v4472_v33 = vadd.f32 %v4471_v4, %v4465_v10  ;;  %v9997_v10 = vld [vmem:[#allocation6_spill] sm:$0xff]  ;;  %v9999_v4 = vld [vmem:[#allocation12_spill] sm:$0xff] }
0x47c7   :  { %v4476_v32 = vpop.permute.xlu1 %4475 }
0x47c8   :  { %v4478_v40 = vmul.f32 %v9451_v45, %v4476_v32 }
0x47ca   :  { %v4479_v55 = vadd.f32 %v4478_v40, %v4472_v33  ;;  %v10000_v40 = vld [vmem:[#allocation30_spill] sm:$0xff] }
0x47cc   :  { %v4486_v8 = vadd.f32 %v4485_v60, %v4479_v55  ;;  %v10002_v60 = vmov 0.0  }
0x4812   :  { %v4425_v31 = vpop.xlane.xlu2 %4424 }
0x4813   :  { %v4426_v35 = vsub.f32 %v4423_v47, %v4425_v31  ;;  %v4490_v47 = vpop.permute.xlu1 %4489 }
0x4814   :  { %v4492_v13 = vmul.f32 %v9461_v24, %v4490_v47 }
0x4815   :  { %v4427_v1 = vmul.f32 1.442695, %v4426_v35 }
0x4816   :  { %v4493_v42 = vadd.f32 %v4492_v13, %v4486_v8  ;;  %v10005_v8 = vld [vmem:[#allocation34_spill] sm:$0xff] }
0x4817   :  { %5608 = vpow2.f32 %v4427_v1 }
0x481a   :  { %v4497_v62 = vpop.permute.xlu2 %4496 }
0x481b   :  { %v4499_v39 = vmul.f32 %v9993_v26, %v4497_v62  ;;  %v10006_v26 = vld [vmem:[#allocation35_spill] sm:$0xff] }
0x481d   :  { %v5609_v27 = vpop.eup %5608  ;;  %v4500_v23 = vadd.f32 %v4499_v39, %v4493_v42  ;;  %v10007_v39 = vld [vmem:[#allocation36_spill] sm:$0xff]  ;;  %v10012_v42 = vld [vmem:[#allocation17_spill] sm:$0xff] }
0x481e   :  { %4429 = vadd.xlane.f32.xlu2 %v5609_v27 }
0x4836   :  { %4510 = vperm.xlu2 %5356, %v4507_v20   ;;  %v4504_v20 = vpop.permute.xlu1 %4503 }
0x483e   :  { %5357 = vset.pattern.permute.xlu2 %v9990_v22 }
0x4891   :  { %v4430_v48 = vpop.xlane.xlu2 %4429 }
0x4892   :  { %5610 = vrcp.f32 %v4430_v48  ;;  %v4442_v30 = vand.u32 2147483648, %v4430_v48  ;;  %v4440_v61 = vand.u32 2147483647, %v4430_v48  ;;  %vm4436_vm2 = vweird.f32 %v4430_v48 }
0x4894   :  { %v4443_v34 = vor.u32 1.1754944e-38, %v4442_v30  ;;  %vm4441_vm6 = vcmp.eq.f32.partialorder %v4440_v61, 8.507059e+37  ;;  %v10004_v61 = vld [vmem:[#allocation33_spill] sm:$0xff] }
0x4898   :  { %v5611_v53 = vpop.eup %5610 }
0x4899   :  { %v4432_v38 = vmul.f32 %v5611_v53, %v4430_v48  ;;  %vm4437_vm1 = vweird.f32 %v5611_v53  ;;  %v4511_v35 = vpop.permute.xlu2 %4510  ;;  %v4540_v48 = vld [vmem:[%s9591_s5 + $0x28] sm:$0xff] }
0x489a   :  { %vm4438_vm5 = vmor %vm4436_vm2, %vm4437_vm1  ;;  %v4513_v17 = vmul.f32 %v4511_v35, %v4500_v23  ;;  %v10015_v35 = vld [vmem:[#allocation20_spill] sm:$0xff]  ;;  %v10017_v23 = vld [vmem:[#allocation23_spill] sm:$0xff] }
0x489b   :  { %v4433_v7 = vsub.f32 1.0, %v4432_v38 }
0x489d   :  { %v4434_v63 = vmul.f32 %v5611_v53, %v4433_v7  ;;  %v10001_v7 = vld [vmem:[#allocation5_spill] sm:$0xff] }
0x489f   :  { %v4435_v11 = vadd.f32 %v5611_v53, %v4434_v63  ;;  %v10003_v63 = vld [vmem:[#allocation32_spill] sm:$0xff] }
0x48a1   :  { %v4439_v28 = vsel %vm4438_vm5, %v5611_v53, %v4435_v11  ;;  %v10008_v11 = vld [vmem:[#allocation37_spill] sm:$0xff] }
0x48a2   :  { %v4444_v31 = vsel %vm4441_vm6, %v4443_v34, %v4439_v28  ;;  %v10011_v34 = vld [vmem:[#allocation16_spill] sm:$0xff]  ;;  %v10013_v28 = vld [vmem:[#allocation38_spill] sm:$0xff] }
0x48a3   :  { %v4445_v1 = vmul.f32 %v5609_v27, %v4444_v31  ;;  %v4543_v27 = vld [vmem:[%s9591_s5 + $0x40] sm:$0xff]  ;;  %v10014_v31 = vld [vmem:[#allocation39_spill] sm:$0xff] }
0x48a4   :  { %4557 = vmatpush.msra.mxu2 %v4543_v27 }
0x48a5   :  { %v4506_v22 = vmul.f32 %v4504_v20, %v4445_v1  ;;  %v10016_v1 = vld [vmem:[#allocation21_spill] sm:$0xff] }
0x48a6   :  { %4558 = vmatpush.msra.mxu2 %v4542_v19  ;;  %v10018_v20 = vld [vmem:[#allocation25_spill] sm:$0xff] }
0x48a7   :  { %v4514_v21 = vadd.f32 %v4513_v17, %v4506_v22 }
0x48a8   :  { %4559 = vmatpush.msra.mxu2 %v4541_v0 }
0x48a9   :  { %5214 = vst [vmem:[%s9599_s12 + $0x30] sm:$0xff] %v4514_v21  ;;  %4517 = vmax.xlane.f32.xlu1 %v4514_v21 }
0x48aa   :  { %4560 = vmatpush.msra.mxu2 %v4540_v48 }
0x48ac   :  { %4561 = vmatpush.msra.mxu2 %v9995_v9 }
0x48ae   :  { %4562 = vmatpush.msra.mxu2 %v9996_v6 }
0x48b0   :  { %4563 = vmatpush.msra.mxu2 %v9997_v10 }
0x48b2   :  { %4564 = vmatpush.msra.mxu2 %v9998_v29 }
0x48b4   :  { %4565 = vmatpush.msra.mxu2 %v9999_v4 }
0x48b6   :  { %4816 = vmatpush.msrb.mxu2 %v10000_v40 }
0x491c   :  { %v4518_v62 = vpop.xlane.xlu1 %4517 }
0x491d   :  { %vm4519_vm8 = vcmp.eq.f32.partialorder %v4514_v21, %v4518_v62 }
0x491e   :  { %v4520_v32 = vsel %vm4519_vm8, %v9994_v57, 128.0 }
0x491f   :  { %4521 = vmin.xlane.f32.xlu2 %v4520_v32 }
0x4992   :  { %v4522_v53 = vpop.xlane.xlu2 %4521 }
0x4993   :  { %vm5264_vm9 = vcmp.lt.s32.totalorder %v4522_v53, 0  ;;  %v5265_v25 = vceil.f32 %v4522_v53  ;;  %v5266_v33 = vfloor.f32 %v4522_v53 }
0x4995   :  { %v5267_v38 = vsel %vm5264_vm9, %v5265_v25, %v5266_v33  ;;  %v10019_v25 = vld [vmem:[#allocation13_spill] sm:$0xff] }
0x4996   :  { %v5268_v47 = vcvt.f32.s32 %v5267_v38 }
0x4998   :  { %5215 = vst.msk [vmem:[%s9600_s13 + $0x30] sm:$0xff] %vm1302_vm3, %v5268_v47  ;;  %vm4526_vm10 = vcmp.ge.s32.totalorder %v5268_v47, 32 }
0x4999   :  { %v4527_v55 = vsel %vm4526_vm10, 1, %v5268_v47 }
0x499a   :  { %vm4528_vm11 = vcmp.eq.s32.totalorder %v4527_v55, %v10001_v7 }
0x499b   :  { %v5216_v30 = vsel %vm4528_vm11, 1.0, %v10002_v60 }
0x499c   :  { %4531 = vst.msk [vmem:[#allocation4] sm:$0xff] %vm48_vm4, %v5216_v30 }
0x499d   :  { %4532 = vst.msk [vmem:[#allocation4] sm:$0xff] %vm185_vm14, %v9407_v56  ;;  %v10009_v56 = vld [vmem:[#allocation14_spill] sm:$0xff] }
0x499e   :  { %4533 = vst.msk [vmem:[#allocation4] sm:$0xff] %vm255_vm15, %v9986_v51  ;;  %v10010_v51 = vld [vmem:[#allocation15_spill] sm:$0xff] }
0x49a5   :  { %v4534_v13 = vld [vmem:[#allocation4] sm:$0xff] }
0x49a6   :  { %5217 = vmatmul.msk.f32.vlgmr.msra.gmra.mxu2 %vm796_vm7, %v4534_v13  ;;  %4897 = vst.msk [vmem:[#allocation4] sm:$0xff] %vm48_vm4, %v5216_v30 }
0x49a7   :  { %4877 = vmatpush.msra.mxu2 %v10003_v63 }
0x49a9   :  { %4878 = vmatpush.msra.mxu2 %v10004_v61 }
0x49ab   :  { %4879 = vmatpush.msra.mxu2 %v10005_v8 }
0x49ad   :  { %4880 = vmatpush.msra.mxu2 %v10006_v26 }
0x49af   :  { %4881 = vmatpush.msra.mxu2 %v10007_v39 }
0x49b1   :  { %4882 = vmatpush.msra.mxu2 %v10008_v11 }
0x49b3   :  { %4883 = vmatpush.msra.mxu2 %v10009_v56 }
0x49b5   :  { %4884 = vmatpush.msra.mxu2 %v10010_v51 }
0x49b7   :  { %4885 = vmatpush.msra.mxu2 %v10011_v34 }
0x49b9   :  { %4886 = vmatpush.msra.mxu2 %v10012_v42 }
0x49bb   :  { %4887 = vmatpush.msra.mxu2 %v10013_v28 }
0x49bd   :  { %4888 = vmatpush.msra.mxu2 %v10014_v31 }
0x49bf   :  { %4889 = vmatpush.msra.mxu2 %v10015_v35 }
0x49c1   :  { %4890 = vmatpush.msra.mxu2 %v10016_v1 }
0x49c3   :  { %4891 = vmatpush.msra.mxu2 %v10017_v23  ;;  %v10024_v23 = vld [vmem:[#allocation28_spill] sm:$0xff] }
0x49c5   :  { %4892 = vmatpush.msra.mxu2 %v10018_v20 }
0x4a29   :  { %v4567_v22 = vpop.f32.mrf.mxu2 }
0x4a2a   :  { %5612 = vtanh.f32 %v4567_v22  ;;  %v5218_v21 = vmul.f32 -1.442695, %v4567_v22 }
0x4a2c   :  { %5614 = vpow2.f32 %v5218_v21 }
0x4a30   :  { %v5613_v17 = vpop.eup %5612 }
0x4a31   :  { %4592 = vrot.lane.b32.xlu0 %v5613_v17, %s5644_s17 }
0x4a32   :  { %v5615_v62 = vpop.eup %5614 }
0x4a33   :  { %v4573_v32 = vadd.f32 1.0, %v5615_v62 }
0x4a35   :  { %5616 = vrcp.f32 %v4573_v32  ;;  %v4585_v9 = vand.u32 2147483648, %v4573_v32  ;;  %vm4579_vm0 = vweird.f32 %v4573_v32  ;;  %v4583_v6 = vand.u32 2147483647, %v4573_v32 }
0x4a37   :  { %v4586_v29 = vor.u32 1.1754944e-38, %v4585_v9  ;;  %vm4584_vm2 = vcmp.eq.f32.partialorder %v4583_v6, 8.507059e+37 }
0x4a3b   :  { %v5617_v41 = vpop.eup %5616 }
0x4a3c   :  { %v4575_v27 = vmul.f32 %v5617_v41, %v4573_v32  ;;  %vm4580_vm13 = vweird.f32 %v5617_v41 }
0x4a3d   :  { %vm4581_vm1 = vmor %vm4579_vm0, %vm4580_vm13 }
0x4a3e   :  { %v4576_v19 = vsub.f32 1.0, %v4575_v27 }
0x4a40   :  { %v4577_v0 = vmul.f32 %v5617_v41, %v4576_v19 }
0x4a42   :  { %v4578_v48 = vadd.f32 %v5617_v41, %v4577_v0 }
0x4a44   :  { %v4582_v10 = vsel %vm4581_vm1, %v5617_v41, %v4578_v48 }
0x4a45   :  { %v4587_v40 = vsel %vm4584_vm2, %v4586_v29, %v4582_v10 }
0x4a46   :  { %v4590_v33 = vmul.f32 %v4587_v40, %v10019_v25 }
0x4aa3   :  { %v4593_v4 = vpop.permute.xlu0 %4592 }
0x4aa4   :  { %v4595_v53 = vmul.f32 %v4593_v4, %v4587_v40  ;;  %v10025_v4 = vmov 3  }
0x4aa6   :  { %4597 = vrot.lane.b32.xlu0 %v4595_v53, %s5644_s17  ;;  %v4821_v53 = vld [vmem:[#allocation2] sm:$0xff] }
0x4b18   :  { %v4598_v38 = vpop.permute.xlu0 %4597 }
0x4b19   :  { %v4600_v47 = vadd.f32 %v4598_v38, %v4590_v33  ;;  %v4822_v38 = vld [vmem:[#allocation2 + $0x8] sm:$0xff] }
0x4b1b   :  { %5618 = vtanh.f32 %v4600_v47 }
0x4b21   :  { %v5619_v55 = vpop.eup %5618 }
0x4b22   :  { %4603 = vrot.lane.b32.xlu0 %v5619_v55, %s5644_s17 }
0x4b94   :  { %v4604_v7 = vpop.permute.xlu0 %4603 }
0x4b95   :  { %v9523_v60 = vmul.f32 %v4604_v7, %v4587_v40 }
0x4b97   :  { %4616 = vrot.lane.b32.xlu0 %v9523_v60, %s5645_s18 }
0x4c09   :  { %v4617_v30 = vpop.permute.xlu0 %4616 }
0x4c0a   :  { %5219 = vmatmul.msk.f32.vlgmr.msra.gmra.mxu3 %vm48_vm4, %v4617_v30  ;;  %5220 = vmatmul.msk.f32.vlgmr.msrb.gmra.mxu0 %vm48_vm4, %v4617_v30 }
0x4c0b   :  { %4924 = vmatpush.msra.mxu3 %v9329_v54 }
0x4c0d   :  { %4925 = vmatpush.msra.mxu3 %v9334_v50  ;;  %v10020_v50 = vld [vmem:[#allocation8_spill] sm:$0xff] }
0x4c0f   :  { %4926 = vmatpush.msra.mxu3 %v9340_v14 }
0x4c11   :  { %4927 = vmatpush.msra.mxu3 %v9346_v15 }
0x4c13   :  { %4928 = vmatpush.msra.mxu3 %v9353_v52  ;;  %v10021_v52 = vld [vmem:[#allocation7_spill] sm:$0xff] }
0x4c15   :  { %4929 = vmatpush.msra.mxu3 %v9359_v16 }
0x4c17   :  { %4930 = vmatpush.msra.mxu3 %v9365_v49 }
0x4c19   :  { %4931 = vmatpush.msra.mxu3 %v9379_v18  ;;  %v10022_v18 = vld [vmem:[#allocation10_spill] sm:$0xff] }
0x4c1b   :  { %4932 = vmatpush.msra.mxu3 %v9385_v36  ;;  %v10023_v36 = vld [vmem:[#allocation9_spill] sm:$0xff] }
0x4c1c   :  { %v4218_v63 = vadd.f32 %v10023_v36, %v10022_v18 }
0x4c1d   :  { %4933 = vmatpush.msra.mxu3 %v9390_v12 }
0x4c1e   :  { %v4751_v51 = vand.u32 2147483648, %v4218_v63  ;;  %vm4745_vm5 = vweird.f32 %v4218_v63  ;;  %v4749_v34 = vand.u32 2147483647, %v4218_v63 }
0x4c1f   :  { %4934 = vmatpush.msra.mxu3 %v9396_v44 }
0x4c20   :  { %v4752_v28 = vor.u32 1.1754944e-38, %v4751_v51  ;;  %vm4750_vm8 = vcmp.eq.f32.partialorder %v4749_v34, 8.507059e+37 }
0x4c21   :  { %4935 = vmatpush.msra.mxu3 %v9403_v46 }
0x4c87   :  { %v4657_v54 = vpop.f32.mrf.mxu0 }
0x4c88   :  { %v4663_v14 = vadd.f32 %v4657_v54, %v10020_v50 }
0x4c8a   :  { %5620 = vtanh.f32 %v4663_v14 }
0x4c8d   :  { %v4637_v15 = vpop.f32.mrf.mxu3 }
0x4c8e   :  { %v4662_v13 = vadd.f32 %v4637_v15, %v10021_v52 }
0x4c90   :  { %v5621_v16 = vpop.eup %5620  ;;  %5622 = vtanh.f32 %v4662_v13 }
0x4c91   :  { %4734 = vmatmul.f32.vlgmr.msra.gmra.mxu0 %v5621_v16  ;;  %5624 = vrcp.f32 %v4218_v63 }
0x4c96   :  { %v5623_v49 = vpop.eup %5622 }
0x4c97   :  { %4714 = vmatmul.f32.vlgmr.msrb.gmra.mxu3 %v5623_v49  ;;  %v5625_v12 = vpop.eup %5624 }
0x4c98   :  { %v4741_v44 = vmul.f32 %v5625_v12, %v4218_v63  ;;  %vm4746_vm4 = vweird.f32 %v5625_v12 }
0x4c99   :  { %vm4747_vm6 = vmor %vm4745_vm5, %vm4746_vm4 }
0x4c9a   :  { %v4742_v61 = vsub.f32 1.0, %v4741_v44 }
0x4c9c   :  { %v4743_v26 = vmul.f32 %v5625_v12, %v4742_v61 }
0x4c9e   :  { %v4744_v56 = vadd.f32 %v5625_v12, %v4743_v26 }
0x4ca0   :  { %v4748_v42 = vsel %vm4747_vm6, %v5625_v12, %v4744_v56 }
0x4ca1   :  { %v4753_v35 = vsel %vm4750_vm8, %v4752_v28, %v4748_v42  ;;  %v4982_v28 = vld [vmem:[%s9598_s2] sm:$0xff] }
0x4d0e   :  { %v4735_v46 = vpop.f32.mrf.mxu0 }
0x4d1a   :  { %v4715_v8 = vpop.f32.mrf.mxu3 }
0x4d1b   :  { %v4736_v39 = vadd.f32 %v4735_v46, %v4715_v8 }
0x4d1d   :  { %v4738_v11 = vmul.f32 1.442695, %v4736_v39 }
0x4d1f   :  { %5626 = vpow2.f32 %v4738_v11 }
0x4d25   :  { %v5627_v31 = vpop.eup %5626 }
0x4d26   :  { %v4754_v1 = vmul.f32 %v5627_v31, %v4753_v35 }
0x4d28   :  { %v4756_v20 = vmul.f32 %v4754_v1, %v10024_v23  ;;  %v5227_v23 = vld [vmem:[%s9598_s2 + $0x18] sm:$0xff] }
0x4d2a   :  { %v4757_v22 = vsel %vm992_vm12, %v4756_v20, 0.0 }
0x4d2b   :  { %4758 = vadd.xlane.f32.xlu2 %v4757_v22 }
0x4d9e   :  { %v4759_v17 = vpop.xlane.xlu2 %4758 }
0x4d9f   :  { %v4760_v21 = vadd.f32 1e-12, %v4759_v17 }
0x4da1   :  { %5628 = vrcp.f32 %v4760_v21  ;;  %v4772_v27 = vand.u32 2147483648, %v4760_v21  ;;  %v4770_v0 = vand.u32 2147483647, %v4760_v21  ;;  %vm4766_vm10 = vweird.f32 %v4760_v21 }
0x4da3   :  { %v4773_v9 = vor.u32 1.1754944e-38, %v4772_v27  ;;  %vm4771_vm13 = vcmp.eq.f32.partialorder %v4770_v0, 8.507059e+37 }
0x4da7   :  { %v5629_v62 = vpop.eup %5628 }
0x4da8   :  { %v4762_v32 = vmul.f32 %v5629_v62, %v4760_v21  ;;  %vm4767_vm9 = vweird.f32 %v5629_v62  ;;  %v5229_v21 = vld [vmem:[%s9598_s2 + $0x28] sm:$0xff] }
0x4da9   :  { %vm4768_vm11 = vmor %vm4766_vm10, %vm4767_vm9 }
0x4daa   :  { %v4763_v41 = vsub.f32 1.0, %v4762_v32 }
0x4dac   :  { %v4764_v19 = vmul.f32 %v5629_v62, %v4763_v41 }
0x4dae   :  { %v4765_v48 = vadd.f32 %v5629_v62, %v4764_v19 }
0x4db0   :  { %v4769_v6 = vsel %vm4768_vm11, %v5629_v62, %v4765_v48 }
0x4db1   :  { %v4774_v10 = vsel %vm4771_vm13, %v4773_v9, %v4769_v6 }
0x4db2   :  { %v4775_v29 = vmul.f32 %v4774_v10, %v4756_v20 }
0x4db4   :  { %4984 = vperm.xlu2 %5357, %v4775_v29   ;;  %5221 = vmatmul.msk.f32.vlgmr.msrb.gmra.mxu1 %vm992_vm12, %v4775_v29 }
0x4db5   :  { %5222 = vmatmul.msk.f32.vlgmr.msrb.gmra.mxu2 %vm992_vm12, %v4775_v29 }
0x4dbc   :  { %5360 = vset.pattern.permute.xlu2 %v10025_v4 }
0x4dbd   :  { %5004 = vperm.xlu2 %5360, %v4775_v29  }
0x4dc5   :  { %5363 = vset.pattern.permute.xlu2 %v9953_v5  ;;  %v10026_v5 = vmov 7  }
0x4dc6   :  { %5025 = vperm.xlu2 %5363, %v4775_v29  }
0x4dce   :  { %5365 = vset.pattern.permute.xlu2 %v9845_v58 }
0x4e0e   :  { %v4985_v11 = vpop.permute.xlu2 %4984 }
0x4e0f   :  { %v4987_v35 = vmul.f32 %v4985_v11, %v4982_v28 }
0x4e17   :  { %v5005_v51 = vpop.permute.xlu2 %5004 }
0x4e18   :  { %v5007_v32 = vmul.f32 %v5227_v23, %v5005_v51 }
0x4e20   :  { %v5026_v42 = vpop.permute.xlu2 %5025 }
0x4e21   :  { %v5028_v6 = vmul.f32 %v9461_v24, %v5026_v42 }
0x4e31   :  { %v4798_v40 = vpop.f32.mrf.mxu1 }
0x4e32   :  { %v4823_v25 = vmul.f32 %v4821_v53, %v4798_v40 }
0x4e34   :  { %4873 = vmatmul.f32.vlgmr.msra.gmra.mxu1 %v4823_v25 }
0x4e38   :  { %v4818_v33 = vpop.f32.mrf.mxu2 }
0x4e39   :  { %v4824_v47 = vmul.f32 %v4822_v38, %v4818_v33 }
0x4e3b   :  { %4893 = vmatmul.f32.vlgmr.msra.gmra.mxu2 %v4824_v47 }
0x4eb1   :  { %v4874_v55 = vpop.f32.mrf.mxu1 }
0x4ebe   :  { %v4894_v7 = vpop.f32.mrf.mxu2 }
0x4ebf   :  { %v4895_v30 = vadd.f32 %v4894_v7, %v4874_v55 }
0x4ec1   :  { %4899 = vrot.lane.b32.xlu1 %v4895_v30, %s5644_s17 }
0x4ec9   :  { %4990 = vperm.xlu1 %5358, %v4775_v29  }
0x4ed1   :  { %5359 = vset.pattern.permute.xlu1 %v9952_v2 }
0x4ed2   :  { %4997 = vperm.xlu1 %5359, %v4775_v29  }
0x4eda   :  { %5361 = vset.pattern.permute.xlu1 %v9916_v3 }
0x4edb   :  { %5011 = vperm.xlu1 %5361, %v4775_v29  }
0x4ee3   :  { %5364 = vset.pattern.permute.xlu1 %v10026_v5 }
0x4ee4   :  { %5032 = vperm.xlu1 %5364, %v4775_v29  }
0x4eec   :  { %5366 = vset.pattern.permute.xlu1 %v9845_v58 }
0x4f33   :  { %v4900_v54 = vpop.permute.xlu1 %4899 }
0x4f34   :  { %4902 = vst.msk [vmem:[#allocation4] sm:$0xff] %vm185_vm14, %v4900_v54 }
0x4f35   :  { %4903 = vst.msk [vmem:[#allocation4] sm:$0xff] %vm255_vm15, %v9523_v60 }
0x4f3b   :  { %v4991_v56 = vpop.permute.xlu1 %4990 }
0x4f3c   :  { %v4904_v50 = vld [vmem:[#allocation4] sm:$0xff]  ;;  %v4993_v31 = vmul.f32 %v9438_v59, %v4991_v56 }
0x4f3d   :  { %5223 = vmatmul.msk.f32.vlgmr.msra.gmra.mxu3 %vm796_vm7, %v4904_v50 }
0x4f3e   :  { %v4994_v1 = vadd.f32 %v4993_v31, %v4987_v35 }
0x4f44   :  { %v4998_v34 = vpop.permute.xlu1 %4997 }
0x4f4d   :  { %v5012_v20 = vpop.permute.xlu1 %5011 }
0x4f4e   :  { %v5014_v59 = vmul.f32 %v9451_v45, %v5012_v20 }
0x4f56   :  { %v5033_v9 = vpop.permute.xlu1 %5032 }
0x4fc0   :  { %v4937_v14 = vpop.f32.mrf.mxu3 }
0x4fc1   :  { %v5224_v2 = vmul.f32 -1.442695, %v4937_v14  ;;  %v4959_v15 = vadd.f32 %v4937_v14, %v9988_v43 }
0x4fc3   :  { %5630 = vpow2.f32 %v5224_v2  ;;  %4960 = vmax.xlane.f32.xlu0 %v4959_v15 }
0x4fc9   :  { %v5631_v3 = vpop.eup %5630 }
0x4fca   :  { %v4943_v52 = vadd.f32 1.0, %v5631_v3 }
0x4fcc   :  { %5632 = vrcp.f32 %v4943_v52  ;;  %v4955_v18 = vand.u32 2147483648, %v4943_v52  ;;  %v4953_v60 = vand.u32 2147483647, %v4943_v52  ;;  %vm4949_vm15 = vweird.f32 %v4943_v52 }
0x4fce   :  { %v4956_v12 = vor.u32 1.1754944e-38, %v4955_v18  ;;  %vm4954_vm12 = vcmp.eq.f32.partialorder %v4953_v60, 8.507059e+37 }
0x4fd2   :  { %v5633_v13 = vpop.eup %5632 }
0x4fd3   :  { %v4945_v16 = vmul.f32 %v5633_v13, %v4943_v52  ;;  %vm4950_vm14 = vweird.f32 %v5633_v13 }
0x4fd4   :  { %vm4951_vm7 = vmor %vm4949_vm15, %vm4950_vm14 }
0x4fd5   :  { %v4946_v49 = vsub.f32 1.0, %v4945_v16 }
0x4fd7   :  { %5018 = vperm.xlu0 %5362, %v4775_v29   ;;  %v4947_v36 = vmul.f32 %v5633_v13, %v4946_v49  ;;  %v5231_v29 = vld [vmem:[%s9598_s2 + $0x38] sm:$0xff] }
0x4fd8   :  { %v5035_v45 = vmul.f32 %v5231_v29, %v5033_v9 }
0x4fd9   :  { %v4948_v63 = vadd.f32 %v5633_v13, %v4947_v36 }
0x4fdb   :  { %v4952_v44 = vsel %vm4951_vm7, %v5633_v13, %v4948_v63 }
0x4fdc   :  { %v4957_v43 = vsel %vm4954_vm12, %v4956_v12, %v4952_v44 }
0x4fdd   :  { %v5043_v61 = vsub.f32 1.0, %v4957_v43 }
0x4fdf   :  { %5046 = vperm.xlu1 %5366, %v5043_v61   ;;  %5367 = vset.pattern.permute.xlu0 %v9845_v58  ;;  %v5000_v58 = vmul.f32 %v9443_v37, %v4998_v34 }
0x4fe1   :  { %v5001_v22 = vadd.f32 %v5000_v58, %v4994_v1 }
0x4fe3   :  { %v5008_v41 = vadd.f32 %v5007_v32, %v5001_v22 }
0x4fe5   :  { %v5015_v37 = vadd.f32 %v5014_v59, %v5008_v41 }
0x5036   :  { %v4961_v46 = vpop.xlane.xlu0 %4960 }
0x5037   :  { %v4962_v8 = vsub.f32 %v4959_v15, %v4961_v46 }
0x5039   :  { %v4963_v26 = vmul.f32 1.442695, %v4962_v8 }
0x503b   :  { %5634 = vpow2.f32 %v4963_v26 }
0x5041   :  { %v5635_v39 = vpop.eup %5634 }
0x5042   :  { %4965 = vadd.xlane.f32.xlu2 %v5635_v39 }
0x5049   :  { %v5019_v62 = vpop.permute.xlu0 %5018 }
0x504a   :  { %v5021_v27 = vmul.f32 %v5229_v21, %v5019_v62 }
0x504c   :  { %v5022_v0 = vadd.f32 %v5021_v27, %v5015_v37 }
0x504e   :  { %v5029_v40 = vadd.f32 %v5028_v6, %v5022_v0 }
0x5050   :  { %v5036_v47 = vadd.f32 %v5035_v45, %v5029_v40 }
0x5051   :  { %v5047_v7 = vpop.permute.xlu1 %5046 }
0x5052   :  { %v5049_v54 = vmul.f32 %v5047_v7, %v5036_v47 }
0x505a   :  { %5039 = vperm.xlu2 %5365, %v4957_v43  }
0x50b5   :  { %v4966_v17 = vpop.xlane.xlu2 %4965 }
0x50b6   :  { %5636 = vrcp.f32 %v4966_v17  ;;  %v4978_v4 = vand.u32 2147483648, %v4966_v17  ;;  %v4976_v25 = vand.u32 2147483647, %v4966_v17  ;;  %vm4972_vm1 = vweird.f32 %v4966_v17 }
0x50b8   :  { %v4979_v38 = vor.u32 1.1754944e-38, %v4978_v4  ;;  %vm4977_vm4 = vcmp.eq.f32.partialorder %v4976_v25, 8.507059e+37 }
0x50bc   :  { %v5637_v19 = vpop.eup %5636 }
0x50bd   :  { %v4968_v48 = vmul.f32 %v5637_v19, %v4966_v17  ;;  %vm4973_vm0 = vweird.f32 %v5637_v19  ;;  %v5040_v5 = vpop.permute.xlu2 %5039 }
0x50be   :  { %vm4974_vm2 = vmor %vm4972_vm1, %vm4973_vm0 }
0x50bf   :  { %v4969_v10 = vsub.f32 1.0, %v4968_v48 }
0x50c1   :  { %v4970_v53 = vmul.f32 %v5637_v19, %v4969_v10 }
0x50c3   :  { %v4971_v33 = vadd.f32 %v5637_v19, %v4970_v53 }
0x50c5   :  { %v4975_v55 = vsel %vm4974_vm2, %v5637_v19, %v4971_v33 }
0x50c6   :  { %v4980_v24 = vsel %vm4977_vm4, %v4979_v38, %v4975_v55 }
0x50c7   :  { %v4981_v30 = vmul.f32 %v5635_v39, %v4980_v24 }
0x50c9   :  { %v5042_v50 = vmul.f32 %v5040_v5, %v4981_v30 }
0x50cb   :  { %v5050_v14 = vadd.f32 %v5049_v54, %v5042_v50 }
0x50cd   :  { %5232 = vst [vmem:[%s9599_s12 + $0x38] sm:$0xff] %v5050_v14  ;;  %5053 = vmax.xlane.f32.xlu2 %v5050_v14 }
0x5140   :  { %v5054_v2 = vpop.xlane.xlu2 %5053 }
0x5141   :  { %vm5055_vm5 = vcmp.eq.f32.partialorder %v5050_v14, %v5054_v2 }
0x5142   :  { %v5056_v15 = vsel %vm5055_vm5, %v9994_v57, 128.0 }
0x5143   :  { %5057 = vmin.xlane.f32.xlu1 %v5056_v15 }
0x51b6   :  { %v5058_v3 = vpop.xlane.xlu1 %5057 }
0x51b7   :  { %vm5269_vm6 = vcmp.lt.s32.totalorder %v5058_v3, 0  ;;  %v5270_v52 = vceil.f32 %v5058_v3  ;;  %v5271_v13 = vfloor.f32 %v5058_v3 }
0x51b9   :  { %v5272_v16 = vsel %vm5269_vm6, %v5270_v52, %v5271_v13 }
0x51ba   :  { %v5273_v49 = vcvt.f32.s32 %v5272_v16 }
0x51bc   :  { %5233 = vst.msk [vmem:[%s9600_s13 + $0x38] sm:$0xff] %vm1302_vm3, %v5273_v49 }

</bundles_post_ra>
